<compile_context>
chip_gen: v7x
topology: tpu7x:2x2x1
jax: 0.10.0
libtpu: 0.0.40
codegen_flags: <defaults>
</compile_context>

<pallas_src>
import jax
import jax.numpy as jnp
from jax import lax
from jax.experimental import pallas as pl
from jax.experimental.pallas import tpu as pltpu


# ----------------------------- fused Pallas kernel --------------------------

def _make_kernel(n_batch):
    n = n_batch
    BLK1 = 144 * n         # rows per pool1 window position (12*12 spatial * n)
    GUARD = 4 * n          # zero guard rows read by conv2's largest shift
    W2_ROWS = 96 * n       # conv2 "wide" rows: 8 (oh) * 12 (wide ow) * n
    Q2_BLK = 12 * n        # one output-height row group (12 wide ow * n)

    def kernel(p_ref, w1_ref, b1_ref, w2_ref, b2_ref,
               wf1_ref, bf1_ref, wf2_ref, bf2_ref,
               out_ref, p1p_s, h2w_s, q2_s):
        # ---- conv1 + pool1 (fused, batched over the whole batch) ----------
        # Patch rows are ordered t-major (t = 2x2 pooling-window position), so
        # the max pool is a running max over 4 shifted matmuls.
        p1p_s[0:BLK1, :] = jnp.dot(p_ref[0:BLK1, :], w1_ref[...],
                                   preferred_element_type=jnp.float32)
        for t in range(1, 4):
            p1p_s[0:BLK1, :] = jnp.maximum(
                p1p_s[0:BLK1, :],
                jnp.dot(p_ref[t * BLK1:(t + 1) * BLK1, :], w1_ref[...],
                        preferred_element_type=jnp.float32))
        # per-channel bias commutes with max -> add once after pooling
        p1p_s[0:BLK1, :] = p1p_s[0:BLK1, :] + b1_ref[...]
        # zero the guard rows touched by conv2's shifted reads
        p1p_s[BLK1:BLK1 + GUARD, :] = jnp.zeros((GUARD, 128), jnp.float32)

        # ---- conv2: 25 shifted batched matmuls, f32 accumulation ----------
        # pooled1 rows are spatial-major ((ih*12+iw)*n + img); conv2 "wide"
        # output row (oh*12+ow)*n + img reads pooled1 rows shifted by
        # (kh*12+kw)*n, so each kernel tap is ONE contiguous slice covering
        # the whole batch.  Columns ow>=8 are junk and discarded by pool2.
        for idx in range(25):
            kh, kw = idx // 5, idx % 5
            start = (kh * 12 + kw) * n
            lhs = p1p_s[start:start + W2_ROWS, :].astype(jnp.bfloat16)
            contrib = jnp.dot(lhs, w2_ref[idx],
                              preferred_element_type=jnp.float32)
            if idx == 0:
                h2w_s[...] = contrib
            else:
                h2w_s[...] = h2w_s[...] + contrib

        # ---- pool2, height direction (batched block maxes) ----------------
        for i in range(4):
            top = h2w_s[(2 * i) * Q2_BLK:(2 * i + 1) * Q2_BLK, :]
            bot = h2w_s[(2 * i + 1) * Q2_BLK:(2 * i + 2) * Q2_BLK, :]
            q2_s[i * Q2_BLK:(i + 1) * Q2_BLK, :] = jnp.maximum(top, bot)

        # ---- pool2 width + fc1 + relu + fc2 + softmax (fully batched) -----
        vs = []
        for i in range(4):          # pooled height
            for j in range(4):      # pooled width
                r0 = (i * 12 + 2 * j) * n
                v = jnp.maximum(q2_s[r0:r0 + n, :],
                                q2_s[r0 + n:r0 + 2 * n, :]) + b2_ref[...]
                vs.append(v)
        # (n, 16*128) lane-concatenated pooled features -> single fc1 matmul
        lhs_wide = jnp.concatenate(vs, axis=1).astype(jnp.bfloat16)
        y = jnp.dot(lhs_wide, wf1_ref[...],
                    preferred_element_type=jnp.float32) + bf1_ref[...]
        h = jnp.maximum(y, 0.0).astype(jnp.bfloat16)                  # (n,512)
        logits = jnp.dot(h, wf2_ref[...],
                         preferred_element_type=jnp.float32) + bf2_ref[...]
        m = jnp.max(logits, axis=-1, keepdims=True)
        e = jnp.exp(logits - m)
        out_ref[...] = e / jnp.sum(e, axis=-1, keepdims=True)

    return kernel


# ----------------------------- JAX-side glue --------------------------------

def _conv1_patches(x):
    """im2col for conv1 only (tiny input), rows ordered so that
    row = t*144*N + (i*12+j)*N + img  with t = dy*2+dx, pooled pos (i,j):
      * the 4 pool-window positions t are 4 contiguous 144*N-row blocks
      * within each block rows are spatial-major and batch-minor, matching the
        layouts used by every later stage of the kernel.
    Column k = kh*5 + kw, zero-padded to 128 lanes, cast to bf16."""
    n = x.shape[0]
    xs = x[:, 0]                                        # (N, 28, 28)
    cols = [xs[:, kh:kh + 24, kw:kw + 24]
            for kh in range(5) for kw in range(5)]      # 25 x (N,24,24)
    p = jnp.stack(cols, axis=-1)                        # (N, 24, 24, 25)
    p = p.reshape(n, 12, 2, 12, 2, 25)                  # (n, i, dy, j, dx, k)
    p = p.transpose(2, 4, 1, 3, 0, 5)                   # (dy, dx, i, j, n, k)
    p = p.reshape(4 * 144 * n, 25)
    p = jnp.pad(p, ((0, 0), (0, 128 - 25)))
    return p.astype(jnp.bfloat16)


def prepare_params(params):
    """One-time weight pre-formatting: permute to the in-kernel layouts,
    zero-pad to (8,128)-aligned shapes, cast the big matrices to bf16."""
    f32, bf16 = jnp.float32, jnp.bfloat16
    # conv1: (20,1,5,5) -> (K=128, OC=128), rows ordered kh*5+kw
    w1 = params["conv1_w"].reshape(20, 25).T
    w1p = jnp.zeros((128, 128), f32).at[:25, :20].set(w1).astype(bf16)
    b1p = jnp.zeros((1, 128), f32).at[0, :20].set(params["conv1_b"])
    # conv2: (50,20,5,5) -> (25, C=128, OC=128) per kernel position
    w2 = params["conv2_w"].transpose(2, 3, 1, 0).reshape(25, 20, 50)
    w2p = jnp.zeros((25, 128, 128), f32).at[:, :20, :50].set(w2).astype(bf16)
    b2p = jnp.zeros((1, 128), f32).at[0, :50].set(params["conv2_b"])
    # fc1: (500,800), torch flatten order (c,h,w) -> wide (16*128, 512) where
    # wide row = (h*4+w)*128 + c  (matches the in-kernel lane concatenation)
    wf1 = params["fc1_w"].reshape(500, 50, 4, 4).transpose(2, 3, 1, 0)
    wf1 = wf1.reshape(16, 50, 500)
    wf1p = jnp.zeros((16, 128, 512), f32).at[:, :50, :500].set(wf1)
    wf1p = wf1p.reshape(16 * 128, 512).astype(bf16)
    bf1p = jnp.zeros((1, 512), f32).at[0, :500].set(params["fc1_b"])
    # fc2: (10,500) -> (512,128); padded logit lanes get a -1e30 bias so they
    # contribute nothing to the softmax denominator.
    wf2p = jnp.zeros((512, 128), f32).at[:500, :10].set(
        params["fc2_w"].T).astype(bf16)
    bf2p = jnp.full((1, 128), -1e30, f32).at[0, :10].set(params["fc2_b"])
    return dict(w1=w1p, b1=b1p, w2=w2p, b2=b2p,
                wf1=wf1p, bf1=bf1p, wf2=wf2p, bf2=bf2p)


def net_forward(prep, x):
    n = x.shape[0]
    patches = _conv1_patches(x)                          # (4*144*n, 128) bf16
    out = pl.pallas_call(
        _make_kernel(n),
        out_shape=jax.ShapeDtypeStruct((n, 128), jnp.float32),
        in_specs=[pl.BlockSpec(memory_space=pltpu.MemorySpace.VMEM)] * 9,
        out_specs=pl.BlockSpec(memory_space=pltpu.MemorySpace.VMEM),
        scratch_shapes=[
            pltpu.VMEM((148 * n, 128), jnp.float32),   # pooled1 (+guard rows)
            pltpu.VMEM((96 * n, 128), jnp.float32),    # conv2 "wide" output
            pltpu.VMEM((48 * n, 128), jnp.float32),    # pool2 (height step)
        ],
        compiler_params=pltpu.CompilerParams(
            vmem_limit_bytes=32 * 1024 * 1024),
    )(patches, prep["w1"], prep["b1"], prep["w2"], prep["b2"],
      prep["wf1"], prep["bf1"], prep["wf2"], prep["bf2"])
    return out[:, :10]


# ----------------------------- reference & setup ----------------------------

def reference_forward(params, x):
    dn = ("NCHW", "OIHW", "NCHW")
    y = lax.conv_general_dilated(x, params["conv1_w"], (1, 1), "VALID",
                                 dimension_numbers=dn)
    y = y + params["conv1_b"][None, :, None, None]
    y = lax.reduce_window(y, -jnp.inf, lax.max, (1, 1, 2, 2), (1, 1, 2, 2),
                          "VALID")
    y = lax.conv_general_dilated(y, params["conv2_w"], (1, 1), "VALID",
                                 dimension_numbers=dn)
    y = y + params["conv2_b"][None, :, None, None]
    y = lax.reduce_window(y, -jnp.inf, lax.max, (1, 1, 2, 2), (1, 1, 2, 2),
                          "VALID")
    y = y.reshape(y.shape[0], -1)
    y = jnp.maximum(y @ params["fc1_w"].T + params["fc1_b"], 0.0)
    y = y @ params["fc2_w"].T + params["fc2_b"]
    return jax.nn.softmax(y, axis=-1)


def init_params(key):
    ks = jax.random.split(key, 8)
    scale = 0.05
    return {
        "conv1_w": scale * jax.random.normal(ks[0], (20, 1, 5, 5), jnp.float32),
        "conv1_b": scale * jax.random.normal(ks[1], (20,), jnp.float32),
        "conv2_w": scale * jax.random.normal(ks[2], (50, 20, 5, 5), jnp.float32),
        "conv2_b": scale * jax.random.normal(ks[3], (50,), jnp.float32),
        "fc1_w": scale * jax.random.normal(ks[4], (500, 800), jnp.float32),
        "fc1_b": scale * jax.random.normal(ks[5], (500,), jnp.float32),
        "fc2_w": scale * jax.random.normal(ks[6], (10, 500), jnp.float32),
        "fc2_b": scale * jax.random.normal(ks[7], (10,), jnp.float32),
    }


if __name__ == "__main__":
    key = jax.random.PRNGKey(0)
    pkey, xkey = jax.random.split(key)
    params = init_params(pkey)
    prep = prepare_params(params)          # one-time weight pre-formatting

    # MNIST-shaped batch of 2 (28x28 -> 50*4*4 = 800 flatten, as in the module)
    x = jax.random.normal(xkey, (2, 1, 28, 28), jnp.float32)

    fwd = jax.jit(net_forward)
    out = jax.block_until_ready(fwd(prep, x))

    assert out.shape == (2, 10), out.shape
    row_sums = jnp.sum(out, axis=1)
    assert bool(jnp.all(jnp.abs(row_sums - 1.0) < 1e-4)), row_sums

    # numerical check against a pure-JAX/XLA reference (bf16 weights in the
    # kernel -> allow a loose tolerance)
    ref = reference_forward(params, x)
    assert bool(jnp.max(jnp.abs(out - ref)) < 1e-2), (out, ref)

    print("KERNEL_OK")
</pallas_src>

<mosaic_0001>
module attributes {stable_mosaic.version = 11 : i64} {
  func.func @kernel(%arg0: memref<1152x128xbf16, #tpu.memory_space<vmem>>, %arg1: memref<128x128xbf16, #tpu.memory_space<vmem>>, %arg2: memref<1x128xf32, #tpu.memory_space<vmem>>, %arg3: memref<25x128x128xbf16, #tpu.memory_space<vmem>>, %arg4: memref<1x128xf32, #tpu.memory_space<vmem>>, %arg5: memref<2048x512xbf16, #tpu.memory_space<vmem>>, %arg6: memref<1x512xf32, #tpu.memory_space<vmem>>, %arg7: memref<512x128xbf16, #tpu.memory_space<vmem>>, %arg8: memref<1x128xf32, #tpu.memory_space<vmem>>, %arg9: memref<2x128xf32, #tpu.memory_space<vmem>>, %arg10: memref<296x128xf32, #tpu.memory_space<vmem>>, %arg11: memref<192x128xf32, #tpu.memory_space<vmem>>, %arg12: memref<96x128xf32, #tpu.memory_space<vmem>>) attributes {dimension_semantics = [], scalar_prefetch = 0 : i64, scratch_operands = 3 : i64, tpu.core_type = #tpu.core_type<tc>} {
    %c0 = arith.constant 0 : index
    %c0_0 = arith.constant 0 : index
    %0 = vector.load %arg0[%c0, %c0_0] : memref<1152x128xbf16, #tpu.memory_space<vmem>>, vector<288x128xbf16>
    %c0_1 = arith.constant 0 : index
    %c0_2 = arith.constant 0 : index
    %1 = vector.load %arg1[%c0_1, %c0_2] : memref<128x128xbf16, #tpu.memory_space<vmem>>, vector<128x128xbf16>
    %cst = arith.constant dense<0.000000e+00> : vector<288x128xf32>
    %2 = tpu.matmul %0, %1, %cst {dimension_numbers = #tpu.dot_dimension_numbers<[1], [0], [0], [1], [0, 0, 1, 1], [], []>} : vector<288x128xbf16>, vector<128x128xbf16>, vector<288x128xf32> -> vector<288x128xf32>
    %c0_3 = arith.constant 0 : index
    %c0_4 = arith.constant 0 : index
    %3 = vector.load %arg10[%c0_3, %c0_4] : memref<296x128xf32, #tpu.memory_space<vmem>>, vector<288x128xf32>
    tpu.vector_store %arg10[%c0_3, %c0_4], %2 {strides = array<i32>} : memref<296x128xf32, #tpu.memory_space<vmem>>, vector<288x128xf32>,
    %c0_5 = arith.constant 0 : index
    %c0_6 = arith.constant 0 : index
    %4 = vector.load %arg10[%c0_5, %c0_6] : memref<296x128xf32, #tpu.memory_space<vmem>>, vector<288x128xf32>
    %c288 = arith.constant 288 : index
    %c0_7 = arith.constant 0 : index
    %5 = vector.load %arg0[%c288, %c0_7] : memref<1152x128xbf16, #tpu.memory_space<vmem>>, vector<288x128xbf16>
    %c0_8 = arith.constant 0 : index
    %c0_9 = arith.constant 0 : index
    %6 = vector.load %arg1[%c0_8, %c0_9] : memref<128x128xbf16, #tpu.memory_space<vmem>>, vector<128x128xbf16>
    %cst_10 = arith.constant dense<0.000000e+00> : vector<288x128xf32>
    %7 = tpu.matmul %5, %6, %cst_10 {dimension_numbers = #tpu.dot_dimension_numbers<[1], [0], [0], [1], [0, 0, 1, 1], [], []>} : vector<288x128xbf16>, vector<128x128xbf16>, vector<288x128xf32> -> vector<288x128xf32>
    %8 = arith.maximumf %4, %7 : vector<288x128xf32>
    %c0_11 = arith.constant 0 : index
    %c0_12 = arith.constant 0 : index
    %9 = vector.load %arg10[%c0_11, %c0_12] : memref<296x128xf32, #tpu.memory_space<vmem>>, vector<288x128xf32>
    tpu.vector_store %arg10[%c0_11, %c0_12], %8 {strides = array<i32>} : memref<296x128xf32, #tpu.memory_space<vmem>>, vector<288x128xf32>,
    %c0_13 = arith.constant 0 : index
    %c0_14 = arith.constant 0 : index
    %10 = vector.load %arg10[%c0_13, %c0_14] : memref<296x128xf32, #tpu.memory_space<vmem>>, vector<288x128xf32>
    %c576 = arith.constant 576 : index
    %c0_15 = arith.constant 0 : index
    %11 = vector.load %arg0[%c576, %c0_15] : memref<1152x128xbf16, #tpu.memory_space<vmem>>, vector<288x128xbf16>
    %c0_16 = arith.constant 0 : index
    %c0_17 = arith.constant 0 : index
    %12 = vector.load %arg1[%c0_16, %c0_17] : memref<128x128xbf16, #tpu.memory_space<vmem>>, vector<128x128xbf16>
    %cst_18 = arith.constant dense<0.000000e+00> : vector<288x128xf32>
    %13 = tpu.matmul %11, %12, %cst_18 {dimension_numbers = #tpu.dot_dimension_numbers<[1], [0], [0], [1], [0, 0, 1, 1], [], []>} : vector<288x128xbf16>, vector<128x128xbf16>, vector<288x128xf32> -> vector<288x128xf32>
    %14 = arith.maximumf %10, %13 : vector<288x128xf32>
    %c0_19 = arith.constant 0 : index
    %c0_20 = arith.constant 0 : index
    %15 = vector.load %arg10[%c0_19, %c0_20] : memref<296x128xf32, #tpu.memory_space<vmem>>, vector<288x128xf32>
    tpu.vector_store %arg10[%c0_19, %c0_20], %14 {strides = array<i32>} : memref<296x128xf32, #tpu.memory_space<vmem>>, vector<288x128xf32>,
    %c0_21 = arith.constant 0 : index
    %c0_22 = arith.constant 0 : index
    %16 = vector.load %arg10[%c0_21, %c0_22] : memref<296x128xf32, #tpu.memory_space<vmem>>, vector<288x128xf32>
    %c864 = arith.constant 864 : index
    %c0_23 = arith.constant 0 : index
    %17 = vector.load %arg0[%c864, %c0_23] : memref<1152x128xbf16, #tpu.memory_space<vmem>>, vector<288x128xbf16>
    %c0_24 = arith.constant 0 : index
    %c0_25 = arith.constant 0 : index
    %18 = vector.load %arg1[%c0_24, %c0_25] : memref<128x128xbf16, #tpu.memory_space<vmem>>, vector<128x128xbf16>
    %cst_26 = arith.constant dense<0.000000e+00> : vector<288x128xf32>
    %19 = tpu.matmul %17, %18, %cst_26 {dimension_numbers = #tpu.dot_dimension_numbers<[1], [0], [0], [1], [0, 0, 1, 1], [], []>} : vector<288x128xbf16>, vector<128x128xbf16>, vector<288x128xf32> -> vector<288x128xf32>
    %20 = arith.maximumf %16, %19 : vector<288x128xf32>
    %c0_27 = arith.constant 0 : index
    %c0_28 = arith.constant 0 : index
    %21 = vector.load %arg10[%c0_27, %c0_28] : memref<296x128xf32, #tpu.memory_space<vmem>>, vector<288x128xf32>
    tpu.vector_store %arg10[%c0_27, %c0_28], %20 {strides = array<i32>} : memref<296x128xf32, #tpu.memory_space<vmem>>, vector<288x128xf32>,
    %c0_29 = arith.constant 0 : index
    %c0_30 = arith.constant 0 : index
    %22 = vector.load %arg10[%c0_29, %c0_30] : memref<296x128xf32, #tpu.memory_space<vmem>>, vector<288x128xf32>
    %c0_31 = arith.constant 0 : index
    %c0_32 = arith.constant 0 : index
    %23 = vector.load %arg2[%c0_31, %c0_32] : memref<1x128xf32, #tpu.memory_space<vmem>>, vector<1x128xf32>
    %24 = vector.broadcast %23 : vector<1x128xf32> to vector<288x128xf32>
    %25 = arith.addf %22, %24 : vector<288x128xf32>
    %c0_33 = arith.constant 0 : index
    %c0_34 = arith.constant 0 : index
    %26 = vector.load %arg10[%c0_33, %c0_34] : memref<296x128xf32, #tpu.memory_space<vmem>>, vector<288x128xf32>
    tpu.vector_store %arg10[%c0_33, %c0_34], %25 {strides = array<i32>} : memref<296x128xf32, #tpu.memory_space<vmem>>, vector<288x128xf32>,
    %cst_35 = arith.constant 0.000000e+00 : f32
    %27 = vector.broadcast %cst_35 : f32 to vector<8x128xf32>
    %c288_36 = arith.constant 288 : index
    %c0_37 = arith.constant 0 : index
    %28 = vector.load %arg10[%c288_36, %c0_37] : memref<296x128xf32, #tpu.memory_space<vmem>>, vector<8x128xf32>
    tpu.vector_store %arg10[%c288_36, %c0_37], %27 {strides = array<i32>} : memref<296x128xf32, #tpu.memory_space<vmem>>, vector<8x128xf32>,
    %c0_38 = arith.constant 0 : index
    %c0_39 = arith.constant 0 : index
    %29 = vector.load %arg10[%c0_38, %c0_39] : memref<296x128xf32, #tpu.memory_space<vmem>>, vector<192x128xf32>
    %30 = arith.truncf %29 : vector<192x128xf32> to vector<192x128xbf16>
    %c0_40 = arith.constant 0 : index
    %c0_41 = arith.constant 0 : index
    %c0_42 = arith.constant 0 : index
    %31 = vector.load %arg3[%c0_40, %c0_41, %c0_42] : memref<25x128x128xbf16, #tpu.memory_space<vmem>>, vector<1x128x128xbf16>
    %32 = vector.shape_cast %31 : vector<1x128x128xbf16> to vector<128x128xbf16>
    %cst_43 = arith.constant dense<0.000000e+00> : vector<192x128xf32>
    %33 = tpu.matmul %30, %32, %cst_43 {dimension_numbers = #tpu.dot_dimension_numbers<[1], [0], [0], [1], [0, 0, 1, 1], [], []>} : vector<192x128xbf16>, vector<128x128xbf16>, vector<192x128xf32> -> vector<192x128xf32>
    %c0_44 = arith.constant 0 : index
    %c0_45 = arith.constant 0 : index
    %34 = vector.load %arg11[%c0_44, %c0_45] : memref<192x128xf32, #tpu.memory_space<vmem>>, vector<192x128xf32>
    tpu.vector_store %arg11[%c0_44, %c0_45], %33 {strides = array<i32>} : memref<192x128xf32, #tpu.memory_space<vmem>>, vector<192x128xf32>,
    %c2 = arith.constant 2 : index
    %c0_46 = arith.constant 0 : index
    %35 = vector.load %arg10[%c2, %c0_46] : memref<296x128xf32, #tpu.memory_space<vmem>>, vector<192x128xf32>
    %36 = arith.truncf %35 : vector<192x128xf32> to vector<192x128xbf16>
    %c1 = arith.constant 1 : index
    %c0_47 = arith.constant 0 : index
    %c0_48 = arith.constant 0 : index
    %37 = vector.load %arg3[%c1, %c0_47, %c0_48] : memref<25x128x128xbf16, #tpu.memory_space<vmem>>, vector<1x128x128xbf16>
    %38 = vector.shape_cast %37 : vector<1x128x128xbf16> to vector<128x128xbf16>
    %cst_49 = arith.constant dense<0.000000e+00> : vector<192x128xf32>
    %39 = tpu.matmul %36, %38, %cst_49 {dimension_numbers = #tpu.dot_dimension_numbers<[1], [0], [0], [1], [0, 0, 1, 1], [], []>} : vector<192x128xbf16>, vector<128x128xbf16>, vector<192x128xf32> -> vector<192x128xf32>
    %c0_50 = arith.constant 0 : index
    %c0_51 = arith.constant 0 : index
    %40 = vector.load %arg11[%c0_50, %c0_51] : memref<192x128xf32, #tpu.memory_space<vmem>>, vector<192x128xf32>
    %41 = arith.addf %40, %39 : vector<192x128xf32>
    %c0_52 = arith.constant 0 : index
    %c0_53 = arith.constant 0 : index
    %42 = vector.load %arg11[%c0_52, %c0_53] : memref<192x128xf32, #tpu.memory_space<vmem>>, vector<192x128xf32>
    tpu.vector_store %arg11[%c0_52, %c0_53], %41 {strides = array<i32>} : memref<192x128xf32, #tpu.memory_space<vmem>>, vector<192x128xf32>,
    %c4 = arith.constant 4 : index
    %c0_54 = arith.constant 0 : index
    %43 = vector.load %arg10[%c4, %c0_54] : memref<296x128xf32, #tpu.memory_space<vmem>>, vector<192x128xf32>
    %44 = arith.truncf %43 : vector<192x128xf32> to vector<192x128xbf16>
    %c2_55 = arith.constant 2 : index
    %c0_56 = arith.constant 0 : index
    %c0_57 = arith.constant 0 : index
    %45 = vector.load %arg3[%c2_55, %c0_56, %c0_57] : memref<25x128x128xbf16, #tpu.memory_space<vmem>>, vector<1x128x128xbf16>
    %46 = vector.shape_cast %45 : vector<1x128x128xbf16> to vector<128x128xbf16>
    %cst_58 = arith.constant dense<0.000000e+00> : vector<192x128xf32>
    %47 = tpu.matmul %44, %46, %cst_58 {dimension_numbers = #tpu.dot_dimension_numbers<[1], [0], [0], [1], [0, 0, 1, 1], [], []>} : vector<192x128xbf16>, vector<128x128xbf16>, vector<192x128xf32> -> vector<192x128xf32>
    %c0_59 = arith.constant 0 : index
    %c0_60 = arith.constant 0 : index
    %48 = vector.load %arg11[%c0_59, %c0_60] : memref<192x128xf32, #tpu.memory_space<vmem>>, vector<192x128xf32>
    %49 = arith.addf %48, %47 : vector<192x128xf32>
    %c0_61 = arith.constant 0 : index
    %c0_62 = arith.constant 0 : index
    %50 = vector.load %arg11[%c0_61, %c0_62] : memref<192x128xf32, #tpu.memory_space<vmem>>, vector<192x128xf32>
    tpu.vector_store %arg11[%c0_61, %c0_62], %49 {strides = array<i32>} : memref<192x128xf32, #tpu.memory_space<vmem>>, vector<192x128xf32>,
    %c6 = arith.constant 6 : index
    %c0_63 = arith.constant 0 : index
    %51 = vector.load %arg10[%c6, %c0_63] : memref<296x128xf32, #tpu.memory_space<vmem>>, vector<192x128xf32>
    %52 = arith.truncf %51 : vector<192x128xf32> to vector<192x128xbf16>
    %c3 = arith.constant 3 : index
    %c0_64 = arith.constant 0 : index
    %c0_65 = arith.constant 0 : index
    %53 = vector.load %arg3[%c3, %c0_64, %c0_65] : memref<25x128x128xbf16, #tpu.memory_space<vmem>>, vector<1x128x128xbf16>
    %54 = vector.shape_cast %53 : vector<1x128x128xbf16> to vector<128x128xbf16>
    %cst_66 = arith.constant dense<0.000000e+00> : vector<192x128xf32>
    %55 = tpu.matmul %52, %54, %cst_66 {dimension_numbers = #tpu.dot_dimension_numbers<[1], [0], [0], [1], [0, 0, 1, 1], [], []>} : vector<192x128xbf16>, vector<128x128xbf16>, vector<192x128xf32> -> vector<192x128xf32>
    %c0_67 = arith.constant 0 : index
    %c0_68 = arith.constant 0 : index
    %56 = vector.load %arg11[%c0_67, %c0_68] : memref<192x128xf32, #tpu.memory_space<vmem>>, vector<192x128xf32>
    %57 = arith.addf %56, %55 : vector<192x128xf32>
    %c0_69 = arith.constant 0 : index
    %c0_70 = arith.constant 0 : index
    %58 = vector.load %arg11[%c0_69, %c0_70] : memref<192x128xf32, #tpu.memory_space<vmem>>, vector<192x128xf32>
    tpu.vector_store %arg11[%c0_69, %c0_70], %57 {strides = array<i32>} : memref<192x128xf32, #tpu.memory_space<vmem>>, vector<192x128xf32>,
    %c8 = arith.constant 8 : index
    %c0_71 = arith.constant 0 : index
    %59 = vector.load %arg10[%c8, %c0_71] : memref<296x128xf32, #tpu.memory_space<vmem>>, vector<192x128xf32>
    %60 = arith.truncf %59 : vector<192x128xf32> to vector<192x128xbf16>
    %c4_72 = arith.constant 4 : index
    %c0_73 = arith.constant 0 : index
    %c0_74 = arith.constant 0 : index
    %61 = vector.load %arg3[%c4_72, %c0_73, %c0_74] : memref<25x128x128xbf16, #tpu.memory_space<vmem>>, vector<1x128x128xbf16>
    %62 = vector.shape_cast %61 : vector<1x128x128xbf16> to vector<128x128xbf16>
    %cst_75 = arith.constant dense<0.000000e+00> : vector<192x128xf32>
    %63 = tpu.matmul %60, %62, %cst_75 {dimension_numbers = #tpu.dot_dimension_numbers<[1], [0], [0], [1], [0, 0, 1, 1], [], []>} : vector<192x128xbf16>, vector<128x128xbf16>, vector<192x128xf32> -> vector<192x128xf32>
    %c0_76 = arith.constant 0 : index
    %c0_77 = arith.constant 0 : index
    %64 = vector.load %arg11[%c0_76, %c0_77] : memref<192x128xf32, #tpu.memory_space<vmem>>, vector<192x128xf32>
    %65 = arith.addf %64, %63 : vector<192x128xf32>
    %c0_78 = arith.constant 0 : index
    %c0_79 = arith.constant 0 : index
    %66 = vector.load %arg11[%c0_78, %c0_79] : memref<192x128xf32, #tpu.memory_space<vmem>>, vector<192x128xf32>
    tpu.vector_store %arg11[%c0_78, %c0_79], %65 {strides = array<i32>} : memref<192x128xf32, #tpu.memory_space<vmem>>, vector<192x128xf32>,
    %c24 = arith.constant 24 : index
    %c0_80 = arith.constant 0 : index
    %67 = vector.load %arg10[%c24, %c0_80] : memref<296x128xf32, #tpu.memory_space<vmem>>, vector<192x128xf32>
    %68 = arith.truncf %67 : vector<192x128xf32> to vector<192x128xbf16>
    %c5 = arith.constant 5 : index
    %c0_81 = arith.constant 0 : index
    %c0_82 = arith.constant 0 : index
    %69 = vector.load %arg3[%c5, %c0_81, %c0_82] : memref<25x128x128xbf16, #tpu.memory_space<vmem>>, vector<1x128x128xbf16>
    %70 = vector.shape_cast %69 : vector<1x128x128xbf16> to vector<128x128xbf16>
    %cst_83 = arith.constant dense<0.000000e+00> : vector<192x128xf32>
    %71 = tpu.matmul %68, %70, %cst_83 {dimension_numbers = #tpu.dot_dimension_numbers<[1], [0], [0], [1], [0, 0, 1, 1], [], []>} : vector<192x128xbf16>, vector<128x128xbf16>, vector<192x128xf32> -> vector<192x128xf32>
    %c0_84 = arith.constant 0 : index
    %c0_85 = arith.constant 0 : index
    %72 = vector.load %arg11[%c0_84, %c0_85] : memref<192x128xf32, #tpu.memory_space<vmem>>, vector<192x128xf32>
    %73 = arith.addf %72, %71 : vector<192x128xf32>
    %c0_86 = arith.constant 0 : index
    %c0_87 = arith.constant 0 : index
    %74 = vector.load %arg11[%c0_86, %c0_87] : memref<192x128xf32, #tpu.memory_space<vmem>>, vector<192x128xf32>
    tpu.vector_store %arg11[%c0_86, %c0_87], %73 {strides = array<i32>} : memref<192x128xf32, #tpu.memory_space<vmem>>, vector<192x128xf32>,
    %c26 = arith.constant 26 : index
    %c0_88 = arith.constant 0 : index
    %75 = vector.load %arg10[%c26, %c0_88] : memref<296x128xf32, #tpu.memory_space<vmem>>, vector<192x128xf32>
    %76 = arith.truncf %75 : vector<192x128xf32> to vector<192x128xbf16>
    %c6_89 = arith.constant 6 : index
    %c0_90 = arith.constant 0 : index
    %c0_91 = arith.constant 0 : index
    %77 = vector.load %arg3[%c6_89, %c0_90, %c0_91] : memref<25x128x128xbf16, #tpu.memory_space<vmem>>, vector<1x128x128xbf16>
    %78 = vector.shape_cast %77 : vector<1x128x128xbf16> to vector<128x128xbf16>
    %cst_92 = arith.constant dense<0.000000e+00> : vector<192x128xf32>
    %79 = tpu.matmul %76, %78, %cst_92 {dimension_numbers = #tpu.dot_dimension_numbers<[1], [0], [0], [1], [0, 0, 1, 1], [], []>} : vector<192x128xbf16>, vector<128x128xbf16>, vector<192x128xf32> -> vector<192x128xf32>
    %c0_93 = arith.constant 0 : index
    %c0_94 = arith.constant 0 : index
    %80 = vector.load %arg11[%c0_93, %c0_94] : memref<192x128xf32, #tpu.memory_space<vmem>>, vector<192x128xf32>
    %81 = arith.addf %80, %79 : vector<192x128xf32>
    %c0_95 = arith.constant 0 : index
    %c0_96 = arith.constant 0 : index
    %82 = vector.load %arg11[%c0_95, %c0_96] : memref<192x128xf32, #tpu.memory_space<vmem>>, vector<192x128xf32>
    tpu.vector_store %arg11[%c0_95, %c0_96], %81 {strides = array<i32>} : memref<192x128xf32, #tpu.memory_space<vmem>>, vector<192x128xf32>,
    %c28 = arith.constant 28 : index
    %c0_97 = arith.constant 0 : index
    %83 = vector.load %arg10[%c28, %c0_97] : memref<296x128xf32, #tpu.memory_space<vmem>>, vector<192x128xf32>
    %84 = arith.truncf %83 : vector<192x128xf32> to vector<192x128xbf16>
    %c7 = arith.constant 7 : index
    %c0_98 = arith.constant 0 : index
    %c0_99 = arith.constant 0 : index
    %85 = vector.load %arg3[%c7, %c0_98, %c0_99] : memref<25x128x128xbf16, #tpu.memory_space<vmem>>, vector<1x128x128xbf16>
    %86 = vector.shape_cast %85 : vector<1x128x128xbf16> to vector<128x128xbf16>
    %cst_100 = arith.constant dense<0.000000e+00> : vector<192x128xf32>
    %87 = tpu.matmul %84, %86, %cst_100 {dimension_numbers = #tpu.dot_dimension_numbers<[1], [0], [0], [1], [0, 0, 1, 1], [], []>} : vector<192x128xbf16>, vector<128x128xbf16>, vector<192x128xf32> -> vector<192x128xf32>
    %c0_101 = arith.constant 0 : index
    %c0_102 = arith.constant 0 : index
    %88 = vector.load %arg11[%c0_101, %c0_102] : memref<192x128xf32, #tpu.memory_space<vmem>>, vector<192x128xf32>
    %89 = arith.addf %88, %87 : vector<192x128xf32>
    %c0_103 = arith.constant 0 : index
    %c0_104 = arith.constant 0 : index
    %90 = vector.load %arg11[%c0_103, %c0_104] : memref<192x128xf32, #tpu.memory_space<vmem>>, vector<192x128xf32>
    tpu.vector_store %arg11[%c0_103, %c0_104], %89 {strides = array<i32>} : memref<192x128xf32, #tpu.memory_space<vmem>>, vector<192x128xf32>,
    %c30 = arith.constant 30 : index
    %c0_105 = arith.constant 0 : index
    %91 = vector.load %arg10[%c30, %c0_105] : memref<296x128xf32, #tpu.memory_space<vmem>>, vector<192x128xf32>
    %92 = arith.truncf %91 : vector<192x128xf32> to vector<192x128xbf16>
    %c8_106 = arith.constant 8 : index
    %c0_107 = arith.constant 0 : index
    %c0_108 = arith.constant 0 : index
    %93 = vector.load %arg3[%c8_106, %c0_107, %c0_108] : memref<25x128x128xbf16, #tpu.memory_space<vmem>>, vector<1x128x128xbf16>
    %94 = vector.shape_cast %93 : vector<1x128x128xbf16> to vector<128x128xbf16>
    %cst_109 = arith.constant dense<0.000000e+00> : vector<192x128xf32>
    %95 = tpu.matmul %92, %94, %cst_109 {dimension_numbers = #tpu.dot_dimension_numbers<[1], [0], [0], [1], [0, 0, 1, 1], [], []>} : vector<192x128xbf16>, vector<128x128xbf16>, vector<192x128xf32> -> vector<192x128xf32>
    %c0_110 = arith.constant 0 : index
    %c0_111 = arith.constant 0 : index
    %96 = vector.load %arg11[%c0_110, %c0_111] : memref<192x128xf32, #tpu.memory_space<vmem>>, vector<192x128xf32>
    %97 = arith.addf %96, %95 : vector<192x128xf32>
    %c0_112 = arith.constant 0 : index
    %c0_113 = arith.constant 0 : index
    %98 = vector.load %arg11[%c0_112, %c0_113] : memref<192x128xf32, #tpu.memory_space<vmem>>, vector<192x128xf32>
    tpu.vector_store %arg11[%c0_112, %c0_113], %97 {strides = array<i32>} : memref<192x128xf32, #tpu.memory_space<vmem>>, vector<192x128xf32>,
    %c32 = arith.constant 32 : index
    %c0_114 = arith.constant 0 : index
    %99 = vector.load %arg10[%c32, %c0_114] : memref<296x128xf32, #tpu.memory_space<vmem>>, vector<192x128xf32>
    %100 = arith.truncf %99 : vector<192x128xf32> to vector<192x128xbf16>
    %c9 = arith.constant 9 : index
    %c0_115 = arith.constant 0 : index
    %c0_116 = arith.constant 0 : index
    %101 = vector.load %arg3[%c9, %c0_115, %c0_116] : memref<25x128x128xbf16, #tpu.memory_space<vmem>>, vector<1x128x128xbf16>
    %102 = vector.shape_cast %101 : vector<1x128x128xbf16> to vector<128x128xbf16>
    %cst_117 = arith.constant dense<0.000000e+00> : vector<192x128xf32>
    %103 = tpu.matmul %100, %102, %cst_117 {dimension_numbers = #tpu.dot_dimension_numbers<[1], [0], [0], [1], [0, 0, 1, 1], [], []>} : vector<192x128xbf16>, vector<128x128xbf16>, vector<192x128xf32> -> vector<192x128xf32>
    %c0_118 = arith.constant 0 : index
    %c0_119 = arith.constant 0 : index
    %104 = vector.load %arg11[%c0_118, %c0_119] : memref<192x128xf32, #tpu.memory_space<vmem>>, vector<192x128xf32>
    %105 = arith.addf %104, %103 : vector<192x128xf32>
    %c0_120 = arith.constant 0 : index
    %c0_121 = arith.constant 0 : index
    %106 = vector.load %arg11[%c0_120, %c0_121] : memref<192x128xf32, #tpu.memory_space<vmem>>, vector<192x128xf32>
    tpu.vector_store %arg11[%c0_120, %c0_121], %105 {strides = array<i32>} : memref<192x128xf32, #tpu.memory_space<vmem>>, vector<192x128xf32>,
    %c48 = arith.constant 48 : index
    %c0_122 = arith.constant 0 : index
    %107 = vector.load %arg10[%c48, %c0_122] : memref<296x128xf32, #tpu.memory_space<vmem>>, vector<192x128xf32>
    %108 = arith.truncf %107 : vector<192x128xf32> to vector<192x128xbf16>
    %c10 = arith.constant 10 : index
    %c0_123 = arith.constant 0 : index
    %c0_124 = arith.constant 0 : index
    %109 = vector.load %arg3[%c10, %c0_123, %c0_124] : memref<25x128x128xbf16, #tpu.memory_space<vmem>>, vector<1x128x128xbf16>
    %110 = vector.shape_cast %109 : vector<1x128x128xbf16> to vector<128x128xbf16>
    %cst_125 = arith.constant dense<0.000000e+00> : vector<192x128xf32>
    %111 = tpu.matmul %108, %110, %cst_125 {dimension_numbers = #tpu.dot_dimension_numbers<[1], [0], [0], [1], [0, 0, 1, 1], [], []>} : vector<192x128xbf16>, vector<128x128xbf16>, vector<192x128xf32> -> vector<192x128xf32>
    %c0_126 = arith.constant 0 : index
    %c0_127 = arith.constant 0 : index
    %112 = vector.load %arg11[%c0_126, %c0_127] : memref<192x128xf32, #tpu.memory_space<vmem>>, vector<192x128xf32>
    %113 = arith.addf %112, %111 : vector<192x128xf32>
    %c0_128 = arith.constant 0 : index
    %c0_129 = arith.constant 0 : index
    %114 = vector.load %arg11[%c0_128, %c0_129] : memref<192x128xf32, #tpu.memory_space<vmem>>, vector<192x128xf32>
    tpu.vector_store %arg11[%c0_128, %c0_129], %113 {strides = array<i32>} : memref<192x128xf32, #tpu.memory_space<vmem>>, vector<192x128xf32>,
    %c50 = arith.constant 50 : index
    %c0_130 = arith.constant 0 : index
    %115 = vector.load %arg10[%c50, %c0_130] : memref<296x128xf32, #tpu.memory_space<vmem>>, vector<192x128xf32>
    %116 = arith.truncf %115 : vector<192x128xf32> to vector<192x128xbf16>
    %c11 = arith.constant 11 : index
    %c0_131 = arith.constant 0 : index
    %c0_132 = arith.constant 0 : index
    %117 = vector.load %arg3[%c11, %c0_131, %c0_132] : memref<25x128x128xbf16, #tpu.memory_space<vmem>>, vector<1x128x128xbf16>
    %118 = vector.shape_cast %117 : vector<1x128x128xbf16> to vector<128x128xbf16>
    %cst_133 = arith.constant dense<0.000000e+00> : vector<192x128xf32>
    %119 = tpu.matmul %116, %118, %cst_133 {dimension_numbers = #tpu.dot_dimension_numbers<[1], [0], [0], [1], [0, 0, 1, 1], [], []>} : vector<192x128xbf16>, vector<128x128xbf16>, vector<192x128xf32> -> vector<192x128xf32>
    %c0_134 = arith.constant 0 : index
    %c0_135 = arith.constant 0 : index
    %120 = vector.load %arg11[%c0_134, %c0_135] : memref<192x128xf32, #tpu.memory_space<vmem>>, vector<192x128xf32>
    %121 = arith.addf %120, %119 : vector<192x128xf32>
    %c0_136 = arith.constant 0 : index
    %c0_137 = arith.constant 0 : index
    %122 = vector.load %arg11[%c0_136, %c0_137] : memref<192x128xf32, #tpu.memory_space<vmem>>, vector<192x128xf32>
    tpu.vector_store %arg11[%c0_136, %c0_137], %121 {strides = array<i32>} : memref<192x128xf32, #tpu.memory_space<vmem>>, vector<192x128xf32>,
    %c52 = arith.constant 52 : index
    %c0_138 = arith.constant 0 : index
    %123 = vector.load %arg10[%c52, %c0_138] : memref<296x128xf32, #tpu.memory_space<vmem>>, vector<192x128xf32>
    %124 = arith.truncf %123 : vector<192x128xf32> to vector<192x128xbf16>
    %c12 = arith.constant 12 : index
    %c0_139 = arith.constant 0 : index
    %c0_140 = arith.constant 0 : index
    %125 = vector.load %arg3[%c12, %c0_139, %c0_140] : memref<25x128x128xbf16, #tpu.memory_space<vmem>>, vector<1x128x128xbf16>
    %126 = vector.shape_cast %125 : vector<1x128x128xbf16> to vector<128x128xbf16>
    %cst_141 = arith.constant dense<0.000000e+00> : vector<192x128xf32>
    %127 = tpu.matmul %124, %126, %cst_141 {dimension_numbers = #tpu.dot_dimension_numbers<[1], [0], [0], [1], [0, 0, 1, 1], [], []>} : vector<192x128xbf16>, vector<128x128xbf16>, vector<192x128xf32> -> vector<192x128xf32>
    %c0_142 = arith.constant 0 : index
    %c0_143 = arith.constant 0 : index
    %128 = vector.load %arg11[%c0_142, %c0_143] : memref<192x128xf32, #tpu.memory_space<vmem>>, vector<192x128xf32>
    %129 = arith.addf %128, %127 : vector<192x128xf32>
    %c0_144 = arith.constant 0 : index
    %c0_145 = arith.constant 0 : index
    %130 = vector.load %arg11[%c0_144, %c0_145] : memref<192x128xf32, #tpu.memory_space<vmem>>, vector<192x128xf32>
    tpu.vector_store %arg11[%c0_144, %c0_145], %129 {strides = array<i32>} : memref<192x128xf32, #tpu.memory_space<vmem>>, vector<192x128xf32>,
    %c54 = arith.constant 54 : index
    %c0_146 = arith.constant 0 : index
    %131 = vector.load %arg10[%c54, %c0_146] : memref<296x128xf32, #tpu.memory_space<vmem>>, vector<192x128xf32>
    %132 = arith.truncf %131 : vector<192x128xf32> to vector<192x128xbf16>
    %c13 = arith.constant 13 : index
    %c0_147 = arith.constant 0 : index
    %c0_148 = arith.constant 0 : index
    %133 = vector.load %arg3[%c13, %c0_147, %c0_148] : memref<25x128x128xbf16, #tpu.memory_space<vmem>>, vector<1x128x128xbf16>
    %134 = vector.shape_cast %133 : vector<1x128x128xbf16> to vector<128x128xbf16>
    %cst_149 = arith.constant dense<0.000000e+00> : vector<192x128xf32>
    %135 = tpu.matmul %132, %134, %cst_149 {dimension_numbers = #tpu.dot_dimension_numbers<[1], [0], [0], [1], [0, 0, 1, 1], [], []>} : vector<192x128xbf16>, vector<128x128xbf16>, vector<192x128xf32> -> vector<192x128xf32>
    %c0_150 = arith.constant 0 : index
    %c0_151 = arith.constant 0 : index
    %136 = vector.load %arg11[%c0_150, %c0_151] : memref<192x128xf32, #tpu.memory_space<vmem>>, vector<192x128xf32>
    %137 = arith.addf %136, %135 : vector<192x128xf32>
    %c0_152 = arith.constant 0 : index
    %c0_153 = arith.constant 0 : index
    %138 = vector.load %arg11[%c0_152, %c0_153] : memref<192x128xf32, #tpu.memory_space<vmem>>, vector<192x128xf32>
    tpu.vector_store %arg11[%c0_152, %c0_153], %137 {strides = array<i32>} : memref<192x128xf32, #tpu.memory_space<vmem>>, vector<192x128xf32>,
    %c56 = arith.constant 56 : index
    %c0_154 = arith.constant 0 : index
    %139 = vector.load %arg10[%c56, %c0_154] : memref<296x128xf32, #tpu.memory_space<vmem>>, vector<192x128xf32>
    %140 = arith.truncf %139 : vector<192x128xf32> to vector<192x128xbf16>
    %c14 = arith.constant 14 : index
    %c0_155 = arith.constant 0 : index
    %c0_156 = arith.constant 0 : index
    %141 = vector.load %arg3[%c14, %c0_155, %c0_156] : memref<25x128x128xbf16, #tpu.memory_space<vmem>>, vector<1x128x128xbf16>
    %142 = vector.shape_cast %141 : vector<1x128x128xbf16> to vector<128x128xbf16>
    %cst_157 = arith.constant dense<0.000000e+00> : vector<192x128xf32>
    %143 = tpu.matmul %140, %142, %cst_157 {dimension_numbers = #tpu.dot_dimension_numbers<[1], [0], [0], [1], [0, 0, 1, 1], [], []>} : vector<192x128xbf16>, vector<128x128xbf16>, vector<192x128xf32> -> vector<192x128xf32>
    %c0_158 = arith.constant 0 : index
    %c0_159 = arith.constant 0 : index
    %144 = vector.load %arg11[%c0_158, %c0_159] : memref<192x128xf32, #tpu.memory_space<vmem>>, vector<192x128xf32>
    %145 = arith.addf %144, %143 : vector<192x128xf32>
    %c0_160 = arith.constant 0 : index
    %c0_161 = arith.constant 0 : index
    %146 = vector.load %arg11[%c0_160, %c0_161] : memref<192x128xf32, #tpu.memory_space<vmem>>, vector<192x128xf32>
    tpu.vector_store %arg11[%c0_160, %c0_161], %145 {strides = array<i32>} : memref<192x128xf32, #tpu.memory_space<vmem>>, vector<192x128xf32>,
    %c72 = arith.constant 72 : index
    %c0_162 = arith.constant 0 : index
    %147 = vector.load %arg10[%c72, %c0_162] : memref<296x128xf32, #tpu.memory_space<vmem>>, vector<192x128xf32>
    %148 = arith.truncf %147 : vector<192x128xf32> to vector<192x128xbf16>
    %c15 = arith.constant 15 : index
    %c0_163 = arith.constant 0 : index
    %c0_164 = arith.constant 0 : index
    %149 = vector.load %arg3[%c15, %c0_163, %c0_164] : memref<25x128x128xbf16, #tpu.memory_space<vmem>>, vector<1x128x128xbf16>
    %150 = vector.shape_cast %149 : vector<1x128x128xbf16> to vector<128x128xbf16>
    %cst_165 = arith.constant dense<0.000000e+00> : vector<192x128xf32>
    %151 = tpu.matmul %148, %150, %cst_165 {dimension_numbers = #tpu.dot_dimension_numbers<[1], [0], [0], [1], [0, 0, 1, 1], [], []>} : vector<192x128xbf16>, vector<128x128xbf16>, vector<192x128xf32> -> vector<192x128xf32>
    %c0_166 = arith.constant 0 : index
    %c0_167 = arith.constant 0 : index
    %152 = vector.load %arg11[%c0_166, %c0_167] : memref<192x128xf32, #tpu.memory_space<vmem>>, vector<192x128xf32>
    %153 = arith.addf %152, %151 : vector<192x128xf32>
    %c0_168 = arith.constant 0 : index
    %c0_169 = arith.constant 0 : index
    %154 = vector.load %arg11[%c0_168, %c0_169] : memref<192x128xf32, #tpu.memory_space<vmem>>, vector<192x128xf32>
    tpu.vector_store %arg11[%c0_168, %c0_169], %153 {strides = array<i32>} : memref<192x128xf32, #tpu.memory_space<vmem>>, vector<192x128xf32>,
    %c74 = arith.constant 74 : index
    %c0_170 = arith.constant 0 : index
    %155 = vector.load %arg10[%c74, %c0_170] : memref<296x128xf32, #tpu.memory_space<vmem>>, vector<192x128xf32>
    %156 = arith.truncf %155 : vector<192x128xf32> to vector<192x128xbf16>
    %c16 = arith.constant 16 : index
    %c0_171 = arith.constant 0 : index
    %c0_172 = arith.constant 0 : index
    %157 = vector.load %arg3[%c16, %c0_171, %c0_172] : memref<25x128x128xbf16, #tpu.memory_space<vmem>>, vector<1x128x128xbf16>
    %158 = vector.shape_cast %157 : vector<1x128x128xbf16> to vector<128x128xbf16>
    %cst_173 = arith.constant dense<0.000000e+00> : vector<192x128xf32>
    %159 = tpu.matmul %156, %158, %cst_173 {dimension_numbers = #tpu.dot_dimension_numbers<[1], [0], [0], [1], [0, 0, 1, 1], [], []>} : vector<192x128xbf16>, vector<128x128xbf16>, vector<192x128xf32> -> vector<192x128xf32>
    %c0_174 = arith.constant 0 : index
    %c0_175 = arith.constant 0 : index
    %160 = vector.load %arg11[%c0_174, %c0_175] : memref<192x128xf32, #tpu.memory_space<vmem>>, vector<192x128xf32>
    %161 = arith.addf %160, %159 : vector<192x128xf32>
    %c0_176 = arith.constant 0 : index
    %c0_177 = arith.constant 0 : index
    %162 = vector.load %arg11[%c0_176, %c0_177] : memref<192x128xf32, #tpu.memory_space<vmem>>, vector<192x128xf32>
    tpu.vector_store %arg11[%c0_176, %c0_177], %161 {strides = array<i32>} : memref<192x128xf32, #tpu.memory_space<vmem>>, vector<192x128xf32>,
    %c76 = arith.constant 76 : index
    %c0_178 = arith.constant 0 : index
    %163 = vector.load %arg10[%c76, %c0_178] : memref<296x128xf32, #tpu.memory_space<vmem>>, vector<192x128xf32>
    %164 = arith.truncf %163 : vector<192x128xf32> to vector<192x128xbf16>
    %c17 = arith.constant 17 : index
    %c0_179 = arith.constant 0 : index
    %c0_180 = arith.constant 0 : index
    %165 = vector.load %arg3[%c17, %c0_179, %c0_180] : memref<25x128x128xbf16, #tpu.memory_space<vmem>>, vector<1x128x128xbf16>
    %166 = vector.shape_cast %165 : vector<1x128x128xbf16> to vector<128x128xbf16>
    %cst_181 = arith.constant dense<0.000000e+00> : vector<192x128xf32>
    %167 = tpu.matmul %164, %166, %cst_181 {dimension_numbers = #tpu.dot_dimension_numbers<[1], [0], [0], [1], [0, 0, 1, 1], [], []>} : vector<192x128xbf16>, vector<128x128xbf16>, vector<192x128xf32> -> vector<192x128xf32>
    %c0_182 = arith.constant 0 : index
    %c0_183 = arith.constant 0 : index
    %168 = vector.load %arg11[%c0_182, %c0_183] : memref<192x128xf32, #tpu.memory_space<vmem>>, vector<192x128xf32>
    %169 = arith.addf %168, %167 : vector<192x128xf32>
    %c0_184 = arith.constant 0 : index
    %c0_185 = arith.constant 0 : index
    %170 = vector.load %arg11[%c0_184, %c0_185] : memref<192x128xf32, #tpu.memory_space<vmem>>, vector<192x128xf32>
    tpu.vector_store %arg11[%c0_184, %c0_185], %169 {strides = array<i32>} : memref<192x128xf32, #tpu.memory_space<vmem>>, vector<192x128xf32>,
    %c78 = arith.constant 78 : index
    %c0_186 = arith.constant 0 : index
    %171 = vector.load %arg10[%c78, %c0_186] : memref<296x128xf32, #tpu.memory_space<vmem>>, vector<192x128xf32>
    %172 = arith.truncf %171 : vector<192x128xf32> to vector<192x128xbf16>
    %c18 = arith.constant 18 : index
    %c0_187 = arith.constant 0 : index
    %c0_188 = arith.constant 0 : index
    %173 = vector.load %arg3[%c18, %c0_187, %c0_188] : memref<25x128x128xbf16, #tpu.memory_space<vmem>>, vector<1x128x128xbf16>
    %174 = vector.shape_cast %173 : vector<1x128x128xbf16> to vector<128x128xbf16>
    %cst_189 = arith.constant dense<0.000000e+00> : vector<192x128xf32>
    %175 = tpu.matmul %172, %174, %cst_189 {dimension_numbers = #tpu.dot_dimension_numbers<[1], [0], [0], [1], [0, 0, 1, 1], [], []>} : vector<192x128xbf16>, vector<128x128xbf16>, vector<192x128xf32> -> vector<192x128xf32>
    %c0_190 = arith.constant 0 : index
    %c0_191 = arith.constant 0 : index
    %176 = vector.load %arg11[%c0_190, %c0_191] : memref<192x128xf32, #tpu.memory_space<vmem>>, vector<192x128xf32>
    %177 = arith.addf %176, %175 : vector<192x128xf32>
    %c0_192 = arith.constant 0 : index
    %c0_193 = arith.constant 0 : index
    %178 = vector.load %arg11[%c0_192, %c0_193] : memref<192x128xf32, #tpu.memory_space<vmem>>, vector<192x128xf32>
    tpu.vector_store %arg11[%c0_192, %c0_193], %177 {strides = array<i32>} : memref<192x128xf32, #tpu.memory_space<vmem>>, vector<192x128xf32>,
    %c80 = arith.constant 80 : index
    %c0_194 = arith.constant 0 : index
    %179 = vector.load %arg10[%c80, %c0_194] : memref<296x128xf32, #tpu.memory_space<vmem>>, vector<192x128xf32>
    %180 = arith.truncf %179 : vector<192x128xf32> to vector<192x128xbf16>
    %c19 = arith.constant 19 : index
    %c0_195 = arith.constant 0 : index
    %c0_196 = arith.constant 0 : index
    %181 = vector.load %arg3[%c19, %c0_195, %c0_196] : memref<25x128x128xbf16, #tpu.memory_space<vmem>>, vector<1x128x128xbf16>
    %182 = vector.shape_cast %181 : vector<1x128x128xbf16> to vector<128x128xbf16>
    %cst_197 = arith.constant dense<0.000000e+00> : vector<192x128xf32>
    %183 = tpu.matmul %180, %182, %cst_197 {dimension_numbers = #tpu.dot_dimension_numbers<[1], [0], [0], [1], [0, 0, 1, 1], [], []>} : vector<192x128xbf16>, vector<128x128xbf16>, vector<192x128xf32> -> vector<192x128xf32>
    %c0_198 = arith.constant 0 : index
    %c0_199 = arith.constant 0 : index
    %184 = vector.load %arg11[%c0_198, %c0_199] : memref<192x128xf32, #tpu.memory_space<vmem>>, vector<192x128xf32>
    %185 = arith.addf %184, %183 : vector<192x128xf32>
    %c0_200 = arith.constant 0 : index
    %c0_201 = arith.constant 0 : index
    %186 = vector.load %arg11[%c0_200, %c0_201] : memref<192x128xf32, #tpu.memory_space<vmem>>, vector<192x128xf32>
    tpu.vector_store %arg11[%c0_200, %c0_201], %185 {strides = array<i32>} : memref<192x128xf32, #tpu.memory_space<vmem>>, vector<192x128xf32>,
    %c96 = arith.constant 96 : index
    %c0_202 = arith.constant 0 : index
    %187 = vector.load %arg10[%c96, %c0_202] : memref<296x128xf32, #tpu.memory_space<vmem>>, vector<192x128xf32>
    %188 = arith.truncf %187 : vector<192x128xf32> to vector<192x128xbf16>
    %c20 = arith.constant 20 : index
    %c0_203 = arith.constant 0 : index
    %c0_204 = arith.constant 0 : index
    %189 = vector.load %arg3[%c20, %c0_203, %c0_204] : memref<25x128x128xbf16, #tpu.memory_space<vmem>>, vector<1x128x128xbf16>
    %190 = vector.shape_cast %189 : vector<1x128x128xbf16> to vector<128x128xbf16>
    %cst_205 = arith.constant dense<0.000000e+00> : vector<192x128xf32>
    %191 = tpu.matmul %188, %190, %cst_205 {dimension_numbers = #tpu.dot_dimension_numbers<[1], [0], [0], [1], [0, 0, 1, 1], [], []>} : vector<192x128xbf16>, vector<128x128xbf16>, vector<192x128xf32> -> vector<192x128xf32>
    %c0_206 = arith.constant 0 : index
    %c0_207 = arith.constant 0 : index
    %192 = vector.load %arg11[%c0_206, %c0_207] : memref<192x128xf32, #tpu.memory_space<vmem>>, vector<192x128xf32>
    %193 = arith.addf %192, %191 : vector<192x128xf32>
    %c0_208 = arith.constant 0 : index
    %c0_209 = arith.constant 0 : index
    %194 = vector.load %arg11[%c0_208, %c0_209] : memref<192x128xf32, #tpu.memory_space<vmem>>, vector<192x128xf32>
    tpu.vector_store %arg11[%c0_208, %c0_209], %193 {strides = array<i32>} : memref<192x128xf32, #tpu.memory_space<vmem>>, vector<192x128xf32>,
    %c98 = arith.constant 98 : index
    %c0_210 = arith.constant 0 : index
    %195 = vector.load %arg10[%c98, %c0_210] : memref<296x128xf32, #tpu.memory_space<vmem>>, vector<192x128xf32>
    %196 = arith.truncf %195 : vector<192x128xf32> to vector<192x128xbf16>
    %c21 = arith.constant 21 : index
    %c0_211 = arith.constant 0 : index
    %c0_212 = arith.constant 0 : index
    %197 = vector.load %arg3[%c21, %c0_211, %c0_212] : memref<25x128x128xbf16, #tpu.memory_space<vmem>>, vector<1x128x128xbf16>
    %198 = vector.shape_cast %197 : vector<1x128x128xbf16> to vector<128x128xbf16>
    %cst_213 = arith.constant dense<0.000000e+00> : vector<192x128xf32>
    %199 = tpu.matmul %196, %198, %cst_213 {dimension_numbers = #tpu.dot_dimension_numbers<[1], [0], [0], [1], [0, 0, 1, 1], [], []>} : vector<192x128xbf16>, vector<128x128xbf16>, vector<192x128xf32> -> vector<192x128xf32>
    %c0_214 = arith.constant 0 : index
    %c0_215 = arith.constant 0 : index
    %200 = vector.load %arg11[%c0_214, %c0_215] : memref<192x128xf32, #tpu.memory_space<vmem>>, vector<192x128xf32>
    %201 = arith.addf %200, %199 : vector<192x128xf32>
    %c0_216 = arith.constant 0 : index
    %c0_217 = arith.constant 0 : index
    %202 = vector.load %arg11[%c0_216, %c0_217] : memref<192x128xf32, #tpu.memory_space<vmem>>, vector<192x128xf32>
    tpu.vector_store %arg11[%c0_216, %c0_217], %201 {strides = array<i32>} : memref<192x128xf32, #tpu.memory_space<vmem>>, vector<192x128xf32>,
    %c100 = arith.constant 100 : index
    %c0_218 = arith.constant 0 : index
    %203 = vector.load %arg10[%c100, %c0_218] : memref<296x128xf32, #tpu.memory_space<vmem>>, vector<192x128xf32>
    %204 = arith.truncf %203 : vector<192x128xf32> to vector<192x128xbf16>
    %c22 = arith.constant 22 : index
    %c0_219 = arith.constant 0 : index
    %c0_220 = arith.constant 0 : index
    %205 = vector.load %arg3[%c22, %c0_219, %c0_220] : memref<25x128x128xbf16, #tpu.memory_space<vmem>>, vector<1x128x128xbf16>
    %206 = vector.shape_cast %205 : vector<1x128x128xbf16> to vector<128x128xbf16>
    %cst_221 = arith.constant dense<0.000000e+00> : vector<192x128xf32>
    %207 = tpu.matmul %204, %206, %cst_221 {dimension_numbers = #tpu.dot_dimension_numbers<[1], [0], [0], [1], [0, 0, 1, 1], [], []>} : vector<192x128xbf16>, vector<128x128xbf16>, vector<192x128xf32> -> vector<192x128xf32>
    %c0_222 = arith.constant 0 : index
    %c0_223 = arith.constant 0 : index
    %208 = vector.load %arg11[%c0_222, %c0_223] : memref<192x128xf32, #tpu.memory_space<vmem>>, vector<192x128xf32>
    %209 = arith.addf %208, %207 : vector<192x128xf32>
    %c0_224 = arith.constant 0 : index
    %c0_225 = arith.constant 0 : index
    %210 = vector.load %arg11[%c0_224, %c0_225] : memref<192x128xf32, #tpu.memory_space<vmem>>, vector<192x128xf32>
    tpu.vector_store %arg11[%c0_224, %c0_225], %209 {strides = array<i32>} : memref<192x128xf32, #tpu.memory_space<vmem>>, vector<192x128xf32>,
    %c102 = arith.constant 102 : index
    %c0_226 = arith.constant 0 : index
    %211 = vector.load %arg10[%c102, %c0_226] : memref<296x128xf32, #tpu.memory_space<vmem>>, vector<192x128xf32>
    %212 = arith.truncf %211 : vector<192x128xf32> to vector<192x128xbf16>
    %c23 = arith.constant 23 : index
    %c0_227 = arith.constant 0 : index
    %c0_228 = arith.constant 0 : index
    %213 = vector.load %arg3[%c23, %c0_227, %c0_228] : memref<25x128x128xbf16, #tpu.memory_space<vmem>>, vector<1x128x128xbf16>
    %214 = vector.shape_cast %213 : vector<1x128x128xbf16> to vector<128x128xbf16>
    %cst_229 = arith.constant dense<0.000000e+00> : vector<192x128xf32>
    %215 = tpu.matmul %212, %214, %cst_229 {dimension_numbers = #tpu.dot_dimension_numbers<[1], [0], [0], [1], [0, 0, 1, 1], [], []>} : vector<192x128xbf16>, vector<128x128xbf16>, vector<192x128xf32> -> vector<192x128xf32>
    %c0_230 = arith.constant 0 : index
    %c0_231 = arith.constant 0 : index
    %216 = vector.load %arg11[%c0_230, %c0_231] : memref<192x128xf32, #tpu.memory_space<vmem>>, vector<192x128xf32>
    %217 = arith.addf %216, %215 : vector<192x128xf32>
    %c0_232 = arith.constant 0 : index
    %c0_233 = arith.constant 0 : index
    %218 = vector.load %arg11[%c0_232, %c0_233] : memref<192x128xf32, #tpu.memory_space<vmem>>, vector<192x128xf32>
    tpu.vector_store %arg11[%c0_232, %c0_233], %217 {strides = array<i32>} : memref<192x128xf32, #tpu.memory_space<vmem>>, vector<192x128xf32>,
    %c104 = arith.constant 104 : index
    %c0_234 = arith.constant 0 : index
    %219 = vector.load %arg10[%c104, %c0_234] : memref<296x128xf32, #tpu.memory_space<vmem>>, vector<192x128xf32>
    %220 = arith.truncf %219 : vector<192x128xf32> to vector<192x128xbf16>
    %c24_235 = arith.constant 24 : index
    %c0_236 = arith.constant 0 : index
    %c0_237 = arith.constant 0 : index
    %221 = vector.load %arg3[%c24_235, %c0_236, %c0_237] : memref<25x128x128xbf16, #tpu.memory_space<vmem>>, vector<1x128x128xbf16>
    %222 = vector.shape_cast %221 : vector<1x128x128xbf16> to vector<128x128xbf16>
    %cst_238 = arith.constant dense<0.000000e+00> : vector<192x128xf32>
    %223 = tpu.matmul %220, %222, %cst_238 {dimension_numbers = #tpu.dot_dimension_numbers<[1], [0], [0], [1], [0, 0, 1, 1], [], []>} : vector<192x128xbf16>, vector<128x128xbf16>, vector<192x128xf32> -> vector<192x128xf32>
    %c0_239 = arith.constant 0 : index
    %c0_240 = arith.constant 0 : index
    %224 = vector.load %arg11[%c0_239, %c0_240] : memref<192x128xf32, #tpu.memory_space<vmem>>, vector<192x128xf32>
    %225 = arith.addf %224, %223 : vector<192x128xf32>
    %c0_241 = arith.constant 0 : index
    %c0_242 = arith.constant 0 : index
    %226 = vector.load %arg11[%c0_241, %c0_242] : memref<192x128xf32, #tpu.memory_space<vmem>>, vector<192x128xf32>
    tpu.vector_store %arg11[%c0_241, %c0_242], %225 {strides = array<i32>} : memref<192x128xf32, #tpu.memory_space<vmem>>, vector<192x128xf32>,
    %c0_243 = arith.constant 0 : index
    %c0_244 = arith.constant 0 : index
    %227 = vector.load %arg11[%c0_243, %c0_244] : memref<192x128xf32, #tpu.memory_space<vmem>>, vector<24x128xf32>
    %c24_245 = arith.constant 24 : index
    %c0_246 = arith.constant 0 : index
    %228 = vector.load %arg11[%c24_245, %c0_246] : memref<192x128xf32, #tpu.memory_space<vmem>>, vector<24x128xf32>
    %229 = arith.maximumf %227, %228 : vector<24x128xf32>
    %c0_247 = arith.constant 0 : index
    %c0_248 = arith.constant 0 : index
    %230 = vector.load %arg12[%c0_247, %c0_248] : memref<96x128xf32, #tpu.memory_space<vmem>>, vector<24x128xf32>
    tpu.vector_store %arg12[%c0_247, %c0_248], %229 {strides = array<i32>} : memref<96x128xf32, #tpu.memory_space<vmem>>, vector<24x128xf32>,
    %c48_249 = arith.constant 48 : index
    %c0_250 = arith.constant 0 : index
    %231 = vector.load %arg11[%c48_249, %c0_250] : memref<192x128xf32, #tpu.memory_space<vmem>>, vector<24x128xf32>
    %c72_251 = arith.constant 72 : index
    %c0_252 = arith.constant 0 : index
    %232 = vector.load %arg11[%c72_251, %c0_252] : memref<192x128xf32, #tpu.memory_space<vmem>>, vector<24x128xf32>
    %233 = arith.maximumf %231, %232 : vector<24x128xf32>
    %c24_253 = arith.constant 24 : index
    %c0_254 = arith.constant 0 : index
    %234 = vector.load %arg12[%c24_253, %c0_254] : memref<96x128xf32, #tpu.memory_space<vmem>>, vector<24x128xf32>
    tpu.vector_store %arg12[%c24_253, %c0_254], %233 {strides = array<i32>} : memref<96x128xf32, #tpu.memory_space<vmem>>, vector<24x128xf32>,
    %c96_255 = arith.constant 96 : index
    %c0_256 = arith.constant 0 : index
    %235 = vector.load %arg11[%c96_255, %c0_256] : memref<192x128xf32, #tpu.memory_space<vmem>>, vector<24x128xf32>
    %c120 = arith.constant 120 : index
    %c0_257 = arith.constant 0 : index
    %236 = vector.load %arg11[%c120, %c0_257] : memref<192x128xf32, #tpu.memory_space<vmem>>, vector<24x128xf32>
    %237 = arith.maximumf %235, %236 : vector<24x128xf32>
    %c48_258 = arith.constant 48 : index
    %c0_259 = arith.constant 0 : index
    %238 = vector.load %arg12[%c48_258, %c0_259] : memref<96x128xf32, #tpu.memory_space<vmem>>, vector<24x128xf32>
    tpu.vector_store %arg12[%c48_258, %c0_259], %237 {strides = array<i32>} : memref<96x128xf32, #tpu.memory_space<vmem>>, vector<24x128xf32>,
    %c144 = arith.constant 144 : index
    %c0_260 = arith.constant 0 : index
    %239 = vector.load %arg11[%c144, %c0_260] : memref<192x128xf32, #tpu.memory_space<vmem>>, vector<24x128xf32>
    %c168 = arith.constant 168 : index
    %c0_261 = arith.constant 0 : index
    %240 = vector.load %arg11[%c168, %c0_261] : memref<192x128xf32, #tpu.memory_space<vmem>>, vector<24x128xf32>
    %241 = arith.maximumf %239, %240 : vector<24x128xf32>
    %c72_262 = arith.constant 72 : index
    %c0_263 = arith.constant 0 : index
    %242 = vector.load %arg12[%c72_262, %c0_263] : memref<96x128xf32, #tpu.memory_space<vmem>>, vector<24x128xf32>
    tpu.vector_store %arg12[%c72_262, %c0_263], %241 {strides = array<i32>} : memref<96x128xf32, #tpu.memory_space<vmem>>, vector<24x128xf32>,
    %c0_264 = arith.constant 0 : index
    %c0_265 = arith.constant 0 : index
    %243 = vector.load %arg12[%c0_264, %c0_265] : memref<96x128xf32, #tpu.memory_space<vmem>>, vector<2x128xf32>
    %c2_266 = arith.constant 2 : index
    %c0_267 = arith.constant 0 : index
    %244 = vector.load %arg12[%c2_266, %c0_267] : memref<96x128xf32, #tpu.memory_space<vmem>>, vector<2x128xf32>
    %245 = arith.maximumf %243, %244 : vector<2x128xf32>
    %c0_268 = arith.constant 0 : index
    %c0_269 = arith.constant 0 : index
    %246 = vector.load %arg4[%c0_268, %c0_269] : memref<1x128xf32, #tpu.memory_space<vmem>>, vector<1x128xf32>
    %247 = vector.broadcast %246 : vector<1x128xf32> to vector<2x128xf32>
    %248 = arith.addf %245, %247 : vector<2x128xf32>
    %c4_270 = arith.constant 4 : index
    %c0_271 = arith.constant 0 : index
    %249 = vector.load %arg12[%c4_270, %c0_271] : memref<96x128xf32, #tpu.memory_space<vmem>>, vector<2x128xf32>
    %c6_272 = arith.constant 6 : index
    %c0_273 = arith.constant 0 : index
    %250 = vector.load %arg12[%c6_272, %c0_273] : memref<96x128xf32, #tpu.memory_space<vmem>>, vector<2x128xf32>
    %251 = arith.maximumf %249, %250 : vector<2x128xf32>
    %c0_274 = arith.constant 0 : index
    %c0_275 = arith.constant 0 : index
    %252 = vector.load %arg4[%c0_274, %c0_275] : memref<1x128xf32, #tpu.memory_space<vmem>>, vector<1x128xf32>
    %253 = vector.broadcast %252 : vector<1x128xf32> to vector<2x128xf32>
    %254 = arith.addf %251, %253 : vector<2x128xf32>
    %c8_276 = arith.constant 8 : index
    %c0_277 = arith.constant 0 : index
    %255 = vector.load %arg12[%c8_276, %c0_277] : memref<96x128xf32, #tpu.memory_space<vmem>>, vector<2x128xf32>
    %c10_278 = arith.constant 10 : index
    %c0_279 = arith.constant 0 : index
    %256 = vector.load %arg12[%c10_278, %c0_279] : memref<96x128xf32, #tpu.memory_space<vmem>>, vector<2x128xf32>
    %257 = arith.maximumf %255, %256 : vector<2x128xf32>
    %c0_280 = arith.constant 0 : index
    %c0_281 = arith.constant 0 : index
    %258 = vector.load %arg4[%c0_280, %c0_281] : memref<1x128xf32, #tpu.memory_space<vmem>>, vector<1x128xf32>
    %259 = vector.broadcast %258 : vector<1x128xf32> to vector<2x128xf32>
    %260 = arith.addf %257, %259 : vector<2x128xf32>
    %c12_282 = arith.constant 12 : index
    %c0_283 = arith.constant 0 : index
    %261 = vector.load %arg12[%c12_282, %c0_283] : memref<96x128xf32, #tpu.memory_space<vmem>>, vector<2x128xf32>
    %c14_284 = arith.constant 14 : index
    %c0_285 = arith.constant 0 : index
    %262 = vector.load %arg12[%c14_284, %c0_285] : memref<96x128xf32, #tpu.memory_space<vmem>>, vector<2x128xf32>
    %263 = arith.maximumf %261, %262 : vector<2x128xf32>
    %c0_286 = arith.constant 0 : index
    %c0_287 = arith.constant 0 : index
    %264 = vector.load %arg4[%c0_286, %c0_287] : memref<1x128xf32, #tpu.memory_space<vmem>>, vector<1x128xf32>
    %265 = vector.broadcast %264 : vector<1x128xf32> to vector<2x128xf32>
    %266 = arith.addf %263, %265 : vector<2x128xf32>
    %c24_288 = arith.constant 24 : index
    %c0_289 = arith.constant 0 : index
    %267 = vector.load %arg12[%c24_288, %c0_289] : memref<96x128xf32, #tpu.memory_space<vmem>>, vector<2x128xf32>
    %c26_290 = arith.constant 26 : index
    %c0_291 = arith.constant 0 : index
    %268 = vector.load %arg12[%c26_290, %c0_291] : memref<96x128xf32, #tpu.memory_space<vmem>>, vector<2x128xf32>
    %269 = arith.maximumf %267, %268 : vector<2x128xf32>
    %c0_292 = arith.constant 0 : index
    %c0_293 = arith.constant 0 : index
    %270 = vector.load %arg4[%c0_292, %c0_293] : memref<1x128xf32, #tpu.memory_space<vmem>>, vector<1x128xf32>
    %271 = vector.broadcast %270 : vector<1x128xf32> to vector<2x128xf32>
    %272 = arith.addf %269, %271 : vector<2x128xf32>
    %c28_294 = arith.constant 28 : index
    %c0_295 = arith.constant 0 : index
    %273 = vector.load %arg12[%c28_294, %c0_295] : memref<96x128xf32, #tpu.memory_space<vmem>>, vector<2x128xf32>
    %c30_296 = arith.constant 30 : index
    %c0_297 = arith.constant 0 : index
    %274 = vector.load %arg12[%c30_296, %c0_297] : memref<96x128xf32, #tpu.memory_space<vmem>>, vector<2x128xf32>
    %275 = arith.maximumf %273, %274 : vector<2x128xf32>
    %c0_298 = arith.constant 0 : index
    %c0_299 = arith.constant 0 : index
    %276 = vector.load %arg4[%c0_298, %c0_299] : memref<1x128xf32, #tpu.memory_space<vmem>>, vector<1x128xf32>
    %277 = vector.broadcast %276 : vector<1x128xf32> to vector<2x128xf32>
    %278 = arith.addf %275, %277 : vector<2x128xf32>
    %c32_300 = arith.constant 32 : index
    %c0_301 = arith.constant 0 : index
    %279 = vector.load %arg12[%c32_300, %c0_301] : memref<96x128xf32, #tpu.memory_space<vmem>>, vector<2x128xf32>
    %c34 = arith.constant 34 : index
    %c0_302 = arith.constant 0 : index
    %280 = vector.load %arg12[%c34, %c0_302] : memref<96x128xf32, #tpu.memory_space<vmem>>, vector<2x128xf32>
    %281 = arith.maximumf %279, %280 : vector<2x128xf32>
    %c0_303 = arith.constant 0 : index
    %c0_304 = arith.constant 0 : index
    %282 = vector.load %arg4[%c0_303, %c0_304] : memref<1x128xf32, #tpu.memory_space<vmem>>, vector<1x128xf32>
    %283 = vector.broadcast %282 : vector<1x128xf32> to vector<2x128xf32>
    %284 = arith.addf %281, %283 : vector<2x128xf32>
    %c36 = arith.constant 36 : index
    %c0_305 = arith.constant 0 : index
    %285 = vector.load %arg12[%c36, %c0_305] : memref<96x128xf32, #tpu.memory_space<vmem>>, vector<2x128xf32>
    %c38 = arith.constant 38 : index
    %c0_306 = arith.constant 0 : index
    %286 = vector.load %arg12[%c38, %c0_306] : memref<96x128xf32, #tpu.memory_space<vmem>>, vector<2x128xf32>
    %287 = arith.maximumf %285, %286 : vector<2x128xf32>
    %c0_307 = arith.constant 0 : index
    %c0_308 = arith.constant 0 : index
    %288 = vector.load %arg4[%c0_307, %c0_308] : memref<1x128xf32, #tpu.memory_space<vmem>>, vector<1x128xf32>
    %289 = vector.broadcast %288 : vector<1x128xf32> to vector<2x128xf32>
    %290 = arith.addf %287, %289 : vector<2x128xf32>
    %c48_309 = arith.constant 48 : index
    %c0_310 = arith.constant 0 : index
    %291 = vector.load %arg12[%c48_309, %c0_310] : memref<96x128xf32, #tpu.memory_space<vmem>>, vector<2x128xf32>
    %c50_311 = arith.constant 50 : index
    %c0_312 = arith.constant 0 : index
    %292 = vector.load %arg12[%c50_311, %c0_312] : memref<96x128xf32, #tpu.memory_space<vmem>>, vector<2x128xf32>
    %293 = arith.maximumf %291, %292 : vector<2x128xf32>
    %c0_313 = arith.constant 0 : index
    %c0_314 = arith.constant 0 : index
    %294 = vector.load %arg4[%c0_313, %c0_314] : memref<1x128xf32, #tpu.memory_space<vmem>>, vector<1x128xf32>
    %295 = vector.broadcast %294 : vector<1x128xf32> to vector<2x128xf32>
    %296 = arith.addf %293, %295 : vector<2x128xf32>
    %c52_315 = arith.constant 52 : index
    %c0_316 = arith.constant 0 : index
    %297 = vector.load %arg12[%c52_315, %c0_316] : memref<96x128xf32, #tpu.memory_space<vmem>>, vector<2x128xf32>
    %c54_317 = arith.constant 54 : index
    %c0_318 = arith.constant 0 : index
    %298 = vector.load %arg12[%c54_317, %c0_318] : memref<96x128xf32, #tpu.memory_space<vmem>>, vector<2x128xf32>
    %299 = arith.maximumf %297, %298 : vector<2x128xf32>
    %c0_319 = arith.constant 0 : index
    %c0_320 = arith.constant 0 : index
    %300 = vector.load %arg4[%c0_319, %c0_320] : memref<1x128xf32, #tpu.memory_space<vmem>>, vector<1x128xf32>
    %301 = vector.broadcast %300 : vector<1x128xf32> to vector<2x128xf32>
    %302 = arith.addf %299, %301 : vector<2x128xf32>
    %c56_321 = arith.constant 56 : index
    %c0_322 = arith.constant 0 : index
    %303 = vector.load %arg12[%c56_321, %c0_322] : memref<96x128xf32, #tpu.memory_space<vmem>>, vector<2x128xf32>
    %c58 = arith.constant 58 : index
    %c0_323 = arith.constant 0 : index
    %304 = vector.load %arg12[%c58, %c0_323] : memref<96x128xf32, #tpu.memory_space<vmem>>, vector<2x128xf32>
    %305 = arith.maximumf %303, %304 : vector<2x128xf32>
    %c0_324 = arith.constant 0 : index
    %c0_325 = arith.constant 0 : index
    %306 = vector.load %arg4[%c0_324, %c0_325] : memref<1x128xf32, #tpu.memory_space<vmem>>, vector<1x128xf32>
    %307 = vector.broadcast %306 : vector<1x128xf32> to vector<2x128xf32>
    %308 = arith.addf %305, %307 : vector<2x128xf32>
    %c60 = arith.constant 60 : index
    %c0_326 = arith.constant 0 : index
    %309 = vector.load %arg12[%c60, %c0_326] : memref<96x128xf32, #tpu.memory_space<vmem>>, vector<2x128xf32>
    %c62 = arith.constant 62 : index
    %c0_327 = arith.constant 0 : index
    %310 = vector.load %arg12[%c62, %c0_327] : memref<96x128xf32, #tpu.memory_space<vmem>>, vector<2x128xf32>
    %311 = arith.maximumf %309, %310 : vector<2x128xf32>
    %c0_328 = arith.constant 0 : index
    %c0_329 = arith.constant 0 : index
    %312 = vector.load %arg4[%c0_328, %c0_329] : memref<1x128xf32, #tpu.memory_space<vmem>>, vector<1x128xf32>
    %313 = vector.broadcast %312 : vector<1x128xf32> to vector<2x128xf32>
    %314 = arith.addf %311, %313 : vector<2x128xf32>
    %c72_330 = arith.constant 72 : index
    %c0_331 = arith.constant 0 : index
    %315 = vector.load %arg12[%c72_330, %c0_331] : memref<96x128xf32, #tpu.memory_space<vmem>>, vector<2x128xf32>
    %c74_332 = arith.constant 74 : index
    %c0_333 = arith.constant 0 : index
    %316 = vector.load %arg12[%c74_332, %c0_333] : memref<96x128xf32, #tpu.memory_space<vmem>>, vector<2x128xf32>
    %317 = arith.maximumf %315, %316 : vector<2x128xf32>
    %c0_334 = arith.constant 0 : index
    %c0_335 = arith.constant 0 : index
    %318 = vector.load %arg4[%c0_334, %c0_335] : memref<1x128xf32, #tpu.memory_space<vmem>>, vector<1x128xf32>
    %319 = vector.broadcast %318 : vector<1x128xf32> to vector<2x128xf32>
    %320 = arith.addf %317, %319 : vector<2x128xf32>
    %c76_336 = arith.constant 76 : index
    %c0_337 = arith.constant 0 : index
    %321 = vector.load %arg12[%c76_336, %c0_337] : memref<96x128xf32, #tpu.memory_space<vmem>>, vector<2x128xf32>
    %c78_338 = arith.constant 78 : index
    %c0_339 = arith.constant 0 : index
    %322 = vector.load %arg12[%c78_338, %c0_339] : memref<96x128xf32, #tpu.memory_space<vmem>>, vector<2x128xf32>
    %323 = arith.maximumf %321, %322 : vector<2x128xf32>
    %c0_340 = arith.constant 0 : index
    %c0_341 = arith.constant 0 : index
    %324 = vector.load %arg4[%c0_340, %c0_341] : memref<1x128xf32, #tpu.memory_space<vmem>>, vector<1x128xf32>
    %325 = vector.broadcast %324 : vector<1x128xf32> to vector<2x128xf32>
    %326 = arith.addf %323, %325 : vector<2x128xf32>
    %c80_342 = arith.constant 80 : index
    %c0_343 = arith.constant 0 : index
    %327 = vector.load %arg12[%c80_342, %c0_343] : memref<96x128xf32, #tpu.memory_space<vmem>>, vector<2x128xf32>
    %c82 = arith.constant 82 : index
    %c0_344 = arith.constant 0 : index
    %328 = vector.load %arg12[%c82, %c0_344] : memref<96x128xf32, #tpu.memory_space<vmem>>, vector<2x128xf32>
    %329 = arith.maximumf %327, %328 : vector<2x128xf32>
    %c0_345 = arith.constant 0 : index
    %c0_346 = arith.constant 0 : index
    %330 = vector.load %arg4[%c0_345, %c0_346] : memref<1x128xf32, #tpu.memory_space<vmem>>, vector<1x128xf32>
    %331 = vector.broadcast %330 : vector<1x128xf32> to vector<2x128xf32>
    %332 = arith.addf %329, %331 : vector<2x128xf32>
    %c84 = arith.constant 84 : index
    %c0_347 = arith.constant 0 : index
    %333 = vector.load %arg12[%c84, %c0_347] : memref<96x128xf32, #tpu.memory_space<vmem>>, vector<2x128xf32>
    %c86 = arith.constant 86 : index
    %c0_348 = arith.constant 0 : index
    %334 = vector.load %arg12[%c86, %c0_348] : memref<96x128xf32, #tpu.memory_space<vmem>>, vector<2x128xf32>
    %335 = arith.maximumf %333, %334 : vector<2x128xf32>
    %c0_349 = arith.constant 0 : index
    %c0_350 = arith.constant 0 : index
    %336 = vector.load %arg4[%c0_349, %c0_350] : memref<1x128xf32, #tpu.memory_space<vmem>>, vector<1x128xf32>
    %337 = vector.broadcast %336 : vector<1x128xf32> to vector<2x128xf32>
    %338 = arith.addf %335, %337 : vector<2x128xf32>
    %339 = tpu.concatenate %248, %254, %260, %266, %272, %278, %284, %290, %296, %302, %308, %314, %320, %326, %332, %338 in 1 : vector<2x128xf32>, vector<2x128xf32>, vector<2x128xf32>, vector<2x128xf32>, vector<2x128xf32>, vector<2x128xf32>, vector<2x128xf32>, vector<2x128xf32>, vector<2x128xf32>, vector<2x128xf32>, vector<2x128xf32>, vector<2x128xf32>, vector<2x128xf32>, vector<2x128xf32>, vector<2x128xf32>, vector<2x128xf32> -> vector<2x2048xf32>
    %340 = arith.truncf %339 : vector<2x2048xf32> to vector<2x2048xbf16>
    %c0_351 = arith.constant 0 : index
    %c0_352 = arith.constant 0 : index
    %341 = vector.load %arg5[%c0_351, %c0_352] : memref<2048x512xbf16, #tpu.memory_space<vmem>>, vector<2048x512xbf16>
    %cst_353 = arith.constant dense<0.000000e+00> : vector<2x512xf32>
    %342 = tpu.matmul %340, %341, %cst_353 {dimension_numbers = #tpu.dot_dimension_numbers<[1], [0], [0], [1], [0, 0, 1, 1], [], []>} : vector<2x2048xbf16>, vector<2048x512xbf16>, vector<2x512xf32> -> vector<2x512xf32>
    %c0_354 = arith.constant 0 : index
    %c0_355 = arith.constant 0 : index
    %343 = vector.load %arg6[%c0_354, %c0_355] : memref<1x512xf32, #tpu.memory_space<vmem>>, vector<1x512xf32>
    %344 = vector.broadcast %343 : vector<1x512xf32> to vector<2x512xf32>
    %345 = arith.addf %342, %344 : vector<2x512xf32>
    %cst_356 = arith.constant 0.000000e+00 : f32
    %346 = vector.broadcast %cst_356 : f32 to vector<2x512xf32>
    %347 = arith.maximumf %345, %346 : vector<2x512xf32>
    %348 = arith.truncf %347 : vector<2x512xf32> to vector<2x512xbf16>
    %c0_357 = arith.constant 0 : index
    %c0_358 = arith.constant 0 : index
    %349 = vector.load %arg7[%c0_357, %c0_358] : memref<512x128xbf16, #tpu.memory_space<vmem>>, vector<512x128xbf16>
    %cst_359 = arith.constant dense<0.000000e+00> : vector<2x128xf32>
    %350 = tpu.matmul %348, %349, %cst_359 {dimension_numbers = #tpu.dot_dimension_numbers<[1], [0], [0], [1], [0, 0, 1, 1], [], []>} : vector<2x512xbf16>, vector<512x128xbf16>, vector<2x128xf32> -> vector<2x128xf32>
    %c0_360 = arith.constant 0 : index
    %c0_361 = arith.constant 0 : index
    %351 = vector.load %arg8[%c0_360, %c0_361] : memref<1x128xf32, #tpu.memory_space<vmem>>, vector<1x128xf32>
    %352 = vector.broadcast %351 : vector<1x128xf32> to vector<2x128xf32>
    %353 = arith.addf %350, %352 : vector<2x128xf32>
    %cst_362 = arith.constant dense<0xFF800000> : vector<2xf32>
    %354 = vector.multi_reduction <maximumf>, %353, %cst_362 [1] : vector<2x128xf32> to vector<2xf32>
    %355 = vector.shape_cast %354 : vector<2xf32> to vector<2x1xf32>
    %356 = vector.broadcast %355 : vector<2x1xf32> to vector<2x128xf32>
    %357 = arith.subf %353, %356 : vector<2x128xf32>
    %358 = math.exp %357 : vector<2x128xf32>
    %cst_363 = arith.constant dense<0.000000e+00> : vector<2xf32>
    %359 = vector.multi_reduction <add>, %358, %cst_363 [1] : vector<2x128xf32> to vector<2xf32>
    %360 = vector.shape_cast %359 : vector<2xf32> to vector<2x1xf32>
    %361 = vector.broadcast %360 : vector<2x1xf32> to vector<2x128xf32>
    %362 = arith.divf %358, %361 : vector<2x128xf32>
    %c0_364 = arith.constant 0 : index
    %c0_365 = arith.constant 0 : index
    %363 = vector.load %arg9[%c0_364, %c0_365] : memref<2x128xf32, #tpu.memory_space<vmem>>, vector<2x128xf32>
    tpu.vector_store %arg9[%c0_364, %c0_365], %362 {strides = array<i32>} : memref<2x128xf32, #tpu.memory_space<vmem>>, vector<2x128xf32>,
    return
  }
}

</mosaic_0001>

<bundles_post_ra>
// kernel: net_forward.1
= control target key start
LH: loop header
LB: loop body
LE: loop exit
PB: predicated region body
PF: predicated region fallthrough
CT: control target
= control target key end

     0   :  { %s22855_s0 = inlined_call_operand.vmem [shape: bf16[1152,128], index: 0, kind: input, shape index: {}]   ;;  %s22856_s1 = inlined_call_operand.vmem [shape: bf16[128,128], index: 1, kind: input, shape index: {}]   ;;  %s22857_s2 = inlined_call_operand.vmem [shape: f32[1,128], index: 2, kind: input, shape index: {}]   ;;  %s22858_s3 = inlined_call_operand.vmem [shape: bf16[25,128,128], index: 3, kind: input, shape index: {}]   ;;  %s22859_s4 = inlined_call_operand.vmem [shape: f32[1,128], index: 4, kind: input, shape index: {}]   ;;  %s22860_s5 = inlined_call_operand.vmem [shape: bf16[2048,512], index: 5, kind: input, shape index: {}]   ;;  %s22861_s6 = inlined_call_operand.vmem [shape: f32[1,512], index: 6, kind: input, shape index: {}]   ;;  %s22862_s7 = inlined_call_operand.vmem [shape: bf16[512,128], index: 7, kind: input, shape index: {}]   ;;  %s22863_s8 = inlined_call_operand.vmem [shape: f32[1,128], index: 8, kind: input, shape index: {}]   ;;  %s22864_s9 = inlined_call_operand.hbm [shape: f32[2,128], index: 9, kind: output, shape index: {}]  }
   0x1   :  { %v17543_v0 = vld [vmem:[%s22856_s1] sm:$0xff]   ;;  %v17544_v1 = vld [vmem:[%s22856_s1 + $0x8] sm:$0xff]   ;;  %v17545_v2 = vld [vmem:[%s22856_s1 + $0x10] sm:$0xff]  }
   0x2   :  { %15697 = vmatprep.subr.bf16.mxu1 %v17543_v0  ;;  %v17546_v3 = vld [vmem:[%s22856_s1 + $0x18] sm:$0xff]   ;;  %v17551_v4 = vld [vmem:[%s22855_s0] sm:$0xff]   ;;  %v17548_v6 = vld [vmem:[%s22856_s1 + $0x28] sm:$0xff]  }
   0x3   :  { %15698 = vmatpush3.bf16.msra.mxu1 %v17543_v0  ;;  %15713 = vmatprep.mubr.bf16.mxu1 %v17551_v4  ;;  %v17547_v5 = vld [vmem:[%s22856_s1 + $0x20] sm:$0xff]   ;;  %v17549_v7 = vld [vmem:[%s22856_s1 + $0x30] sm:$0xff]   ;;  %v17550_v8 = vld [vmem:[%s22856_s1 + $0x38] sm:$0xff]  }
   0x4   :  { %15699 = vmatprep.subr.bf16.mxu1 %v17544_v1  ;;  %v17553_v9 = vld [vmem:[%s22856_s1] sm:$0xff]   ;;  %v17552_v11 = vld [vmem:[%s22855_s0 + $0x8] sm:$0xff]   ;;  %v17554_v13 = vld [vmem:[%s22855_s0 + $0x10] sm:$0xff]  }
   0x5   :  { %v17571_v10 = vld [vmem:[%s22856_s1] sm:$0xff]   ;;  %v17573_v12 = vld [vmem:[%s22856_s1 + $0x8] sm:$0xff]   ;;  %v17576_v15 = vld [vmem:[%s22856_s1 + $0x10] sm:$0xff]  }
   0x6   :  { %15801 = vmatprep.subr.bf16.mxu0 %v17571_v10  ;;  %v17556_v14 = vld [vmem:[%s22856_s1 + $0x8] sm:$0xff]   ;;  %v17559_v16 = vld [vmem:[%s22856_s1 + $0x10] sm:$0xff]   ;;  %v17577_v17 = vld [vmem:[%s22856_s1 + $0x18] sm:$0xff]  }
   0x7   :  { %15700 = vmatpush3.bf16.msra.mxu1 %v17544_v1  ;;  %15802 = vmatpush3.bf16.msra.mxu0 %v17571_v10  ;;  %v17555_v18 = vld [vmem:[%s22855_s0 + $0x18] sm:$0xff]   ;;  %v17557_v19 = vld [vmem:[%s22855_s0 + $0x20] sm:$0xff]   ;;  %v17558_v22 = vld [vmem:[%s22855_s0 + $0x28] sm:$0xff]  }
   0x8   :  { %15701 = vmatprep.subr.bf16.mxu1 %v17545_v2  ;;  %15803 = vmatprep.subr.bf16.mxu0 %v17573_v12  ;;  %v17562_v20 = vld [vmem:[%s22856_s1 + $0x18] sm:$0xff]   ;;  %v17581_v21 = vld [vmem:[%s22856_s1 + $0x20] sm:$0xff]   ;;  %v17582_v24 = vld [vmem:[%s22856_s1 + $0x28] sm:$0xff]  }
   0x9   :  { %v17565_v23 = vld [vmem:[%s22856_s1 + $0x20] sm:$0xff]   ;;  %v17560_v25 = vld [vmem:[%s22855_s0 + $0x30] sm:$0xff]   ;;  %v17568_v27 = vld [vmem:[%s22856_s1 + $0x28] sm:$0xff]  }
   0xa   :  { %v17590_v26 = vld [vmem:[%s22855_s0 + $0x120] sm:$0xff]   ;;  %v17586_v28 = vld [vmem:[%s22856_s1 + $0x30] sm:$0xff]   ;;  %v17587_v30 = vld [vmem:[%s22856_s1 + $0x38] sm:$0xff]  }
   0xb   :  { %15702 = vmatpush3.bf16.msra.mxu1 %v17545_v2  ;;  %15804 = vmatpush3.bf16.msra.mxu0 %v17573_v12  ;;  %v17572_v29 = vld [vmem:[%s22856_s1 + $0x30] sm:$0xff]   ;;  %v17561_v31 = vld [vmem:[%s22855_s0 + $0x38] sm:$0xff]   ;;  %v17563_v32 = vld [vmem:[%s22855_s0 + $0x40] sm:$0xff]  }
   0xc   :  { %15703 = vmatprep.subr.bf16.mxu1 %v17546_v3  ;;  %15805 = vmatprep.subr.bf16.mxu0 %v17576_v15  ;;  %v17579_v33 = vld [vmem:[%s22856_s1 + $0x38] sm:$0xff]   ;;  %v17585_v34 = vld [vmem:[%s22856_s1] sm:$0xff]   ;;  %v17592_v35 = vld [vmem:[%s22855_s0 + $0x128] sm:$0xff]  }
   0xd   :  { %15817 = vmatprep.mubr.bf16.mxu0 %v17590_v26  ;;  %v17595_v36 = vld [vmem:[%s22855_s0 + $0x130] sm:$0xff]   ;;  %v17564_v37 = vld [vmem:[%s22855_s0 + $0x48] sm:$0xff]   ;;  %v17596_v39 = vld [vmem:[%s22855_s0 + $0x138] sm:$0xff]  }
   0xe   :  { %v17566_v38 = vld [vmem:[%s22855_s0 + $0x50] sm:$0xff]   ;;  %v17600_v40 = vld [vmem:[%s22855_s0 + $0x140] sm:$0xff]   ;;  %v17567_v41 = vld [vmem:[%s22855_s0 + $0x58] sm:$0xff]  }
   0xf   :  { %15704 = vmatpush3.bf16.msra.mxu1 %v17546_v3  ;;  %15806 = vmatpush3.bf16.msra.mxu0 %v17576_v15  ;;  %v17569_v42 = vld [vmem:[%s22855_s0 + $0x60] sm:$0xff]   ;;  %v17601_v43 = vld [vmem:[%s22855_s0 + $0x148] sm:$0xff]   ;;  %v17605_v44 = vld [vmem:[%s22855_s0 + $0x150] sm:$0xff]  }
  0x10   :  { %15705 = vmatprep.subr.bf16.mxu1 %v17547_v5  ;;  %15807 = vmatprep.subr.bf16.mxu0 %v17577_v17  ;;  %v17570_v45 = vld [vmem:[%s22855_s0 + $0x68] sm:$0xff]   ;;  %v17574_v46 = vld [vmem:[%s22855_s0 + $0x70] sm:$0xff]   ;;  %v17606_v47 = vld [vmem:[%s22855_s0 + $0x158] sm:$0xff]  }
  0x11   :  { %v17610_v48 = vld [vmem:[%s22855_s0 + $0x160] sm:$0xff]   ;;  %v17575_v49 = vld [vmem:[%s22855_s0 + $0x78] sm:$0xff]   ;;  %v17611_v51 = vld [vmem:[%s22855_s0 + $0x168] sm:$0xff]  }
  0x12   :  { %v17578_v50 = vld [vmem:[%s22855_s0 + $0x80] sm:$0xff]   ;;  %v17615_v52 = vld [vmem:[%s22855_s0 + $0x170] sm:$0xff]   ;;  %v17580_v53 = vld [vmem:[%s22855_s0 + $0x88] sm:$0xff]  }
  0x13   :  { %15706 = vmatpush3.bf16.msra.mxu1 %v17547_v5  ;;  %15808 = vmatpush3.bf16.msra.mxu0 %v17577_v17  ;;  %v17583_v54 = vld [vmem:[%s22855_s0 + $0x90] sm:$0xff]   ;;  %v17616_v55 = vld [vmem:[%s22855_s0 + $0x178] sm:$0xff]   ;;  %v17620_v57 = vld [vmem:[%s22855_s0 + $0x180] sm:$0xff]  }
  0x14   :  { %15707 = vmatprep.subr.bf16.mxu1 %v17548_v6  ;;  %15809 = vmatprep.subr.bf16.mxu0 %v17581_v21  ;;  %v17584_v56 = vld [vmem:[%s22855_s0 + $0x98] sm:$0xff]   ;;  %v17588_v58 = vld [vmem:[%s22855_s0 + $0xa0] sm:$0xff]   ;;  %v17591_v59 = vld [vmem:[%s22856_s1 + $0x8] sm:$0xff]  }
  0x15   :  { %v17597_v60 = vld [vmem:[%s22856_s1 + $0x10] sm:$0xff]   ;;  %v17621_v61 = vld [vmem:[%s22855_s0 + $0x188] sm:$0xff]   ;;  %v17602_v1 = vld [vmem:[%s22856_s1 + $0x18] sm:$0xff]  }
  0x16   :  { %v17625_v62 = vld [vmem:[%s22855_s0 + $0x190] sm:$0xff]   ;;  %v17589_v63 = vld [vmem:[%s22855_s0 + $0xa8] sm:$0xff]   ;;  %v17626_v2 = vld [vmem:[%s22855_s0 + $0x198] sm:$0xff]  }
  0x17   :  { %15708 = vmatpush3.bf16.msra.mxu1 %v17548_v6  ;;  %15810 = vmatpush3.bf16.msra.mxu0 %v17581_v21  ;;  %v17593_v0 = vld [vmem:[%s22855_s0 + $0xb0] sm:$0xff]   ;;  %v17607_v3 = vld [vmem:[%s22856_s1 + $0x20] sm:$0xff]   ;;  %v17594_v5 = vld [vmem:[%s22855_s0 + $0xb8] sm:$0xff]  }
  0x18   :  { %15709 = vmatprep.subr.bf16.mxu1 %v17549_v7  ;;  %15811 = vmatprep.subr.bf16.mxu0 %v17582_v24  ;;  %v17629_v4 = vld [vmem:[%s22855_s0 + $0x1a0] sm:$0xff]   ;;  %v17599_v10 = vld [vmem:[%s22855_s0 + $0xc8] sm:$0xff]   ;;  %v17623_v12 = vld [vmem:[%s22856_s1 + $0x38] sm:$0xff]  }
  0x19   :  { %v17598_v6 = vld [vmem:[%s22855_s0 + $0xc0] sm:$0xff]   ;;  %v17609_v15 = vld [vmem:[%s22855_s0 + $0xe8] sm:$0xff]   ;;  %v17614_v17 = vld [vmem:[%s22855_s0 + $0xf8] sm:$0xff]  }
  0x1a   :  { %v17624_v21 = vld [vmem:[%s22855_s0 + $0x118] sm:$0xff]   ;;  %v17633_v26 = vld [vmem:[%s22855_s0 + $0x1d0] sm:$0xff]  }
  0x1b   :  { %15710 = vmatpush3.bf16.msra.mxu1 %v17549_v7  ;;  %15812 = vmatpush3.bf16.msra.mxu0 %v17582_v24  ;;  %v17612_v7 = vld [vmem:[%s22856_s1 + $0x28] sm:$0xff]   ;;  %v17631_v24 = vld [vmem:[%s22855_s0 + $0x1c0] sm:$0xff]  }
  0x1c   :  { %15711 = vmatprep.subr.bf16.mxu1 %v17550_v8  ;;  %15813 = vmatprep.subr.bf16.mxu0 %v17586_v28 }
  0x1f   :  { %15712 = vmatpush3.bf16.msra.mxu1 %v17550_v8  ;;  %15814 = vmatpush3.bf16.msra.mxu0 %v17586_v28  ;;  %v17630_v8 = vld [vmem:[%s22855_s0 + $0x1a8] sm:$0xff]   ;;  %v17635_v28 = vld [vmem:[%s22855_s0 + $0x1e0] sm:$0xff]  }
  0x20   :  { %15749 = vmatprep.subr.bf16.mxu1 %v17553_v9  ;;  %15815 = vmatprep.subr.bf16.mxu0 %v17587_v30 }
  0x22   :  { %15714 = vmatmul.mubr.bf16.vlgmr.msra.gmra.mrb[0].mxu1 %v17552_v11  ;;  %v17603_v11 = vld [vmem:[%s22855_s0 + $0xd0] sm:$0xff]  }
  0x23   :  { %15750 = vmatpush3.bf16.msra.mxu1 %v17553_v9  ;;  %15717 = vmatprep.mubr.bf16.mxu1 %v17554_v13  ;;  %v17617_v9 = vld [vmem:[%s22856_s1 + $0x30] sm:$0xff]   ;;  %v17604_v13 = vld [vmem:[%s22855_s0 + $0xd8] sm:$0xff]  }
  0x24   :  { %15751 = vmatprep.subr.bf16.mxu1 %v17556_v14  ;;  %15816 = vmatpush3.bf16.msra.mxu0 %v17587_v30  ;;  %v17637_v30 = vld [vmem:[%s22855_s0 + $0x1f0] sm:$0xff]  }
  0x27   :  { %15752 = vmatpush3.bf16.msra.mxu1 %v17556_v14  ;;  %15818 = vmatmul.mubr.bf16.vlgmr.msra.gmra.mrb[0].mxu0 %v17592_v35  ;;  %v17608_v14 = vld [vmem:[%s22855_s0 + $0xe0] sm:$0xff]  }
  0x28   :  { %15753 = vmatprep.subr.bf16.mxu1 %v17559_v16  ;;  %15821 = vmatprep.mubr.bf16.mxu0 %v17595_v36  ;;  %v17647_v35 = vld [vmem:[%s22858_s3] sm:$0xff]   ;;  %v17642_v36 = vld [vmem:[%s22855_s0 + $0x218] sm:$0xff]  }
  0x29   :  { %15905 = vmatprep.subr.bf16.mxu0 %v17647_v35 }
  0x2a   :  { %15718 = vmatmul.mubr.bf16.gmra.mrb[4].mxu1 %v17555_v18  ;;  %v17618_v18 = vld [vmem:[%s22855_s0 + $0x100] sm:$0xff]   ;;  %15906 = vmatpush3.bf16.msra.mxu0 %v17647_v35 }
  0x2b   :  { %15721 = vmatprep.mubr.bf16.mxu1 %v17557_v19  ;;  %15754 = vmatpush3.bf16.msra.mxu1 %v17559_v16  ;;  %v17613_v16 = vld [vmem:[%s22855_s0 + $0xf0] sm:$0xff]   ;;  %v17619_v19 = vld [vmem:[%s22855_s0 + $0x108] sm:$0xff]  }
  0x2c   :  { %15755 = vmatprep.subr.bf16.mxu1 %v17562_v20 }
  0x2f   :  { %15756 = vmatpush3.bf16.msra.mxu1 %v17562_v20  ;;  %15822 = vmatmul.mubr.bf16.gmra.mrb[4].mxu0 %v17596_v39  ;;  %v17622_v20 = vld [vmem:[%s22855_s0 + $0x110] sm:$0xff]   ;;  %v17644_v39 = vld [vmem:[%s22855_s0 + $0x228] sm:$0xff]  }
  0x30   :  { %15757 = vmatprep.subr.bf16.mxu1 %v17565_v23  ;;  %15825 = vmatprep.mubr.bf16.mxu0 %v17600_v40  ;;  %v17645_v40 = vld [vmem:[%s22855_s0 + $0x230] sm:$0xff]  }
  0x32   :  { %15722 = vmatmul.mubr.bf16.gmra.mrb[8].mxu1 %v17558_v22  ;;  %v17627_v22 = vld [vmem:[%s22855_s0 + $0x1b0] sm:$0xff]  }
  0x33   :  { %15725 = vmatprep.mubr.bf16.mxu1 %v17560_v25  ;;  %15758 = vmatpush3.bf16.msra.mxu1 %v17565_v23  ;;  %v17628_v23 = vld [vmem:[%s22855_s0 + $0x1b8] sm:$0xff]   ;;  %v17632_v25 = vld [vmem:[%s22855_s0 + $0x1c8] sm:$0xff]  }
  0x34   :  { %15759 = vmatprep.subr.bf16.mxu1 %v17568_v27 }
  0x37   :  { %15760 = vmatpush3.bf16.msra.mxu1 %v17568_v27  ;;  %15826 = vmatmul.mubr.bf16.gmra.mrb[8].mxu0 %v17601_v43  ;;  %v17634_v27 = vld [vmem:[%s22855_s0 + $0x1d8] sm:$0xff]  }
  0x38   :  { %15761 = vmatprep.subr.bf16.mxu1 %v17572_v29  ;;  %15829 = vmatprep.mubr.bf16.mxu0 %v17605_v44  ;;  %v17650_v43 = vld [vmem:[%s22858_s3 + $0x18] sm:$0xff]  }
  0x3a   :  { %15726 = vmatmul.mubr.bf16.gmra.mrb[12].mxu1 %v17561_v31  ;;  %v17638_v31 = vld [vmem:[%s22855_s0 + $0x1f8] sm:$0xff]  }
  0x3b   :  { %15729 = vmatprep.mubr.bf16.mxu1 %v17563_v32  ;;  %15762 = vmatpush3.bf16.msra.mxu1 %v17572_v29  ;;  %v17636_v29 = vld [vmem:[%s22855_s0 + $0x1e8] sm:$0xff]   ;;  %v17639_v32 = vld [vmem:[%s22855_s0 + $0x200] sm:$0xff]  }
  0x3c   :  { %15763 = vmatprep.subr.bf16.mxu1 %v17579_v33 }
  0x3f   :  { %15764 = vmatpush3.bf16.msra.mxu1 %v17579_v33  ;;  %15830 = vmatmul.mubr.bf16.gmra.mrb[12].mxu0 %v17606_v47  ;;  %v17640_v33 = vld [vmem:[%s22855_s0 + $0x208] sm:$0xff]  }
  0x40   :  { %15853 = vmatprep.subr.bf16.mxu1 %v17585_v34  ;;  %15833 = vmatprep.mubr.bf16.mxu0 %v17610_v48  ;;  %v17651_v48 = vld [vmem:[%s22858_s3 + $0x20] sm:$0xff]  }
  0x42   :  { %15730 = vmatmul.mubr.bf16.gmra.mrb[16].mxu1 %v17564_v37  ;;  %v17643_v37 = vld [vmem:[%s22855_s0 + $0x220] sm:$0xff]  }
  0x43   :  { %15733 = vmatprep.mubr.bf16.mxu1 %v17566_v38  ;;  %v17648_v38 = vld [vmem:[%s22858_s3 + $0x8] sm:$0xff]  }
  0x44   :  { %15907 = vmatprep.subr.bf16.mxu0 %v17648_v38 }
  0x45   :  { %15908 = vmatpush3.bf16.msra.mxu0 %v17648_v38 }
  0x47   :  { %15834 = vmatmul.mubr.bf16.gmra.mrb[16].mxu0 %v17611_v51 }
  0x48   :  { %15837 = vmatprep.mubr.bf16.mxu0 %v17615_v52 }
  0x4a   :  { %15734 = vmatmul.mubr.bf16.gmra.mrb[20].mxu1 %v17567_v41  ;;  %v17649_v41 = vld [vmem:[%s22858_s3 + $0x10] sm:$0xff]  }
  0x4b   :  { %15737 = vmatprep.mubr.bf16.mxu1 %v17569_v42  ;;  %15909 = vmatprep.subr.bf16.mxu0 %v17649_v41  ;;  %v17646_v42 = vld [vmem:[%s22855_s0 + $0x238] sm:$0xff]  }
  0x4c   :  { %15910 = vmatpush3.bf16.msra.mxu0 %v17649_v41 }
  0x4d   :  { %15911 = vmatprep.subr.bf16.mxu0 %v17650_v43 }
  0x4f   :  { %15838 = vmatmul.mubr.bf16.gmra.mrb[20].mxu0 %v17616_v55 }
  0x50   :  { %15841 = vmatprep.mubr.bf16.mxu0 %v17620_v57  ;;  %15912 = vmatpush3.bf16.msra.mxu0 %v17650_v43 }
  0x51   :  { %15913 = vmatprep.subr.bf16.mxu0 %v17651_v48 }
  0x52   :  { %15738 = vmatmul.mubr.bf16.gmra.mrb[24].mxu1 %v17570_v45 }
  0x53   :  { %15741 = vmatprep.mubr.bf16.mxu1 %v17574_v46 }
  0x54   :  { %15914 = vmatpush3.bf16.msra.mxu0 %v17651_v48 }
  0x57   :  { %15842 = vmatmul.mubr.bf16.gmra.mrb[24].mxu0 %v17621_v61 }
  0x58   :  { %15845 = vmatprep.mubr.bf16.mxu0 %v17625_v62 }
  0x5a   :  { %15742 = vmatmul.mubr.bf16.gmra.mrb[28].mxu1 %v17575_v49 }
  0x5b   :  { %15745 = vmatprep.mubr.bf16.mxu1 %v17578_v50 }
  0x5f   :  { %15846 = vmatmul.mubr.bf16.gmra.mrb[28].mxu0 %v17626_v2 }
  0x60   :  { %15849 = vmatprep.mubr.bf16.mxu0 %v17629_v4 }
  0x62   :  { %15746 = vmatmul.mubr.bf16.gmra.mrb[32].mxu1 %v17580_v53  ;;  %v17652_v53 = vld [vmem:[%s22858_s3 + $0x28] sm:$0xff]  }
  0x63   :  { %15765 = vmatprep.mubr.bf16.mxu1 %v17583_v54  ;;  %15915 = vmatprep.subr.bf16.mxu0 %v17652_v53 }
  0x64   :  { %15916 = vmatpush3.bf16.msra.mxu0 %v17652_v53 }
  0x67   :  { %15850 = vmatmul.mubr.bf16.gmra.mrb[32].mxu0 %v17630_v8 }
  0x6a   :  { %15766 = vmatmul.mubr.bf16.vlgmr.msra.gmra.mrb[36].mxu1 %v17584_v56  ;;  %v17653_v56 = vld [vmem:[%s22858_s3 + $0x30] sm:$0xff]  }
  0x6b   :  { %15854 = vmatpush3.bf16.msra.mxu1 %v17585_v34  ;;  %15769 = vmatprep.mubr.bf16.mxu1 %v17588_v58  ;;  %v17641_v34 = vld [vmem:[%s22855_s0 + $0x210] sm:$0xff]  }
  0x6c   :  { %15855 = vmatprep.subr.bf16.mxu1 %v17591_v59  ;;  %15917 = vmatprep.subr.bf16.mxu0 %v17653_v56 }
  0x6d   :  { %15918 = vmatpush3.bf16.msra.mxu0 %v17653_v56 }
  0x6f   :  { %15856 = vmatpush3.bf16.msra.mxu1 %v17591_v59  ;;  %v17654_v59 = vld [vmem:[%s22858_s3 + $0x38] sm:$0xff]  }
  0x70   :  { %15857 = vmatprep.subr.bf16.mxu1 %v17597_v60  ;;  %15919 = vmatprep.subr.bf16.mxu0 %v17654_v59 }
  0x71   :  { %15920 = vmatpush3.bf16.msra.mxu0 %v17654_v59 }
  0x72   :  { %15770 = vmatmul.mubr.bf16.gmra.mrb[40].mxu1 %v17589_v63 }
  0x73   :  { %15773 = vmatprep.mubr.bf16.mxu1 %v17593_v0  ;;  %15858 = vmatpush3.bf16.msra.mxu1 %v17597_v60 }
  0x74   :  { %15859 = vmatprep.subr.bf16.mxu1 %v17602_v1 }
  0x77   :  { %15860 = vmatpush3.bf16.msra.mxu1 %v17602_v1 }
  0x78   :  { %15861 = vmatprep.subr.bf16.mxu1 %v17607_v3 }
  0x7a   :  { %15774 = vmatmul.mubr.bf16.gmra.mrb[44].mxu1 %v17594_v5 }
  0x7b   :  { %15777 = vmatprep.mubr.bf16.mxu1 %v17598_v6  ;;  %15862 = vmatpush3.bf16.msra.mxu1 %v17607_v3 }
  0x7c   :  { %15863 = vmatprep.subr.bf16.mxu1 %v17612_v7 }
  0x7f   :  { %15864 = vmatpush3.bf16.msra.mxu1 %v17612_v7 }
  0x80   :  { %15865 = vmatprep.subr.bf16.mxu1 %v17617_v9 }
  0x82   :  { %15778 = vmatmul.mubr.bf16.gmra.mrb[48].mxu1 %v17599_v10 }
  0x83   :  { %15781 = vmatprep.mubr.bf16.mxu1 %v17603_v11  ;;  %15866 = vmatpush3.bf16.msra.mxu1 %v17617_v9 }
  0x84   :  { %15867 = vmatprep.subr.bf16.mxu1 %v17623_v12 }
  0x87   :  { %15868 = vmatpush3.bf16.msra.mxu1 %v17623_v12 }
  0x8a   :  { %15782 = vmatmul.mubr.bf16.gmra.mrb[52].mxu1 %v17604_v13 }
  0x8b   :  { %15785 = vmatprep.mubr.bf16.mxu1 %v17608_v14  ;;  %v19220_v14 = vld [vmem:[%s22858_s3 + $0x40] sm:$0xff]  }
  0x8c   :  { %23023 = vst [vmem:[#allocation8_spill] sm:$0xff] %v19220_v14  ;;  %15945 = vmatprep.subr.bf16.mxu0 %v19220_v14 }
  0x92   :  { %15786 = vmatmul.mubr.bf16.gmra.mrb[56].mxu1 %v17609_v15 }
  0x93   :  { %15789 = vmatprep.mubr.bf16.mxu1 %v17613_v16 }
  0x9a   :  { %15790 = vmatmul.mubr.bf16.gmra.mrb[60].mxu1 %v17614_v17 }
  0x9b   :  { %15793 = vmatprep.mubr.bf16.mxu1 %v17618_v18 }
  0xa2   :  { %15794 = vmatmul.mubr.bf16.gmra.mrb[64].mxu1 %v17619_v19 }
  0xa3   :  { %15797 = vmatprep.mubr.bf16.mxu1 %v17622_v20 }
  0xaa   :  { %15798 = vmatmul.mubr.bf16.gmra.mrb[68].mxu1 %v17624_v21 }
  0xab   :  { %15869 = vmatprep.mubr.bf16.mxu1 %v17627_v22 }
  0xb2   :  { %15870 = vmatmul.mubr.bf16.vlgmr.msra.gmra.mrb[72].mxu1 %v17628_v23 }
  0xb3   :  { %15873 = vmatprep.mubr.bf16.mxu1 %v17631_v24 }
  0xba   :  { %15874 = vmatmul.mubr.bf16.gmra.mrb[76].mxu1 %v17632_v25 }
  0xbb   :  { %15877 = vmatprep.mubr.bf16.mxu1 %v17633_v26 }
  0xc2   :  { %15878 = vmatmul.mubr.bf16.gmra.mrb[80].mxu1 %v17634_v27 }
  0xc3   :  { %15881 = vmatprep.mubr.bf16.mxu1 %v17635_v28 }
  0xca   :  { %15882 = vmatmul.mubr.bf16.gmra.mrb[84].mxu1 %v17636_v29 }
  0xcb   :  { %15885 = vmatprep.mubr.bf16.mxu1 %v17637_v30 }
  0xd2   :  { %15886 = vmatmul.mubr.bf16.gmra.mrb[88].mxu1 %v17638_v31 }
  0xd3   :  { %15889 = vmatprep.mubr.bf16.mxu1 %v17639_v32 }
  0xda   :  { %15890 = vmatmul.mubr.bf16.gmra.mrb[92].mxu1 %v17640_v33 }
  0xdb   :  { %15893 = vmatprep.mubr.bf16.mxu1 %v17641_v34 }
  0xe2   :  { %15894 = vmatmul.mubr.bf16.gmra.mrb[96].mxu1 %v17642_v36 }
  0xe3   :  { %15897 = vmatprep.mubr.bf16.mxu1 %v17643_v37 }
  0xea   :  { %15898 = vmatmul.mubr.bf16.gmra.mrb[100].mxu1 %v17644_v39 }
  0xeb   :  { %15901 = vmatprep.mubr.bf16.mxu1 %v17645_v40 }
  0xf2   :  { %15902 = vmatmul.mubr.bf16.gmra.mrb[104].mxu1 %v17646_v42 }
  0xf5   :  { %v19161_v44 = vpop.f32.mrb[0].mxu1 }
  0xf6   :  { %v19163_v45 = vpop.f32.mrb[1].mxu1 }
  0xf7   :  { %v19165_v46 = vpop.f32.mrb[2].mxu1 }
  0xf8   :  { %v19167_v47 = vpop.f32.mrb[3].mxu1 }
  0xfa   :  { %v15819_v0 = vpop.f32.mrb[0].mxu0 }
  0xfb   :  { %v1226_v1 = vpop.f32.mrb[1].mxu0 }
  0xfc   :  { %v15820_v2 = vpop.f32.mrb[2].mxu0 }
  0xfd   :  { %v19172_v49 = vpop.f32.mrb[4].mxu1  ;;  %v1229_v4 = vpop.f32.mrb[3].mxu0 }
  0xfe   :  { %v19174_v50 = vpop.f32.mrb[5].mxu1 }
  0xff   :  { %v19176_v51 = vpop.f32.mrb[6].mxu1 }
 0x100   :  { %v19178_v52 = vpop.f32.mrb[7].mxu1 }
 0x102   :  { %v15823_v8 = vpop.f32.mrb[4].mxu0 }
 0x103   :  { %v1242_v9 = vpop.f32.mrb[5].mxu0 }
 0x104   :  { %v15824_v10 = vpop.f32.mrb[6].mxu0 }
 0x105   :  { %v19183_v54 = vpop.f32.mrb[8].mxu1  ;;  %v1245_v12 = vpop.f32.mrb[7].mxu0 }
 0x106   :  { %v19185_v55 = vpop.f32.mrb[9].mxu1 }
 0x107   :  { %v19190_v57 = vpop.f32.mrb[10].mxu1 }
 0x108   :  { %v19192_v58 = vpop.f32.mrb[11].mxu1 }
 0x10a   :  { %v19227_v17 = vpop.f32.mrb[8].mxu0 }
 0x10b   :  { %v19229_v18 = vpop.f32.mrb[9].mxu0 }
 0x10c   :  { %v19231_v19 = vpop.f32.mrb[10].mxu0 }
 0x10d   :  { %v19197_v60 = vpop.f32.mrb[12].mxu1  ;;  %v19235_v21 = vpop.f32.mrb[11].mxu0 }
 0x10e   :  { %v19199_v61 = vpop.f32.mrb[13].mxu1 }
 0x10f   :  { %v19201_v62 = vpop.f32.mrb[14].mxu1 }
 0x110   :  { %v19203_v63 = vpop.f32.mrb[15].mxu1 }
 0x112   :  { %v19243_v25 = vpop.f32.mrb[12].mxu0 }
 0x113   :  { %v19245_v26 = vpop.f32.mrb[13].mxu0 }
 0x114   :  { %v19247_v27 = vpop.f32.mrb[14].mxu0 }
 0x115   :  { %v19205_v3 = vpop.f32.mrb[16].mxu1  ;;  %v19251_v29 = vpop.f32.mrb[15].mxu0 }
 0x116   :  { %v19207_v5 = vpop.f32.mrb[17].mxu1 }
 0x117   :  { %v19209_v6 = vpop.f32.mrb[18].mxu1 }
 0x118   :  { %v19211_v7 = vpop.f32.mrb[19].mxu1 }
 0x11a   :  { %v19259_v33 = vpop.f32.mrb[16].mxu0 }
 0x11b   :  { %v19261_v34 = vpop.f32.mrb[17].mxu0 }
 0x11c   :  { %v19263_v35 = vpop.f32.mrb[18].mxu0 }
 0x11d   :  { %v19213_v11 = vpop.f32.mrb[20].mxu1  ;;  %v19267_v37 = vpop.f32.mrb[19].mxu0 }
 0x11e   :  { %v19215_v13 = vpop.f32.mrb[21].mxu1 }
 0x11f   :  { %v19222_v15 = vpop.f32.mrb[22].mxu1 }
 0x120   :  { %v19224_v16 = vpop.f32.mrb[23].mxu1 }
 0x122   :  { %v19275_v41 = vpop.f32.mrb[20].mxu0 }
 0x123   :  { %v19277_v42 = vpop.f32.mrb[21].mxu0 }
 0x124   :  { %v19279_v43 = vpop.f32.mrb[22].mxu0 }
 0x125   :  { %v19233_v20 = vpop.f32.mrb[24].mxu1  ;;  %v19281_v53 = vpop.f32.mrb[23].mxu0 }
 0x126   :  { %v19237_v22 = vpop.f32.mrb[25].mxu1 }
 0x127   :  { %v19239_v23 = vpop.f32.mrb[26].mxu1 }
 0x128   :  { %v19241_v24 = vpop.f32.mrb[27].mxu1 }
 0x129   :  { %23024 = vst [vmem:[#allocation9_spill] sm:$0xff] %v19241_v24 }
 0x12d   :  { %v19249_v28 = vpop.f32.mrb[28].mxu1 }
 0x12e   :  { %23025 = vst [vmem:[#allocation10_spill] sm:$0xff] %v19249_v28  ;;  %v19253_v30 = vpop.f32.mrb[29].mxu1  ;;  %v19293_v28 = vpop.f32.mrb[24].mxu0 }
 0x12f   :  { %23026 = vst [vmem:[#allocation11_spill] sm:$0xff] %v19253_v30  ;;  %v19255_v31 = vpop.f32.mrb[30].mxu1 }
 0x130   :  { %23027 = vst [vmem:[#allocation12_spill] sm:$0xff] %v19255_v31  ;;  %v19257_v32 = vpop.f32.mrb[31].mxu1 }
 0x131   :  { %23028 = vst [vmem:[#allocation13_spill] sm:$0xff] %v19257_v32 }
 0x135   :  { %v19265_v36 = vpop.f32.mrb[32].mxu1 }
 0x136   :  { %23029 = vst [vmem:[#allocation14_spill] sm:$0xff] %v19265_v36  ;;  %v19269_v38 = vpop.f32.mrb[33].mxu1 }
 0x137   :  { %23030 = vst [vmem:[#allocation15_spill] sm:$0xff] %v19269_v38  ;;  %v19271_v39 = vpop.f32.mrb[34].mxu1 }
 0x138   :  { %23031 = vst [vmem:[#allocation16_spill] sm:$0xff] %v19271_v39  ;;  %v19273_v40 = vpop.f32.mrb[35].mxu1 }
 0x139   :  { %23032 = vst [vmem:[#allocation17_spill] sm:$0xff] %v19273_v40 }
 0x13d   :  { %v15767_v48 = vpop.f32.mrb[36].mxu1 }
 0x13e   :  { %v878_v56 = vmax.f32 %v19161_v44, %v15767_v48  ;;  %v733_v59 = vpop.f32.mrb[37].mxu1  ;;  %v19297_v44 = vpop.f32.mrb[25].mxu0 }
 0x13f   :  { %v876_v14 = vmax.f32 %v19163_v45, %v733_v59  ;;  %v15768_v36 = vpop.f32.mrb[38].mxu1  ;;  %v19299_v48 = vpop.f32.mrb[26].mxu0 }
 0x140   :  { %v879_v38 = vmax.f32 %v19165_v46, %v15768_v36  ;;  %v736_v39 = vpop.f32.mrb[39].mxu1  ;;  %v19286_v32 = vmax.f32 %v878_v56, %v15819_v0  ;;  %v19301_v59 = vpop.f32.mrb[27].mxu0 }
 0x141   :  { %v877_v40 = vmax.f32 %v19167_v47, %v736_v39  ;;  %v19289_v31 = vmax.f32 %v876_v14, %v1226_v1 }
 0x142   :  { %v19291_v30 = vmax.f32 %v879_v38, %v15820_v2 }
 0x143   :  { %v19295_v24 = vmax.f32 %v877_v40, %v1229_v4  ;;  %v19313_v40 = vpop.f32.mrb[28].mxu0 }
 0x145   :  { %v15771_v45 = vpop.f32.mrb[40].mxu1 }
 0x146   :  { %v882_v46 = vmax.f32 %v19172_v49, %v15771_v45  ;;  %v749_v0 = vpop.f32.mrb[41].mxu1  ;;  %v19317_v49 = vpop.f32.mrb[29].mxu0 }
 0x147   :  { %v880_v47 = vmax.f32 %v19174_v50, %v749_v0  ;;  %v15772_v1 = vpop.f32.mrb[42].mxu1  ;;  %v19319_v45 = vpop.f32.mrb[30].mxu0 }
 0x148   :  { %v883_v2 = vmax.f32 %v19176_v51, %v15772_v1  ;;  %v752_v14 = vpop.f32.mrb[43].mxu1  ;;  %v19306_v36 = vmax.f32 %v882_v46, %v15823_v8  ;;  %v19321_v0 = vpop.f32.mrb[31].mxu0 }
 0x149   :  { %v881_v4 = vmax.f32 %v19178_v52, %v752_v14  ;;  %v19309_v38 = vmax.f32 %v880_v47, %v1242_v9  ;;  %v19336_v14 = vpop.f32.mrb[32].mxu0 }
 0x14a   :  { %v19311_v39 = vmax.f32 %v883_v2, %v15824_v10 }
 0x14b   :  { %v19315_v56 = vmax.f32 %v881_v4, %v1245_v12 }
 0x14d   :  { %v15775_v50 = vpop.f32.mrb[44].mxu1 }
 0x14e   :  { %v886_v51 = vmax.f32 %v19183_v54, %v15775_v50  ;;  %v765_v8 = vpop.f32.mrb[45].mxu1 }
 0x14f   :  { %v884_v52 = vmax.f32 %v19185_v55, %v765_v8  ;;  %v15776_v9 = vpop.f32.mrb[46].mxu1  ;;  %v19341_v55 = vpop.f32.mrb[33].mxu0 }
 0x150   :  { %v887_v10 = vmax.f32 %v19190_v57, %v15776_v9  ;;  %v768_v46 = vpop.f32.mrb[47].mxu1  ;;  %v19327_v47 = vmax.f32 %v886_v51, %v19227_v17  ;;  %v19343_v57 = vpop.f32.mrb[34].mxu0 }
 0x151   :  { %v885_v12 = vmax.f32 %v19192_v58, %v768_v46  ;;  %v19331_v1 = vmax.f32 %v884_v52, %v19229_v18  ;;  %v19345_v17 = vpop.f32.mrb[35].mxu0 }
 0x152   :  { %v19334_v2 = vmax.f32 %v887_v10, %v19231_v19 }
 0x153   :  { %v19339_v54 = vmax.f32 %v885_v12, %v19235_v21 }
 0x155   :  { %v15779_v4 = vpop.f32.mrb[48].mxu1 }
 0x156   :  { %v890_v58 = vmax.f32 %v19197_v60, %v15779_v4  ;;  %v781_v50 = vpop.f32.mrb[49].mxu1 }
 0x157   :  { %v888_v18 = vmax.f32 %v19199_v61, %v781_v50  ;;  %v15780_v51 = vpop.f32.mrb[50].mxu1 }
 0x158   :  { %v891_v19 = vmax.f32 %v19201_v62, %v15780_v51  ;;  %v784_v8 = vpop.f32.mrb[51].mxu1  ;;  %v19351_v52 = vmax.f32 %v890_v58, %v19243_v25 }
 0x159   :  { %v889_v21 = vmax.f32 %v19203_v63, %v784_v8  ;;  %v19355_v9 = vmax.f32 %v888_v18, %v19245_v26 }
 0x15a   :  { %v19358_v10 = vmax.f32 %v891_v19, %v19247_v27 }
 0x15b   :  { %v19361_v60 = vmax.f32 %v889_v21, %v19251_v29 }
 0x15d   :  { %v15783_v46 = vpop.f32.mrb[52].mxu1 }
 0x15e   :  { %v894_v61 = vmax.f32 %v19205_v3, %v15783_v46  ;;  %v797_v12 = vpop.f32.mrb[53].mxu1 }
 0x15f   :  { %v892_v62 = vmax.f32 %v19207_v5, %v797_v12  ;;  %v15784_v4 = vpop.f32.mrb[54].mxu1 }
 0x160   :  { %v895_v25 = vmax.f32 %v19209_v6, %v15784_v4  ;;  %v800_v58 = vpop.f32.mrb[55].mxu1  ;;  %v19367_v63 = vmax.f32 %v894_v61, %v19259_v33 }
 0x161   :  { %v893_v26 = vmax.f32 %v19211_v7, %v800_v58  ;;  %v19371_v27 = vmax.f32 %v892_v62, %v19261_v34 }
 0x162   :  { %v19374_v29 = vmax.f32 %v895_v25, %v19263_v35 }
 0x163   :  { %v19377_v3 = vmax.f32 %v893_v26, %v19267_v37 }
 0x165   :  { %v15787_v50 = vpop.f32.mrb[56].mxu1 }
 0x166   :  { %v898_v5 = vmax.f32 %v19213_v11, %v15787_v50  ;;  %v813_v18 = vpop.f32.mrb[57].mxu1 }
 0x167   :  { %v896_v6 = vmax.f32 %v19215_v13, %v813_v18  ;;  %v15788_v51 = vpop.f32.mrb[58].mxu1 }
 0x168   :  { %v899_v33 = vmax.f32 %v19222_v15, %v15788_v51  ;;  %v816_v19 = vpop.f32.mrb[59].mxu1  ;;  %v19383_v7 = vmax.f32 %v898_v5, %v19275_v41 }
 0x169   :  { %v897_v34 = vmax.f32 %v19224_v16, %v816_v19  ;;  %v19387_v35 = vmax.f32 %v896_v6, %v19277_v42  ;;  %v23033_v42 = vld [vmem:[#allocation9_spill] sm:$0xff]  ;;  %v23038_v19 = vld [vmem:[#allocation14_spill] sm:$0xff] }
 0x16a   :  { %v19390_v37 = vmax.f32 %v899_v33, %v19279_v43 }
 0x16b   :  { %v19393_v11 = vmax.f32 %v897_v34, %v19281_v53 }
 0x16d   :  { %v15791_v8 = vpop.f32.mrb[60].mxu1 }
 0x16e   :  { %v902_v13 = vmax.f32 %v19233_v20, %v15791_v8  ;;  %v829_v21 = vpop.f32.mrb[61].mxu1 }
 0x16f   :  { %v900_v15 = vmax.f32 %v19237_v22, %v829_v21  ;;  %v15792_v46 = vpop.f32.mrb[62].mxu1  ;;  %v23034_v22 = vld [vmem:[#allocation10_spill] sm:$0xff] }
 0x170   :  { %v903_v41 = vmax.f32 %v19239_v23, %v15792_v46  ;;  %v832_v61 = vpop.f32.mrb[63].mxu1  ;;  %v19399_v16 = vmax.f32 %v902_v13, %v19293_v28  ;;  %v23035_v23 = vld [vmem:[#allocation11_spill] sm:$0xff]  ;;  %v23036_v28 = vld [vmem:[#allocation12_spill] sm:$0xff] }
 0x171   :  { %v901_v12 = vmax.f32 %v23033_v42, %v832_v61  ;;  %v19403_v43 = vmax.f32 %v900_v15, %v19297_v44  ;;  %v23037_v44 = vld [vmem:[#allocation13_spill] sm:$0xff]  ;;  %v23039_v13 = vld [vmem:[#allocation15_spill] sm:$0xff] }
 0x172   :  { %v19406_v53 = vmax.f32 %v903_v41, %v19299_v48 }
 0x173   :  { %v19409_v20 = vmax.f32 %v901_v12, %v19301_v59  ;;  %v19443_v12 = vld [vmem:[%s22857_s2] ss:$0 sm:$0xff] }
 0x175   :  { %v15795_v62 = vpop.f32.mrb[64].mxu1 }
 0x176   :  { %v906_v4 = vmax.f32 %v23034_v22, %v15795_v62  ;;  %v845_v25 = vpop.f32.mrb[65].mxu1 }
 0x177   :  { %v904_v58 = vmax.f32 %v23035_v23, %v845_v25  ;;  %v15796_v26 = vpop.f32.mrb[66].mxu1 }
 0x178   :  { %v907_v50 = vmax.f32 %v23036_v28, %v15796_v26  ;;  %v848_v5 = vpop.f32.mrb[67].mxu1  ;;  %v19415_v18 = vmax.f32 %v906_v4, %v19313_v40  ;;  %v23040_v40 = vld [vmem:[#allocation16_spill] sm:$0xff] }
 0x179   :  { %v905_v6 = vmax.f32 %v23037_v44, %v848_v5  ;;  %v19419_v48 = vmax.f32 %v904_v58, %v19317_v49  ;;  %v23041_v49 = vld [vmem:[#allocation17_spill] sm:$0xff]  ;;  %v18785_v5 = vmov 0.0  }
 0x17a   :  { %v19422_v59 = vmax.f32 %v907_v50, %v19319_v45  ;;  %2049 = vst [vmem:[#allocation2 + $0x120] sm:$0xff] %v18785_v5 }
 0x17b   :  { %v19425_v51 = vmax.f32 %v905_v6, %v19321_v0 }
 0x17d   :  { %v15799_v33 = vpop.f32.mrb[68].mxu1 }
 0x17e   :  { %v910_v34 = vmax.f32 %v23038_v19, %v15799_v33  ;;  %v861_v8 = vpop.f32.mrb[69].mxu1 }
 0x17f   :  { %v908_v21 = vmax.f32 %v23039_v13, %v861_v8  ;;  %v15800_v15 = vpop.f32.mrb[70].mxu1 }
 0x180   :  { %v911_v46 = vmax.f32 %v23040_v40, %v15800_v15  ;;  %v864_v41 = vpop.f32.mrb[71].mxu1  ;;  %v19431_v61 = vmax.f32 %v910_v34, %v19336_v14  ;;  %v23042_v40 = vld [vmem:[#allocation8_spill] sm:$0xff] }
 0x181   :  { %v909_v42 = vmax.f32 %v23041_v49, %v864_v41  ;;  %v19435_v45 = vmax.f32 %v908_v21, %v19341_v55 }
 0x182   :  { %v19438_v0 = vmax.f32 %v911_v46, %v19343_v57 }
 0x183   :  { %v19446_v62 = vmax.f32 %v909_v42, %v19345_v17 }
 0x185   :  { %v15871_v22 = vpop.f32.mrb[72].mxu1 }
 0x186   :  { %v1864_v14 = vmax.f32 %v19286_v32, %v15871_v22  ;;  %v1719_v4 = vpop.f32.mrb[73].mxu1  ;;  %v17658_v22 = vld [vmem:[%s22858_s3 + $0x58] sm:$0xff]  }
 0x187   :  { %v1862_v25 = vmax.f32 %v19289_v31, %v1719_v4  ;;  %v15872_v23 = vpop.f32.mrb[74].mxu1  ;;  %v17656_v31 = vld [vmem:[%s22858_s3 + $0x48] sm:$0xff]  }
 0x188   :  { %v1979_v55 = vadd.f32 %v19443_v12, %v1864_v14  ;;  %v1865_v57 = vmax.f32 %v19291_v30, %v15872_v23  ;;  %v1722_v58 = vpop.f32.mrb[75].mxu1 }
 0x189   :  { %v1977_v26 = vadd.f32 %v19443_v12, %v1862_v25  ;;  %v1863_v28 = vmax.f32 %v19295_v24, %v1722_v58 }
 0x18a   :  { %2015 = vst [vmem:[#allocation2 + $0x10] sm:$0xff] %v1979_v55  ;;  %v1980_v17 = vadd.f32 %v19443_v12, %v1865_v57 }
 0x18b   :  { %2013 = vst [vmem:[#allocation2] sm:$0xff] %v1977_v26  ;;  %v1978_v50 = vadd.f32 %v19443_v12, %v1863_v28 }
 0x18c   :  { %2016 = vst [vmem:[#allocation2 + $0x18] sm:$0xff] %v1980_v17  ;;  %v2075_v32 = vpack.c.bf16 %v1980_v17, %v1979_v55 }
 0x18d   :  { %2014 = vst [vmem:[#allocation2 + $0x8] sm:$0xff] %v1978_v50  ;;  %v15875_v30 = vpop.f32.mrb[76].mxu1  ;;  %v2074_v44 = vpack.c.bf16 %v1978_v50, %v1977_v26 }
 0x18e   :  { %v1868_v6 = vmax.f32 %v19306_v36, %v15875_v30  ;;  %v1735_v24 = vpop.f32.mrb[77].mxu1  ;;  %v17657_v36 = vld [vmem:[%s22858_s3 + $0x50] sm:$0xff]  }
 0x18f   :  { %v1866_v33 = vmax.f32 %v19309_v38, %v1735_v24  ;;  %v15876_v19 = vpop.f32.mrb[78].mxu1  ;;  %15921 = vmatprep.mubr.bf16.mxu0 %v2074_v44 }
 0x190   :  { %v1983_v34 = vadd.f32 %v19443_v12, %v1868_v6  ;;  %v1869_v8 = vmax.f32 %v19311_v39, %v15876_v19  ;;  %v1738_v13 = vpop.f32.mrb[79].mxu1  ;;  %15922 = vmatmul.mubr.bf16.vlgmr.msra.gmra.mrb[36].mxu0 %v2075_v32 }
 0x191   :  { %v1981_v21 = vadd.f32 %v19443_v12, %v1866_v33  ;;  %v1867_v15 = vmax.f32 %v19315_v56, %v1738_v13  ;;  %15946 = vmatpush3.bf16.msra.mxu0 %v23042_v40 }
 0x192   :  { %2019 = vst [vmem:[#allocation2 + $0x30] sm:$0xff] %v1983_v34  ;;  %v1984_v38 = vadd.f32 %v19443_v12, %v1869_v8  ;;  %15947 = vmatprep.subr.bf16.mxu0 %v17656_v31 }
 0x193   :  { %2017 = vst [vmem:[#allocation2 + $0x20] sm:$0xff] %v1981_v21  ;;  %v1982_v46 = vadd.f32 %v19443_v12, %v1867_v15  ;;  %v17660_v15 = vld [vmem:[%s22858_s3 + $0x68] sm:$0xff]  }
 0x194   :  { %2020 = vst [vmem:[#allocation2 + $0x38] sm:$0xff] %v1984_v38  ;;  %v2077_v39 = vpack.c.bf16 %v1984_v38, %v1983_v34 }
 0x195   :  { %2018 = vst [vmem:[#allocation2 + $0x28] sm:$0xff] %v1982_v46  ;;  %v15879_v41 = vpop.f32.mrb[80].mxu1  ;;  %v2076_v49 = vpack.c.bf16 %v1982_v46, %v1981_v21  ;;  %15948 = vmatpush3.bf16.msra.mxu0 %v17656_v31 }
 0x196   :  { %v1872_v56 = vmax.f32 %v19327_v47, %v15879_v41  ;;  %v1751_v42 = vpop.f32.mrb[81].mxu1  ;;  %15949 = vmatprep.subr.bf16.mxu0 %v17657_v36 }
 0x197   :  { %v1870_v14 = vmax.f32 %v19331_v1, %v1751_v42  ;;  %v15880_v4 = vpop.f32.mrb[82].mxu1  ;;  %15925 = vmatprep.mubr.bf16.mxu0 %v2076_v49  ;;  %v17659_v1 = vld [vmem:[%s22858_s3 + $0x60] sm:$0xff]  }
 0x198   :  { %v1987_v25 = vadd.f32 %v19443_v12, %v1872_v56  ;;  %v1873_v23 = vmax.f32 %v19334_v2, %v15880_v4  ;;  %v1754_v55 = vpop.f32.mrb[83].mxu1  ;;  %15926 = vmatmul.mubr.bf16.gmra.mrb[40].mxu0 %v2077_v39 }
 0x199   :  { %v1985_v57 = vadd.f32 %v19443_v12, %v1870_v14  ;;  %v1871_v47 = vmax.f32 %v19339_v54, %v1754_v55  ;;  %15950 = vmatpush3.bf16.msra.mxu0 %v17657_v36  ;;  %v3214_v14 = vld [vmem:[#allocation2 + $0x30] sm:$0xff] }
 0x19a   :  { %2023 = vst [vmem:[#allocation2 + $0x50] sm:$0xff] %v1987_v25  ;;  %v1988_v58 = vadd.f32 %v19443_v12, %v1873_v23  ;;  %15951 = vmatprep.subr.bf16.mxu0 %v17658_v22  ;;  %v19484_v26 = vld [vmem:[#allocation2 + $0x1a] sm:$0xff] }
 0x19b   :  { %23043 = vst [vmem:[#allocation9_spill] sm:$0xff] %v19484_v26  ;;  %2021 = vst [vmem:[#allocation2 + $0x40] sm:$0xff] %v1985_v57  ;;  %v1986_v2 = vadd.f32 %v19443_v12, %v1871_v47  ;;  %v19487_v28 = vld [vmem:[#allocation2 + $0x32] sm:$0xff]  ;;  %v19489_v17 = vld [vmem:[#allocation2 + $0x1c] sm:$0xff] }
 0x19c   :  { %23044 = vst [vmem:[#allocation10_spill] sm:$0xff] %v19487_v28  ;;  %v19491_v50 = vld [vmem:[#allocation2 + $0x34] sm:$0xff]  ;;  %2024 = vst [vmem:[#allocation2 + $0x58] sm:$0xff] %v1988_v58  ;;  %v2079_v32 = vpack.c.bf16 %v1988_v58, %v1987_v25  ;;  %v19495_v31 = vld [vmem:[#allocation2 + $0x22] sm:$0xff] }
 0x19d   :  { %v19493_v54 = vld [vmem:[#allocation2 + $0x36] sm:$0xff]  ;;  %23046 = vst [vmem:[#allocation12_spill] sm:$0xff] %v19495_v31  ;;  %v19497_v5 = vld [vmem:[#allocation2 + $0x2a] sm:$0xff]  ;;  %2022 = vst [vmem:[#allocation2 + $0x48] sm:$0xff] %v1986_v2  ;;  %v15883_v44 = vpop.f32.mrb[84].mxu1  ;;  %v2078_v6 = vpack.c.bf16 %v1986_v2, %v1985_v57  ;;  %15952 = vmatpush3.bf16.msra.mxu0 %v17658_v22 }
 0x19e   :  { %23045 = vst [vmem:[#allocation11_spill] sm:$0xff] %v19493_v54  ;;  %23047 = vst [vmem:[#allocation13_spill] sm:$0xff] %v19497_v5  ;;  %v19499_v30 = vld [vmem:[#allocation2 + $0x24] sm:$0xff]  ;;  %v19501_v24 = vld [vmem:[#allocation2 + $0x2c] sm:$0xff]  ;;  %v1876_v13 = vmax.f32 %v19351_v52, %v15883_v44  ;;  %v1767_v21 = vpop.f32.mrb[85].mxu1  ;;  %15953 = vmatprep.subr.bf16.mxu0 %v17659_v1 }
 0x19f   :  { %v19503_v33 = vld [vmem:[#allocation2 + $0x26] sm:$0xff]  ;;  %v19505_v19 = vld [vmem:[#allocation2 + $0x2e] sm:$0xff]  ;;  %v3215_v36 = vld [vmem:[#allocation2 + $0x38] sm:$0xff]  ;;  %v1874_v46 = vmax.f32 %v19355_v9, %v1767_v21  ;;  %v15884_v39 = vpop.f32.mrb[86].mxu1  ;;  %15929 = vmatprep.mubr.bf16.mxu0 %v2078_v6 }
 0x1a0   :  { %23048 = vst [vmem:[#allocation14_spill] sm:$0xff] %v19503_v33  ;;  %23049 = vst [vmem:[#allocation15_spill] sm:$0xff] %v19505_v19  ;;  %v19515_v40 = vld [vmem:[#allocation2 + $0x28] sm:$0xff]  ;;  %v19520_v41 = vld [vmem:[#allocation2 + $0x1e] sm:$0xff]  ;;  %v1991_v49 = vadd.f32 %v19443_v12, %v1876_v13  ;;  %v1877_v56 = vmax.f32 %v19358_v10, %v15884_v39  ;;  %v1770_v42 = vpop.f32.mrb[87].mxu1  ;;  %15930 = vmatmul.mubr.bf16.gmra.mrb[44].mxu0 %v2079_v32  ;;  %v19536_v10 = vpack.c.bf16 %v3215_v36, %v3214_v14 }
 0x1a1   :  { %23050 = vst [vmem:[#allocation16_spill] sm:$0xff] %v19515_v40  ;;  %23051 = vst [vmem:[#allocation17_spill] sm:$0xff] %v19520_v41  ;;  %v19526_v22 = vld [vmem:[#allocation2 + $0x20] sm:$0xff]  ;;  %v1989_v25 = vadd.f32 %v19443_v12, %v1874_v46  ;;  %v1875_v23 = vmax.f32 %v19361_v60, %v1770_v42  ;;  %15954 = vmatpush3.bf16.msra.mxu0 %v17659_v1  ;;  %v17661_v47 = vld [vmem:[%s22858_s3 + $0x70] sm:$0xff]  }
 0x1a2   :  { %23052 = vst [vmem:[#allocation8_spill] sm:$0xff] %v19526_v22  ;;  %23053 = vst [vmem:[#allocation18_spill] sm:$0xff] %v19536_v10  ;;  %v1992_v57 = vadd.f32 %v19443_v12, %v1877_v56  ;;  %15955 = vmatprep.subr.bf16.mxu0 %v17660_v15  ;;  %v19542_v58 = vld [vmem:[#allocation2 + $0x3a] sm:$0xff]  ;;  %v19584_v34 = vld [vmem:[#allocation2 + $0x50] sm:$0xff] }
 0x1a3   :  { %2027 = vst [vmem:[#allocation2 + $0x70] sm:$0xff] %v1991_v49  ;;  %23054 = vst [vmem:[#allocation19_spill] sm:$0xff] %v19542_v58  ;;  %v1990_v2 = vadd.f32 %v19443_v12, %v1875_v23  ;;  %v19545_v60 = vld [vmem:[#allocation2 + $0x52] sm:$0xff]  ;;  %v19547_v1 = vld [vmem:[#allocation2 + $0x3c] sm:$0xff] }
 0x1a4   :  { %2025 = vst [vmem:[#allocation2 + $0x60] sm:$0xff] %v1989_v25  ;;  %v19549_v32 = vld [vmem:[#allocation2 + $0x54] sm:$0xff]  ;;  %2028 = vst [vmem:[#allocation2 + $0x78] sm:$0xff] %v1992_v57  ;;  %v2081_v6 = vpack.c.bf16 %v1992_v57, %v1991_v49  ;;  %v19553_v13 = vld [vmem:[#allocation2 + $0x42] sm:$0xff] }
 0x1a5   :  { %v19551_v44 = vld [vmem:[#allocation2 + $0x56] sm:$0xff]  ;;  %23056 = vst [vmem:[#allocation21_spill] sm:$0xff] %v19553_v13  ;;  %v19555_v21 = vld [vmem:[#allocation2 + $0x4a] sm:$0xff]  ;;  %2026 = vst [vmem:[#allocation2 + $0x68] sm:$0xff] %v1990_v2  ;;  %v15887_v46 = vpop.f32.mrb[88].mxu1  ;;  %v2080_v39 = vpack.c.bf16 %v1990_v2, %v1989_v25  ;;  %15956 = vmatpush3.bf16.msra.mxu0 %v17660_v15 }
 0x1a6   :  { %23055 = vst [vmem:[#allocation20_spill] sm:$0xff] %v19551_v44  ;;  %23057 = vst [vmem:[#allocation22_spill] sm:$0xff] %v19555_v21  ;;  %v19557_v36 = vld [vmem:[#allocation2 + $0x44] sm:$0xff]  ;;  %v19559_v56 = vld [vmem:[#allocation2 + $0x4c] sm:$0xff]  ;;  %v1880_v57 = vmax.f32 %v19367_v63, %v15887_v46  ;;  %v1783_v55 = vpop.f32.mrb[89].mxu1  ;;  %15957 = vmatprep.subr.bf16.mxu0 %v17661_v47 }
 0x1a7   :  { %v19561_v42 = vld [vmem:[#allocation2 + $0x46] sm:$0xff]  ;;  %v19563_v14 = vld [vmem:[#allocation2 + $0x4e] sm:$0xff]  ;;  %v17662_v15 = vld [vmem:[%s22858_s3 + $0x78] sm:$0xff]   ;;  %v1878_v4 = vmax.f32 %v19371_v27, %v1783_v55  ;;  %v15888_v52 = vpop.f32.mrb[90].mxu1  ;;  %15933 = vmatprep.mubr.bf16.mxu0 %v2080_v39  ;;  %23062 = vst [vmem:[#allocation27_spill] sm:$0xff] %v19584_v34 }
 0x1a8   :  { %23058 = vst [vmem:[#allocation23_spill] sm:$0xff] %v19561_v42  ;;  %23059 = vst [vmem:[#allocation24_spill] sm:$0xff] %v19563_v14  ;;  %v3217_v25 = vld [vmem:[#allocation2 + $0x48] sm:$0xff]  ;;  %v19573_v2 = vld [vmem:[#allocation2 + $0x58] sm:$0xff]  ;;  %v1995_v46 = vadd.f32 %v19443_v12, %v1880_v57  ;;  %v1881_v49 = vmax.f32 %v19374_v29, %v15888_v52  ;;  %v1786_v23 = vpop.f32.mrb[91].mxu1  ;;  %15934 = vmatmul.mubr.bf16.gmra.mrb[48].mxu0 %v2081_v6 }
 0x1a9   :  { %23060 = vst [vmem:[#allocation25_spill] sm:$0xff] %v19573_v2  ;;  %v19578_v38 = vld [vmem:[#allocation2 + $0x3e] sm:$0xff]  ;;  %v1993_v55 = vadd.f32 %v19443_v12, %v1878_v4  ;;  %v1879_v39 = vmax.f32 %v19377_v3, %v1786_v23  ;;  %15958 = vmatpush3.bf16.msra.mxu0 %v17661_v47  ;;  %v19596_v52 = vld [vmem:[#allocation2 + $0x4a] sm:$0xff]  ;;  %v19598_v6 = vld [vmem:[#allocation2 + $0x52] sm:$0xff] }
 0x1aa   :  { %23061 = vst [vmem:[#allocation26_spill] sm:$0xff] %v19578_v38  ;;  %v3216_v8 = vld [vmem:[#allocation2 + $0x40] sm:$0xff]  ;;  %23064 = vst [vmem:[#allocation29_spill] sm:$0xff] %v19596_v52  ;;  %v1996_v57 = vadd.f32 %v19443_v12, %v1881_v49  ;;  %15959 = vmatprep.subr.bf16.mxu0 %v17662_v15  ;;  %v19654_v42 = vld [vmem:[#allocation2 + $0x70] sm:$0xff] }
 0x1ab   :  { %v19592_v63 = vpack.c.bf16 %v3217_v25, %v3216_v8  ;;  %23065 = vst [vmem:[#allocation30_spill] sm:$0xff] %v19598_v6  ;;  %2031 = vst [vmem:[#allocation2 + $0x90] sm:$0xff] %v1995_v46  ;;  %v19604_v4 = vld [vmem:[%s22858_s3 + $0x80] sm:$0xff]   ;;  %v1994_v8 = vadd.f32 %v19443_v12, %v1879_v39  ;;  %v19609_v47 = vld [vmem:[#allocation2 + $0x72] sm:$0xff] }
 0x1ac   :  { %v19606_v3 = vld [vmem:[#allocation2 + $0x5a] sm:$0xff]  ;;  %2029 = vst [vmem:[#allocation2 + $0x80] sm:$0xff] %v1993_v55  ;;  %2032 = vst [vmem:[#allocation2 + $0x98] sm:$0xff] %v1996_v57  ;;  %v2083_v49 = vpack.c.bf16 %v1996_v57, %v1995_v46  ;;  %v19617_v27 = vld [vmem:[#allocation2 + $0x62] sm:$0xff] }
 0x1ad   :  { %23063 = vst [vmem:[#allocation28_spill] sm:$0xff] %v19592_v63  ;;  %v19611_v23 = vld [vmem:[#allocation2 + $0x5c] sm:$0xff]  ;;  %v19613_v25 = vld [vmem:[#allocation2 + $0x74] sm:$0xff]  ;;  %v19619_v9 = vld [vmem:[#allocation2 + $0x6a] sm:$0xff]  ;;  %v15891_v39 = vpop.f32.mrb[92].mxu1  ;;  %v2082_v63 = vpack.c.bf16 %v1994_v8, %v1993_v55  ;;  %15960 = vmatpush3.bf16.msra.mxu0 %v17662_v15 }
 0x1ae   :  { %23066 = vst [vmem:[#allocation31_spill] sm:$0xff] %v19613_v25  ;;  %v19615_v29 = vld [vmem:[#allocation2 + $0x76] sm:$0xff]  ;;  %v19621_v34 = vld [vmem:[#allocation2 + $0x64] sm:$0xff]  ;;  %2030 = vst [vmem:[#allocation2 + $0x88] sm:$0xff] %v1994_v8  ;;  %v1884_v14 = vmax.f32 %v19383_v7, %v15891_v39  ;;  %v1799_v44 = vpop.f32.mrb[93].mxu1  ;;  %15985 = vmatprep.subr.bf16.mxu0 %v19604_v4 }
 0x1af   :  { %23067 = vst [vmem:[#allocation32_spill] sm:$0xff] %v19615_v29  ;;  %v19625_v10 = vld [vmem:[#allocation2 + $0x6c] sm:$0xff]  ;;  %v19639_v15 = vld [vmem:[#allocation2 + $0x78] sm:$0xff]  ;;  %v1882_v8 = vmax.f32 %v19387_v35, %v1799_v44  ;;  %v15892_v52 = vpop.f32.mrb[94].mxu1  ;;  %15937 = vmatprep.mubr.bf16.mxu0 %v2082_v63  ;;  %v19652_v38 = vld [vmem:[#allocation2 + $0x60] sm:$0xff] }
 0x1b0   :  { %v19627_v22 = vld [vmem:[#allocation2 + $0x66] sm:$0xff]  ;;  %v19629_v40 = vld [vmem:[#allocation2 + $0x6e] sm:$0xff]  ;;  %23071 = vst [vmem:[#allocation36_spill] sm:$0xff] %v19639_v15  ;;  %v19644_v46 = vld [vmem:[#allocation2 + $0x5e] sm:$0xff]  ;;  %v19649_v7 = vadd.f32 %v19443_v12, %v1884_v14  ;;  %v1885_v39 = vmax.f32 %v19390_v37, %v15892_v52  ;;  %v1802_v6 = vpop.f32.mrb[95].mxu1  ;;  %15938 = vmatmul.mubr.bf16.gmra.mrb[52].mxu0 %v2083_v49 }
 0x1b1   :  { %23068 = vst [vmem:[#allocation33_spill] sm:$0xff] %v19627_v22  ;;  %23069 = vst [vmem:[#allocation34_spill] sm:$0xff] %v19629_v40  ;;  %v19637_v2 = vld [vmem:[#allocation2 + $0x68] sm:$0xff]  ;;  %v1997_v63 = vadd.f32 %v19443_v12, %v1882_v8  ;;  %v1883_v57 = vmax.f32 %v19393_v11, %v1802_v6 }
 0x1b2   :  { %23070 = vst [vmem:[#allocation35_spill] sm:$0xff] %v19637_v2  ;;  %23072 = vst [vmem:[#allocation37_spill] sm:$0xff] %v19644_v46  ;;  %v19668_v52 = vadd.f32 %v19443_v12, %v1885_v39  ;;  %v2303_v44 = vld [vmem:[#allocation2 + $0x2] sm:$0xff]  ;;  %v2304_v35 = vld [vmem:[#allocation2 + $0xa] sm:$0xff] }
 0x1b3   :  { %23073 = vst [vmem:[#allocation38_spill] sm:$0xff] %v19649_v7  ;;  %23074 = vst [vmem:[#allocation39_spill] sm:$0xff] %v19652_v38  ;;  %v19671_v49 = vadd.f32 %v19443_v12, %v1883_v57  ;;  %v19673_v8 = vld [vmem:[#allocation2 + $0x92] sm:$0xff]  ;;  %v19678_v6 = vld [vmem:[#allocation2 + $0x7a] sm:$0xff]  ;;  %v2327_v38 = vpack.c.bf16 %v2304_v35, %v2303_v44 }
 0x1b4   :  { %23075 = vst [vmem:[#allocation40_spill] sm:$0xff] %v19654_v42  ;;  %2035 = vst [vmem:[#allocation2 + $0xb0] sm:$0xff] %v19649_v7  ;;  %v2085_v11 = vpack.c.bf16 %v19668_v52, %v19649_v7  ;;  %v19690_v15 = vld [vmem:[#allocation2 + $0x94] sm:$0xff]  ;;  %v19714_v25 = vld [vmem:[#allocation2 + $0x7e] sm:$0xff] }
 0x1b5   :  { %23076 = vst [vmem:[#allocation41_spill] sm:$0xff] %v19668_v52  ;;  %2033 = vst [vmem:[#allocation2 + $0xa0] sm:$0xff] %v1997_v63  ;;  %v19680_v37 = vld [vmem:[#allocation2 + $0x82] sm:$0xff]  ;;  %v19682_v14 = vld [vmem:[#allocation2 + $0x8a] sm:$0xff]  ;;  %v15895_v39 = vpop.f32.mrb[96].mxu1  ;;  %v2084_v57 = vpack.c.bf16 %v19671_v49, %v1997_v63 }
 0x1b6   :  { %23077 = vst [vmem:[#allocation42_spill] sm:$0xff] %v19671_v49  ;;  %2036 = vst [vmem:[#allocation2 + $0xb8] sm:$0xff] %v19668_v52  ;;  %v19686_v55 = vld [vmem:[#allocation2 + $0x84] sm:$0xff]  ;;  %v19688_v42 = vld [vmem:[#allocation2 + $0x8c] sm:$0xff]  ;;  %v1888_v29 = vmax.f32 %v19399_v16, %v15895_v39  ;;  %v1815_v19 = vpop.f32.mrb[97].mxu1 }
 0x1b7   :  { %2034 = vst [vmem:[#allocation2 + $0xa8] sm:$0xff] %v19671_v49  ;;  %23078 = vst [vmem:[#allocation43_spill] sm:$0xff] %v19690_v15  ;;  %v19697_v54 = vld [vmem:[#allocation2 + $0x86] sm:$0xff]  ;;  %v19699_v41 = vld [vmem:[#allocation2 + $0x8e] sm:$0xff]  ;;  %v1886_v40 = vmax.f32 %v19403_v43, %v1815_v19  ;;  %v15896_v22 = vpop.f32.mrb[98].mxu1  ;;  %15941 = vmatprep.mubr.bf16.mxu0 %v2084_v57 }
 0x1b8   :  { %23079 = vst [vmem:[#allocation44_spill] sm:$0xff] %v19697_v54  ;;  %23080 = vst [vmem:[#allocation45_spill] sm:$0xff] %v19699_v41  ;;  %v19701_v63 = vld [vmem:[#allocation2 + $0x96] sm:$0xff]  ;;  %v19710_v16 = vld [vmem:[#allocation2 + $0x88] sm:$0xff]  ;;  %v2003_v39 = vadd.f32 %v19443_v12, %v1888_v29  ;;  %v1889_v7 = vmax.f32 %v19406_v53, %v15896_v22  ;;  %v1818_v46 = vpop.f32.mrb[99].mxu1  ;;  %15942 = vmatmul.mubr.bf16.gmra.mrb[56].mxu0 %v2085_v11  ;;  %v2329_v41 = vpack.c.bf16 %v19497_v5, %v19495_v31 }
 0x1b9   :  { %23081 = vst [vmem:[#allocation46_spill] sm:$0xff] %v19701_v63  ;;  %v19706_v49 = vld [vmem:[#allocation2 + $0x7c] sm:$0xff]  ;;  %23083 = vst [vmem:[#allocation48_spill] sm:$0xff] %v19710_v16  ;;  %v19721_v35 = vadd.f32 %v19443_v12, %v1886_v40  ;;  %v1887_v44 = vmax.f32 %v19409_v20, %v1818_v46  ;;  %15961 = vmatprep.mubr.bf16.mxu0 %v2327_v38  ;;  %v19726_v29 = vld [vmem:[#allocation2 + $0x90] sm:$0xff] }
 0x1ba   :  { %v19708_v2 = vld [vmem:[#allocation2 + $0x98] sm:$0xff]  ;;  %23084 = vst [vmem:[#allocation49_spill] sm:$0xff] %v19714_v25  ;;  %v19724_v57 = vld [vmem:[#allocation2 + $0x80] sm:$0xff]  ;;  %23087 = vst [vmem:[#allocation52_spill] sm:$0xff] %v19726_v29  ;;  %v2004_v11 = vadd.f32 %v19443_v12, %v1889_v7 }
 0x1bb   :  { %23082 = vst [vmem:[#allocation47_spill] sm:$0xff] %v19708_v2  ;;  %23085 = vst [vmem:[#allocation50_spill] sm:$0xff] %v19721_v35  ;;  %v19741_v38 = vpack.c.bf16 %v19708_v2, %v19726_v29  ;;  %v2002_v46 = vadd.f32 %v19443_v12, %v1887_v44  ;;  %v2305_v53 = vld [vmem:[#allocation2 + $0x12] sm:$0xff]  ;;  %v17664_v20 = vld [vmem:[%s22858_s3 + $0x88] sm:$0xff]  }
 0x1bc   :  { %23086 = vst [vmem:[#allocation51_spill] sm:$0xff] %v19724_v57  ;;  %2039 = vst [vmem:[#allocation2 + $0xd0] sm:$0xff] %v2003_v39  ;;  %v19733_v19 = vld [vmem:[#allocation2 + $0x9a] sm:$0xff]  ;;  %v19801_v57 = vld [vmem:[#allocation2 + $0x62] sm:$0xff] }
 0x1bd   :  { %v19735_v40 = vld [vmem:[#allocation2 + $0x9c] sm:$0xff]  ;;  %23089 = vst [vmem:[#allocation54_spill] sm:$0xff] %v19741_v38  ;;  %2037 = vst [vmem:[#allocation2 + $0xc0] sm:$0xff] %v19721_v35  ;;  %v19745_v22 = vld [vmem:[#allocation2 + $0xb2] sm:$0xff]  ;;  %v15899_v16 = vpop.f32.mrb[100].mxu1 }
 0x1be   :  { %23088 = vst [vmem:[#allocation53_spill] sm:$0xff] %v19735_v40  ;;  %v19747_v39 = vld [vmem:[#allocation2 + $0xb4] sm:$0xff]  ;;  %2040 = vst [vmem:[#allocation2 + $0xd8] sm:$0xff] %v2004_v11  ;;  %v19754_v43 = vld [vmem:[#allocation2 + $0xa2] sm:$0xff]  ;;  %v1892_v54 = vmax.f32 %v19415_v18, %v15899_v16  ;;  %v1831_v44 = vpop.f32.mrb[101].mxu1 }
 0x1bf   :  { %v19749_v7 = vld [vmem:[#allocation2 + $0xb6] sm:$0xff]  ;;  %v19756_v33 = vld [vmem:[#allocation2 + $0xaa] sm:$0xff]  ;;  %2038 = vst [vmem:[#allocation2 + $0xc8] sm:$0xff] %v2002_v46  ;;  %v2328_v46 = vpack.c.bf16 %v19484_v26, %v2305_v53  ;;  %v19776_v52 = vld [vmem:[#allocation2 + $0x9e] sm:$0xff]  ;;  %v1890_v15 = vmax.f32 %v19419_v48, %v1831_v44  ;;  %v15900_v63 = vpop.f32.mrb[102].mxu1 }
 0x1c0   :  { %23090 = vst [vmem:[#allocation55_spill] sm:$0xff] %v19749_v7  ;;  %v19758_v38 = vld [vmem:[#allocation2 + $0xa4] sm:$0xff]  ;;  %v19762_v2 = vld [vmem:[#allocation2 + $0xac] sm:$0xff]  ;;  %23093 = vst [vmem:[#allocation58_spill] sm:$0xff] %v19776_v52  ;;  %v2007_v16 = vadd.f32 %v19443_v12, %v1892_v54  ;;  %v1893_v53 = vmax.f32 %v19422_v59, %v15900_v63  ;;  %v1834_v26 = vpop.f32.mrb[103].mxu1 }
 0x1c1   :  { %23091 = vst [vmem:[#allocation56_spill] sm:$0xff] %v19758_v38  ;;  %v19764_v29 = vld [vmem:[#allocation2 + $0xa6] sm:$0xff]  ;;  %v19766_v11 = vld [vmem:[#allocation2 + $0xae] sm:$0xff]  ;;  %v19780_v25 = vld [vmem:[#allocation2 + $0xb8] sm:$0xff]  ;;  %15962 = vmatmul.mubr.bf16.vlgmr.msra.gmra.mrb[36].mxu0 %v2328_v46  ;;  %v2005_v5 = vadd.f32 %v19443_v12, %v1890_v15  ;;  %v1891_v18 = vmax.f32 %v19425_v51, %v1834_v26 }
 0x1c2   :  { %23092 = vst [vmem:[#allocation57_spill] sm:$0xff] %v19766_v11  ;;  %v19778_v35 = vld [vmem:[#allocation2 + $0xa8] sm:$0xff]  ;;  %23095 = vst [vmem:[#allocation60_spill] sm:$0xff] %v19780_v25  ;;  %v19787_v38 = vld [vmem:[#allocation2 + $0xa0] sm:$0xff]  ;;  %15965 = vmatprep.mubr.bf16.mxu0 %v2329_v41  ;;  %15986 = vmatpush3.bf16.msra.mxu0 %v19604_v4  ;;  %v2008_v48 = vadd.f32 %v19443_v12, %v1893_v53 }
 0x1c3   :  { %23094 = vst [vmem:[#allocation59_spill] sm:$0xff] %v19778_v35  ;;  %v19793_v40 = vld [vmem:[#allocation2 + $0xb0] sm:$0xff]  ;;  %v19799_v44 = vpack.c.bf16 %v19778_v35, %v19787_v38  ;;  %23098 = vst [vmem:[#allocation63_spill] sm:$0xff] %v19801_v57  ;;  %v19814_v46 = vld [vmem:[#allocation2 + $0x82] sm:$0xff]  ;;  %15987 = vmatprep.subr.bf16.mxu0 %v17664_v20  ;;  %v2006_v26 = vadd.f32 %v19443_v12, %v1891_v18  ;;  %v2330_v35 = vpack.c.bf16 %v19542_v58, %v19487_v28 }
 0x1c4   :  { %23096 = vst [vmem:[#allocation61_spill] sm:$0xff] %v19793_v40  ;;  %v19808_v59 = vpack.c.bf16 %v19780_v25, %v19793_v40  ;;  %v19810_v54 = vld [vmem:[#allocation2 + $0x6a] sm:$0xff]  ;;  %v19812_v63 = vld [vmem:[#allocation2 + $0x72] sm:$0xff]  ;;  %23102 = vst [vmem:[#allocation67_spill] sm:$0xff] %v19814_v46 }
 0x1c5   :  { %23097 = vst [vmem:[#allocation62_spill] sm:$0xff] %v19799_v44  ;;  %23100 = vst [vmem:[#allocation65_spill] sm:$0xff] %v19810_v54  ;;  %v17665_v51 = vld [vmem:[%s22858_s3 + $0x90] sm:$0xff]   ;;  %v19821_v41 = vld [vmem:[#allocation2 + $0xc0] sm:$0xff]  ;;  %v15903_v31 = vpop.f32.mrb[104].mxu1 }
 0x1c6   :  { %23099 = vst [vmem:[#allocation64_spill] sm:$0xff] %v19808_v59  ;;  %23101 = vst [vmem:[#allocation66_spill] sm:$0xff] %v19812_v63  ;;  %v19823_v4 = vld [vmem:[#allocation2 + $0x5a] sm:$0xff]  ;;  %v19827_v59 = vld [vmem:[#allocation2 + $0xc8] sm:$0xff]  ;;  %15988 = vmatpush3.bf16.msra.mxu0 %v17664_v20  ;;  %v1896_v25 = vmax.f32 %v19431_v61, %v15903_v31  ;;  %v1847_v40 = vpop.f32.mrb[105].mxu1  ;;  %v2331_v20 = vpack.c.bf16 %v19555_v21, %v19553_v13 }
 0x1c7   :  { %2043 = vst [vmem:[#allocation2 + $0xf0] sm:$0xff] %v2007_v16  ;;  %2041 = vst [vmem:[#allocation2 + $0xe0] sm:$0xff] %v2005_v5  ;;  %v19825_v15 = vld [vmem:[#allocation2 + $0x7a] sm:$0xff]  ;;  %v19829_v16 = vld [vmem:[#allocation2 + $0xc2] sm:$0xff]  ;;  %15989 = vmatprep.subr.bf16.mxu0 %v17665_v51  ;;  %v1894_v18 = vmax.f32 %v19435_v45, %v1847_v40 }
 0x1c8   :  { %23103 = vst [vmem:[#allocation68_spill] sm:$0xff] %v19821_v41  ;;  %23104 = vst [vmem:[#allocation69_spill] sm:$0xff] %v19823_v4  ;;  %v19831_v53 = vld [vmem:[#allocation2 + $0xca] sm:$0xff]  ;;  %v17666_v5 = vld [vmem:[%s22858_s3 + $0x98] sm:$0xff]   ;;  %v2011_v54 = vadd.f32 %v19443_v12, %v1896_v25 }
 0x1c9   :  { %23105 = vst [vmem:[#allocation70_spill] sm:$0xff] %v19825_v15  ;;  %2044 = vst [vmem:[#allocation2 + $0xf8] sm:$0xff] %v2008_v48  ;;  %v19841_v48 = vpack.c.bf16 %v19827_v59, %v19821_v41  ;;  %v19852_v44 = vld [vmem:[#allocation2 + $0xc4] sm:$0xff]  ;;  %v19854_v15 = vld [vmem:[#allocation2 + $0xcc] sm:$0xff]  ;;  %15966 = vmatmul.mubr.bf16.gmra.mrb[40].mxu0 %v2330_v35  ;;  %v2009_v21 = vadd.f32 %v19443_v12, %v1894_v18 }
 0x1ca   :  { %23106 = vst [vmem:[#allocation71_spill] sm:$0xff] %v19827_v59  ;;  %23107 = vst [vmem:[#allocation72_spill] sm:$0xff] %v19829_v16  ;;  %v19856_v61 = vld [vmem:[#allocation2 + $0x8a] sm:$0xff]  ;;  %v19858_v31 = vld [vmem:[#allocation2 + $0x92] sm:$0xff]  ;;  %15969 = vmatprep.mubr.bf16.mxu0 %v2331_v20  ;;  %15990 = vmatpush3.bf16.msra.mxu0 %v17665_v51 }
 0x1cb   :  { %23108 = vst [vmem:[#allocation73_spill] sm:$0xff] %v19831_v53  ;;  %2042 = vst [vmem:[#allocation2 + $0xe8] sm:$0xff] %v2006_v26  ;;  %v15904_v26 = vpop.f32.mrb[106].mxu1  ;;  %v19867_v40 = vld [vmem:[%s22858_s3 + $0xa0] sm:$0xff]   ;;  %v19871_v57 = vld [vmem:[#allocation2 + $0xce] sm:$0xff]  ;;  %15991 = vmatprep.subr.bf16.mxu0 %v17666_v5 }
 0x1cc   :  { %23109 = vst [vmem:[#allocation74_spill] sm:$0xff] %v19841_v48  ;;  %23110 = vst [vmem:[#allocation75_spill] sm:$0xff] %v19852_v44  ;;  %v1897_v63 = vmax.f32 %v19438_v0, %v15904_v26  ;;  %v1850_v45 = vpop.f32.mrb[107].mxu1  ;;  %v19869_v4 = vld [vmem:[#allocation2 + $0xc6] sm:$0xff]  ;;  %v19879_v25 = vld [vmem:[#allocation2 + $0xb2] sm:$0xff] }
 0x1cd   :  { %23111 = vst [vmem:[#allocation76_spill] sm:$0xff] %v19854_v15  ;;  %23112 = vst [vmem:[#allocation77_spill] sm:$0xff] %v19856_v61  ;;  %v19873_v48 = vld [vmem:[#allocation2 + $0xa2] sm:$0xff]  ;;  %v1895_v46 = vmax.f32 %v19446_v62, %v1850_v45  ;;  %v19877_v0 = vld [vmem:[#allocation2 + $0xaa] sm:$0xff] }
 0x1ce   :  { %23113 = vst [vmem:[#allocation78_spill] sm:$0xff] %v19858_v31  ;;  %23114 = vst [vmem:[#allocation79_spill] sm:$0xff] %v19869_v4  ;;  %v19881_v35 = vld [vmem:[#allocation2 + $0x4c] sm:$0xff]  ;;  %v19883_v26 = vld [vmem:[#allocation2 + $0x54] sm:$0xff]  ;;  %v2012_v16 = vadd.f32 %v19443_v12, %v1897_v63  ;;  %15992 = vmatpush3.bf16.msra.mxu0 %v17666_v5 }
 0x1cf   :  { %23115 = vst [vmem:[#allocation80_spill] sm:$0xff] %v19871_v57  ;;  %23116 = vst [vmem:[#allocation81_spill] sm:$0xff] %v19873_v48  ;;  %v19885_v53 = vld [vmem:[#allocation2 + $0x64] sm:$0xff]  ;;  %v19888_v58 = vld [vmem:[#allocation2 + $0xd8] sm:$0xff]  ;;  %v2010_v45 = vadd.f32 %v19443_v12, %v1895_v46  ;;  %v2332_v57 = vpack.c.bf16 %v19606_v3, %v19545_v60  ;;  %15993 = vmatprep.subr.bf16.mxu0 %v19867_v40 }
 0x1d0   :  { %23117 = vst [vmem:[#allocation82_spill] sm:$0xff] %v19877_v0  ;;  %23118 = vst [vmem:[#allocation83_spill] sm:$0xff] %v19879_v25  ;;  %v19890_v18 = vld [vmem:[#allocation2 + $0xe0] sm:$0xff]  ;;  %v19894_v51 = vld [vmem:[#allocation2 + $0x6c] sm:$0xff]  ;;  %v2333_v0 = vpack.c.bf16 %v19619_v9, %v19617_v27 }
 0x1d1   :  { %23119 = vst [vmem:[#allocation84_spill] sm:$0xff] %v19881_v35  ;;  %23120 = vst [vmem:[#allocation85_spill] sm:$0xff] %v19883_v26  ;;  %v19892_v62 = vld [vmem:[#allocation2 + $0x9a] sm:$0xff]  ;;  %v19903_v63 = vld [vmem:[#allocation2 + $0x84] sm:$0xff]  ;;  %15970 = vmatmul.mubr.bf16.gmra.mrb[44].mxu0 %v2332_v57 }
 0x1d2   :  { %23121 = vst [vmem:[#allocation86_spill] sm:$0xff] %v19885_v53  ;;  %2047 = vst [vmem:[#allocation2 + $0x110] sm:$0xff] %v2011_v54  ;;  %v19899_v13 = vld [vmem:[#allocation2 + $0x5c] sm:$0xff]  ;;  %v19901_v54 = vld [vmem:[#allocation2 + $0x74] sm:$0xff]  ;;  %15973 = vmatprep.mubr.bf16.mxu0 %v2333_v0  ;;  %15994 = vmatpush3.bf16.msra.mxu0 %v19867_v40 }
 0x1d3   :  { %23122 = vst [vmem:[#allocation87_spill] sm:$0xff] %v19888_v58  ;;  %23123 = vst [vmem:[#allocation88_spill] sm:$0xff] %v19890_v18  ;;  %v19905_v28 = vld [vmem:[#allocation2 + $0x8c] sm:$0xff]  ;;  %v19914_v12 = vld [vmem:[#allocation2 + $0xe2] sm:$0xff] }
 0x1d4   :  { %23124 = vst [vmem:[#allocation89_spill] sm:$0xff] %v19892_v62  ;;  %23125 = vst [vmem:[#allocation90_spill] sm:$0xff] %v19894_v51  ;;  %v19916_v46 = vld [vmem:[#allocation2 + $0x7c] sm:$0xff]  ;;  %v19918_v20 = vld [vmem:[#allocation2 + $0x94] sm:$0xff] }
 0x1d5   :  { %2045 = vst [vmem:[#allocation2 + $0x100] sm:$0xff] %v2009_v21  ;;  %23126 = vst [vmem:[#allocation91_spill] sm:$0xff] %v19899_v13  ;;  %v17668_v21 = vld [vmem:[%s22858_s3 + $0xa8] sm:$0xff]   ;;  %v19924_v59 = vld [vmem:[#allocation2 + $0xda] sm:$0xff] }
 0x1d6   :  { %23127 = vst [vmem:[#allocation92_spill] sm:$0xff] %v19901_v54  ;;  %23128 = vst [vmem:[#allocation93_spill] sm:$0xff] %v19903_v63  ;;  %v19920_v44 = vld [vmem:[#allocation2 + $0xa4] sm:$0xff]  ;;  %v19928_v41 = vld [vmem:[#allocation2 + $0xac] sm:$0xff]  ;;  %15995 = vmatprep.subr.bf16.mxu0 %v17668_v21 }
 0x1d7   :  { %23129 = vst [vmem:[#allocation94_spill] sm:$0xff] %v19905_v28  ;;  %2048 = vst [vmem:[#allocation2 + $0x118] sm:$0xff] %v2012_v16  ;;  %v19926_v16 = vld [vmem:[#allocation2 + $0x9c] sm:$0xff]  ;;  %v19930_v58 = vld [vmem:[#allocation2 + $0xb4] sm:$0xff]  ;;  %15996 = vmatpush3.bf16.msra.mxu0 %v17668_v21 }
 0x1d8   :  { %23130 = vst [vmem:[#allocation95_spill] sm:$0xff] %v19914_v12  ;;  %23131 = vst [vmem:[#allocation96_spill] sm:$0xff] %v19916_v46  ;;  %v19939_v5 = vld [vmem:[#allocation2 + $0xe4] sm:$0xff]  ;;  %v19943_v15 = vld [vmem:[#allocation2 + $0x56] sm:$0xff] }
 0x1d9   :  { %23132 = vst [vmem:[#allocation97_spill] sm:$0xff] %v19918_v20  ;;  %23133 = vst [vmem:[#allocation98_spill] sm:$0xff] %v19920_v44  ;;  %v19953_v25 = vld [vmem:[#allocation2 + $0x66] sm:$0xff]  ;;  %v19955_v62 = vld [vmem:[#allocation2 + $0x6e] sm:$0xff] }
 0x1da   :  { %2046 = vst [vmem:[#allocation2 + $0x108] sm:$0xff] %v2010_v45  ;;  %23134 = vst [vmem:[#allocation99_spill] sm:$0xff] %v19924_v59  ;;  %v19941_v45 = vld [vmem:[#allocation2 + $0x4e] sm:$0xff]  ;;  %v19957_v48 = vld [vmem:[#allocation2 + $0x76] sm:$0xff] }
 0x1db   :  { %23135 = vst [vmem:[#allocation100_spill] sm:$0xff] %v19926_v16  ;;  %23136 = vst [vmem:[#allocation101_spill] sm:$0xff] %v19928_v41  ;;  %v17669_v4 = vld [vmem:[%s22858_s3 + $0xb0] sm:$0xff]   ;;  %v19966_v18 = vld [vmem:[#allocation2 + $0xdc] sm:$0xff]  ;;  %v2334_v41 = vpack.c.bf16 %v19678_v6, %v19609_v47 }
 0x1dc   :  { %23137 = vst [vmem:[#allocation102_spill] sm:$0xff] %v19930_v58  ;;  %23138 = vst [vmem:[#allocation103_spill] sm:$0xff] %v19939_v5  ;;  %v19968_v13 = vld [vmem:[#allocation2 + $0x5e] sm:$0xff]  ;;  %v19970_v53 = vld [vmem:[#allocation2 + $0x86] sm:$0xff]  ;;  %15997 = vmatprep.subr.bf16.mxu0 %v17669_v4 }
 0x1dd   :  { %23139 = vst [vmem:[#allocation104_spill] sm:$0xff] %v19941_v45  ;;  %23140 = vst [vmem:[#allocation105_spill] sm:$0xff] %v19943_v15  ;;  %v19979_v57 = vld [vmem:[#allocation2 + $0x7e] sm:$0xff]  ;;  %v19981_v46 = vld [vmem:[#allocation2 + $0x8e] sm:$0xff]  ;;  %15974 = vmatmul.mubr.bf16.gmra.mrb[48].mxu0 %v2334_v41 }
 0x1de   :  { %23141 = vst [vmem:[#allocation106_spill] sm:$0xff] %v19953_v25  ;;  %23142 = vst [vmem:[#allocation107_spill] sm:$0xff] %v19955_v62  ;;  %v19983_v63 = vld [vmem:[#allocation2 + $0x96] sm:$0xff]  ;;  %v19989_v31 = vld [vmem:[#allocation2 + $0x9e] sm:$0xff]  ;;  %15998 = vmatpush3.bf16.msra.mxu0 %v17669_v4 }
 0x1df   :  { %23143 = vst [vmem:[#allocation108_spill] sm:$0xff] %v19957_v48  ;;  %23144 = vst [vmem:[#allocation109_spill] sm:$0xff] %v19966_v18  ;;  %v19991_v16 = vld [vmem:[#allocation2 + $0xa6] sm:$0xff]  ;;  %v19993_v0 = vld [vmem:[#allocation2 + $0xae] sm:$0xff] }
 0x1e0   :  { %23145 = vst [vmem:[#allocation110_spill] sm:$0xff] %v19968_v13  ;;  %23146 = vst [vmem:[#allocation111_spill] sm:$0xff] %v19970_v53  ;;  %v20001_v51 = vld [vmem:[#allocation2 + $0xb6] sm:$0xff]  ;;  %v20007_v15 = vld [vmem:[#allocation2 + $0xde] sm:$0xff] }
 0x1e1   :  { %23147 = vst [vmem:[#allocation112_spill] sm:$0xff] %v19979_v57  ;;  %23148 = vst [vmem:[#allocation113_spill] sm:$0xff] %v19981_v46  ;;  %v20009_v18 = vld [vmem:[#allocation2 + $0xe6] sm:$0xff]  ;;  %v17670_v35 = vld [vmem:[%s22858_s3 + $0xb8] sm:$0xff]  }
 0x1e2   :  { %23149 = vst [vmem:[#allocation114_spill] sm:$0xff] %v19983_v63  ;;  %23150 = vst [vmem:[#allocation115_spill] sm:$0xff] %v19989_v31  ;;  %v20020_v45 = vld [vmem:[#allocation2 + $0x90] sm:$0xff]  ;;  %v2335_v31 = vpack.c.bf16 %v19682_v14, %v19680_v37  ;;  %v20026_v40 = vld [vmem:[#allocation2 + $0xa0] sm:$0xff]  ;;  %15999 = vmatprep.subr.bf16.mxu0 %v17670_v35 }
 0x1e3   :  { %23151 = vst [vmem:[#allocation116_spill] sm:$0xff] %v19991_v16  ;;  %23152 = vst [vmem:[#allocation117_spill] sm:$0xff] %v19993_v0  ;;  %v20024_v16 = vld [vmem:[#allocation2 + $0x98] sm:$0xff]  ;;  %v20028_v21 = vld [vmem:[#allocation2 + $0xa8] sm:$0xff]  ;;  %16000 = vmatpush3.bf16.msra.mxu0 %v17670_v35  ;;  %v2337_v35 = vpack.c.bf16 %v19756_v33, %v19754_v43 }
 0x1e4   :  { %23153 = vst [vmem:[#allocation118_spill] sm:$0xff] %v20001_v51  ;;  %23154 = vst [vmem:[#allocation119_spill] sm:$0xff] %v20007_v15  ;;  %v17671_v61 = vld [vmem:[%s22858_s3 + $0xc0] sm:$0xff]   ;;  %v20033_v15 = vld [vmem:[#allocation2 + $0xb0] sm:$0xff]  ;;  %15977 = vmatprep.mubr.bf16.mxu0 %v2335_v31 }
 0x1e5   :  { %23155 = vst [vmem:[#allocation120_spill] sm:$0xff] %v20009_v18  ;;  %23156 = vst [vmem:[#allocation121_spill] sm:$0xff] %v20020_v45  ;;  %v20035_v18 = vld [vmem:[#allocation2 + $0xb8] sm:$0xff]  ;;  %v6246_v46 = vld [vmem:[#allocation2 + $0xc0] sm:$0xff]  ;;  %16025 = vmatprep.subr.bf16.mxu0 %v17671_v61 }
 0x1e6   :  { %23157 = vst [vmem:[#allocation122_spill] sm:$0xff] %v20024_v16  ;;  %23158 = vst [vmem:[#allocation123_spill] sm:$0xff] %v20026_v40  ;;  %v6247_v63 = vld [vmem:[#allocation2 + $0xc8] sm:$0xff]  ;;  %v6248_v57 = vld [vmem:[#allocation2 + $0xd0] sm:$0xff] }
 0x1e7   :  { %23159 = vst [vmem:[#allocation124_spill] sm:$0xff] %v20028_v21  ;;  %23160 = vst [vmem:[#allocation125_spill] sm:$0xff] %v20033_v15  ;;  %v20043_v53 = vld [vmem:[#allocation2 + $0xf0] sm:$0xff]  ;;  %v6549_v62 = vld [vmem:[#allocation2 + $0xd8] sm:$0xff]  ;;  %v20047_v13 = vpack.c.bf16 %v6247_v63, %v6246_v46 }
 0x1e8   :  { %23161 = vst [vmem:[#allocation126_spill] sm:$0xff] %v20035_v18  ;;  %23162 = vst [vmem:[#allocation127_spill] sm:$0xff] %v20043_v53  ;;  %v20045_v48 = vld [vmem:[#allocation2 + $0xf8] sm:$0xff]  ;;  %v20049_v0 = vld [vmem:[#allocation2 + $0xc2] sm:$0xff]  ;;  %v20053_v31 = vpack.c.bf16 %v6549_v62, %v6248_v57  ;;  %v2336_v62 = vpack.c.bf16 %v19733_v19, %v19673_v8 }
 0x1e9   :  { %23163 = vst [vmem:[#allocation128_spill] sm:$0xff] %v20045_v48  ;;  %23164 = vst [vmem:[#allocation129_spill] sm:$0xff] %v20047_v13  ;;  %v20051_v45 = vld [vmem:[#allocation2 + $0xca] sm:$0xff]  ;;  %v20057_v51 = vld [vmem:[#allocation2 + $0xf2] sm:$0xff] }
 0x1ea   :  { %23165 = vst [vmem:[#allocation130_spill] sm:$0xff] %v20049_v0  ;;  %23166 = vst [vmem:[#allocation131_spill] sm:$0xff] %v20051_v45  ;;  %v20059_v41 = vld [vmem:[#allocation2 + $0xfa] sm:$0xff]  ;;  %v20063_v18 = vld [vmem:[#allocation2 + $0xc4] sm:$0xff]  ;;  %15978 = vmatmul.mubr.bf16.gmra.mrb[52].mxu0 %v2336_v62 }
 0x1eb   :  { %23167 = vst [vmem:[#allocation132_spill] sm:$0xff] %v20053_v31  ;;  %23168 = vst [vmem:[#allocation133_spill] sm:$0xff] %v20057_v51  ;;  %v20065_v63 = vld [vmem:[#allocation2 + $0xcc] sm:$0xff]  ;;  %v20071_v57 = vld [vmem:[#allocation2 + $0xf4] sm:$0xff]  ;;  %15981 = vmatprep.mubr.bf16.mxu0 %v2337_v35 }
 0x1ec   :  { %23169 = vst [vmem:[#allocation134_spill] sm:$0xff] %v20059_v41  ;;  %23170 = vst [vmem:[#allocation135_spill] sm:$0xff] %v20063_v18  ;;  %v20073_v4 = vld [vmem:[#allocation2 + $0xfc] sm:$0xff]  ;;  %v20079_v15 = vld [vmem:[#allocation2 + $0xc6] sm:$0xff] }
 0x1ed   :  { %23171 = vst [vmem:[#allocation136_spill] sm:$0xff] %v20065_v63  ;;  %23172 = vst [vmem:[#allocation137_spill] sm:$0xff] %v20071_v57  ;;  %v20081_v0 = vld [vmem:[#allocation2 + $0xce] sm:$0xff]  ;;  %v20085_v51 = vld [vmem:[#allocation2 + $0xf6] sm:$0xff] }
 0x1ee   :  { %23173 = vst [vmem:[#allocation138_spill] sm:$0xff] %v20073_v4  ;;  %23174 = vst [vmem:[#allocation139_spill] sm:$0xff] %v20079_v15  ;;  %v20087_v41 = vld [vmem:[#allocation2 + $0xfe] sm:$0xff]  ;;  %v20095_v63 = vld [vmem:[#allocation2 + $0xe8] sm:$0xff] }
 0x1ef   :  { %23175 = vst [vmem:[#allocation140_spill] sm:$0xff] %v20081_v0  ;;  %23176 = vst [vmem:[#allocation141_spill] sm:$0xff] %v20085_v51  ;;  %v20093_v18 = vld [vmem:[#allocation2 + $0xba] sm:$0xff]  ;;  %v20097_v48 = vld [vmem:[#allocation2 + $0x108] sm:$0xff]  ;;  %v2631_v0 = vpack.c.bf16 %v19501_v24, %v19499_v30 }
 0x1f0   :  { %23177 = vst [vmem:[#allocation142_spill] sm:$0xff] %v20087_v41  ;;  %23178 = vst [vmem:[#allocation143_spill] sm:$0xff] %v20095_v63  ;;  %v2605_v31 = vld [vmem:[#allocation2 + $0x4] sm:$0xff]  ;;  %v2606_v46 = vld [vmem:[#allocation2 + $0xc] sm:$0xff]  ;;  %v2338_v4 = vpack.c.bf16 %v20093_v18, %v19745_v22 }
 0x1f1   :  { %23179 = vst [vmem:[#allocation144_spill] sm:$0xff] %v20097_v48  ;;  %v20099_v62 = vld [vmem:[#allocation2 + $0xf0] sm:$0xff]  ;;  %v2629_v45 = vpack.c.bf16 %v2606_v46, %v2605_v31  ;;  %v17672_v15 = vld [vmem:[%s22858_s3 + $0xc8] sm:$0xff]   ;;  %v20152_v48 = vld [vmem:[#allocation2 + $0xbc] sm:$0xff] }
 0x1f2   :  { %23180 = vst [vmem:[#allocation145_spill] sm:$0xff] %v20099_v62  ;;  %v20101_v57 = vld [vmem:[#allocation2 + $0x110] sm:$0xff]  ;;  %15982 = vmatmul.mubr.bf16.gmra.mrb[56].mxu0 %v2338_v4  ;;  %v2633_v4 = vpack.c.bf16 %v19559_v56, %v19557_v36  ;;  %v17680_v63 = vld [vmem:[%s22858_s3 + $0x108] sm:$0xff]   ;;  %v18651_v62 = vld [vmem:[#allocation2 + $0x1e] sm:$0xff] }
 0x1f3   :  { %23181 = vst [vmem:[#allocation146_spill] sm:$0xff] %v20101_v57  ;;  %16001 = vmatprep.mubr.bf16.mxu0 %v2629_v45  ;;  %v2607_v51 = vld [vmem:[#allocation2 + $0x14] sm:$0xff]  ;;  %v2632_v45 = vpack.c.bf16 %v19547_v1, %v19491_v50  ;;  %v18652_v40 = vld [vmem:[#allocation2 + $0x26] sm:$0xff] }
 0x1f4   :  { %v2630_v41 = vpack.c.bf16 %v19489_v17, %v2607_v51  ;;  %v17673_v31 = vld [vmem:[%s22858_s3 + $0xd0] sm:$0xff]   ;;  %v17674_v51 = vld [vmem:[%s22858_s3 + $0xd8] sm:$0xff]  }
 0x1f5   :  { %v17677_v46 = vld [vmem:[%s22858_s3 + $0xf0] sm:$0xff]  }
 0x1fa   :  { %16002 = vmatmul.mubr.bf16.vlgmr.msra.gmra.mrb[36].mxu0 %v2630_v41  ;;  %v2635_v41 = vpack.c.bf16 %v19625_v10, %v19621_v34 }
 0x1fb   :  { %16005 = vmatprep.mubr.bf16.mxu0 %v2631_v0  ;;  %16026 = vmatpush3.bf16.msra.mxu0 %v17671_v61  ;;  %v17675_v61 = vld [vmem:[%s22858_s3 + $0xe0] sm:$0xff]   ;;  %v2634_v0 = vpack.c.bf16 %v19611_v23, %v19549_v32 }
 0x1fc   :  { %16027 = vmatprep.subr.bf16.mxu0 %v17672_v15 }
 0x1ff   :  { %16028 = vmatpush3.bf16.msra.mxu0 %v17672_v15  ;;  %v17676_v15 = vld [vmem:[%s22858_s3 + $0xe8] sm:$0xff]  }
 0x200   :  { %16029 = vmatprep.subr.bf16.mxu0 %v17673_v31 }
 0x202   :  { %16006 = vmatmul.mubr.bf16.gmra.mrb[40].mxu0 %v2632_v45  ;;  %v23182_v45 = vld [vmem:[#allocation31_spill] sm:$0xff] }
 0x203   :  { %16009 = vmatprep.mubr.bf16.mxu0 %v2633_v4  ;;  %16030 = vmatpush3.bf16.msra.mxu0 %v17673_v31  ;;  %v17678_v31 = vld [vmem:[%s22858_s3 + $0xf8] sm:$0xff]   ;;  %v2637_v4 = vpack.c.bf16 %v19688_v42, %v19686_v55 }
 0x204   :  { %16031 = vmatprep.subr.bf16.mxu0 %v17674_v51 }
 0x207   :  { %16032 = vmatpush3.bf16.msra.mxu0 %v17674_v51  ;;  %v2636_v51 = vpack.c.bf16 %v19706_v49, %v23182_v45 }
 0x208   :  { %16033 = vmatprep.subr.bf16.mxu0 %v17675_v61 }
 0x20a   :  { %16010 = vmatmul.mubr.bf16.gmra.mrb[44].mxu0 %v2634_v0  ;;  %v23183_v0 = vld [vmem:[#allocation43_spill] sm:$0xff] }
 0x20b   :  { %16013 = vmatprep.mubr.bf16.mxu0 %v2635_v41  ;;  %16034 = vmatpush3.bf16.msra.mxu0 %v17675_v61  ;;  %v17679_v61 = vld [vmem:[%s22858_s3 + $0x100] sm:$0xff]   ;;  %v23184_v41 = vld [vmem:[#allocation53_spill] sm:$0xff] }
 0x20c   :  { %16035 = vmatprep.subr.bf16.mxu0 %v17676_v15  ;;  %v2638_v53 = vpack.c.bf16 %v23184_v41, %v23183_v0 }
 0x20f   :  { %16036 = vmatpush3.bf16.msra.mxu0 %v17676_v15  ;;  %v23185_v15 = vld [vmem:[#allocation56_spill] sm:$0xff] }
 0x210   :  { %16037 = vmatprep.subr.bf16.mxu0 %v17677_v46  ;;  %v2639_v35 = vpack.c.bf16 %v19762_v2, %v23185_v15 }
 0x212   :  { %16014 = vmatmul.mubr.bf16.gmra.mrb[48].mxu0 %v2636_v51  ;;  %v2907_v51 = vld [vmem:[#allocation2 + $0x6] sm:$0xff] }
 0x213   :  { %16017 = vmatprep.mubr.bf16.mxu0 %v2637_v4  ;;  %16038 = vmatpush3.bf16.msra.mxu0 %v17677_v46  ;;  %v2908_v4 = vld [vmem:[#allocation2 + $0xe] sm:$0xff]  ;;  %v2640_v46 = vpack.c.bf16 %v20152_v48, %v19747_v39 }
 0x214   :  { %16039 = vmatprep.subr.bf16.mxu0 %v17678_v31  ;;  %v2931_v57 = vpack.c.bf16 %v2908_v4, %v2907_v51  ;;  %v17681_v51 = vld [vmem:[%s22858_s3 + $0x110] sm:$0xff]  }
 0x217   :  { %16040 = vmatpush3.bf16.msra.mxu0 %v17678_v31  ;;  %v2909_v31 = vld [vmem:[#allocation2 + $0x16] sm:$0xff] }
 0x218   :  { %16065 = vmatprep.subr.bf16.mxu0 %v17679_v61  ;;  %v2932_v13 = vpack.c.bf16 %v18651_v62, %v2909_v31 }
 0x21a   :  { %16018 = vmatmul.mubr.bf16.gmra.mrb[52].mxu0 %v2638_v53  ;;  %v18653_v53 = vld [vmem:[#allocation2 + $0x2e] sm:$0xff] }
 0x21b   :  { %16021 = vmatprep.mubr.bf16.mxu0 %v2639_v35  ;;  %v2933_v35 = vpack.c.bf16 %v18653_v53, %v18652_v40 }
 0x222   :  { %16022 = vmatmul.mubr.bf16.gmra.mrb[56].mxu0 %v2640_v46 }
 0x223   :  { %16041 = vmatprep.mubr.bf16.mxu0 %v2931_v57 }
 0x22a   :  { %16042 = vmatmul.mubr.bf16.vlgmr.msra.gmra.mrb[36].mxu0 %v2932_v13 }
 0x22b   :  { %16045 = vmatprep.mubr.bf16.mxu0 %v2933_v35  ;;  %16066 = vmatpush3.bf16.msra.mxu0 %v17679_v61 }
 0x22c   :  { %16067 = vmatprep.subr.bf16.mxu0 %v17680_v63 }
 0x22d   :  { %14 = vsyncpa [#allocation6], 0  ;;  %v18654_v57 = vld [vmem:[#allocation2 + $0x36] sm:$0xff]  ;;  %v18655_v4 = vld [vmem:[#allocation2 + $0x3e] sm:$0xff]  ;;  %vm13787_vm0 = vcmask 1041408  }
 0x22e   :  { %v2934_v46 = vpack.c.bf16 %v18655_v4, %v18654_v57  ;;  %v17682_v62 = vld [vmem:[%s22858_s3 + $0x118] sm:$0xff]   ;;  %v18656_v31 = vld [vmem:[#allocation2 + $0x46] sm:$0xff]  ;;  %v18657_v40 = vld [vmem:[#allocation2 + $0x4e] sm:$0xff] }
 0x22f   :  { %16068 = vmatpush3.bf16.msra.mxu0 %v17680_v63  ;;  %v2935_v13 = vpack.c.bf16 %v18657_v40, %v18656_v31  ;;  %v17683_v61 = vld [vmem:[%s22858_s3 + $0x120] sm:$0xff]   ;;  %v18658_v63 = vld [vmem:[#allocation2 + $0x56] sm:$0xff]  ;;  %v17684_v57 = vld [vmem:[%s22858_s3 + $0x128] sm:$0xff]  }
 0x230   :  { %16069 = vmatprep.subr.bf16.mxu0 %v17681_v51  ;;  %v23186_v53 = vld [vmem:[#allocation37_spill] sm:$0xff]  ;;  %v23188_v21 = vld [vmem:[#allocation34_spill] sm:$0xff]  ;;  %v17688_v28 = vld [vmem:[%s22858_s3 + $0x148] sm:$0xff]  }
 0x231   :  { %v2936_v35 = vpack.c.bf16 %v23186_v53, %v18658_v63  ;;  %v23187_v4 = vld [vmem:[#allocation33_spill] sm:$0xff]  ;;  %v23190_v63 = vld [vmem:[#allocation44_spill] sm:$0xff]  ;;  %v18660_v58 = vld [vmem:[#allocation2 + $0x20] sm:$0xff] }
 0x232   :  { %16046 = vmatmul.mubr.bf16.gmra.mrb[40].mxu0 %v2934_v46  ;;  %v2937_v31 = vpack.c.bf16 %v23188_v21, %v23187_v4  ;;  %v18659_v46 = vld [vmem:[#allocation2 + $0x76] sm:$0xff]  ;;  %v18661_v20 = vld [vmem:[#allocation2 + $0x28] sm:$0xff] }
 0x233   :  { %16049 = vmatprep.mubr.bf16.mxu0 %v2935_v13  ;;  %16070 = vmatpush3.bf16.msra.mxu0 %v17681_v51  ;;  %v17685_v51 = vld [vmem:[%s22858_s3 + $0x130] sm:$0xff]   ;;  %v17686_v13 = vld [vmem:[%s22858_s3 + $0x138] sm:$0xff]   ;;  %v23197_v26 = vld [vmem:[#allocation51_spill] sm:$0xff] }
 0x234   :  { %16071 = vmatprep.subr.bf16.mxu0 %v17682_v62  ;;  %v23191_v16 = vld [vmem:[#allocation45_spill] sm:$0xff] }
 0x235   :  { %v2939_v25 = vpack.c.bf16 %v23191_v16, %v23190_v63  ;;  %v18666_v54 = vld [vmem:[#allocation2 + $0x50] sm:$0xff]  ;;  %v17694_v12 = vld [vmem:[%s22858_s3 + $0x178] sm:$0xff]  }
 0x237   :  { %16072 = vmatpush3.bf16.msra.mxu0 %v17682_v62  ;;  %v23189_v62 = vld [vmem:[#allocation49_spill] sm:$0xff] }
 0x238   :  { %16073 = vmatprep.subr.bf16.mxu0 %v17683_v61  ;;  %v2938_v40 = vpack.c.bf16 %v23189_v62, %v18659_v46  ;;  %v20190_v46 = vld [vmem:[#allocation2 + $0xbe] sm:$0xff] }
 0x239   :  { %23193 = vst [vmem:[#allocation31_spill] sm:$0xff] %v20190_v46 }
 0x23a   :  { %16050 = vmatmul.mubr.bf16.gmra.mrb[44].mxu0 %v2936_v35  ;;  %v23192_v35 = vld [vmem:[#allocation46_spill] sm:$0xff] }
 0x23b   :  { %16053 = vmatprep.mubr.bf16.mxu0 %v2937_v31  ;;  %16074 = vmatpush3.bf16.msra.mxu0 %v17683_v61  ;;  %v17687_v61 = vld [vmem:[%s22858_s3 + $0x140] sm:$0xff]   ;;  %v2941_v31 = vpack.c.bf16 %v19766_v11, %v19764_v29 }
 0x23c   :  { %16075 = vmatprep.subr.bf16.mxu0 %v17684_v57  ;;  %v23199_v11 = vld [vmem:[#allocation47_spill] sm:$0xff] }
 0x23f   :  { %16076 = vmatpush3.bf16.msra.mxu0 %v17684_v57  ;;  %v2940_v57 = vpack.c.bf16 %v19776_v52, %v23192_v35  ;;  %v23203_v52 = vld [vmem:[#allocation50_spill] sm:$0xff] }
 0x240   :  { %16077 = vmatprep.subr.bf16.mxu0 %v17685_v51 }
 0x242   :  { %16054 = vmatmul.mubr.bf16.gmra.mrb[48].mxu0 %v2938_v40  ;;  %v3209_v40 = vld [vmem:[#allocation2 + $0x8] sm:$0xff] }
 0x243   :  { %16057 = vmatprep.mubr.bf16.mxu0 %v2939_v25  ;;  %16078 = vmatpush3.bf16.msra.mxu0 %v17685_v51  ;;  %v2942_v25 = vpack.c.bf16 %v20190_v46, %v19749_v7  ;;  %v3210_v51 = vld [vmem:[#allocation2 + $0x10] sm:$0xff]  ;;  %v23201_v7 = vld [vmem:[#allocation42_spill] sm:$0xff] }
 0x244   :  { %16079 = vmatprep.subr.bf16.mxu0 %v17686_v13  ;;  %v3233_v5 = vpack.c.bf16 %v3210_v51, %v3209_v40  ;;  %v17689_v40 = vld [vmem:[%s22858_s3 + $0x150] sm:$0xff]  }
 0x247   :  { %16080 = vmatpush3.bf16.msra.mxu0 %v17686_v13  ;;  %v3211_v13 = vld [vmem:[#allocation2 + $0x18] sm:$0xff] }
 0x248   :  { %16105 = vmatprep.subr.bf16.mxu0 %v17687_v61  ;;  %v3234_v44 = vpack.c.bf16 %v18660_v58, %v3211_v13  ;;  %v17690_v58 = vld [vmem:[%s22858_s3 + $0x158] sm:$0xff]   ;;  %v18665_v13 = vld [vmem:[#allocation2 + $0x48] sm:$0xff] }
 0x24a   :  { %16058 = vmatmul.mubr.bf16.gmra.mrb[52].mxu0 %v2940_v57  ;;  %v18662_v57 = vld [vmem:[#allocation2 + $0x30] sm:$0xff] }
 0x24b   :  { %16061 = vmatprep.mubr.bf16.mxu0 %v2941_v31  ;;  %v3235_v31 = vpack.c.bf16 %v18662_v57, %v18661_v20  ;;  %v3237_v20 = vpack.c.bf16 %v18666_v54, %v18665_v13  ;;  %v18668_v57 = vld [vmem:[#allocation2 + $0x60] sm:$0xff]  ;;  %v20212_v54 = vld [vmem:[#allocation2 + $0x68] sm:$0xff]  ;;  %v18670_v13 = vld [vmem:[#allocation2 + $0x70] sm:$0xff] }
 0x24c   :  { %23195 = vst [vmem:[#allocation53_spill] sm:$0xff] %v20212_v54 }
 0x252   :  { %16062 = vmatmul.mubr.bf16.gmra.mrb[56].mxu0 %v2942_v25  ;;  %v18664_v25 = vld [vmem:[#allocation2 + $0x40] sm:$0xff] }
 0x253   :  { %16081 = vmatprep.mubr.bf16.mxu0 %v3233_v5  ;;  %v18663_v5 = vld [vmem:[#allocation2 + $0x38] sm:$0xff] }
 0x254   :  { %v3236_v51 = vpack.c.bf16 %v18664_v25, %v18663_v5  ;;  %v17692_v25 = vld [vmem:[%s22858_s3 + $0x168] sm:$0xff]  }
 0x25a   :  { %16082 = vmatmul.mubr.bf16.vlgmr.msra.gmra.mrb[36].mxu0 %v3234_v44 }
 0x25b   :  { %16085 = vmatprep.mubr.bf16.mxu0 %v3235_v31  ;;  %16106 = vmatpush3.bf16.msra.mxu0 %v17687_v61  ;;  %v17691_v61 = vld [vmem:[%s22858_s3 + $0x160] sm:$0xff]  }
 0x25c   :  { %16107 = vmatprep.subr.bf16.mxu0 %v17688_v28 }
 0x25f   :  { %16108 = vmatpush3.bf16.msra.mxu0 %v17688_v28  ;;  %v20206_v28 = vld [vmem:[#allocation2 + $0x58] sm:$0xff] }
 0x260   :  { %16109 = vmatprep.subr.bf16.mxu0 %v17689_v40  ;;  %23194 = vst [vmem:[#allocation43_spill] sm:$0xff] %v20206_v28  ;;  %v3238_v5 = vpack.c.bf16 %v18668_v57, %v20206_v28  ;;  %v20218_v57 = vld [vmem:[#allocation2 + $0x78] sm:$0xff] }
 0x261   :  { %23196 = vst [vmem:[#allocation56_spill] sm:$0xff] %v20218_v57  ;;  %v3240_v59 = vpack.c.bf16 %v23197_v26, %v20218_v57  ;;  %v23200_v26 = vld [vmem:[#allocation38_spill] sm:$0xff] }
 0x262   :  { %16086 = vmatmul.mubr.bf16.gmra.mrb[40].mxu0 %v3236_v51  ;;  %v23202_v46 = vpack.c.bf16 %v23200_v26, %v23201_v7  ;;  %v17699_v7 = vld [vmem:[%s22858_s3 + $0x1a0] sm:$0xff]   ;;  %v17701_v26 = vld [vmem:[%s22858_s3 + $0x1b0] sm:$0xff]  }
 0x263   :  { %16089 = vmatprep.mubr.bf16.mxu0 %v3237_v20  ;;  %16110 = vmatpush3.bf16.msra.mxu0 %v17689_v40  ;;  %v3239_v40 = vpack.c.bf16 %v18670_v13, %v20212_v54  ;;  %v18672_v13 = vld [vmem:[#allocation2 + $0x88] sm:$0xff] }
 0x264   :  { %16111 = vmatprep.subr.bf16.mxu0 %v17690_v58  ;;  %v23198_v54 = vld [vmem:[#allocation52_spill] sm:$0xff] }
 0x265   :  { %v3241_v28 = vpack.c.bf16 %v23198_v54, %v18672_v13  ;;  %v23204_v54 = vld [vmem:[#allocation41_spill] sm:$0xff] }
 0x266   :  { %v23205_v13 = vpack.c.bf16 %v23203_v52, %v23204_v54  ;;  %v17698_v52 = vld [vmem:[%s22858_s3 + $0x198] sm:$0xff]  }
 0x267   :  { %16112 = vmatpush3.bf16.msra.mxu0 %v17690_v58  ;;  %v17693_v58 = vld [vmem:[%s22858_s3 + $0x170] sm:$0xff]  }
 0x268   :  { %16113 = vmatprep.subr.bf16.mxu0 %v17691_v61 }
 0x26a   :  { %16090 = vmatmul.mubr.bf16.gmra.mrb[44].mxu0 %v3238_v5 }
 0x26b   :  { %16093 = vmatprep.mubr.bf16.mxu0 %v3239_v40  ;;  %16114 = vmatpush3.bf16.msra.mxu0 %v17691_v61  ;;  %v17695_v61 = vld [vmem:[%s22858_s3 + $0x180] sm:$0xff]  }
 0x26c   :  { %16115 = vmatprep.subr.bf16.mxu0 %v17692_v25 }
 0x26f   :  { %16116 = vmatpush3.bf16.msra.mxu0 %v17692_v25  ;;  %v18673_v25 = vld [vmem:[#allocation2 + $0xa0] sm:$0xff] }
 0x270   :  { %16117 = vmatprep.subr.bf16.mxu0 %v17693_v58  ;;  %v3242_v57 = vpack.c.bf16 %v18673_v25, %v23199_v11  ;;  %v17697_v11 = vld [vmem:[%s22858_s3 + $0x190] sm:$0xff]  }
 0x271   :  { %v23209_v25 = vld [vmem:[#allocation68_spill] sm:$0xff] }
 0x272   :  { %16094 = vmatmul.mubr.bf16.gmra.mrb[48].mxu0 %v3240_v59 }
 0x273   :  { %16097 = vmatprep.mubr.bf16.mxu0 %v3241_v28  ;;  %16118 = vmatpush3.bf16.msra.mxu0 %v17693_v58  ;;  %v17696_v28 = vld [vmem:[%s22858_s3 + $0x188] sm:$0xff]   ;;  %v23207_v58 = vld [vmem:[#allocation61_spill] sm:$0xff] }
 0x274   :  { %16119 = vmatprep.subr.bf16.mxu0 %v17694_v12 }
 0x277   :  { %16120 = vmatpush3.bf16.msra.mxu0 %v17694_v12  ;;  %v20254_v12 = vld [vmem:[#allocation2 + $0x88] sm:$0xff] }
 0x278   :  { %16145 = vmatprep.subr.bf16.mxu0 %v17695_v61 }
 0x27a   :  { %16098 = vmatmul.mubr.bf16.gmra.mrb[52].mxu0 %v3242_v57 }
 0x27b   :  { %16101 = vmatprep.mubr.bf16.mxu0 %v23202_v46  ;;  %v18675_v46 = vld [vmem:[#allocation2 + $0x90] sm:$0xff] }
 0x282   :  { %16102 = vmatmul.mubr.bf16.gmra.mrb[56].mxu0 %v23205_v13  ;;  %v20268_v13 = vld [vmem:[#allocation2 + $0xd0] sm:$0xff] }
 0x283   :  { %16121 = vmatprep.mubr.bf16.mxu0 %v3234_v44  ;;  %v17700_v44 = vld [vmem:[%s22858_s3 + $0x1a8] sm:$0xff]  }
 0x28a   :  { %16122 = vmatmul.mubr.bf16.vlgmr.msra.gmra.mrb[36].mxu0 %v3235_v31  ;;  %v3542_v31 = vpack.c.bf16 %v18675_v46, %v20254_v12  ;;  %v23215_v46 = vld [vmem:[#allocation13_spill] sm:$0xff] }
 0x28b   :  { %16125 = vmatprep.mubr.bf16.mxu0 %v3236_v51  ;;  %16146 = vmatpush3.bf16.msra.mxu0 %v17695_v61  ;;  %v17702_v51 = vld [vmem:[%s22858_s3 + $0x1b8] sm:$0xff]   ;;  %v23208_v61 = vld [vmem:[#allocation60_spill] sm:$0xff] }
 0x28c   :  { %16147 = vmatprep.subr.bf16.mxu0 %v17696_v28  ;;  %v3545_v54 = vpack.c.bf16 %v23209_v25, %v23208_v61  ;;  %v23222_v25 = vpack.c.bf16 %v19617_v27, %v19606_v3  ;;  %v23224_v27 = vpack.c.bf16 %v19680_v37, %v19678_v6  ;;  %v17709_v3 = vld [vmem:[%s22858_s3 + $0x1f0] sm:$0xff]   ;;  %v17711_v37 = vld [vmem:[%s22858_s3 + $0x200] sm:$0xff]  }
 0x28d   :  { %v23227_v6 = vld [vmem:[#allocation72_spill] sm:$0xff] }
 0x28f   :  { %16148 = vmatpush3.bf16.msra.mxu0 %v17696_v28 }
 0x290   :  { %16149 = vmatprep.subr.bf16.mxu0 %v17697_v11 }
 0x292   :  { %16126 = vmatmul.mubr.bf16.gmra.mrb[40].mxu0 %v3237_v20  ;;  %v18676_v20 = vld [vmem:[#allocation2 + $0x98] sm:$0xff] }
 0x293   :  { %16129 = vmatprep.mubr.bf16.mxu0 %v3238_v5  ;;  %16150 = vmatpush3.bf16.msra.mxu0 %v17697_v11  ;;  %v17703_v5 = vld [vmem:[%s22858_s3 + $0x1c0] sm:$0xff]   ;;  %v23211_v11 = vld [vmem:[#allocation12_spill] sm:$0xff] }
 0x294   :  { %16151 = vmatprep.subr.bf16.mxu0 %v17698_v52 }
 0x297   :  { %16152 = vmatpush3.bf16.msra.mxu0 %v17698_v52  ;;  %v23212_v52 = vld [vmem:[#allocation9_spill] sm:$0xff] }
 0x298   :  { %16153 = vmatprep.subr.bf16.mxu0 %v17699_v7 }
 0x29a   :  { %16130 = vmatmul.mubr.bf16.gmra.mrb[44].mxu0 %v3239_v40  ;;  %v23206_v40 = vld [vmem:[#allocation59_spill] sm:$0xff] }
 0x29b   :  { %16133 = vmatprep.mubr.bf16.mxu0 %v3240_v59  ;;  %16154 = vmatpush3.bf16.msra.mxu0 %v17699_v7  ;;  %v3543_v59 = vpack.c.bf16 %v19787_v38, %v18676_v20  ;;  %v3544_v57 = vpack.c.bf16 %v23207_v58, %v23206_v40  ;;  %v23210_v38 = vld [vmem:[#allocation71_spill] sm:$0xff]  ;;  %v23213_v7 = vpack.c.bf16 %v23211_v11, %v23212_v52  ;;  %v17705_v40 = vld [vmem:[%s22858_s3 + $0x1d0] sm:$0xff]   ;;  %v17706_v58 = vld [vmem:[%s22858_s3 + $0x1d8] sm:$0xff]  }
 0x29c   :  { %16155 = vmatprep.subr.bf16.mxu0 %v17700_v44  ;;  %v3546_v28 = vpack.c.bf16 %v20268_v13, %v23210_v38  ;;  %v23218_v20 = vld [vmem:[#allocation19_spill] sm:$0xff]  ;;  %v17710_v38 = vld [vmem:[%s22858_s3 + $0x1f8] sm:$0xff]   ;;  %v23228_v11 = vpack.c.bf16 %v19745_v22, %v19756_v33  ;;  %v23232_v33 = vpack.c.bf16 %v19557_v36, %v19547_v1  ;;  %v17713_v22 = vld [vmem:[%s22858_s3 + $0x210] sm:$0xff]  }
 0x29d   :  { %v17712_v52 = vld [vmem:[%s22858_s3 + $0x208] sm:$0xff]   ;;  %v17717_v36 = vld [vmem:[%s22858_s3 + $0x230] sm:$0xff]  }
 0x29e   :  { %v17716_v1 = vld [vmem:[%s22858_s3 + $0x228] sm:$0xff]  }
 0x29f   :  { %16156 = vmatpush3.bf16.msra.mxu0 %v17700_v44  ;;  %v17704_v44 = vld [vmem:[%s22858_s3 + $0x1c8] sm:$0xff]  }
 0x2a0   :  { %16157 = vmatprep.subr.bf16.mxu0 %v17701_v26 }
 0x2a2   :  { %16134 = vmatmul.mubr.bf16.gmra.mrb[48].mxu0 %v3542_v31 }
 0x2a3   :  { %16137 = vmatprep.mubr.bf16.mxu0 %v3543_v59  ;;  %16158 = vmatpush3.bf16.msra.mxu0 %v17701_v26  ;;  %v23214_v26 = vld [vmem:[#allocation10_spill] sm:$0xff] }
 0x2a4   :  { %16159 = vmatprep.subr.bf16.mxu0 %v17702_v51  ;;  %v23216_v31 = vpack.c.bf16 %v23214_v26, %v23215_v46  ;;  %v17720_v46 = vld [vmem:[%s22858_s3 + $0x248] sm:$0xff]  }
 0x2a7   :  { %16160 = vmatpush3.bf16.msra.mxu0 %v17702_v51  ;;  %v23217_v51 = vld [vmem:[#allocation21_spill] sm:$0xff] }
 0x2a8   :  { %16185 = vmatprep.subr.bf16.mxu0 %v17703_v5  ;;  %v23219_v59 = vpack.c.bf16 %v23217_v51, %v23218_v20 }
 0x2aa   :  { %16138 = vmatmul.mubr.bf16.gmra.mrb[52].mxu0 %v3544_v57  ;;  %v23220_v57 = vld [vmem:[#allocation22_spill] sm:$0xff] }
 0x2ab   :  { %16141 = vmatprep.mubr.bf16.mxu0 %v3545_v54  ;;  %v23221_v61 = vpack.c.bf16 %v19545_v60, %v23220_v57  ;;  %v17708_v54 = vld [vmem:[%s22858_s3 + $0x1e8] sm:$0xff]   ;;  %v23223_v60 = vpack.c.bf16 %v19609_v47, %v19619_v9  ;;  %v23225_v9 = vpack.c.bf16 %v19673_v8, %v19682_v14  ;;  %v23226_v47 = vpack.c.bf16 %v19754_v43, %v19733_v19  ;;  %v20328_v14 = vld [vmem:[#allocation2 + $0xd2] sm:$0xff] }
 0x2ac   :  { %v23229_v8 = vld [vmem:[#allocation73_spill] sm:$0xff]  ;;  %v23230_v19 = vpack.c.bf16 %v19499_v30, %v19489_v17  ;;  %v23234_v30 = vpack.c.bf16 %v19621_v34, %v19611_v23  ;;  %v23236_v34 = vpack.c.bf16 %v19686_v55, %v19706_v49  ;;  %v23238_v23 = vpack.c.bf16 %v23185_v15, %v23184_v41  ;;  %v17719_v55 = vld [vmem:[%s22858_s3 + $0x240] sm:$0xff]   ;;  %v23250_v57 = vld [vmem:[#allocation24_spill] sm:$0xff] }
 0x2ad   :  { %v3848_v43 = vpack.c.bf16 %v20328_v14, %v23229_v8  ;;  %v17714_v17 = vld [vmem:[%s22858_s3 + $0x218] sm:$0xff]   ;;  %v18677_v49 = vld [vmem:[#allocation2 + $0xc4] sm:$0xff] }
 0x2ae   :  { %v23240_v15 = vld [vmem:[#allocation14_spill] sm:$0xff] }
 0x2b2   :  { %16142 = vmatmul.mubr.bf16.gmra.mrb[56].mxu0 %v3546_v28  ;;  %v3847_v28 = vpack.c.bf16 %v23227_v6, %v20093_v18  ;;  %v23231_v18 = vpack.c.bf16 %v19491_v50, %v19501_v24  ;;  %v23233_v50 = vpack.c.bf16 %v19549_v32, %v19559_v56  ;;  %v17715_v24 = vld [vmem:[%s22858_s3 + $0x220] sm:$0xff]   ;;  %v23235_v32 = vpack.c.bf16 %v23182_v45, %v19625_v10  ;;  %v17718_v56 = vld [vmem:[%s22858_s3 + $0x238] sm:$0xff]  }
 0x2b3   :  { %16161 = vmatprep.mubr.bf16.mxu0 %v23213_v7  ;;  %v23237_v10 = vpack.c.bf16 %v23183_v0, %v19688_v42  ;;  %v4149_v45 = vpack.c.bf16 %v18677_v49, %v20152_v48  ;;  %v23239_v7 = vpack.c.bf16 %v19747_v39, %v19762_v2  ;;  %v20387_v42 = vld [vmem:[#allocation2 + $0xd4] sm:$0xff]  ;;  %v18678_v0 = vld [vmem:[#allocation2 + $0xcc] sm:$0xff]  ;;  %v23243_v48 = vld [vmem:[#allocation11_spill] sm:$0xff] }
 0x2b4   :  { %v4150_v41 = vpack.c.bf16 %v20387_v42, %v18678_v0  ;;  %v23246_v2 = vld [vmem:[#allocation23_spill] sm:$0xff]  ;;  %v23247_v39 = vld [vmem:[#allocation26_spill] sm:$0xff]  ;;  %v23275_v49 = vld [vmem:[#allocation40_spill] sm:$0xff] }
 0x2b5   :  { %v23248_v20 = vpack.c.bf16 %v23246_v2, %v23247_v39  ;;  %v23278_v0 = vld [vmem:[#allocation51_spill] sm:$0xff]  ;;  %v18681_v2 = vld [vmem:[#allocation2 + $0xd8] sm:$0xff] }
 0x2b6   :  { %v4754_v39 = vpack.c.bf16 %v18681_v2, %v20268_v13  ;;  %v17737_v13 = vld [vmem:[%s22858_s3 + $0x2d0] sm:$0xff]   ;;  %v18697_v2 = vld [vmem:[#allocation2 + $0xda] sm:$0xff] }
 0x2ba   :  { %16162 = vmatmul.mubr.bf16.vlgmr.msra.gmra.mrb[36].mxu0 %v23216_v31  ;;  %v23244_v31 = vld [vmem:[#allocation15_spill] sm:$0xff] }
 0x2bb   :  { %16165 = vmatprep.mubr.bf16.mxu0 %v23219_v59  ;;  %16186 = vmatpush3.bf16.msra.mxu0 %v17703_v5  ;;  %v17707_v5 = vld [vmem:[%s22858_s3 + $0x1e0] sm:$0xff]   ;;  %v23245_v51 = vpack.c.bf16 %v23243_v48, %v23244_v31  ;;  %v17721_v59 = vld [vmem:[%s22858_s3 + $0x250] sm:$0xff]  }
 0x2bc   :  { %16187 = vmatprep.subr.bf16.mxu0 %v17704_v44  ;;  %v17735_v48 = vld [vmem:[%s22858_s3 + $0x2c0] sm:$0xff]   ;;  %v23282_v31 = vld [vmem:[#allocation64_spill] sm:$0xff] }
 0x2bf   :  { %16188 = vmatpush3.bf16.msra.mxu0 %v17704_v44  ;;  %v23241_v44 = vld [vmem:[#allocation17_spill] sm:$0xff] }
 0x2c0   :  { %16189 = vmatprep.subr.bf16.mxu0 %v17705_v40  ;;  %v23242_v26 = vpack.c.bf16 %v23240_v15, %v23241_v44  ;;  %v17733_v15 = vld [vmem:[%s22858_s3 + $0x2b0] sm:$0xff]   ;;  %v17734_v44 = vld [vmem:[%s22858_s3 + $0x2b8] sm:$0xff]  }
 0x2c2   :  { %16166 = vmatmul.mubr.bf16.gmra.mrb[40].mxu0 %v23221_v61 }
 0x2c3   :  { %16169 = vmatprep.mubr.bf16.mxu0 %v23222_v25  ;;  %16190 = vmatpush3.bf16.msra.mxu0 %v17705_v40  ;;  %v17722_v40 = vld [vmem:[%s22858_s3 + $0x258] sm:$0xff]   ;;  %v23252_v25 = vpack.c.bf16 %v23187_v4, %v23186_v53  ;;  %v23255_v53 = vpack.c.bf16 %v23190_v63, %v23189_v62  ;;  %v17725_v4 = vld [vmem:[%s22858_s3 + $0x270] sm:$0xff]   ;;  %v17727_v63 = vld [vmem:[%s22858_s3 + $0x280] sm:$0xff]  }
 0x2c4   :  { %16191 = vmatprep.subr.bf16.mxu0 %v17706_v58 }
 0x2c7   :  { %16192 = vmatpush3.bf16.msra.mxu0 %v17706_v58  ;;  %v23249_v58 = vld [vmem:[#allocation20_spill] sm:$0xff] }
 0x2c8   :  { %16193 = vmatprep.subr.bf16.mxu0 %v17707_v5  ;;  %v23251_v61 = vpack.c.bf16 %v23249_v58, %v23250_v57  ;;  %v20506_v57 = vld [vmem:[#allocation2 + $0x60] sm:$0xff] }
 0x2ca   :  { %16170 = vmatmul.mubr.bf16.gmra.mrb[44].mxu0 %v23223_v60  ;;  %v23253_v60 = vld [vmem:[#allocation32_spill] sm:$0xff] }
 0x2cb   :  { %16173 = vmatprep.mubr.bf16.mxu0 %v23224_v27  ;;  %16194 = vmatpush3.bf16.msra.mxu0 %v17707_v5  ;;  %v17723_v5 = vld [vmem:[%s22858_s3 + $0x260] sm:$0xff]   ;;  %v23254_v27 = vpack.c.bf16 %v23253_v60, %v23188_v21  ;;  %v23256_v21 = vpack.c.bf16 %v23192_v35, %v23191_v16  ;;  %v20445_v16 = vld [vmem:[#allocation2 + $0xd6] sm:$0xff]  ;;  %v23286_v60 = vld [vmem:[#allocation56_spill] sm:$0xff] }
 0x2cc   :  { %16195 = vmatprep.subr.bf16.mxu0 %v17708_v54 }
 0x2cf   :  { %16196 = vmatpush3.bf16.msra.mxu0 %v17708_v54  ;;  %v17724_v54 = vld [vmem:[%s22858_s3 + $0x268] sm:$0xff]  }
 0x2d0   :  { %16197 = vmatprep.subr.bf16.mxu0 %v17709_v3 }
 0x2d2   :  { %16174 = vmatmul.mubr.bf16.gmra.mrb[48].mxu0 %v23225_v9  ;;  %v18679_v9 = vld [vmem:[#allocation2 + $0xc6] sm:$0xff] }
 0x2d3   :  { %16177 = vmatprep.mubr.bf16.mxu0 %v23226_v47  ;;  %16198 = vmatpush3.bf16.msra.mxu0 %v17709_v3  ;;  %v17726_v3 = vld [vmem:[%s22858_s3 + $0x278] sm:$0xff]   ;;  %v23259_v47 = vld [vmem:[#allocation31_spill] sm:$0xff] }
 0x2d4   :  { %16199 = vmatprep.subr.bf16.mxu0 %v17710_v38 }
 0x2d7   :  { %16200 = vmatpush3.bf16.msra.mxu0 %v17710_v38  ;;  %v23257_v38 = vld [vmem:[#allocation58_spill] sm:$0xff] }
 0x2d8   :  { %16225 = vmatprep.subr.bf16.mxu0 %v17711_v37  ;;  %v23258_v62 = vpack.c.bf16 %v19764_v29, %v23257_v38  ;;  %v18680_v29 = vld [vmem:[#allocation2 + $0xce] sm:$0xff] }
 0x2d9   :  { %v4452_v35 = vpack.c.bf16 %v20445_v16, %v18680_v29  ;;  %v17741_v38 = vld [vmem:[%s22858_s3 + $0x2f0] sm:$0xff]  }
 0x2da   :  { %16178 = vmatmul.mubr.bf16.gmra.mrb[52].mxu0 %v23228_v11  ;;  %v23261_v11 = vld [vmem:[#allocation57_spill] sm:$0xff]  ;;  %v18683_v29 = vld [vmem:[#allocation2 + $0x4a] sm:$0xff] }
 0x2db   :  { %16181 = vmatprep.mubr.bf16.mxu0 %v3847_v28  ;;  %v23260_v28 = vld [vmem:[#allocation55_spill] sm:$0xff] }
 0x2e2   :  { %16182 = vmatmul.mubr.bf16.gmra.mrb[56].mxu0 %v3848_v43  ;;  %v23262_v43 = vpack.c.bf16 %v23260_v28, %v23261_v11  ;;  %v5323_v28 = vld [vmem:[#allocation2 + $0x32] sm:$0xff] }
 0x2e3   :  { %16201 = vmatprep.mubr.bf16.mxu0 %v23230_v19  ;;  %v23263_v19 = vld [vmem:[#allocation16_spill] sm:$0xff] }
 0x2ea   :  { %16202 = vmatmul.mubr.bf16.vlgmr.msra.gmra.mrb[36].mxu0 %v23231_v18 }
 0x2eb   :  { %16205 = vmatprep.mubr.bf16.mxu0 %v23232_v33  ;;  %16226 = vmatpush3.bf16.msra.mxu0 %v17711_v37  ;;  %v4451_v37 = vpack.c.bf16 %v18679_v9, %v23259_v47  ;;  %v17728_v33 = vld [vmem:[%s22858_s3 + $0x288] sm:$0xff]   ;;  %v5324_v9 = vld [vmem:[#allocation2 + $0x3a] sm:$0xff] }
 0x2ec   :  { %16227 = vmatprep.subr.bf16.mxu0 %v17712_v52  ;;  %v20542_v47 = vld [vmem:[#allocation2 + $0xe0] sm:$0xff]  ;;  %v5347_v11 = vpack.c.bf16 %v5324_v9, %v5323_v28  ;;  %v17754_v9 = vld [vmem:[%s22858_s3 + $0x358] sm:$0xff]  }
 0x2ed   :  { %v18705_v28 = vld [vmem:[#allocation2 + $0x7c] sm:$0xff] }
 0x2ef   :  { %16228 = vmatpush3.bf16.msra.mxu0 %v17712_v52  ;;  %v23264_v52 = vld [vmem:[#allocation8_spill] sm:$0xff] }
 0x2f0   :  { %16229 = vmatprep.subr.bf16.mxu0 %v17713_v22  ;;  %v23265_v18 = vpack.c.bf16 %v23263_v19, %v23264_v52  ;;  %v17744_v19 = vld [vmem:[%s22858_s3 + $0x308] sm:$0xff]   ;;  %v18684_v52 = vld [vmem:[#allocation2 + $0x52] sm:$0xff] }
 0x2f2   :  { %16206 = vmatmul.mubr.bf16.gmra.mrb[40].mxu0 %v23233_v50  ;;  %v17729_v50 = vld [vmem:[%s22858_s3 + $0x290] sm:$0xff]  }
 0x2f3   :  { %16209 = vmatprep.mubr.bf16.mxu0 %v23234_v30  ;;  %16230 = vmatpush3.bf16.msra.mxu0 %v17713_v22  ;;  %v23266_v22 = vld [vmem:[#allocation18_spill] sm:$0xff] }
 0x2f4   :  { %16231 = vmatprep.subr.bf16.mxu0 %v17714_v17  ;;  %v17730_v30 = vld [vmem:[%s22858_s3 + $0x298] sm:$0xff]  }
 0x2f7   :  { %16232 = vmatpush3.bf16.msra.mxu0 %v17714_v17  ;;  %v23267_v17 = vld [vmem:[#allocation28_spill] sm:$0xff] }
 0x2f8   :  { %16233 = vmatprep.subr.bf16.mxu0 %v17715_v24 }
 0x2fa   :  { %16210 = vmatmul.mubr.bf16.gmra.mrb[44].mxu0 %v23235_v32 }
 0x2fb   :  { %16213 = vmatprep.mubr.bf16.mxu0 %v23236_v34  ;;  %16234 = vmatpush3.bf16.msra.mxu0 %v17715_v24  ;;  %v23268_v24 = vld [vmem:[#allocation25_spill] sm:$0xff]  ;;  %v23271_v34 = vld [vmem:[#allocation35_spill] sm:$0xff] }
 0x2fc   :  { %16235 = vmatprep.subr.bf16.mxu0 %v17716_v1 }
 0x2ff   :  { %16236 = vmatpush3.bf16.msra.mxu0 %v17716_v1  ;;  %v23269_v1 = vld [vmem:[#allocation27_spill] sm:$0xff] }
 0x300   :  { %16237 = vmatprep.subr.bf16.mxu0 %v17717_v36  ;;  %v23270_v32 = vpack.c.bf16 %v23268_v24, %v23269_v1  ;;  %v17746_v24 = vld [vmem:[%s22858_s3 + $0x318] sm:$0xff]  }
 0x301   :  { %v18688_v1 = vld [vmem:[#allocation2 + $0x72] sm:$0xff] }
 0x302   :  { %16214 = vmatmul.mubr.bf16.gmra.mrb[48].mxu0 %v23237_v10  ;;  %v17731_v10 = vld [vmem:[%s22858_s3 + $0x2a0] sm:$0xff]  }
 0x303   :  { %16217 = vmatprep.mubr.bf16.mxu0 %v23238_v23  ;;  %16238 = vmatpush3.bf16.msra.mxu0 %v17717_v36  ;;  %v23272_v36 = vld [vmem:[#allocation39_spill] sm:$0xff] }
 0x304   :  { %16239 = vmatprep.subr.bf16.mxu0 %v17718_v56  ;;  %v17732_v23 = vld [vmem:[%s22858_s3 + $0x2a8] sm:$0xff]  }
 0x307   :  { %16240 = vmatpush3.bf16.msra.mxu0 %v17718_v56  ;;  %v23273_v56 = vpack.c.bf16 %v23271_v34, %v23272_v36  ;;  %v17747_v36 = vld [vmem:[%s22858_s3 + $0x320] sm:$0xff]  }
 0x308   :  { %16265 = vmatprep.subr.bf16.mxu0 %v17719_v55 }
 0x30a   :  { %16218 = vmatmul.mubr.bf16.gmra.mrb[52].mxu0 %v23239_v7  ;;  %v23277_v7 = vld [vmem:[#allocation48_spill] sm:$0xff] }
 0x30b   :  { %16221 = vmatprep.mubr.bf16.mxu0 %v4149_v45 }
 0x312   :  { %16222 = vmatmul.mubr.bf16.gmra.mrb[56].mxu0 %v4150_v41  ;;  %v23279_v41 = vpack.c.bf16 %v23277_v7, %v23278_v0  ;;  %v17749_v0 = vld [vmem:[%s22858_s3 + $0x330] sm:$0xff]  }
 0x313   :  { %16241 = vmatprep.mubr.bf16.mxu0 %v23242_v26  ;;  %v23280_v26 = vld [vmem:[#allocation54_spill] sm:$0xff] }
 0x31a   :  { %16242 = vmatmul.mubr.bf16.vlgmr.msra.gmra.mrb[36].mxu0 %v23245_v51  ;;  %v23283_v51 = vld [vmem:[#allocation74_spill] sm:$0xff] }
 0x31b   :  { %16245 = vmatprep.mubr.bf16.mxu0 %v23248_v20  ;;  %16266 = vmatpush3.bf16.msra.mxu0 %v17719_v55  ;;  %v23274_v55 = vld [vmem:[#allocation36_spill] sm:$0xff] }
 0x31c   :  { %16267 = vmatprep.subr.bf16.mxu0 %v17720_v46  ;;  %v23276_v45 = vpack.c.bf16 %v23274_v55, %v23275_v49  ;;  %v20495_v20 = vld [vmem:[#allocation2 + $0x50] sm:$0xff]  ;;  %v17748_v55 = vld [vmem:[%s22858_s3 + $0x328] sm:$0xff]  }
 0x31d   :  { %v18692_v49 = vld [vmem:[#allocation2 + $0x92] sm:$0xff] }
 0x31f   :  { %16268 = vmatpush3.bf16.msra.mxu0 %v17720_v46  ;;  %v23281_v46 = vld [vmem:[#allocation62_spill] sm:$0xff] }
 0x320   :  { %16269 = vmatprep.subr.bf16.mxu0 %v17721_v59 }
 0x322   :  { %16246 = vmatmul.mubr.bf16.gmra.mrb[40].mxu0 %v23251_v61  ;;  %v23285_v61 = vld [vmem:[#allocation53_spill] sm:$0xff] }
 0x323   :  { %16249 = vmatprep.mubr.bf16.mxu0 %v23252_v25  ;;  %16270 = vmatpush3.bf16.msra.mxu0 %v17721_v59  ;;  %v17736_v59 = vld [vmem:[%s22858_s3 + $0x2c8] sm:$0xff]   ;;  %v5048_v25 = vpack.c.bf16 %v23285_v61, %v20506_v57 }
 0x324   :  { %16271 = vmatprep.subr.bf16.mxu0 %v17722_v40 }
 0x327   :  { %16272 = vmatpush3.bf16.msra.mxu0 %v17722_v40  ;;  %v23284_v40 = vld [vmem:[#allocation43_spill] sm:$0xff] }
 0x328   :  { %16273 = vmatprep.subr.bf16.mxu0 %v17723_v5  ;;  %v5047_v58 = vpack.c.bf16 %v23284_v40, %v20495_v20  ;;  %v20577_v40 = vld [vmem:[#allocation2 + $0xea] sm:$0xff] }
 0x32a   :  { %16250 = vmatmul.mubr.bf16.gmra.mrb[44].mxu0 %v23254_v27 }
 0x32b   :  { %16253 = vmatprep.mubr.bf16.mxu0 %v23255_v53  ;;  %16274 = vmatpush3.bf16.msra.mxu0 %v17723_v5  ;;  %v20510_v5 = vld [vmem:[#allocation2 + $0x70] sm:$0xff]  ;;  %v17739_v53 = vld [vmem:[%s22858_s3 + $0x2e0] sm:$0xff]  }
 0x32c   :  { %16275 = vmatprep.subr.bf16.mxu0 %v17724_v54  ;;  %v5049_v27 = vpack.c.bf16 %v23286_v60, %v20510_v5  ;;  %v5627_v60 = vld [vmem:[#allocation2 + $0x44] sm:$0xff] }
 0x32f   :  { %16276 = vmatpush3.bf16.msra.mxu0 %v17724_v54  ;;  %v17738_v54 = vld [vmem:[%s22858_s3 + $0x2d8] sm:$0xff]  }
 0x330   :  { %16277 = vmatprep.subr.bf16.mxu0 %v17725_v4 }
 0x332   :  { %16254 = vmatmul.mubr.bf16.gmra.mrb[48].mxu0 %v23256_v21  ;;  %v17740_v21 = vld [vmem:[%s22858_s3 + $0x2e8] sm:$0xff]  }
 0x333   :  { %16257 = vmatprep.mubr.bf16.mxu0 %v23258_v62  ;;  %16278 = vmatpush3.bf16.msra.mxu0 %v17725_v4  ;;  %v20520_v4 = vld [vmem:[#allocation2 + $0x80] sm:$0xff] }
 0x334   :  { %16279 = vmatprep.subr.bf16.mxu0 %v17726_v3  ;;  %v17743_v62 = vld [vmem:[%s22858_s3 + $0x300] sm:$0xff]  }
 0x337   :  { %16280 = vmatpush3.bf16.msra.mxu0 %v17726_v3  ;;  %v5050_v3 = vpack.c.bf16 %v20254_v12, %v20520_v4  ;;  %v17742_v12 = vld [vmem:[%s22858_s3 + $0x2f8] sm:$0xff]  }
 0x338   :  { %16305 = vmatprep.subr.bf16.mxu0 %v17727_v63 }
 0x33a   :  { %16258 = vmatmul.mubr.bf16.gmra.mrb[52].mxu0 %v23262_v43  ;;  %v5325_v43 = vld [vmem:[#allocation2 + $0x42] sm:$0xff] }
 0x33b   :  { %16261 = vmatprep.mubr.bf16.mxu0 %v4451_v37 }
 0x342   :  { %16262 = vmatmul.mubr.bf16.gmra.mrb[56].mxu0 %v4452_v35  ;;  %v5348_v35 = vpack.c.bf16 %v18683_v29, %v5325_v43  ;;  %v17755_v43 = vld [vmem:[%s22858_s3 + $0x360] sm:$0xff]  }
 0x343   :  { %16281 = vmatprep.mubr.bf16.mxu0 %v23265_v18  ;;  %v18685_v18 = vld [vmem:[#allocation2 + $0x5a] sm:$0xff]  ;;  %v18706_v29 = vld [vmem:[#allocation2 + $0x84] sm:$0xff] }
 0x34a   :  { %16282 = vmatmul.mubr.bf16.vlgmr.msra.gmra.mrb[36].mxu0 %v23266_v22 }
 0x34b   :  { %16285 = vmatprep.mubr.bf16.mxu0 %v23267_v17  ;;  %16306 = vmatpush3.bf16.msra.mxu0 %v17727_v63  ;;  %v20540_v63 = vld [vmem:[#allocation2 + $0xe8] sm:$0xff] }
 0x34c   :  { %16307 = vmatprep.subr.bf16.mxu0 %v17728_v33  ;;  %v5056_v37 = vpack.c.bf16 %v20540_v63, %v20542_v47 }
 0x34f   :  { %16308 = vmatpush3.bf16.msra.mxu0 %v17728_v33  ;;  %v5349_v33 = vpack.c.bf16 %v18685_v18, %v18684_v52  ;;  %v17756_v52 = vld [vmem:[%s22858_s3 + $0x368] sm:$0xff]   ;;  %v18708_v18 = vld [vmem:[#allocation2 + $0x94] sm:$0xff] }
 0x350   :  { %16309 = vmatprep.subr.bf16.mxu0 %v17729_v50 }
 0x352   :  { %16286 = vmatmul.mubr.bf16.gmra.mrb[40].mxu0 %v23270_v32  ;;  %v18689_v32 = vld [vmem:[#allocation2 + $0x7a] sm:$0xff] }
 0x353   :  { %16289 = vmatprep.mubr.bf16.mxu0 %v23273_v56  ;;  %16310 = vmatpush3.bf16.msra.mxu0 %v17729_v50  ;;  %v18687_v50 = vld [vmem:[#allocation2 + $0x6a] sm:$0xff]  ;;  %v5351_v34 = vpack.c.bf16 %v18689_v32, %v18688_v1  ;;  %v18690_v56 = vld [vmem:[#allocation2 + $0x82] sm:$0xff]  ;;  %v17758_v32 = vld [vmem:[%s22858_s3 + $0x378] sm:$0xff]  }
 0x354   :  { %16311 = vmatprep.subr.bf16.mxu0 %v17730_v30 }
 0x357   :  { %16312 = vmatpush3.bf16.msra.mxu0 %v17730_v30 }
 0x358   :  { %16313 = vmatprep.subr.bf16.mxu0 %v17731_v10 }
 0x35a   :  { %16290 = vmatmul.mubr.bf16.gmra.mrb[44].mxu0 %v23276_v45  ;;  %v18693_v45 = vld [vmem:[#allocation2 + $0x9a] sm:$0xff] }
 0x35b   :  { %16293 = vmatprep.mubr.bf16.mxu0 %v23279_v41  ;;  %16314 = vmatpush3.bf16.msra.mxu0 %v17731_v10  ;;  %v18691_v10 = vld [vmem:[#allocation2 + $0x8a] sm:$0xff]  ;;  %v5353_v7 = vpack.c.bf16 %v18693_v45, %v18692_v49  ;;  %v20564_v41 = vld [vmem:[#allocation2 + $0xba] sm:$0xff]  ;;  %v23289_v49 = vld [vmem:[#allocation75_spill] sm:$0xff] }
 0x35c   :  { %16315 = vmatprep.subr.bf16.mxu0 %v17732_v23 }
 0x35f   :  { %16316 = vmatpush3.bf16.msra.mxu0 %v17732_v23  ;;  %v5352_v23 = vpack.c.bf16 %v18691_v10, %v18690_v56  ;;  %v17759_v56 = vld [vmem:[%s22858_s3 + $0x380] sm:$0xff]  }
 0x360   :  { %16317 = vmatprep.subr.bf16.mxu0 %v17733_v15  ;;  %v18713_v10 = vld [vmem:[#allocation2 + $0xdc] sm:$0xff] }
 0x362   :  { %16294 = vmatmul.mubr.bf16.gmra.mrb[48].mxu0 %v23280_v26 }
 0x363   :  { %16297 = vmatprep.mubr.bf16.mxu0 %v23281_v46  ;;  %16318 = vmatpush3.bf16.msra.mxu0 %v17733_v15  ;;  %v18694_v15 = vld [vmem:[#allocation2 + $0xa2] sm:$0xff] }
 0x364   :  { %16319 = vmatprep.subr.bf16.mxu0 %v17734_v44 }
 0x367   :  { %16320 = vmatpush3.bf16.msra.mxu0 %v17734_v44  ;;  %v18695_v44 = vld [vmem:[#allocation2 + $0xaa] sm:$0xff] }
 0x368   :  { %16345 = vmatprep.subr.bf16.mxu0 %v17735_v48 }
 0x36a   :  { %16298 = vmatmul.mubr.bf16.gmra.mrb[52].mxu0 %v23282_v31 }
 0x36b   :  { %16301 = vmatprep.mubr.bf16.mxu0 %v23283_v51 }
 0x372   :  { %16302 = vmatmul.mubr.bf16.gmra.mrb[56].mxu0 %v4754_v39 }
 0x373   :  { %16321 = vmatprep.mubr.bf16.mxu0 %v23266_v22  ;;  %v17745_v22 = vld [vmem:[%s22858_s3 + $0x310] sm:$0xff]  }
 0x37a   :  { %16322 = vmatmul.mubr.bf16.vlgmr.msra.gmra.mrb[36].mxu0 %v23267_v17  ;;  %v18686_v17 = vld [vmem:[#allocation2 + $0x62] sm:$0xff] }
 0x37b   :  { %16325 = vmatprep.mubr.bf16.mxu0 %v5047_v58  ;;  %16346 = vmatpush3.bf16.msra.mxu0 %v17735_v48  ;;  %v5350_v30 = vpack.c.bf16 %v18687_v50, %v18686_v17  ;;  %v18696_v48 = vld [vmem:[#allocation2 + $0xb2] sm:$0xff]  ;;  %v5626_v58 = vld [vmem:[#allocation2 + $0x3c] sm:$0xff] }
 0x37c   :  { %16347 = vmatprep.subr.bf16.mxu0 %v17736_v59  ;;  %v17757_v17 = vld [vmem:[%s22858_s3 + $0x370] sm:$0xff]   ;;  %v20598_v50 = vld [vmem:[#allocation2 + $0xbc] sm:$0xff] }
 0x37f   :  { %16348 = vmatpush3.bf16.msra.mxu0 %v17736_v59  ;;  %v23287_v59 = vpack.c.bf16 %v23229_v8, %v23227_v6  ;;  %v18700_v6 = vld [vmem:[#allocation2 + $0x54] sm:$0xff]  ;;  %v18701_v8 = vld [vmem:[#allocation2 + $0x5c] sm:$0xff] }
 0x380   :  { %16349 = vmatprep.subr.bf16.mxu0 %v17737_v13 }
 0x382   :  { %16326 = vmatmul.mubr.bf16.gmra.mrb[40].mxu0 %v5048_v25  ;;  %v5625_v25 = vld [vmem:[#allocation2 + $0x34] sm:$0xff] }
 0x383   :  { %16329 = vmatprep.mubr.bf16.mxu0 %v5049_v27  ;;  %16350 = vmatpush3.bf16.msra.mxu0 %v17737_v13  ;;  %v18698_v13 = vld [vmem:[#allocation2 + $0xe2] sm:$0xff]  ;;  %v18699_v27 = vld [vmem:[#allocation2 + $0x4c] sm:$0xff] }
 0x384   :  { %16351 = vmatprep.subr.bf16.mxu0 %v17738_v54  ;;  %v5358_v61 = vpack.c.bf16 %v20577_v40, %v18698_v13  ;;  %v18718_v13 = vld [vmem:[#allocation2 + $0x66] sm:$0xff] }
 0x387   :  { %16352 = vmatpush3.bf16.msra.mxu0 %v17738_v54  ;;  %v5649_v54 = vpack.c.bf16 %v5626_v58, %v5625_v25  ;;  %v17761_v58 = vld [vmem:[%s22858_s3 + $0x390] sm:$0xff]  }
 0x388   :  { %16353 = vmatprep.subr.bf16.mxu0 %v17739_v53 }
 0x38a   :  { %16330 = vmatmul.mubr.bf16.gmra.mrb[44].mxu0 %v5050_v3  ;;  %v5651_v3 = vpack.c.bf16 %v18701_v8, %v18700_v6  ;;  %v18722_v6 = vld [vmem:[#allocation2 + $0x86] sm:$0xff]  ;;  %v18723_v8 = vld [vmem:[#allocation2 + $0x8e] sm:$0xff] }
 0x38b   :  { %16333 = vmatprep.mubr.bf16.mxu0 %v23280_v26  ;;  %16354 = vmatpush3.bf16.msra.mxu0 %v17739_v53  ;;  %v5354_v26 = vpack.c.bf16 %v18695_v44, %v18694_v15  ;;  %v5650_v53 = vpack.c.bf16 %v18699_v27, %v5627_v60  ;;  %v18714_v15 = vld [vmem:[#allocation2 + $0xe4] sm:$0xff]  ;;  %v18720_v60 = vld [vmem:[#allocation2 + $0x76] sm:$0xff] }
 0x38c   :  { %16355 = vmatprep.subr.bf16.mxu0 %v17740_v21  ;;  %v18721_v27 = vld [vmem:[#allocation2 + $0x7e] sm:$0xff] }
 0x38f   :  { %16356 = vmatpush3.bf16.msra.mxu0 %v17740_v21  ;;  %v17753_v21 = vld [vmem:[%s22858_s3 + $0x350] sm:$0xff]  }
 0x390   :  { %16357 = vmatprep.subr.bf16.mxu0 %v17741_v38 }
 0x392   :  { %16334 = vmatmul.mubr.bf16.gmra.mrb[48].mxu0 %v23281_v46  ;;  %v17750_v46 = vld [vmem:[%s22858_s3 + $0x338] sm:$0xff]  }
 0x393   :  { %16337 = vmatprep.mubr.bf16.mxu0 %v23282_v31  ;;  %16358 = vmatpush3.bf16.msra.mxu0 %v17741_v38  ;;  %v5355_v31 = vpack.c.bf16 %v20564_v41, %v18696_v48  ;;  %v18702_v38 = vld [vmem:[#allocation2 + $0x64] sm:$0xff] }
 0x394   :  { %16359 = vmatprep.subr.bf16.mxu0 %v17742_v12  ;;  %v5929_v48 = vld [vmem:[#allocation2 + $0x46] sm:$0xff] }
 0x397   :  { %16360 = vmatpush3.bf16.msra.mxu0 %v17742_v12  ;;  %v18703_v12 = vld [vmem:[#allocation2 + $0x6c] sm:$0xff] }
 0x398   :  { %16385 = vmatprep.subr.bf16.mxu0 %v17743_v62 }
 0x39a   :  { %16338 = vmatmul.mubr.bf16.gmra.mrb[52].mxu0 %v23283_v51  ;;  %v17751_v51 = vld [vmem:[%s22858_s3 + $0x340] sm:$0xff]  }
 0x39b   :  { %16341 = vmatprep.mubr.bf16.mxu0 %v4754_v39  ;;  %v5357_v39 = vpack.c.bf16 %v18697_v2, %v20328_v14  ;;  %v17752_v14 = vld [vmem:[%s22858_s3 + $0x348] sm:$0xff]   ;;  %v18716_v2 = vld [vmem:[#allocation2 + $0x56] sm:$0xff] }
 0x3a2   :  { %16342 = vmatmul.mubr.bf16.gmra.mrb[56].mxu0 %v5056_v37  ;;  %v18704_v37 = vld [vmem:[#allocation2 + $0x74] sm:$0xff] }
 0x3a3   :  { %16361 = vmatprep.mubr.bf16.mxu0 %v5347_v11  ;;  %v5653_v11 = vpack.c.bf16 %v18705_v28, %v18704_v37  ;;  %v20632_v37 = vld [vmem:[#allocation2 + $0xbe] sm:$0xff]  ;;  %v18726_v28 = vld [vmem:[#allocation2 + $0xa6] sm:$0xff] }
 0x3aa   :  { %16362 = vmatmul.mubr.bf16.vlgmr.msra.gmra.mrb[36].mxu0 %v5348_v35  ;;  %v18707_v35 = vld [vmem:[#allocation2 + $0x8c] sm:$0xff] }
 0x3ab   :  { %16365 = vmatprep.mubr.bf16.mxu0 %v5349_v33  ;;  %16386 = vmatpush3.bf16.msra.mxu0 %v17743_v62  ;;  %v5652_v62 = vpack.c.bf16 %v18703_v12, %v18702_v38  ;;  %v18709_v33 = vld [vmem:[#allocation2 + $0x9c] sm:$0xff] }
 0x3ac   :  { %16387 = vmatprep.subr.bf16.mxu0 %v17744_v19  ;;  %v18724_v38 = vld [vmem:[#allocation2 + $0x96] sm:$0xff]  ;;  %v18725_v12 = vld [vmem:[#allocation2 + $0x9e] sm:$0xff] }
 0x3af   :  { %16388 = vmatpush3.bf16.msra.mxu0 %v17744_v19  ;;  %v5654_v19 = vpack.c.bf16 %v18707_v35, %v18706_v29  ;;  %v17766_v29 = vld [vmem:[%s22858_s3 + $0x3b8] sm:$0xff]  }
 0x3b0   :  { %16389 = vmatprep.subr.bf16.mxu0 %v17745_v22  ;;  %v18728_v35 = vld [vmem:[#allocation2 + $0xb6] sm:$0xff] }
 0x3b2   :  { %16366 = vmatmul.mubr.bf16.gmra.mrb[40].mxu0 %v5350_v30  ;;  %v18710_v30 = vld [vmem:[#allocation2 + $0xa4] sm:$0xff] }
 0x3b3   :  { %16369 = vmatprep.mubr.bf16.mxu0 %v5351_v34  ;;  %16390 = vmatpush3.bf16.msra.mxu0 %v17745_v22  ;;  %v5655_v22 = vpack.c.bf16 %v18709_v33, %v18708_v18  ;;  %v18712_v34 = vld [vmem:[#allocation2 + $0xb4] sm:$0xff]  ;;  %v18729_v18 = vld [vmem:[#allocation2 + $0xde] sm:$0xff] }
 0x3b4   :  { %16391 = vmatprep.subr.bf16.mxu0 %v17746_v24  ;;  %v5961_v33 = vpack.c.bf16 %v18729_v18, %v20445_v16  ;;  %v17768_v16 = vld [vmem:[%s22858_s3 + $0x3c8] sm:$0xff]   ;;  %v20728_v18 = vld [vmem:[#allocation2 + $0xf8] sm:$0xff] }
 0x3b7   :  { %16392 = vmatpush3.bf16.msra.mxu0 %v17746_v24  ;;  %v18711_v24 = vld [vmem:[#allocation2 + $0xac] sm:$0xff] }
 0x3b8   :  { %16393 = vmatprep.subr.bf16.mxu0 %v17747_v36  ;;  %v5656_v1 = vpack.c.bf16 %v18711_v24, %v18710_v30  ;;  %v20645_v24 = vld [vmem:[#allocation2 + $0xee] sm:$0xff] }
 0x3ba   :  { %16370 = vmatmul.mubr.bf16.gmra.mrb[44].mxu0 %v5352_v23  ;;  %v5659_v23 = vpack.c.bf16 %v18713_v10, %v20387_v42  ;;  %v17760_v42 = vld [vmem:[%s22858_s3 + $0x388] sm:$0xff]  }
 0x3bb   :  { %16373 = vmatprep.mubr.bf16.mxu0 %v5353_v7  ;;  %16394 = vmatpush3.bf16.msra.mxu0 %v17747_v36  ;;  %v5657_v36 = vpack.c.bf16 %v20598_v50, %v18712_v34  ;;  %v20611_v7 = vld [vmem:[#allocation2 + $0xec] sm:$0xff] }
 0x3bc   :  { %16395 = vmatprep.subr.bf16.mxu0 %v17748_v55  ;;  %v5660_v44 = vpack.c.bf16 %v20611_v7, %v18714_v15  ;;  %v6231_v10 = vld [vmem:[#allocation2 + $0x48] sm:$0xff]  ;;  %v20663_v15 = vld [vmem:[#allocation2 + $0x78] sm:$0xff] }
 0x3bf   :  { %16396 = vmatpush3.bf16.msra.mxu0 %v17748_v55  ;;  %v23288_v55 = vld [vmem:[#allocation76_spill] sm:$0xff] }
 0x3c0   :  { %16397 = vmatprep.subr.bf16.mxu0 %v17749_v0  ;;  %v23290_v45 = vpack.c.bf16 %v23288_v55, %v23289_v49  ;;  %v20649_v55 = vld [vmem:[#allocation2 + $0x58] sm:$0xff] }
 0x3c1   :  { %v6255_v49 = vpack.c.bf16 %v20506_v57, %v20649_v55  ;;  %v17770_v57 = vld [vmem:[%s22858_s3 + $0x3d8] sm:$0xff]  }
 0x3c2   :  { %16374 = vmatmul.mubr.bf16.gmra.mrb[48].mxu0 %v5354_v26  ;;  %v5927_v26 = vld [vmem:[#allocation2 + $0x36] sm:$0xff] }
 0x3c3   :  { %16377 = vmatprep.mubr.bf16.mxu0 %v5355_v31  ;;  %16398 = vmatpush3.bf16.msra.mxu0 %v17749_v0  ;;  %v5928_v0 = vld [vmem:[#allocation2 + $0x3e] sm:$0xff]  ;;  %v18715_v31 = vld [vmem:[#allocation2 + $0x4e] sm:$0xff] }
 0x3c4   :  { %16399 = vmatprep.subr.bf16.mxu0 %v17750_v46 }
 0x3c7   :  { %16400 = vmatpush3.bf16.msra.mxu0 %v17750_v46  ;;  %v5951_v46 = vpack.c.bf16 %v5928_v0, %v5927_v26  ;;  %v20659_v0 = vld [vmem:[#allocation2 + $0x68] sm:$0xff]  ;;  %v17771_v26 = vld [vmem:[%s22858_s3 + $0x3e0] sm:$0xff]  }
 0x3c8   :  { %16425 = vmatprep.subr.bf16.mxu0 %v17751_v51 }
 0x3ca   :  { %16378 = vmatmul.mubr.bf16.gmra.mrb[52].mxu0 %v23287_v59 }
 0x3cb   :  { %16381 = vmatprep.mubr.bf16.mxu0 %v5357_v39  ;;  %v18717_v39 = vld [vmem:[#allocation2 + $0x5e] sm:$0xff] }
 0x3cc   :  { %v5953_v59 = vpack.c.bf16 %v18717_v39, %v18716_v2  ;;  %v17773_v2 = vld [vmem:[%s22858_s3 + $0x3f0] sm:$0xff]   ;;  %v20685_v39 = vld [vmem:[#allocation2 + $0xa8] sm:$0xff] }
 0x3d2   :  { %16382 = vmatmul.mubr.bf16.gmra.mrb[56].mxu0 %v5358_v61  ;;  %v18719_v61 = vld [vmem:[#allocation2 + $0x6e] sm:$0xff] }
 0x3d3   :  { %16401 = vmatprep.mubr.bf16.mxu0 %v5649_v54  ;;  %v5954_v25 = vpack.c.bf16 %v18719_v61, %v18718_v13  ;;  %v17762_v54 = vld [vmem:[%s22858_s3 + $0x398] sm:$0xff]  }
 0x3d4   :  { %v17774_v13 = vld [vmem:[%s22858_s3 + $0x3f8] sm:$0xff]  }
 0x3d5   :  { %v20691_v61 = vld [vmem:[#allocation2 + $0xb8] sm:$0xff] }
 0x3da   :  { %16402 = vmatmul.mubr.bf16.vlgmr.msra.gmra.mrb[36].mxu0 %v5650_v53  ;;  %v5955_v53 = vpack.c.bf16 %v18721_v27, %v18720_v60  ;;  %v17775_v60 = vld [vmem:[%s22858_s3 + $0x400] sm:$0xff]   ;;  %v18738_v27 = vld [vmem:[#allocation2 + $0xc8] sm:$0xff] }
 0x3db   :  { %16405 = vmatprep.mubr.bf16.mxu0 %v5651_v3  ;;  %16426 = vmatpush3.bf16.msra.mxu0 %v17751_v51  ;;  %v5952_v51 = vpack.c.bf16 %v18715_v31, %v5929_v48  ;;  %v5956_v3 = vpack.c.bf16 %v18723_v8, %v18722_v6  ;;  %v17772_v31 = vld [vmem:[%s22858_s3 + $0x3e8] sm:$0xff]  }
 0x3dc   :  { %16427 = vmatprep.subr.bf16.mxu0 %v17752_v14  ;;  %v23294_v6 = vld [vmem:[#allocation88_spill] sm:$0xff]  ;;  %v23295_v8 = vld [vmem:[#allocation87_spill] sm:$0xff] }
 0x3df   :  { %16428 = vmatpush3.bf16.msra.mxu0 %v17752_v14  ;;  %v17763_v14 = vld [vmem:[%s22858_s3 + $0x3a0] sm:$0xff]  }
 0x3e0   :  { %16429 = vmatprep.subr.bf16.mxu0 %v17753_v21 }
 0x3e2   :  { %16406 = vmatmul.mubr.bf16.gmra.mrb[40].mxu0 %v5652_v62  ;;  %v5957_v62 = vpack.c.bf16 %v18725_v12, %v18724_v38  ;;  %v17776_v12 = vld [vmem:[%s22858_s3 + $0x408] sm:$0xff]  }
 0x3e3   :  { %16409 = vmatprep.mubr.bf16.mxu0 %v5653_v11  ;;  %16430 = vmatpush3.bf16.msra.mxu0 %v17753_v21  ;;  %v17764_v21 = vld [vmem:[%s22858_s3 + $0x3a8] sm:$0xff]  }
 0x3e4   :  { %16431 = vmatprep.subr.bf16.mxu0 %v17754_v9  ;;  %v18727_v11 = vld [vmem:[#allocation2 + $0xae] sm:$0xff] }
 0x3e7   :  { %16432 = vmatpush3.bf16.msra.mxu0 %v17754_v9  ;;  %v17765_v9 = vld [vmem:[%s22858_s3 + $0x3b0] sm:$0xff]  }
 0x3e8   :  { %16433 = vmatprep.subr.bf16.mxu0 %v17755_v43 }
 0x3ea   :  { %16410 = vmatmul.mubr.bf16.gmra.mrb[44].mxu0 %v5654_v19  ;;  %v5959_v19 = vpack.c.bf16 %v20632_v37, %v18728_v35  ;;  %v18741_v35 = vld [vmem:[#allocation2 + $0xd8] sm:$0xff] }
 0x3eb   :  { %16413 = vmatprep.mubr.bf16.mxu0 %v5655_v22  ;;  %16434 = vmatpush3.bf16.msra.mxu0 %v17755_v43  ;;  %v5958_v43 = vpack.c.bf16 %v18727_v11, %v18726_v28  ;;  %v23291_v22 = vld [vmem:[#allocation80_spill] sm:$0xff] }
 0x3ec   :  { %16435 = vmatprep.subr.bf16.mxu0 %v17756_v52  ;;  %v17780_v28 = vld [vmem:[%s22858_s3 + $0x428] sm:$0xff]   ;;  %v17781_v11 = vld [vmem:[%s22858_s3 + $0x430] sm:$0xff]  }
 0x3ef   :  { %16436 = vmatpush3.bf16.msra.mxu0 %v17756_v52  ;;  %v17767_v52 = vld [vmem:[%s22858_s3 + $0x3c0] sm:$0xff]  }
 0x3f0   :  { %16437 = vmatprep.subr.bf16.mxu0 %v17757_v17 }
 0x3f2   :  { %16414 = vmatmul.mubr.bf16.gmra.mrb[48].mxu0 %v5656_v1  ;;  %v6230_v1 = vld [vmem:[#allocation2 + $0x40] sm:$0xff] }
 0x3f3   :  { %16417 = vmatprep.mubr.bf16.mxu0 %v5657_v36  ;;  %16438 = vmatpush3.bf16.msra.mxu0 %v17757_v17  ;;  %v23292_v17 = vld [vmem:[#allocation79_spill] sm:$0xff]  ;;  %v6229_v36 = vld [vmem:[#allocation2 + $0x38] sm:$0xff] }
 0x3f4   :  { %16439 = vmatprep.subr.bf16.mxu0 %v17758_v32  ;;  %v23293_v30 = vpack.c.bf16 %v23291_v22, %v23292_v17  ;;  %v23297_v22 = vld [vmem:[#allocation30_spill] sm:$0xff]  ;;  %v23298_v17 = vld [vmem:[#allocation29_spill] sm:$0xff] }
 0x3f7   :  { %16440 = vmatpush3.bf16.msra.mxu0 %v17758_v32  ;;  %v18730_v32 = vld [vmem:[#allocation2 + $0xe6] sm:$0xff] }
 0x3f8   :  { %16465 = vmatprep.subr.bf16.mxu0 %v17759_v56  ;;  %v5962_v34 = vpack.c.bf16 %v20645_v24, %v18730_v32  ;;  %v23301_v32 = vld [vmem:[#allocation69_spill] sm:$0xff] }
 0x3fa   :  { %16418 = vmatmul.mubr.bf16.gmra.mrb[52].mxu0 %v23290_v45  ;;  %v17769_v45 = vld [vmem:[%s22858_s3 + $0x3d0] sm:$0xff]  }
 0x3fb   :  { %16421 = vmatprep.mubr.bf16.mxu0 %v5659_v23  ;;  %v6254_v23 = vpack.c.bf16 %v20495_v20, %v6231_v10  ;;  %v6256_v20 = vpack.c.bf16 %v20510_v5, %v20659_v0  ;;  %v18731_v5 = vld [vmem:[#allocation2 + $0x90] sm:$0xff] }
 0x402   :  { %16422 = vmatmul.mubr.bf16.gmra.mrb[56].mxu0 %v5660_v44  ;;  %v6257_v44 = vpack.c.bf16 %v20520_v4, %v20663_v15  ;;  %v20679_v4 = vld [vmem:[#allocation2 + $0x98] sm:$0xff] }
 0x403   :  { %16441 = vmatprep.mubr.bf16.mxu0 %v5951_v46  ;;  %v20673_v46 = vld [vmem:[#allocation2 + $0x88] sm:$0xff] }
 0x404   :  { %v6258_v48 = vpack.c.bf16 %v18731_v5, %v20673_v46  ;;  %v17787_v5 = vld [vmem:[%s22858_s3 + $0x460] sm:$0xff]  }
 0x40a   :  { %16442 = vmatmul.mubr.bf16.vlgmr.msra.gmra.mrb[36].mxu0 %v5952_v51  ;;  %v18733_v51 = vld [vmem:[#allocation2 + $0xa0] sm:$0xff] }
 0x40b   :  { %16445 = vmatprep.mubr.bf16.mxu0 %v5953_v59  ;;  %16466 = vmatpush3.bf16.msra.mxu0 %v17759_v56  ;;  %v6253_v56 = vpack.c.bf16 %v6230_v1, %v6229_v36  ;;  %v18735_v59 = vld [vmem:[#allocation2 + $0xb0] sm:$0xff]  ;;  %v17784_v1 = vld [vmem:[%s22858_s3 + $0x448] sm:$0xff]   ;;  %v23303_v36 = vld [vmem:[#allocation66_spill] sm:$0xff] }
 0x40c   :  { %16467 = vmatprep.subr.bf16.mxu0 %v17760_v42 }
 0x40f   :  { %16468 = vmatpush3.bf16.msra.mxu0 %v17760_v42  ;;  %v6259_v42 = vpack.c.bf16 %v18733_v51, %v20679_v4  ;;  %v23313_v51 = vld [vmem:[#allocation89_spill] sm:$0xff] }
 0x410   :  { %16469 = vmatprep.subr.bf16.mxu0 %v17761_v58 }
 0x412   :  { %16446 = vmatmul.mubr.bf16.gmra.mrb[40].mxu0 %v5954_v25  ;;  %v18737_v25 = vld [vmem:[#allocation2 + $0xc0] sm:$0xff] }
 0x413   :  { %16449 = vmatprep.mubr.bf16.mxu0 %v5955_v53  ;;  %16470 = vmatpush3.bf16.msra.mxu0 %v17761_v58  ;;  %v6260_v58 = vpack.c.bf16 %v18735_v59, %v20685_v39  ;;  %v18739_v53 = vld [vmem:[#allocation2 + $0xd0] sm:$0xff]  ;;  %v23316_v59 = vld [vmem:[#allocation82_spill] sm:$0xff] }
 0x414   :  { %16471 = vmatprep.subr.bf16.mxu0 %v17762_v54 }
 0x417   :  { %16472 = vmatpush3.bf16.msra.mxu0 %v17762_v54  ;;  %v6261_v54 = vpack.c.bf16 %v18737_v25, %v20691_v61  ;;  %v20771_v25 = vld [vmem:[#allocation2 + $0xd2] sm:$0xff] }
 0x418   :  { %16473 = vmatprep.subr.bf16.mxu0 %v17763_v14 }
 0x41a   :  { %16450 = vmatmul.mubr.bf16.gmra.mrb[44].mxu0 %v5956_v3  ;;  %v23296_v3 = vpack.c.bf16 %v23294_v6, %v23295_v8  ;;  %v17791_v6 = vld [vmem:[%s22858_s3 + $0x480] sm:$0xff]   ;;  %v18745_v8 = vld [vmem:[#allocation2 + $0xf2] sm:$0xff] }
 0x41b   :  { %16453 = vmatprep.mubr.bf16.mxu0 %v5957_v62  ;;  %16474 = vmatpush3.bf16.msra.mxu0 %v17763_v14  ;;  %v6262_v14 = vpack.c.bf16 %v18739_v53, %v18738_v27  ;;  %v17777_v62 = vld [vmem:[%s22858_s3 + $0x410] sm:$0xff]   ;;  %v17790_v27 = vld [vmem:[%s22858_s3 + $0x478] sm:$0xff]  }
 0x41c   :  { %16475 = vmatprep.subr.bf16.mxu0 %v17764_v21  ;;  %v18744_v53 = vld [vmem:[#allocation2 + $0xca] sm:$0xff] }
 0x41f   :  { %16476 = vmatpush3.bf16.msra.mxu0 %v17764_v21  ;;  %v18740_v21 = vld [vmem:[#allocation2 + $0xf0] sm:$0xff] }
 0x420   :  { %16477 = vmatprep.subr.bf16.mxu0 %v17765_v9  ;;  %v6264_v38 = vpack.c.bf16 %v18740_v21, %v20540_v63  ;;  %v17778_v63 = vld [vmem:[%s22858_s3 + $0x418] sm:$0xff]   ;;  %v23319_v21 = vld [vmem:[#allocation99_spill] sm:$0xff] }
 0x422   :  { %16454 = vmatmul.mubr.bf16.gmra.mrb[48].mxu0 %v5958_v43  ;;  %v17782_v43 = vld [vmem:[%s22858_s3 + $0x438] sm:$0xff]  }
 0x423   :  { %16457 = vmatprep.mubr.bf16.mxu0 %v5959_v19  ;;  %16478 = vmatpush3.bf16.msra.mxu0 %v17765_v9  ;;  %v17779_v9 = vld [vmem:[%s22858_s3 + $0x420] sm:$0xff]   ;;  %v6564_v19 = vpack.c.bf16 %v20542_v47, %v18741_v35 }
 0x424   :  { %16479 = vmatprep.subr.bf16.mxu0 %v17766_v29  ;;  %v23300_v47 = vld [vmem:[#allocation63_spill] sm:$0xff] }
 0x427   :  { %16480 = vmatpush3.bf16.msra.mxu0 %v17766_v29  ;;  %v17783_v29 = vld [vmem:[%s22858_s3 + $0x440] sm:$0xff]  }
 0x428   :  { %16505 = vmatprep.subr.bf16.mxu0 %v17767_v52 }
 0x42a   :  { %16458 = vmatmul.mubr.bf16.gmra.mrb[52].mxu0 %v23293_v30  ;;  %v23299_v30 = vpack.c.bf16 %v23297_v22, %v23298_v17  ;;  %v17793_v17 = vld [vmem:[%s22858_s3 + $0x490] sm:$0xff]  }
 0x42b   :  { %16461 = vmatprep.mubr.bf16.mxu0 %v5961_v33 }
 0x432   :  { %16462 = vmatmul.mubr.bf16.gmra.mrb[56].mxu0 %v5962_v34  ;;  %v23302_v34 = vpack.c.bf16 %v23300_v47, %v23301_v32  ;;  %v23331_v47 = vld [vmem:[#allocation96_spill] sm:$0xff] }
 0x433   :  { %16481 = vmatprep.mubr.bf16.mxu0 %v6253_v56  ;;  %v23304_v56 = vld [vmem:[#allocation65_spill] sm:$0xff] }
 0x434   :  { %v23305_v10 = vpack.c.bf16 %v23303_v36, %v23304_v56  ;;  %v23334_v36 = vld [vmem:[#allocation94_spill] sm:$0xff] }
 0x43a   :  { %16482 = vmatmul.mubr.bf16.vlgmr.msra.gmra.mrb[36].mxu0 %v6254_v23 }
 0x43b   :  { %16485 = vmatprep.mubr.bf16.mxu0 %v6255_v49  ;;  %16506 = vmatpush3.bf16.msra.mxu0 %v17767_v52  ;;  %v20726_v52 = vld [vmem:[#allocation2 + $0x100] sm:$0xff] }
 0x43c   :  { %16507 = vmatprep.subr.bf16.mxu0 %v17768_v16  ;;  %v6566_v33 = vpack.c.bf16 %v20726_v52, %v20728_v18 }
 0x43f   :  { %16508 = vmatpush3.bf16.msra.mxu0 %v17768_v16  ;;  %v17786_v16 = vld [vmem:[%s22858_s3 + $0x458] sm:$0xff]  }
 0x440   :  { %16509 = vmatprep.subr.bf16.mxu0 %v17769_v45 }
 0x442   :  { %16486 = vmatmul.mubr.bf16.gmra.mrb[40].mxu0 %v6256_v20 }
 0x443   :  { %16489 = vmatprep.mubr.bf16.mxu0 %v6257_v44  ;;  %16510 = vmatpush3.bf16.msra.mxu0 %v17769_v45  ;;  %v23307_v45 = vld [vmem:[#allocation70_spill] sm:$0xff] }
 0x444   :  { %16511 = vmatprep.subr.bf16.mxu0 %v17770_v57 }
 0x447   :  { %16512 = vmatpush3.bf16.msra.mxu0 %v17770_v57  ;;  %v23309_v57 = vld [vmem:[#allocation78_spill] sm:$0xff] }
 0x448   :  { %16513 = vmatprep.subr.bf16.mxu0 %v17771_v26 }
 0x44a   :  { %16490 = vmatmul.mubr.bf16.gmra.mrb[44].mxu0 %v6258_v48 }
 0x44b   :  { %16493 = vmatprep.mubr.bf16.mxu0 %v6259_v42  ;;  %16514 = vmatpush3.bf16.msra.mxu0 %v17771_v26 }
 0x44c   :  { %16515 = vmatprep.subr.bf16.mxu0 %v17772_v31 }
 0x44f   :  { %16516 = vmatpush3.bf16.msra.mxu0 %v17772_v31  ;;  %v23312_v31 = vld [vmem:[#allocation81_spill] sm:$0xff] }
 0x450   :  { %16517 = vmatprep.subr.bf16.mxu0 %v17773_v2 }
 0x452   :  { %16494 = vmatmul.mubr.bf16.gmra.mrb[48].mxu0 %v6260_v58 }
 0x453   :  { %16497 = vmatprep.mubr.bf16.mxu0 %v6261_v54  ;;  %16518 = vmatpush3.bf16.msra.mxu0 %v17773_v2  ;;  %v23315_v2 = vld [vmem:[#allocation83_spill] sm:$0xff] }
 0x454   :  { %16519 = vmatprep.subr.bf16.mxu0 %v17774_v13 }
 0x457   :  { %16520 = vmatpush3.bf16.msra.mxu0 %v17774_v13  ;;  %v17789_v13 = vld [vmem:[%s22858_s3 + $0x470] sm:$0xff]  }
 0x458   :  { %16545 = vmatprep.subr.bf16.mxu0 %v17775_v60 }
 0x45a   :  { %16498 = vmatmul.mubr.bf16.gmra.mrb[52].mxu0 %v6262_v14 }
 0x45b   :  { %16501 = vmatprep.mubr.bf16.mxu0 %v23296_v3  ;;  %v23318_v3 = vld [vmem:[#allocation95_spill] sm:$0xff] }
 0x462   :  { %16502 = vmatmul.mubr.bf16.gmra.mrb[56].mxu0 %v6264_v38 }
 0x463   :  { %16521 = vmatprep.mubr.bf16.mxu0 %v6254_v23  ;;  %v17785_v23 = vld [vmem:[%s22858_s3 + $0x450] sm:$0xff]  }
 0x46a   :  { %16522 = vmatmul.mubr.bf16.vlgmr.msra.gmra.mrb[36].mxu0 %v6255_v49  ;;  %v23306_v49 = vld [vmem:[#allocation67_spill] sm:$0xff] }
 0x46b   :  { %16525 = vmatprep.mubr.bf16.mxu0 %v6256_v20  ;;  %16546 = vmatpush3.bf16.msra.mxu0 %v17775_v60  ;;  %v23308_v20 = vpack.c.bf16 %v23306_v49, %v23307_v45  ;;  %v23337_v49 = vld [vmem:[#allocation100_spill] sm:$0xff] }
 0x46c   :  { %16547 = vmatprep.subr.bf16.mxu0 %v17776_v12 }
 0x46f   :  { %16548 = vmatpush3.bf16.msra.mxu0 %v17776_v12  ;;  %v20785_v12 = vld [vmem:[#allocation2 + $0x102] sm:$0xff] }
 0x470   :  { %16549 = vmatprep.subr.bf16.mxu0 %v17777_v62 }
 0x472   :  { %16526 = vmatmul.mubr.bf16.gmra.mrb[40].mxu0 %v6257_v44  ;;  %v23310_v44 = vld [vmem:[#allocation77_spill] sm:$0xff] }
 0x473   :  { %16529 = vmatprep.mubr.bf16.mxu0 %v6258_v48  ;;  %16550 = vmatpush3.bf16.msra.mxu0 %v17777_v62  ;;  %v23311_v26 = vpack.c.bf16 %v23309_v57, %v23310_v44  ;;  %v17788_v48 = vld [vmem:[%s22858_s3 + $0x468] sm:$0xff]   ;;  %v18746_v62 = vld [vmem:[#allocation2 + $0xfa] sm:$0xff]  ;;  %v23340_v57 = vld [vmem:[#allocation101_spill] sm:$0xff] }
 0x474   :  { %16551 = vmatprep.subr.bf16.mxu0 %v17778_v63 }
 0x477   :  { %16552 = vmatpush3.bf16.msra.mxu0 %v17778_v63  ;;  %v6868_v63 = vpack.c.bf16 %v20785_v12, %v18746_v62  ;;  %v23351_v62 = vld [vmem:[#allocation108_spill] sm:$0xff] }
 0x478   :  { %16553 = vmatprep.subr.bf16.mxu0 %v17779_v9 }
 0x47a   :  { %16530 = vmatmul.mubr.bf16.gmra.mrb[44].mxu0 %v6259_v42  ;;  %v23314_v42 = vpack.c.bf16 %v23312_v31, %v23313_v51  ;;  %v17798_v51 = vld [vmem:[%s22858_s3 + $0x4b8] sm:$0xff]  }
 0x47b   :  { %16533 = vmatprep.mubr.bf16.mxu0 %v6260_v58  ;;  %16554 = vmatpush3.bf16.msra.mxu0 %v17779_v9  ;;  %v23317_v58 = vpack.c.bf16 %v23315_v2, %v23316_v59  ;;  %v23321_v9 = vld [vmem:[#allocation85_spill] sm:$0xff]  ;;  %v17799_v59 = vld [vmem:[%s22858_s3 + $0x4c0] sm:$0xff]  }
 0x47c   :  { %16555 = vmatprep.subr.bf16.mxu0 %v17780_v28 }
 0x47f   :  { %16556 = vmatpush3.bf16.msra.mxu0 %v17780_v28  ;;  %v23322_v28 = vld [vmem:[#allocation84_spill] sm:$0xff] }
 0x480   :  { %16557 = vmatprep.subr.bf16.mxu0 %v17781_v11 }
 0x482   :  { %16534 = vmatmul.mubr.bf16.gmra.mrb[48].mxu0 %v6261_v54  ;;  %v18743_v54 = vld [vmem:[#allocation2 + $0xc2] sm:$0xff] }
 0x483   :  { %16537 = vmatprep.mubr.bf16.mxu0 %v6262_v14  ;;  %16558 = vmatpush3.bf16.msra.mxu0 %v17781_v11  ;;  %v6864_v60 = vpack.c.bf16 %v18743_v54, %v20564_v41  ;;  %v6865_v14 = vpack.c.bf16 %v20771_v25, %v18744_v53  ;;  %v6867_v41 = vpack.c.bf16 %v18745_v8, %v20577_v40  ;;  %v23324_v40 = vld [vmem:[#allocation86_spill] sm:$0xff]  ;;  %v23343_v54 = vld [vmem:[#allocation109_spill] sm:$0xff]  ;;  %v23346_v8 = vld [vmem:[#allocation104_spill] sm:$0xff] }
 0x484   :  { %16559 = vmatprep.subr.bf16.mxu0 %v17782_v43  ;;  %v23323_v11 = vpack.c.bf16 %v23321_v9, %v23322_v28  ;;  %v18750_v53 = vld [vmem:[#allocation2 + $0xfc] sm:$0xff]  ;;  %v17801_v28 = vld [vmem:[%s22858_s3 + $0x4d0] sm:$0xff]  }
 0x487   :  { %16560 = vmatpush3.bf16.msra.mxu0 %v17782_v43  ;;  %v17792_v43 = vld [vmem:[%s22858_s3 + $0x488] sm:$0xff]  }
 0x488   :  { %16585 = vmatprep.subr.bf16.mxu0 %v17783_v29 }
 0x48a   :  { %16538 = vmatmul.mubr.bf16.gmra.mrb[52].mxu0 %v6564_v19  ;;  %v23327_v19 = vld [vmem:[#allocation92_spill] sm:$0xff] }
 0x48b   :  { %16541 = vmatprep.mubr.bf16.mxu0 %v6264_v38  ;;  %v23320_v38 = vpack.c.bf16 %v23318_v3, %v23319_v21  ;;  %v17800_v3 = vld [vmem:[%s22858_s3 + $0x4c8] sm:$0xff]   ;;  %v23349_v21 = vld [vmem:[#allocation110_spill] sm:$0xff] }
 0x492   :  { %16542 = vmatmul.mubr.bf16.gmra.mrb[56].mxu0 %v6566_v33  ;;  %v23328_v33 = vld [vmem:[#allocation90_spill] sm:$0xff] }
 0x493   :  { %16561 = vmatprep.mubr.bf16.mxu0 %v23299_v30  ;;  %v23329_v22 = vpack.c.bf16 %v23327_v19, %v23328_v33  ;;  %v17794_v30 = vld [vmem:[%s22858_s3 + $0x498] sm:$0xff]  }
 0x494   :  { %v23358_v19 = vld [vmem:[#allocation113_spill] sm:$0xff] }
 0x49a   :  { %16562 = vmatmul.mubr.bf16.vlgmr.msra.gmra.mrb[36].mxu0 %v23302_v34  ;;  %v23333_v34 = vld [vmem:[#allocation97_spill] sm:$0xff] }
 0x49b   :  { %16565 = vmatprep.mubr.bf16.mxu0 %v23305_v10  ;;  %16586 = vmatpush3.bf16.msra.mxu0 %v17783_v29  ;;  %v23325_v29 = vld [vmem:[#allocation91_spill] sm:$0xff]  ;;  %v23335_v56 = vpack.c.bf16 %v23333_v34, %v23334_v36  ;;  %v23364_v34 = vld [vmem:[#allocation117_spill] sm:$0xff] }
 0x49c   :  { %16587 = vmatprep.subr.bf16.mxu0 %v17784_v1  ;;  %v23326_v35 = vpack.c.bf16 %v23324_v40, %v23325_v29  ;;  %v17795_v10 = vld [vmem:[%s22858_s3 + $0x4a0] sm:$0xff]   ;;  %v23355_v40 = vld [vmem:[#allocation112_spill] sm:$0xff] }
 0x49f   :  { %16588 = vmatpush3.bf16.msra.mxu0 %v17784_v1  ;;  %v23330_v1 = vld [vmem:[#allocation93_spill] sm:$0xff] }
 0x4a0   :  { %16589 = vmatprep.subr.bf16.mxu0 %v17785_v23  ;;  %v23332_v32 = vpack.c.bf16 %v23330_v1, %v23331_v47  ;;  %v23361_v1 = vld [vmem:[#allocation115_spill] sm:$0xff] }
 0x4a2   :  { %16566 = vmatmul.mubr.bf16.gmra.mrb[40].mxu0 %v23308_v20  ;;  %v23339_v20 = vld [vmem:[#allocation102_spill] sm:$0xff] }
 0x4a3   :  { %16569 = vmatprep.mubr.bf16.mxu0 %v23311_v26  ;;  %16590 = vmatpush3.bf16.msra.mxu0 %v17785_v23  ;;  %v17796_v23 = vld [vmem:[%s22858_s3 + $0x4a8] sm:$0xff]   ;;  %v23341_v44 = vpack.c.bf16 %v23339_v20, %v23340_v57  ;;  %v17797_v26 = vld [vmem:[%s22858_s3 + $0x4b0] sm:$0xff]   ;;  %v17807_v57 = vld [vmem:[%s22858_s3 + $0x500] sm:$0xff]  }
 0x4a4   :  { %16591 = vmatprep.subr.bf16.mxu0 %v17786_v16 }
 0x4a7   :  { %16592 = vmatpush3.bf16.msra.mxu0 %v17786_v16  ;;  %v23336_v16 = vld [vmem:[#allocation98_spill] sm:$0xff] }
 0x4a8   :  { %16593 = vmatprep.subr.bf16.mxu0 %v17787_v5  ;;  %v23338_v45 = vpack.c.bf16 %v23336_v16, %v23337_v49  ;;  %v17806_v49 = vld [vmem:[%s22858_s3 + $0x4f8] sm:$0xff]  }
 0x4aa   :  { %16570 = vmatmul.mubr.bf16.gmra.mrb[44].mxu0 %v23314_v42  ;;  %v18748_v42 = vld [vmem:[#allocation2 + $0xcc] sm:$0xff] }
 0x4ab   :  { %16573 = vmatprep.mubr.bf16.mxu0 %v23317_v58  ;;  %16594 = vmatpush3.bf16.msra.mxu0 %v17787_v5  ;;  %v20827_v5 = vld [vmem:[#allocation2 + $0xd4] sm:$0xff] }
 0x4ac   :  { %16595 = vmatprep.subr.bf16.mxu0 %v17788_v48  ;;  %v7167_v2 = vpack.c.bf16 %v20827_v5, %v18748_v42  ;;  %v18749_v58 = vld [vmem:[#allocation2 + $0xf4] sm:$0xff]  ;;  %v18754_v42 = vld [vmem:[#allocation2 + $0xfe] sm:$0xff] }
 0x4af   :  { %16596 = vmatpush3.bf16.msra.mxu0 %v17788_v48  ;;  %v18747_v48 = vld [vmem:[#allocation2 + $0xc4] sm:$0xff] }
 0x4b0   :  { %16597 = vmatprep.subr.bf16.mxu0 %v17789_v13  ;;  %v7166_v31 = vpack.c.bf16 %v18747_v48, %v20598_v50  ;;  %v7169_v50 = vpack.c.bf16 %v18749_v58, %v20611_v7  ;;  %v23348_v7 = vld [vmem:[#allocation106_spill] sm:$0xff]  ;;  %v23367_v48 = vld [vmem:[#allocation119_spill] sm:$0xff] }
 0x4b2   :  { %16574 = vmatmul.mubr.bf16.gmra.mrb[48].mxu0 %v6864_v60 }
 0x4b3   :  { %16577 = vmatprep.mubr.bf16.mxu0 %v6865_v14  ;;  %16598 = vmatpush3.bf16.msra.mxu0 %v17789_v13  ;;  %v23342_v13 = vld [vmem:[#allocation103_spill] sm:$0xff] }
 0x4b4   :  { %16599 = vmatprep.subr.bf16.mxu0 %v17790_v27  ;;  %v23344_v60 = vpack.c.bf16 %v23342_v13, %v23343_v54  ;;  %v20902_v54 = vld [vmem:[#allocation2 + $0x70] sm:$0xff] }
 0x4b7   :  { %16600 = vmatpush3.bf16.msra.mxu0 %v17790_v27  ;;  %v20841_v27 = vld [vmem:[#allocation2 + $0x104] sm:$0xff] }
 0x4b8   :  { %16625 = vmatprep.subr.bf16.mxu0 %v17791_v6  ;;  %v7170_v14 = vpack.c.bf16 %v20841_v27, %v18750_v53  ;;  %v20912_v53 = vld [vmem:[#allocation2 + $0x80] sm:$0xff] }
 0x4ba   :  { %16578 = vmatmul.mubr.bf16.gmra.mrb[52].mxu0 %v23320_v38  ;;  %v23350_v38 = vpack.c.bf16 %v23348_v7, %v23349_v21  ;;  %v23373_v7 = vld [vmem:[#allocation123_spill] sm:$0xff] }
 0x4bb   :  { %16581 = vmatprep.mubr.bf16.mxu0 %v6867_v41 }
 0x4c2   :  { %16582 = vmatmul.mubr.bf16.gmra.mrb[56].mxu0 %v6868_v63  ;;  %v23352_v63 = vld [vmem:[#allocation107_spill] sm:$0xff] }
 0x4c3   :  { %16601 = vmatprep.mubr.bf16.mxu0 %v23323_v11  ;;  %v23353_v9 = vpack.c.bf16 %v23351_v62, %v23352_v63  ;;  %v17802_v11 = vld [vmem:[%s22858_s3 + $0x4d8] sm:$0xff]  }
 0x4c4   :  { %v23376_v62 = vld [vmem:[#allocation125_spill] sm:$0xff] }
 0x4ca   :  { %16602 = vmatmul.mubr.bf16.vlgmr.msra.gmra.mrb[36].mxu0 %v23326_v35  ;;  %v23357_v35 = vld [vmem:[#allocation114_spill] sm:$0xff] }
 0x4cb   :  { %16605 = vmatprep.mubr.bf16.mxu0 %v23329_v22  ;;  %16626 = vmatpush3.bf16.msra.mxu0 %v17791_v6  ;;  %v23345_v6 = vld [vmem:[#allocation105_spill] sm:$0xff]  ;;  %v23359_v33 = vpack.c.bf16 %v23357_v35, %v23358_v19  ;;  %v17803_v22 = vld [vmem:[%s22858_s3 + $0x4e0] sm:$0xff]   ;;  %v18755_v35 = vld [vmem:[#allocation2 + $0xe8] sm:$0xff] }
 0x4cc   :  { %16627 = vmatprep.subr.bf16.mxu0 %v17792_v43  ;;  %v23347_v41 = vpack.c.bf16 %v23345_v6, %v23346_v8  ;;  %v23370_v6 = vld [vmem:[#allocation121_spill] sm:$0xff] }
 0x4cf   :  { %16628 = vmatpush3.bf16.msra.mxu0 %v17792_v43  ;;  %v23354_v43 = vld [vmem:[#allocation111_spill] sm:$0xff] }
 0x4d0   :  { %16629 = vmatprep.subr.bf16.mxu0 %v17793_v17  ;;  %v23356_v29 = vpack.c.bf16 %v23354_v43, %v23355_v40  ;;  %v23379_v43 = vld [vmem:[#allocation132_spill] sm:$0xff]  ;;  %v17815_v40 = vld [vmem:[%s22858_s3 + $0x540] sm:$0xff]  }
 0x4d2   :  { %16606 = vmatmul.mubr.bf16.gmra.mrb[40].mxu0 %v23332_v32  ;;  %v23363_v32 = vld [vmem:[#allocation118_spill] sm:$0xff] }
 0x4d3   :  { %16609 = vmatprep.mubr.bf16.mxu0 %v23335_v56  ;;  %16630 = vmatpush3.bf16.msra.mxu0 %v17793_v17  ;;  %v17804_v17 = vld [vmem:[%s22858_s3 + $0x4e8] sm:$0xff]   ;;  %v23365_v36 = vpack.c.bf16 %v23363_v32, %v23364_v34  ;;  %v17805_v56 = vld [vmem:[%s22858_s3 + $0x4f0] sm:$0xff]  }
 0x4d4   :  { %16631 = vmatprep.subr.bf16.mxu0 %v17794_v30  ;;  %v17817_v32 = vld [vmem:[%s22858_s3 + $0x550] sm:$0xff]  }
 0x4d5   :  { %v20958_v34 = vld [vmem:[#allocation2 + $0x90] sm:$0xff] }
 0x4d7   :  { %16632 = vmatpush3.bf16.msra.mxu0 %v17794_v30  ;;  %v23360_v30 = vld [vmem:[#allocation116_spill] sm:$0xff] }
 0x4d8   :  { %16633 = vmatprep.subr.bf16.mxu0 %v17795_v10  ;;  %v23362_v47 = vpack.c.bf16 %v23360_v30, %v23361_v1  ;;  %v18756_v30 = vld [vmem:[#allocation2 + $0x108] sm:$0xff] }
 0x4d9   :  { %v7774_v1 = vpack.c.bf16 %v18756_v30, %v20726_v52  ;;  %v8068_v52 = vpack.c.bf16 %v20679_v4, %v20958_v34  ;;  %v8364_v30 = vld [vmem:[#allocation2 + $0x10a] sm:$0xff] }
 0x4da   :  { %16610 = vmatmul.mubr.bf16.gmra.mrb[44].mxu0 %v23338_v45  ;;  %v18752_v45 = vld [vmem:[#allocation2 + $0xce] sm:$0xff] }
 0x4db   :  { %16613 = vmatprep.mubr.bf16.mxu0 %v23341_v44  ;;  %16634 = vmatpush3.bf16.msra.mxu0 %v17795_v10  ;;  %v20883_v10 = vld [vmem:[#allocation2 + $0xd6] sm:$0xff] }
 0x4dc   :  { %16635 = vmatprep.subr.bf16.mxu0 %v17796_v23  ;;  %v7469_v20 = vpack.c.bf16 %v20883_v10, %v18752_v45  ;;  %v18753_v44 = vld [vmem:[#allocation2 + $0xf6] sm:$0xff]  ;;  %v17820_v45 = vld [vmem:[%s22858_s3 + $0x568] sm:$0xff]  }
 0x4df   :  { %16636 = vmatpush3.bf16.msra.mxu0 %v17796_v23  ;;  %v18751_v23 = vld [vmem:[#allocation2 + $0xc6] sm:$0xff] }
 0x4e0   :  { %16637 = vmatprep.subr.bf16.mxu0 %v17797_v26  ;;  %v7468_v16 = vpack.c.bf16 %v18751_v23, %v20632_v37  ;;  %v7471_v37 = vpack.c.bf16 %v18753_v44, %v20645_v24  ;;  %v17808_v24 = vld [vmem:[%s22858_s3 + $0x508] sm:$0xff]  }
 0x4e2   :  { %16614 = vmatmul.mubr.bf16.gmra.mrb[48].mxu0 %v7166_v31 }
 0x4e3   :  { %16617 = vmatprep.mubr.bf16.mxu0 %v7167_v2  ;;  %16638 = vmatpush3.bf16.msra.mxu0 %v17797_v26  ;;  %v23366_v26 = vld [vmem:[#allocation120_spill] sm:$0xff] }
 0x4e4   :  { %16639 = vmatprep.subr.bf16.mxu0 %v17798_v51  ;;  %v23368_v31 = vpack.c.bf16 %v23366_v26, %v23367_v48  ;;  %v8343_v26 = vld [vmem:[#allocation2 + $0x62] sm:$0xff]  ;;  %v8344_v48 = vld [vmem:[#allocation2 + $0x6a] sm:$0xff] }
 0x4e7   :  { %16640 = vmatpush3.bf16.msra.mxu0 %v17798_v51  ;;  %v20897_v51 = vld [vmem:[#allocation2 + $0x106] sm:$0xff] }
 0x4e8   :  { %16665 = vmatprep.subr.bf16.mxu0 %v17799_v59  ;;  %v7472_v2 = vpack.c.bf16 %v20897_v51, %v18754_v42 }
 0x4ea   :  { %16618 = vmatmul.mubr.bf16.gmra.mrb[52].mxu0 %v23344_v60  ;;  %v7765_v60 = vpack.c.bf16 %v20663_v15, %v20902_v54  ;;  %v23369_v15 = vld [vmem:[#allocation122_spill] sm:$0xff] }
 0x4eb   :  { %16621 = vmatprep.mubr.bf16.mxu0 %v7169_v50  ;;  %v7741_v50 = vld [vmem:[#allocation2 + $0x60] sm:$0xff]  ;;  %v23371_v8 = vpack.c.bf16 %v23369_v15, %v23370_v6  ;;  %v8352_v15 = vld [vmem:[#allocation2 + $0xaa] sm:$0xff]  ;;  %v8349_v6 = vld [vmem:[#allocation2 + $0x92] sm:$0xff] }
 0x4ec   :  { %v7764_v13 = vpack.c.bf16 %v20659_v0, %v7741_v50  ;;  %v7766_v0 = vpack.c.bf16 %v20673_v46, %v20912_v53  ;;  %v17812_v46 = vld [vmem:[%s22858_s3 + $0x528] sm:$0xff]  }
 0x4ed   :  { %v8348_v50 = vld [vmem:[#allocation2 + $0x8a] sm:$0xff] }
 0x4f2   :  { %16622 = vmatmul.mubr.bf16.gmra.mrb[56].mxu0 %v7170_v14  ;;  %v17810_v14 = vld [vmem:[%s22858_s3 + $0x518] sm:$0xff]  }
 0x4f3   :  { %16641 = vmatprep.mubr.bf16.mxu0 %v23347_v41  ;;  %v17811_v41 = vld [vmem:[%s22858_s3 + $0x520] sm:$0xff]  }
 0x4fa   :  { %16642 = vmatmul.mubr.bf16.vlgmr.msra.gmra.mrb[36].mxu0 %v23350_v38  ;;  %v23375_v38 = vld [vmem:[#allocation126_spill] sm:$0xff] }
 0x4fb   :  { %16645 = vmatprep.mubr.bf16.mxu0 %v23353_v9  ;;  %16666 = vmatpush3.bf16.msra.mxu0 %v17799_v59  ;;  %v7739_v59 = vld [vmem:[#allocation2 + $0x50] sm:$0xff]  ;;  %v23377_v63 = vpack.c.bf16 %v23375_v38, %v23376_v62  ;;  %v17828_v62 = vld [vmem:[%s22858_s3 + $0x5a8] sm:$0xff]  }
 0x4fc   :  { %16667 = vmatprep.subr.bf16.mxu0 %v17800_v3  ;;  %v7763_v58 = vpack.c.bf16 %v20649_v55, %v7739_v59  ;;  %v17809_v55 = vld [vmem:[%s22858_s3 + $0x510] sm:$0xff]   ;;  %v8346_v59 = vld [vmem:[#allocation2 + $0x7a] sm:$0xff] }
 0x4fd   :  { %v17813_v9 = vld [vmem:[%s22858_s3 + $0x530] sm:$0xff]  }
 0x4ff   :  { %16668 = vmatpush3.bf16.msra.mxu0 %v17800_v3  ;;  %v23372_v3 = vld [vmem:[#allocation124_spill] sm:$0xff] }
 0x500   :  { %16669 = vmatprep.subr.bf16.mxu0 %v17801_v28  ;;  %v23374_v21 = vpack.c.bf16 %v23372_v3, %v23373_v7  ;;  %v17827_v3 = vld [vmem:[%s22858_s3 + $0x5a0] sm:$0xff]  }
 0x501   :  { %v8354_v7 = vld [vmem:[#allocation2 + $0xba] sm:$0xff] }
 0x502   :  { %16646 = vmatmul.mubr.bf16.gmra.mrb[40].mxu0 %v23356_v29  ;;  %v20945_v29 = vld [vmem:[#allocation2 + $0xe0] sm:$0xff] }
 0x503   :  { %16649 = vmatprep.mubr.bf16.mxu0 %v23359_v33  ;;  %16670 = vmatpush3.bf16.msra.mxu0 %v17801_v28  ;;  %v17814_v28 = vld [vmem:[%s22858_s3 + $0x538] sm:$0xff]   ;;  %v7772_v19 = vpack.c.bf16 %v18755_v35, %v20945_v29  ;;  %v23380_v33 = vld [vmem:[#allocation128_spill] sm:$0xff] }
 0x504   :  { %16671 = vmatprep.subr.bf16.mxu0 %v17802_v11  ;;  %v8360_v35 = vld [vmem:[#allocation2 + $0xea] sm:$0xff] }
 0x507   :  { %16672 = vmatpush3.bf16.msra.mxu0 %v17802_v11  ;;  %v23378_v11 = vld [vmem:[#allocation129_spill] sm:$0xff] }
 0x508   :  { %16673 = vmatprep.subr.bf16.mxu0 %v17803_v22 }
 0x50a   :  { %16650 = vmatmul.mubr.bf16.gmra.mrb[44].mxu0 %v23362_v47  ;;  %v17816_v47 = vld [vmem:[%s22858_s3 + $0x548] sm:$0xff]  }
 0x50b   :  { %16653 = vmatprep.mubr.bf16.mxu0 %v23365_v36  ;;  %16674 = vmatpush3.bf16.msra.mxu0 %v17803_v22  ;;  %v23381_v22 = vld [vmem:[#allocation127_spill] sm:$0xff] }
 0x50c   :  { %16675 = vmatprep.subr.bf16.mxu0 %v17804_v17  ;;  %v20962_v36 = vld [vmem:[#allocation2 + $0xa0] sm:$0xff] }
 0x50d   :  { %v8069_v23 = vpack.c.bf16 %v20685_v39, %v20962_v36  ;;  %v17821_v39 = vld [vmem:[%s22858_s3 + $0x570] sm:$0xff]  }
 0x50f   :  { %16676 = vmatpush3.bf16.msra.mxu0 %v17804_v17  ;;  %v23382_v17 = vpack.c.bf16 %v23380_v33, %v23381_v22  ;;  %v17830_v33 = vld [vmem:[%s22858_s3 + $0x5b8] sm:$0xff]  }
 0x510   :  { %16677 = vmatprep.subr.bf16.mxu0 %v17805_v56 }
 0x512   :  { %16654 = vmatmul.mubr.bf16.gmra.mrb[48].mxu0 %v7468_v16  ;;  %v17819_v16 = vld [vmem:[%s22858_s3 + $0x560] sm:$0xff]  }
 0x513   :  { %16657 = vmatprep.mubr.bf16.mxu0 %v7469_v20  ;;  %16678 = vmatpush3.bf16.msra.mxu0 %v17805_v56  ;;  %v17818_v56 = vld [vmem:[%s22858_s3 + $0x558] sm:$0xff]   ;;  %v17823_v20 = vld [vmem:[%s22858_s3 + $0x580] sm:$0xff]  }
 0x514   :  { %16679 = vmatprep.subr.bf16.mxu0 %v17806_v49 }
 0x517   :  { %16680 = vmatpush3.bf16.msra.mxu0 %v17806_v49  ;;  %v20972_v49 = vld [vmem:[#allocation2 + $0xb0] sm:$0xff] }
 0x518   :  { %16705 = vmatprep.subr.bf16.mxu0 %v17807_v57  ;;  %v8070_v4 = vpack.c.bf16 %v20691_v61, %v20972_v49  ;;  %v17822_v61 = vld [vmem:[%s22858_s3 + $0x578] sm:$0xff]  }
 0x51a   :  { %16658 = vmatmul.mubr.bf16.gmra.mrb[52].mxu0 %v23368_v31  ;;  %v18758_v31 = vld [vmem:[#allocation2 + $0x110] sm:$0xff] }
 0x51b   :  { %16661 = vmatprep.mubr.bf16.mxu0 %v7471_v37  ;;  %v20991_v37 = vld [vmem:[#allocation2 + $0x118] sm:$0xff] }
 0x51c   :  { %v8076_v42 = vpack.c.bf16 %v20991_v37, %v18758_v31  ;;  %v8652_v31 = vld [vmem:[#allocation2 + $0x9c] sm:$0xff] }
 0x522   :  { %16662 = vmatmul.mubr.bf16.gmra.mrb[56].mxu0 %v7472_v2  ;;  %v8367_v2 = vpack.c.bf16 %v8344_v48, %v8343_v26  ;;  %v17833_v48 = vld [vmem:[%s22858_s3 + $0x5d0] sm:$0xff]  }
 0x523   :  { %16681 = vmatprep.mubr.bf16.mxu0 %v7763_v58  ;;  %v8347_v58 = vld [vmem:[#allocation2 + $0x82] sm:$0xff] }
 0x52a   :  { %16682 = vmatmul.mubr.bf16.vlgmr.msra.gmra.mrb[36].mxu0 %v7764_v13 }
 0x52b   :  { %16685 = vmatprep.mubr.bf16.mxu0 %v7765_v60  ;;  %16706 = vmatpush3.bf16.msra.mxu0 %v17807_v57  ;;  %v18757_v57 = vld [vmem:[#allocation2 + $0xf0] sm:$0xff] }
 0x52c   :  { %16707 = vmatprep.subr.bf16.mxu0 %v17808_v24  ;;  %v8074_v44 = vpack.c.bf16 %v20728_v18, %v18757_v57  ;;  %v17824_v18 = vld [vmem:[%s22858_s3 + $0x588] sm:$0xff]   ;;  %v8647_v57 = vld [vmem:[#allocation2 + $0x74] sm:$0xff] }
 0x52f   :  { %16708 = vmatpush3.bf16.msra.mxu0 %v17808_v24 }
 0x530   :  { %16709 = vmatprep.subr.bf16.mxu0 %v17809_v55 }
 0x532   :  { %16686 = vmatmul.mubr.bf16.gmra.mrb[40].mxu0 %v7766_v0 }
 0x533   :  { %16689 = vmatprep.mubr.bf16.mxu0 %v23371_v8  ;;  %16710 = vmatpush3.bf16.msra.mxu0 %v17809_v55  ;;  %v17825_v55 = vld [vmem:[%s22858_s3 + $0x590] sm:$0xff]  }
 0x534   :  { %16711 = vmatprep.subr.bf16.mxu0 %v17810_v14 }
 0x537   :  { %16712 = vmatpush3.bf16.msra.mxu0 %v17810_v14  ;;  %v8351_v14 = vld [vmem:[#allocation2 + $0xa2] sm:$0xff] }
 0x538   :  { %16713 = vmatprep.subr.bf16.mxu0 %v17811_v41 }
 0x53a   :  { %16690 = vmatmul.mubr.bf16.gmra.mrb[44].mxu0 %v23374_v21  ;;  %v8353_v21 = vld [vmem:[#allocation2 + $0xb2] sm:$0xff] }
 0x53b   :  { %16693 = vmatprep.mubr.bf16.mxu0 %v23377_v63  ;;  %16714 = vmatpush3.bf16.msra.mxu0 %v17811_v41  ;;  %v17826_v41 = vld [vmem:[%s22858_s3 + $0x598] sm:$0xff]   ;;  %v8372_v38 = vpack.c.bf16 %v8354_v7, %v8353_v21  ;;  %v23383_v63 = vld [vmem:[#allocation131_spill] sm:$0xff]  ;;  %v23389_v7 = vld [vmem:[#allocation136_spill] sm:$0xff] }
 0x53c   :  { %16715 = vmatprep.subr.bf16.mxu0 %v17812_v46  ;;  %v23390_v21 = vld [vmem:[#allocation135_spill] sm:$0xff] }
 0x53f   :  { %16716 = vmatpush3.bf16.msra.mxu0 %v17812_v46  ;;  %v8371_v46 = vpack.c.bf16 %v8352_v15, %v8351_v14  ;;  %v17850_v14 = vld [vmem:[%s22860_s5 + $0x20] ss:$16 sps:$4 sm:$0xff]   ;;  %v17855_v15 = vld [vmem:[%s22860_s5 + $0x44] ss:$16 sps:$4 sm:$0xff]  }
 0x540   :  { %16717 = vmatprep.subr.bf16.mxu0 %v17813_v9 }
 0x542   :  { %16694 = vmatmul.mubr.bf16.gmra.mrb[48].mxu0 %v23378_v11 }
 0x543   :  { %16697 = vmatprep.mubr.bf16.mxu0 %v23379_v43  ;;  %16718 = vmatpush3.bf16.msra.mxu0 %v17813_v9  ;;  %v23384_v9 = vld [vmem:[#allocation130_spill] sm:$0xff] }
 0x544   :  { %16719 = vmatprep.subr.bf16.mxu0 %v17814_v28 }
 0x547   :  { %16720 = vmatpush3.bf16.msra.mxu0 %v17814_v28  ;;  %v23385_v28 = vpack.c.bf16 %v23383_v63, %v23384_v9  ;;  %v8660_v63 = vld [vmem:[#allocation2 + $0xdc] sm:$0xff] }
 0x548   :  { %16745 = vmatprep.subr.bf16.mxu0 %v17815_v40  ;;  %v17856_v9 = vld [vmem:[%s22860_s5 + $0x60] ss:$16 sps:$4 sm:$0xff]  }
 0x54a   :  { %16698 = vmatmul.mubr.bf16.gmra.mrb[52].mxu0 %v7772_v19 }
 0x54b   :  { %16701 = vmatprep.mubr.bf16.mxu0 %v23382_v17  ;;  %v17831_v17 = vld [vmem:[%s22858_s3 + $0x5c0] sm:$0xff]  }
 0x552   :  { %16702 = vmatmul.mubr.bf16.gmra.mrb[56].mxu0 %v7774_v1 }
 0x553   :  { %16721 = vmatprep.mubr.bf16.mxu0 %v7764_v13  ;;  %v8345_v13 = vld [vmem:[#allocation2 + $0x72] sm:$0xff] }
 0x554   :  { %v8368_v24 = vpack.c.bf16 %v8346_v59, %v8345_v13  ;;  %v8651_v59 = vld [vmem:[#allocation2 + $0x94] sm:$0xff] }
 0x55a   :  { %16722 = vmatmul.mubr.bf16.vlgmr.msra.gmra.mrb[36].mxu0 %v7765_v60  ;;  %v8369_v60 = vpack.c.bf16 %v8348_v50, %v8347_v58  ;;  %v8672_v58 = vpack.c.bf16 %v8652_v31, %v8651_v59  ;;  %v17834_v50 = vld [vmem:[%s22858_s3 + $0x5d8] sm:$0xff]   ;;  %v8951_v31 = vld [vmem:[#allocation2 + $0x86] sm:$0xff] }
 0x55b   :  { %16725 = vmatprep.mubr.bf16.mxu0 %v7766_v0  ;;  %16746 = vmatpush3.bf16.msra.mxu0 %v17815_v40  ;;  %v8350_v0 = vld [vmem:[#allocation2 + $0x9a] sm:$0xff]  ;;  %v8359_v40 = vld [vmem:[#allocation2 + $0xe2] sm:$0xff] }
 0x55c   :  { %16747 = vmatprep.subr.bf16.mxu0 %v17816_v47  ;;  %v8370_v8 = vpack.c.bf16 %v8350_v0, %v8349_v6  ;;  %v8375_v22 = vpack.c.bf16 %v8360_v35, %v8359_v40  ;;  %v8656_v0 = vld [vmem:[#allocation2 + $0xbc] sm:$0xff]  ;;  %v8655_v6 = vld [vmem:[#allocation2 + $0xb4] sm:$0xff]  ;;  %v8676_v40 = vpack.c.bf16 %v8660_v63, %v20827_v5  ;;  %v23395_v63 = vld [vmem:[#allocation140_spill] sm:$0xff] }
 0x55d   :  { %v17838_v35 = vld [vmem:[%s22858_s3 + $0x5f8] sm:$0xff]   ;;  %v17839_v5 = vld [vmem:[%s22858_s3 + $0x600] sm:$0xff]  }
 0x55e   :  { %v8949_v59 = vld [vmem:[#allocation2 + $0x76] sm:$0xff] }
 0x55f   :  { %16748 = vmatpush3.bf16.msra.mxu0 %v17816_v47  ;;  %v23387_v47 = vld [vmem:[#allocation133_spill] sm:$0xff] }
 0x560   :  { %16749 = vmatprep.subr.bf16.mxu0 %v17817_v32 }
 0x562   :  { %16726 = vmatmul.mubr.bf16.gmra.mrb[40].mxu0 %v8068_v52  ;;  %v8365_v52 = vld [vmem:[#allocation2 + $0x112] sm:$0xff] }
 0x563   :  { %16729 = vmatprep.mubr.bf16.mxu0 %v8069_v23  ;;  %16750 = vmatpush3.bf16.msra.mxu0 %v17817_v32  ;;  %v8645_v23 = vld [vmem:[#allocation2 + $0x64] sm:$0xff] }
 0x564   :  { %16751 = vmatprep.subr.bf16.mxu0 %v17818_v56 }
 0x567   :  { %16752 = vmatpush3.bf16.msra.mxu0 %v17818_v56  ;;  %v8366_v56 = vld [vmem:[#allocation2 + $0x11a] sm:$0xff] }
 0x568   :  { %16753 = vmatprep.subr.bf16.mxu0 %v17819_v16 }
 0x56a   :  { %16730 = vmatmul.mubr.bf16.gmra.mrb[44].mxu0 %v8070_v4  ;;  %v8378_v4 = vpack.c.bf16 %v8366_v56, %v8365_v52  ;;  %v23393_v52 = vld [vmem:[#allocation137_spill] sm:$0xff] }
 0x56b   :  { %16733 = vmatprep.mubr.bf16.mxu0 %v23378_v11  ;;  %16754 = vmatpush3.bf16.msra.mxu0 %v17819_v16  ;;  %v17829_v11 = vld [vmem:[%s22858_s3 + $0x5b0] sm:$0xff]  }
 0x56c   :  { %16755 = vmatprep.subr.bf16.mxu0 %v17820_v45  ;;  %v8646_v16 = vld [vmem:[#allocation2 + $0x6c] sm:$0xff] }
 0x56f   :  { %16756 = vmatpush3.bf16.msra.mxu0 %v17820_v45  ;;  %v8669_v45 = vpack.c.bf16 %v8646_v16, %v8645_v23  ;;  %v17870_v23 = vld [vmem:[%s22860_s5 + $0xe4] ss:$16 sps:$4 sm:$0xff]  }
 0x570   :  { %16757 = vmatprep.subr.bf16.mxu0 %v17821_v39  ;;  %v8667_v16 = vld [vmem:[#allocation2 + $0x114] sm:$0xff] }
 0x572   :  { %16734 = vmatmul.mubr.bf16.gmra.mrb[48].mxu0 %v23379_v43  ;;  %v8358_v43 = vld [vmem:[#allocation2 + $0xda] sm:$0xff] }
 0x573   :  { %16737 = vmatprep.mubr.bf16.mxu0 %v7772_v19  ;;  %16758 = vmatpush3.bf16.msra.mxu0 %v17821_v39  ;;  %v8374_v19 = vpack.c.bf16 %v8358_v43, %v20771_v25  ;;  %v23386_v25 = vld [vmem:[#allocation134_spill] sm:$0xff]  ;;  %v17861_v43 = vld [vmem:[%s22860_s5 + $0x84] ss:$16 sps:$4 sm:$0xff]  }
 0x574   :  { %16759 = vmatprep.subr.bf16.mxu0 %v17822_v61  ;;  %v23388_v32 = vpack.c.bf16 %v23386_v25, %v23387_v47  ;;  %v8648_v39 = vld [vmem:[#allocation2 + $0x7c] sm:$0xff] }
 0x575   :  { %v17865_v47 = vld [vmem:[%s22860_s5 + $0xc0] ss:$16 sps:$4 sm:$0xff]  }
 0x577   :  { %16760 = vmatpush3.bf16.msra.mxu0 %v17822_v61  ;;  %v8649_v61 = vld [vmem:[#allocation2 + $0x84] sm:$0xff] }
 0x578   :  { %16785 = vmatprep.subr.bf16.mxu0 %v17823_v20 }
 0x57a   :  { %16738 = vmatmul.mubr.bf16.gmra.mrb[52].mxu0 %v8074_v44  ;;  %v8670_v44 = vpack.c.bf16 %v8648_v39, %v8647_v57  ;;  %v8948_v39 = vld [vmem:[#allocation2 + $0x6e] sm:$0xff] }
 0x57b   :  { %16741 = vmatprep.mubr.bf16.mxu0 %v7774_v1  ;;  %v8377_v1 = vpack.c.bf16 %v8364_v30, %v20785_v12  ;;  %v17832_v12 = vld [vmem:[%s22858_s3 + $0x5c8] sm:$0xff]  }
 0x57c   :  { %v8666_v30 = vld [vmem:[#allocation2 + $0x10c] sm:$0xff] }
 0x57d   :  { %v8679_v25 = vpack.c.bf16 %v8666_v30, %v20841_v27  ;;  %v17868_v27 = vld [vmem:[%s22860_s5 + $0xe0] ss:$16 sps:$4 sm:$0xff]  }
 0x57e   :  { %v23398_v30 = vld [vmem:[#allocation142_spill] sm:$0xff] }
 0x582   :  { %16742 = vmatmul.mubr.bf16.gmra.mrb[56].mxu0 %v8076_v42  ;;  %v8653_v42 = vld [vmem:[#allocation2 + $0xa4] sm:$0xff] }
 0x583   :  { %16761 = vmatprep.mubr.bf16.mxu0 %v8367_v2  ;;  %v8654_v2 = vld [vmem:[#allocation2 + $0xac] sm:$0xff] }
 0x584   :  { %v8673_v13 = vpack.c.bf16 %v8654_v2, %v8653_v42  ;;  %v8952_v42 = vld [vmem:[#allocation2 + $0x8e] sm:$0xff] }
 0x585   :  { %v17879_v2 = vld [vmem:[%s22860_s5 + $0x144] ss:$16 sps:$4 sm:$0xff]  }
 0x58a   :  { %16762 = vmatmul.mubr.bf16.vlgmr.msra.gmra.mrb[36].mxu0 %v8368_v24  ;;  %v17847_v24 = vld [vmem:[%s22860_s5] ss:$16 sps:$4 sm:$0xff]  }
 0x58b   :  { %16765 = vmatprep.mubr.bf16.mxu0 %v8369_v60  ;;  %16786 = vmatpush3.bf16.msra.mxu0 %v17823_v20  ;;  %v8650_v20 = vld [vmem:[#allocation2 + $0x8c] sm:$0xff]  ;;  %v17852_v60 = vld [vmem:[%s22860_s5 + $0x24] ss:$16 sps:$4 sm:$0xff]  }
 0x58c   :  { %16787 = vmatprep.subr.bf16.mxu0 %v17824_v18  ;;  %v8671_v26 = vpack.c.bf16 %v8650_v20, %v8649_v61  ;;  %v17873_v61 = vld [vmem:[%s22860_s5 + $0x104] ss:$16 sps:$4 sm:$0xff]  }
 0x58f   :  { %16788 = vmatpush3.bf16.msra.mxu0 %v17824_v18  ;;  %v17849_v18 = vld [vmem:[%s22860_s5 + $0x4] ss:$16 sps:$4 sm:$0xff]  }
 0x590   :  { %16789 = vmatprep.subr.bf16.mxu0 %v17825_v55  ;;  %12780 = vmatprep.subr.bf16.mxu1 %v17849_v18  ;;  %v17882_v18 = vld [vmem:[%s22860_s5 + $0x164] ss:$16 sps:$4 sm:$0xff]  }
 0x591   :  { %12781 = vmatpush1.bf16.msra.mxu1 %v17847_v24  ;;  %v17877_v24 = vld [vmem:[%s22860_s5 + $0x140] ss:$16 sps:$4 sm:$0xff]  }
 0x592   :  { %16766 = vmatmul.mubr.bf16.gmra.mrb[40].mxu0 %v8370_v8  ;;  %12782 = vmatprep.subr.bf16.mxu1 %v17852_v60  ;;  %v8674_v8 = vpack.c.bf16 %v8656_v0, %v8655_v6  ;;  %v17841_v60 = vld [vmem:[%s22858_s3 + $0x610] sm:$0xff]  }
 0x593   :  { %16769 = vmatprep.mubr.bf16.mxu0 %v8371_v46  ;;  %16790 = vmatpush3.bf16.msra.mxu0 %v17825_v55  ;;  %v17835_v55 = vld [vmem:[%s22858_s3 + $0x5e0] sm:$0xff]   ;;  %v8953_v6 = vld [vmem:[#allocation2 + $0x96] sm:$0xff] }
 0x594   :  { %16791 = vmatprep.subr.bf16.mxu0 %v17826_v41  ;;  %v17853_v46 = vld [vmem:[%s22860_s5 + $0x40] ss:$16 sps:$4 sm:$0xff]  }
 0x595   :  { %12783 = vmatpush1.bf16.msra.mxu1 %v17850_v14  ;;  %v17880_v0 = vld [vmem:[%s22860_s5 + $0x160] ss:$16 sps:$4 sm:$0xff]   ;;  %v8955_v14 = vld [vmem:[#allocation2 + $0xa6] sm:$0xff] }
 0x596   :  { %12784 = vmatprep.subr.bf16.mxu1 %v17855_v15  ;;  %v8956_v15 = vld [vmem:[#allocation2 + $0xae] sm:$0xff] }
 0x597   :  { %16792 = vmatpush3.bf16.msra.mxu0 %v17826_v41  ;;  %v17836_v41 = vld [vmem:[%s22858_s3 + $0x5e8] sm:$0xff]  }
 0x598   :  { %16793 = vmatprep.subr.bf16.mxu0 %v17827_v3 }
 0x599   :  { %12785 = vmatpush1.bf16.msra.mxu1 %v17853_v46  ;;  %v8975_v46 = vpack.c.bf16 %v8956_v15, %v8955_v14  ;;  %v17894_v14 = vld [vmem:[%s22860_s5 + $0x1e4] ss:$16 sps:$4 sm:$0xff]   ;;  %v17892_v15 = vld [vmem:[%s22860_s5 + $0x1e0] ss:$16 sps:$4 sm:$0xff]  }
 0x59a   :  { %16770 = vmatmul.mubr.bf16.gmra.mrb[44].mxu0 %v8372_v38  ;;  %v23391_v38 = vpack.c.bf16 %v23389_v7, %v23390_v21  ;;  %v8958_v7 = vld [vmem:[#allocation2 + $0xbe] sm:$0xff]  ;;  %v8957_v21 = vld [vmem:[#allocation2 + $0xb6] sm:$0xff] }
 0x59b   :  { %16773 = vmatprep.mubr.bf16.mxu0 %v23385_v28  ;;  %16794 = vmatpush3.bf16.msra.mxu0 %v17827_v3  ;;  %v17858_v3 = vld [vmem:[%s22860_s5 + $0x64] ss:$16 sps:$4 sm:$0xff]  }
 0x59c   :  { %16795 = vmatprep.subr.bf16.mxu0 %v17828_v62  ;;  %v8661_v28 = vld [vmem:[#allocation2 + $0xe4] sm:$0xff]  ;;  %12786 = vmatprep.subr.bf16.mxu1 %v17858_v3 }
 0x59d   :  { %12787 = vmatpush1.bf16.msra.mxu1 %v17856_v9  ;;  %v17843_v3 = vld [vmem:[%s22858_s3 + $0x620] sm:$0xff]  }
 0x59e   :  { %12788 = vmatprep.subr.bf16.mxu1 %v17861_v43  ;;  %v23396_v9 = vld [vmem:[#allocation139_spill] sm:$0xff] }
 0x59f   :  { %16796 = vmatpush3.bf16.msra.mxu0 %v17828_v62  ;;  %v17837_v62 = vld [vmem:[%s22858_s3 + $0x5f0] sm:$0xff]   ;;  %v8962_v43 = vld [vmem:[#allocation2 + $0xde] sm:$0xff] }
 0x5a0   :  { %16797 = vmatprep.subr.bf16.mxu0 %v17829_v11 }
 0x5a2   :  { %16774 = vmatmul.mubr.bf16.gmra.mrb[48].mxu0 %v8374_v19 }
 0x5a3   :  { %16777 = vmatprep.mubr.bf16.mxu0 %v8375_v22  ;;  %16798 = vmatpush3.bf16.msra.mxu0 %v17829_v11  ;;  %v8662_v11 = vld [vmem:[#allocation2 + $0xec] sm:$0xff]  ;;  %v17864_v22 = vld [vmem:[%s22860_s5 + $0xa4] ss:$16 sps:$4 sm:$0xff]  }
 0x5a4   :  { %16799 = vmatprep.subr.bf16.mxu0 %v17830_v33  ;;  %v8677_v19 = vpack.c.bf16 %v8662_v11, %v8661_v28  ;;  %v23397_v28 = vpack.c.bf16 %v23395_v63, %v23396_v9  ;;  %v17845_v11 = vld [vmem:[%s22858_s3 + $0x630] sm:$0xff]  }
 0x5a7   :  { %16800 = vmatpush3.bf16.msra.mxu0 %v17830_v33  ;;  %v17859_v33 = vld [vmem:[%s22860_s5 + $0x80] ss:$16 sps:$4 sm:$0xff]  }
 0x5a8   :  { %16825 = vmatprep.subr.bf16.mxu0 %v17831_v17  ;;  %12789 = vmatpush1.bf16.msra.mxu1 %v17859_v33  ;;  %v17846_v33 = vld [vmem:[%s22858_s3 + $0x638] sm:$0xff]  }
 0x5a9   :  { %12790 = vmatprep.subr.bf16.mxu1 %v17864_v22 }
 0x5aa   :  { %16778 = vmatmul.mubr.bf16.gmra.mrb[52].mxu0 %v23388_v32  ;;  %v23392_v32 = vld [vmem:[#allocation138_spill] sm:$0xff] }
 0x5ab   :  { %16781 = vmatprep.mubr.bf16.mxu0 %v8377_v1  ;;  %v17867_v1 = vld [vmem:[%s22860_s5 + $0xc4] ss:$16 sps:$4 sm:$0xff]   ;;  %v23394_v56 = vpack.c.bf16 %v23392_v32, %v23393_v52  ;;  %v9249_v32 = vld [vmem:[#allocation2 + $0x68] sm:$0xff] }
 0x5b2   :  { %16782 = vmatmul.mubr.bf16.gmra.mrb[56].mxu0 %v8378_v4  ;;  %v8668_v4 = vld [vmem:[#allocation2 + $0x11c] sm:$0xff] }
 0x5b3   :  { %16801 = vmatprep.mubr.bf16.mxu0 %v8669_v45  ;;  %v8947_v45 = vld [vmem:[#allocation2 + $0x66] sm:$0xff]  ;;  %v8680_v20 = vpack.c.bf16 %v8668_v4, %v8667_v16  ;;  %v9251_v16 = vld [vmem:[#allocation2 + $0x78] sm:$0xff] }
 0x5b4   :  { %v8971_v57 = vpack.c.bf16 %v8948_v39, %v8947_v45  ;;  %v9274_v4 = vpack.c.bf16 %v20912_v53, %v9251_v16  ;;  %v9255_v45 = vld [vmem:[#allocation2 + $0x98] sm:$0xff] }
 0x5b5   :  { %v9276_v39 = vpack.c.bf16 %v20962_v36, %v9255_v45  ;;  %v9263_v53 = vld [vmem:[#allocation2 + $0xd8] sm:$0xff]  ;;  %v9268_v36 = vld [vmem:[#allocation2 + $0x100] sm:$0xff] }
 0x5ba   :  { %16802 = vmatmul.mubr.bf16.vlgmr.msra.gmra.mrb[36].mxu0 %v8670_v44  ;;  %v17871_v44 = vld [vmem:[%s22860_s5 + $0x100] ss:$16 sps:$4 sm:$0xff]  }
 0x5bb   :  { %16805 = vmatprep.mubr.bf16.mxu0 %v8671_v26  ;;  %16826 = vmatpush3.bf16.msra.mxu0 %v17831_v17  ;;  %v17862_v17 = vld [vmem:[%s22860_s5 + $0xa0] ss:$16 sps:$4 sm:$0xff]  }
 0x5bc   :  { %16827 = vmatprep.subr.bf16.mxu0 %v17832_v12  ;;  %12791 = vmatpush1.bf16.msra.mxu1 %v17862_v17  ;;  %v8950_v26 = vld [vmem:[#allocation2 + $0x7e] sm:$0xff] }
 0x5bd   :  { %12792 = vmatprep.subr.bf16.mxu1 %v17867_v1  ;;  %v23399_v1 = vld [vmem:[#allocation141_spill] sm:$0xff] }
 0x5bf   :  { %16828 = vmatpush3.bf16.msra.mxu0 %v17832_v12  ;;  %v17876_v12 = vld [vmem:[%s22860_s5 + $0x124] ss:$16 sps:$4 sm:$0xff]  }
 0x5c0   :  { %16829 = vmatprep.subr.bf16.mxu0 %v17833_v48  ;;  %12793 = vmatpush1.bf16.msra.mxu1 %v17865_v47  ;;  %v8970_v47 = vld [vmem:[#allocation2 + $0x11e] sm:$0xff] }
 0x5c1   :  { %12794 = vmatprep.subr.bf16.mxu1 %v17870_v23  ;;  %v9253_v23 = vld [vmem:[#allocation2 + $0x88] sm:$0xff] }
 0x5c2   :  { %16806 = vmatmul.mubr.bf16.gmra.mrb[40].mxu0 %v8672_v58  ;;  %v8972_v58 = vpack.c.bf16 %v8950_v26, %v8949_v59  ;;  %v23404_v59 = vld [vmem:[#allocation146_spill] sm:$0xff] }
 0x5c3   :  { %16809 = vmatprep.mubr.bf16.mxu0 %v8673_v13  ;;  %16830 = vmatpush3.bf16.msra.mxu0 %v17833_v48  ;;  %v17874_v48 = vld [vmem:[%s22860_s5 + $0x120] ss:$16 sps:$4 sm:$0xff]   ;;  %v8973_v13 = vpack.c.bf16 %v8952_v42, %v8951_v31 }
 0x5c4   :  { %16831 = vmatprep.subr.bf16.mxu0 %v17834_v50  ;;  %12795 = vmatpush1.bf16.msra.mxu1 %v17868_v27  ;;  %v9275_v27 = vpack.c.bf16 %v20958_v34, %v9253_v23  ;;  %v9280_v34 = vpack.c.bf16 %v20945_v29, %v9263_v53  ;;  %v23402_v31 = vld [vmem:[#allocation143_spill] sm:$0xff] }
 0x5c5   :  { %12796 = vmatprep.subr.bf16.mxu1 %v17873_v61  ;;  %v17883_v29 = vld [vmem:[%s22860_s5 + $0x180] ss:$16 sps:$4 sm:$0xff]  }
 0x5c7   :  { %16832 = vmatpush3.bf16.msra.mxu0 %v17834_v50  ;;  %v17840_v50 = vld [vmem:[%s22858_s3 + $0x608] sm:$0xff]  }
 0x5c8   :  { %16833 = vmatprep.subr.bf16.mxu0 %v17835_v55  ;;  %12797 = vmatpush1.bf16.msra.mxu1 %v17871_v44 }
 0x5c9   :  { %12798 = vmatprep.subr.bf16.mxu1 %v17876_v12  ;;  %v9262_v12 = vld [vmem:[#allocation2 + $0xd0] sm:$0xff] }
 0x5ca   :  { %16810 = vmatmul.mubr.bf16.gmra.mrb[44].mxu0 %v8674_v8 }
 0x5cb   :  { %16813 = vmatprep.mubr.bf16.mxu0 %v23391_v38  ;;  %16834 = vmatpush3.bf16.msra.mxu0 %v17835_v55  ;;  %v8954_v55 = vld [vmem:[#allocation2 + $0x9e] sm:$0xff]  ;;  %v8976_v38 = vpack.c.bf16 %v8958_v7, %v8957_v21 }
 0x5cc   :  { %16835 = vmatprep.subr.bf16.mxu0 %v17836_v41  ;;  %12799 = vmatpush1.bf16.msra.mxu1 %v17874_v48  ;;  %v8974_v8 = vpack.c.bf16 %v8954_v55, %v8953_v6  ;;  %v23401_v48 = vld [vmem:[#allocation145_spill] sm:$0xff] }
 0x5cd   :  { %12800 = vmatprep.subr.bf16.mxu1 %v17879_v2  ;;  %v23403_v42 = vpack.c.bf16 %v23401_v48, %v23402_v31  ;;  %v17886_v55 = vld [vmem:[%s22860_s5 + $0x1a0] ss:$16 sps:$4 sm:$0xff]   ;;  %v17897_v6 = vld [vmem:[%s22860_s5 + $0x204] ss:$16 sps:$4 sm:$0xff]  }
 0x5ce   :  { %v17909_v48 = vld [vmem:[%s22860_s5 + $0x284] ss:$16 sps:$4 sm:$0xff]  }
 0x5cf   :  { %16836 = vmatpush3.bf16.msra.mxu0 %v17836_v41  ;;  %v17842_v41 = vld [vmem:[%s22858_s3 + $0x618] sm:$0xff]  }
 0x5d0   :  { %16837 = vmatprep.subr.bf16.mxu0 %v17837_v62  ;;  %12801 = vmatpush1.bf16.msra.mxu1 %v17877_v24 }
 0x5d1   :  { %12802 = vmatprep.subr.bf16.mxu1 %v17882_v18  ;;  %v17885_v18 = vld [vmem:[%s22860_s5 + $0x184] ss:$16 sps:$4 sm:$0xff]  }
 0x5d2   :  { %16814 = vmatmul.mubr.bf16.gmra.mrb[48].mxu0 %v8676_v40  ;;  %v8963_v40 = vld [vmem:[#allocation2 + $0xe6] sm:$0xff] }
 0x5d3   :  { %16817 = vmatprep.mubr.bf16.mxu0 %v8677_v19  ;;  %16838 = vmatpush3.bf16.msra.mxu0 %v17837_v62  ;;  %v17844_v62 = vld [vmem:[%s22858_s3 + $0x628] sm:$0xff]   ;;  %v8978_v19 = vpack.c.bf16 %v8962_v43, %v20883_v10  ;;  %v8969_v10 = vld [vmem:[#allocation2 + $0x116] sm:$0xff] }
 0x5d4   :  { %16839 = vmatprep.subr.bf16.mxu0 %v17838_v35  ;;  %12803 = vmatpush1.bf16.msra.mxu1 %v17880_v0  ;;  %v8982_v52 = vpack.c.bf16 %v8970_v47, %v8969_v10  ;;  %v17891_v0 = vld [vmem:[%s22860_s5 + $0x1c4] ss:$16 sps:$4 sm:$0xff]   ;;  %v17895_v10 = vld [vmem:[%s22860_s5 + $0x200] ss:$16 sps:$4 sm:$0xff]  }
 0x5d5   :  { %12804 = vmatprep.subr.bf16.mxu1 %v17885_v18 }
 0x5d7   :  { %16840 = vmatpush3.bf16.msra.mxu0 %v17838_v35  ;;  %v8964_v35 = vld [vmem:[#allocation2 + $0xee] sm:$0xff] }
 0x5d8   :  { %16865 = vmatprep.subr.bf16.mxu0 %v17839_v5  ;;  %v8979_v22 = vpack.c.bf16 %v8964_v35, %v8963_v40  ;;  %12805 = vmatpush1.bf16.msra.mxu1 %v17883_v29 }
 0x5da   :  { %16818 = vmatmul.mubr.bf16.gmra.mrb[52].mxu0 %v23394_v56  ;;  %v9273_v56 = vpack.c.bf16 %v20902_v54, %v9249_v32  ;;  %v9261_v54 = vld [vmem:[#allocation2 + $0xc8] sm:$0xff] }
 0x5db   :  { %16821 = vmatprep.mubr.bf16.mxu0 %v8679_v25  ;;  %v23400_v25 = vpack.c.bf16 %v23398_v30, %v23399_v1  ;;  %v9279_v26 = vpack.c.bf16 %v9262_v12, %v9261_v54  ;;  %v17906_v12 = vld [vmem:[%s22860_s5 + $0x264] ss:$16 sps:$4 sm:$0xff]  }
 0x5e2   :  { %16822 = vmatmul.mubr.bf16.gmra.mrb[56].mxu0 %v8680_v20  ;;  %v9260_v20 = vld [vmem:[#allocation2 + $0xc0] sm:$0xff] }
 0x5e3   :  { %16841 = vmatprep.mubr.bf16.mxu0 %v8971_v57  ;;  %v9259_v57 = vld [vmem:[#allocation2 + $0xb8] sm:$0xff] }
 0x5e4   :  { %v9278_v44 = vpack.c.bf16 %v9260_v20, %v9259_v57  ;;  %v17901_v57 = vld [vmem:[%s22860_s5 + $0x240] ss:$16 sps:$4 sm:$0xff]  }
 0x5ea   :  { %16842 = vmatmul.mubr.bf16.vlgmr.msra.gmra.mrb[36].mxu0 %v8972_v58  ;;  %v23405_v58 = vld [vmem:[#allocation144_spill] sm:$0xff] }
 0x5eb   :  { %16845 = vmatprep.mubr.bf16.mxu0 %v8973_v13  ;;  %16866 = vmatpush3.bf16.msra.mxu0 %v17839_v5  ;;  %v8968_v5 = vld [vmem:[#allocation2 + $0x10e] sm:$0xff]  ;;  %v18759_v13 = vld [vmem:[#allocation2 + $0x120] sm:$0xff] }
 0x5ec   :  { %16867 = vmatprep.subr.bf16.mxu0 %v17840_v50  ;;  %v8981_v17 = vpack.c.bf16 %v8968_v5, %v20897_v51  ;;  %v9257_v51 = vld [vmem:[#allocation2 + $0xa8] sm:$0xff]  ;;  %v9284_v24 = vpack.c.bf16 %v18759_v13, %v20991_v37  ;;  %v17889_v37 = vld [vmem:[%s22860_s5 + $0x1c0] ss:$16 sps:$4 sm:$0xff]   ;;  %v17915_v13 = vld [vmem:[%s22860_s5 + $0x2c4] ss:$16 sps:$4 sm:$0xff]  }
 0x5ed   :  { %v9277_v61 = vpack.c.bf16 %v20972_v49, %v9257_v51  ;;  %v9267_v49 = vld [vmem:[#allocation2 + $0xf8] sm:$0xff]  ;;  %v17898_v51 = vld [vmem:[%s22860_s5 + $0x220] ss:$16 sps:$4 sm:$0xff]  }
 0x5ee   :  { %v9282_v2 = vpack.c.bf16 %v9268_v36, %v9267_v49  ;;  %v17907_v36 = vld [vmem:[%s22860_s5 + $0x280] ss:$16 sps:$4 sm:$0xff]  }
 0x5ef   :  { %16868 = vmatpush3.bf16.msra.mxu0 %v17840_v50  ;;  %v23406_v50 = vpack.c.bf16 %v23404_v59, %v23405_v58  ;;  %v17912_v59 = vld [vmem:[%s22860_s5 + $0x2a4] ss:$16 sps:$4 sm:$0xff]  }
 0x5f0   :  { %16869 = vmatprep.subr.bf16.mxu0 %v17841_v60 }
 0x5f2   :  { %16846 = vmatmul.mubr.bf16.gmra.mrb[40].mxu0 %v8974_v8 }
 0x5f3   :  { %16849 = vmatprep.mubr.bf16.mxu0 %v8975_v46  ;;  %16870 = vmatpush3.bf16.msra.mxu0 %v17841_v60  ;;  %v17888_v60 = vld [vmem:[%s22860_s5 + $0x1a4] ss:$16 sps:$4 sm:$0xff]  }
 0x5f4   :  { %16871 = vmatprep.subr.bf16.mxu0 %v17842_v41  ;;  %12806 = vmatprep.subr.bf16.mxu1 %v17888_v60  ;;  %v17913_v60 = vld [vmem:[%s22860_s5 + $0x2c0] ss:$16 sps:$4 sm:$0xff]  }
 0x5f5   :  { %12807 = vmatpush1.bf16.msra.mxu1 %v17886_v55 }
 0x5f6   :  { %12808 = vmatprep.subr.bf16.mxu1 %v17891_v0 }
 0x5f7   :  { %16872 = vmatpush3.bf16.msra.mxu0 %v17842_v41 }
 0x5f8   :  { %16873 = vmatprep.subr.bf16.mxu0 %v17843_v3 }
 0x5f9   :  { %12809 = vmatpush1.bf16.msra.mxu1 %v17889_v37  ;;  %v17918_v37 = vld [vmem:[%s22860_s5 + $0x2e4] ss:$16 sps:$4 sm:$0xff]  }
 0x5fa   :  { %16850 = vmatmul.mubr.bf16.gmra.mrb[44].mxu0 %v8976_v38  ;;  %12810 = vmatprep.subr.bf16.mxu1 %v17894_v14 }
 0x5fb   :  { %16853 = vmatprep.mubr.bf16.mxu0 %v23397_v28  ;;  %16874 = vmatpush3.bf16.msra.mxu0 %v17843_v3  ;;  %v21202_v28 = vld [vmem:[%s22859_s4] ss:$0 sm:$0xff] }
 0x5fc   :  { %16875 = vmatprep.subr.bf16.mxu0 %v17844_v62 }
 0x5fd   :  { %12811 = vmatpush1.bf16.msra.mxu1 %v17892_v15  ;;  %v17916_v15 = vld [vmem:[%s22860_s5 + $0x2e0] ss:$16 sps:$4 sm:$0xff]  }
 0x5fe   :  { %12821 = vmatprep.subr.bf16.mxu1 %v17897_v6  ;;  %v17921_v6 = vld [vmem:[%s22860_s5 + $0x304] ss:$16 sps:$4 sm:$0xff]  }
 0x5ff   :  { %16876 = vmatpush3.bf16.msra.mxu0 %v17844_v62 }
 0x600   :  { %16877 = vmatprep.subr.bf16.mxu0 %v17845_v11 }
 0x602   :  { %16854 = vmatmul.mubr.bf16.gmra.mrb[48].mxu0 %v8978_v19 }
 0x603   :  { %16857 = vmatprep.mubr.bf16.mxu0 %v8979_v22  ;;  %16878 = vmatpush3.bf16.msra.mxu0 %v17845_v11 }
 0x604   :  { %16879 = vmatprep.subr.bf16.mxu0 %v17846_v33 }
 0x607   :  { %16880 = vmatpush3.bf16.msra.mxu0 %v17846_v33 }
 0x60a   :  { %16858 = vmatmul.mubr.bf16.gmra.mrb[52].mxu0 %v23400_v25 }
 0x60b   :  { %16861 = vmatprep.mubr.bf16.mxu0 %v8981_v17 }
 0x612   :  { %16862 = vmatmul.mubr.bf16.gmra.mrb[56].mxu0 %v8982_v52  ;;  %v17900_v52 = vld [vmem:[%s22860_s5 + $0x224] ss:$16 sps:$4 sm:$0xff]  }
 0x613   :  { %16881 = vmatprep.mubr.bf16.mxu0 %v9273_v56 }
 0x61a   :  { %16882 = vmatmul.mubr.bf16.vlgmr.msra.gmra.mrb[36].mxu0 %v9274_v4 }
 0x61b   :  { %16885 = vmatprep.mubr.bf16.mxu0 %v9275_v27 }
 0x622   :  { %16886 = vmatmul.mubr.bf16.gmra.mrb[40].mxu0 %v9276_v39  ;;  %v17903_v39 = vld [vmem:[%s22860_s5 + $0x244] ss:$16 sps:$4 sm:$0xff]  }
 0x623   :  { %16889 = vmatprep.mubr.bf16.mxu0 %v9277_v61 }
 0x62a   :  { %16890 = vmatmul.mubr.bf16.gmra.mrb[44].mxu0 %v9278_v44 }
 0x62b   :  { %16893 = vmatprep.mubr.bf16.mxu0 %v9279_v26 }
 0x632   :  { %16894 = vmatmul.mubr.bf16.gmra.mrb[48].mxu0 %v9280_v34  ;;  %v17904_v34 = vld [vmem:[%s22860_s5 + $0x260] ss:$16 sps:$4 sm:$0xff]  }
 0x633   :  { %16897 = vmatprep.mubr.bf16.mxu0 %v23403_v42 }
 0x63a   :  { %16898 = vmatmul.mubr.bf16.gmra.mrb[52].mxu0 %v9282_v2 }
 0x63b   :  { %16901 = vmatprep.mubr.bf16.mxu0 %v23406_v50  ;;  %v17910_v50 = vld [vmem:[%s22860_s5 + $0x2a0] ss:$16 sps:$4 sm:$0xff]  }
 0x642   :  { %16902 = vmatmul.mubr.bf16.gmra.mrb[56].mxu0 %v9284_v24 }
 0x6ed   :  { %v16883_v8 = vpop.f32.mrb[36].mxu0 }
 0x6ee   :  { %v9384_v41 = vpop.f32.mrb[37].mxu0  ;;  %v17919_v8 = vld [vmem:[%s22860_s5 + $0x300] ss:$16 sps:$4 sm:$0xff]  }
 0x6ef   :  { %v16884_v46 = vpop.f32.mrb[38].mxu0 }
 0x6f0   :  { %v9557_v3 = vmax.f32 %v9384_v41, %v16884_v46  ;;  %v9387_v7 = vpop.f32.mrb[39].mxu0  ;;  %v17924_v41 = vld [vmem:[%s22860_s5 + $0x324] ss:$16 sps:$4 sm:$0xff]   ;;  %v17922_v46 = vld [vmem:[%s22860_s5 + $0x320] ss:$16 sps:$4 sm:$0xff]  }
 0x6f2   :  { %9560 = vst [vmem:[#allocation4] sm:$0xff] %v9557_v3  ;;  %v17927_v3 = vld [vmem:[%s22860_s5 + $0x344] ss:$16 sps:$4 sm:$0xff]  }
 0x6f5   :  { %v16887_v21 = vpop.f32.mrb[40].mxu0 }
 0x6f6   :  { %v9400_v38 = vpop.f32.mrb[41].mxu0 }
 0x6f7   :  { %v9558_v62 = vmax.f32 %v9387_v7, %v9400_v38  ;;  %v16888_v63 = vpop.f32.mrb[42].mxu0  ;;  %v17925_v7 = vld [vmem:[%s22860_s5 + $0x340] ss:$16 sps:$4 sm:$0xff]  }
 0x6f8   :  { %v9403_v9 = vpop.f32.mrb[43].mxu0  ;;  %v17928_v38 = vld [vmem:[%s22860_s5 + $0x360] ss:$16 sps:$4 sm:$0xff]  }
 0x6f9   :  { %9561 = vst [vmem:[#allocation4 + $0x8] sm:$0xff] %v9558_v62  ;;  %v9610_v11 = vld [vmem:[#allocation4 + $0x4] sm:$0x3]  ;;  %v9611_v43 = vld [vmem:[#allocation4 + $0x6] sm:$0x3] }
 0x6fa   :  { %v9599_v40 = vld [vmem:[#allocation4] sm:$0x3]  ;;  %v9612_v35 = vmax.f32 %v9610_v11, %v9611_v43  ;;  %v9600_v19 = vld [vmem:[#allocation4 + $0x2] sm:$0x3]  ;;  %v17933_v62 = vld [vmem:[%s22860_s5 + $0x384] ss:$16 sps:$4 sm:$0xff]  }
 0x6fb   :  { %v9601_v33 = vmax.f32 %v9599_v40, %v9600_v19  ;;  %v17936_v9 = vld [vmem:[%s22860_s5 + $0x3a4] ss:$16 sps:$4 sm:$0xff]   ;;  %v17934_v11 = vld [vmem:[%s22860_s5 + $0x3a0] ss:$16 sps:$4 sm:$0xff]  }
 0x6fc   :  { %v9613_v22 = vadd.f32 %v21202_v28, %v9612_v35  ;;  %v17939_v43 = vld [vmem:[%s22860_s5 + $0x3c4] ss:$16 sps:$4 sm:$0xff]  }
 0x6fd   :  { %v16891_v5 = vpop.f32.mrb[44].mxu0  ;;  %v9609_v17 = vadd.f32 %v21202_v28, %v9601_v33 }
 0x6fe   :  { %v9570_v30 = vmax.f32 %v16888_v63, %v16891_v5  ;;  %v9416_v1 = vpop.f32.mrb[45].mxu0  ;;  %v21206_v25 = vpack.c.bf16 %v9613_v22, %v9613_v22  ;;  %v17931_v63 = vld [vmem:[%s22860_s5 + $0x380] ss:$16 sps:$4 sm:$0xff]   ;;  %v17942_v5 = vld [vmem:[%s22860_s5 + $0x3e4] ss:$16 sps:$4 sm:$0xff]  }
 0x6ff   :  { %v16892_v47 = vpop.f32.mrb[46].mxu0  ;;  %v21211_v32 = vpack.c.bf16 %v9609_v17, %v9609_v17  ;;  %v17937_v22 = vld [vmem:[%s22860_s5 + $0x3c0] ss:$16 sps:$4 sm:$0xff]  }
 0x700   :  { %9573 = vst [vmem:[#allocation4 + $0x20] sm:$0xff] %v9570_v30  ;;  %v9419_v56 = vpop.f32.mrb[47].mxu0  ;;  %12812 = vmatprep.mubr.bf16.mxu1 %v21206_v25  ;;  %v9618_v23 = vld [vmem:[#allocation4 + $0xc] sm:$0x3]  ;;  %v9619_v16 = vld [vmem:[#allocation4 + $0xe] sm:$0x3] }
 0x701   :  { %v9569_v4 = vmax.f32 %v16887_v21, %v9419_v56  ;;  %12813 = vmatmul.mubr.bf16.vlgmr.msra.gmra.mrb[108].mxu1 %v21211_v32  ;;  %v9620_v27 = vmax.f32 %v9618_v23, %v9619_v16  ;;  %v17930_v21 = vld [vmem:[%s22860_s5 + $0x364] ss:$16 sps:$4 sm:$0xff]   ;;  %v9614_v40 = vld [vmem:[#allocation4 + $0x8] sm:$0x3]  ;;  %v9615_v35 = vld [vmem:[#allocation4 + $0xa] sm:$0x3] }
 0x702   :  { %12822 = vmatpush1.bf16.msra.mxu1 %v17895_v10  ;;  %v9616_v17 = vmax.f32 %v9614_v40, %v9615_v35  ;;  %v17940_v1 = vld [vmem:[%s22860_s5 + $0x3e0] ss:$16 sps:$4 sm:$0xff]   ;;  %v17945_v47 = vld [vmem:[%s22860_s5 + $0x404] ss:$16 sps:$4 sm:$0xff]  }
 0x703   :  { %9572 = vst [vmem:[#allocation4 + $0x18] sm:$0xff] %v9569_v4  ;;  %12823 = vmatprep.subr.bf16.mxu1 %v17900_v52  ;;  %v9621_v45 = vadd.f32 %v21202_v28, %v9620_v27  ;;  %v17943_v56 = vld [vmem:[%s22860_s5 + $0x400] ss:$16 sps:$4 sm:$0xff]   ;;  %v17948_v16 = vld [vmem:[%s22860_s5 + $0x424] ss:$16 sps:$4 sm:$0xff]  }
 0x704   :  { %v9617_v10 = vadd.f32 %v21202_v28, %v9616_v17  ;;  %v17946_v27 = vld [vmem:[%s22860_s5 + $0x420] ss:$16 sps:$4 sm:$0xff]   ;;  %v18002_v35 = vld [vmem:[%s22860_s5 + $0x664] ss:$16 sps:$4 sm:$0xff]  }
 0x705   :  { %v16895_v61 = vpop.f32.mrb[48].mxu0  ;;  %v21225_v20 = vpack.c.bf16 %v9621_v45, %v9621_v45  ;;  %v17949_v45 = vld [vmem:[%s22860_s5 + $0x440] ss:$16 sps:$4 sm:$0xff]  }
 0x706   :  { %12824 = vmatpush1.bf16.msra.mxu1 %v17898_v51  ;;  %v9432_v54 = vpop.f32.mrb[49].mxu0  ;;  %v21317_v23 = vpack.c.bf16 %v9617_v10, %v9617_v10  ;;  %v17951_v51 = vld [vmem:[%s22860_s5 + $0x444] ss:$16 sps:$4 sm:$0xff]   ;;  %v17952_v61 = vld [vmem:[%s22860_s5 + $0x460] ss:$16 sps:$4 sm:$0xff]  }
 0x707   :  { %v16896_v44 = vpop.f32.mrb[50].mxu0  ;;  %12853 = vmatprep.mubr.bf16.mxu1 %v21225_v20  ;;  %12825 = vmatprep.subr.bf16.mxu1 %v17903_v39  ;;  %v17954_v39 = vld [vmem:[%s22860_s5 + $0x464] ss:$16 sps:$4 sm:$0xff]   ;;  %v17997_v40 = vld [vmem:[%s22860_s5 + $0x640] ss:$16 sps:$4 sm:$0xff]  }
 0x708   :  { %v9581_v26 = vmax.f32 %v9432_v54, %v16896_v44  ;;  %v9435_v53 = vpop.f32.mrb[51].mxu0  ;;  %v17957_v54 = vld [vmem:[%s22860_s5 + $0x484] ss:$16 sps:$4 sm:$0xff]   ;;  %v18006_v17 = vld [vmem:[%s22860_s5 + $0x6a0] ss:$16 sps:$4 sm:$0xff]  }
 0x709   :  { %v17960_v44 = vld [vmem:[%s22860_s5 + $0x4a4] ss:$16 sps:$4 sm:$0xff]  }
 0x70a   :  { %9584 = vst [vmem:[#allocation4 + $0x30] sm:$0xff] %v9581_v26  ;;  %12826 = vmatpush1.bf16.msra.mxu1 %v17901_v57  ;;  %v9626_v19 = vld [vmem:[#allocation4 + $0x1c] sm:$0x3]  ;;  %v9627_v33 = vld [vmem:[#allocation4 + $0x1e] sm:$0x3] }
 0x70b   :  { %12827 = vmatprep.subr.bf16.mxu1 %v17906_v12  ;;  %v9628_v30 = vmax.f32 %v9626_v19, %v9627_v33  ;;  %v17955_v57 = vld [vmem:[%s22860_s5 + $0x480] ss:$16 sps:$4 sm:$0xff]   ;;  %v17963_v26 = vld [vmem:[%s22860_s5 + $0x4c4] ss:$16 sps:$4 sm:$0xff]  }
 0x70c   :  { %v17958_v12 = vld [vmem:[%s22860_s5 + $0x4a0] ss:$16 sps:$4 sm:$0xff]   ;;  %v18005_v33 = vld [vmem:[%s22860_s5 + $0x684] ss:$16 sps:$4 sm:$0xff]  }
 0x70d   :  { %v16899_v31 = vpop.f32.mrb[52].mxu0  ;;  %v9629_v52 = vadd.f32 %v21202_v28, %v9628_v30  ;;  %v18000_v19 = vld [vmem:[%s22860_s5 + $0x660] ss:$16 sps:$4 sm:$0xff]   ;;  %v18011_v30 = vld [vmem:[%s22860_s5 + $0x6c4] ss:$16 sps:$4 sm:$0xff]  }
 0x70e   :  { %12828 = vmatpush1.bf16.msra.mxu1 %v17904_v34  ;;  %v9448_v42 = vpop.f32.mrb[53].mxu0  ;;  %v17966_v34 = vld [vmem:[%s22860_s5 + $0x4e4] ss:$16 sps:$4 sm:$0xff]  }
 0x70f   :  { %v9582_v49 = vmax.f32 %v9435_v53, %v9448_v42  ;;  %v16900_v2 = vpop.f32.mrb[54].mxu0  ;;  %12829 = vmatprep.subr.bf16.mxu1 %v17909_v48  ;;  %v21322_v4 = vpack.c.bf16 %v9629_v52, %v9629_v52  ;;  %v17961_v53 = vld [vmem:[%s22860_s5 + $0x4c0] ss:$16 sps:$4 sm:$0xff]   ;;  %v18014_v10 = vld [vmem:[%s22860_s5 + $0x6e4] ss:$16 sps:$4 sm:$0xff]  }
 0x710   :  { %v9451_v58 = vpop.f32.mrb[55].mxu0  ;;  %v17964_v48 = vld [vmem:[%s22860_s5 + $0x4e0] ss:$16 sps:$4 sm:$0xff]   ;;  %v18017_v52 = vld [vmem:[%s22860_s5 + $0x704] ss:$16 sps:$4 sm:$0xff]  }
 0x711   :  { %9585 = vst [vmem:[#allocation4 + $0x38] sm:$0xff] %v9582_v49  ;;  %v17967_v42 = vld [vmem:[%s22860_s5 + $0x500] ss:$16 sps:$4 sm:$0xff]   ;;  %v17978_v58 = vld [vmem:[%s22860_s5 + $0x564] ss:$16 sps:$4 sm:$0xff]  }
 0x712   :  { %12830 = vmatpush1.bf16.msra.mxu1 %v17907_v36  ;;  %v17972_v36 = vld [vmem:[%s22860_s5 + $0x524] ss:$16 sps:$4 sm:$0xff]   ;;  %v17970_v49 = vld [vmem:[%s22860_s5 + $0x520] ss:$16 sps:$4 sm:$0xff]  }
 0x713   :  { %12831 = vmatprep.subr.bf16.mxu1 %v17912_v59  ;;  %v17973_v59 = vld [vmem:[%s22860_s5 + $0x540] ss:$16 sps:$4 sm:$0xff]  }
 0x715   :  { %v16903_v24 = vpop.f32.mrb[56].mxu0 }
 0x716   :  { %v9594_v29 = vmax.f32 %v16900_v2, %v16903_v24  ;;  %12832 = vmatpush1.bf16.msra.mxu1 %v17910_v50  ;;  %v9464_v18 = vpop.f32.mrb[57].mxu0  ;;  %v17975_v2 = vld [vmem:[%s22860_s5 + $0x544] ss:$16 sps:$4 sm:$0xff]   ;;  %v17976_v50 = vld [vmem:[%s22860_s5 + $0x560] ss:$16 sps:$4 sm:$0xff]  }
 0x717   :  { %v16904_v55 = vpop.f32.mrb[58].mxu0  ;;  %12833 = vmatprep.subr.bf16.mxu1 %v17915_v13  ;;  %v17981_v13 = vld [vmem:[%s22860_s5 + $0x584] ss:$16 sps:$4 sm:$0xff]   ;;  %v17979_v24 = vld [vmem:[%s22860_s5 + $0x580] ss:$16 sps:$4 sm:$0xff]  }
 0x718   :  { %9597 = vst [vmem:[#allocation4 + $0x50] sm:$0xff] %v9594_v29  ;;  %v9467_v0 = vpop.f32.mrb[59].mxu0  ;;  %v17984_v29 = vld [vmem:[%s22860_s5 + $0x5a4] ss:$16 sps:$4 sm:$0xff]   ;;  %v17982_v18 = vld [vmem:[%s22860_s5 + $0x5a0] ss:$16 sps:$4 sm:$0xff]  }
 0x719   :  { %v9593_v14 = vmax.f32 %v16899_v31, %v9467_v0  ;;  %v17969_v31 = vld [vmem:[%s22860_s5 + $0x504] ss:$16 sps:$4 sm:$0xff]   ;;  %v9622_v55 = vld [vmem:[#allocation4 + $0x18] sm:$0x3]  ;;  %v9634_v0 = vld [vmem:[#allocation4 + $0x24] sm:$0x3] }
 0x71a   :  { %12834 = vmatpush1.bf16.msra.mxu1 %v17913_v60  ;;  %v17987_v60 = vld [vmem:[%s22860_s5 + $0x5c4] ss:$16 sps:$4 sm:$0xff]  }
 0x71b   :  { %9596 = vst [vmem:[#allocation4 + $0x48] sm:$0xff] %v9593_v14  ;;  %12835 = vmatprep.subr.bf16.mxu1 %v17918_v37  ;;  %v9623_v37 = vld [vmem:[#allocation4 + $0x1a] sm:$0x3]  ;;  %v9635_v14 = vld [vmem:[#allocation4 + $0x26] sm:$0x3] }
 0x71e   :  { %12836 = vmatpush1.bf16.msra.mxu1 %v17916_v15  ;;  %v17985_v15 = vld [vmem:[%s22860_s5 + $0x5c0] ss:$16 sps:$4 sm:$0xff]  }
 0x71f   :  { %12837 = vmatprep.subr.bf16.mxu1 %v17921_v6  ;;  %v17990_v6 = vld [vmem:[%s22860_s5 + $0x5e4] ss:$16 sps:$4 sm:$0xff]  }
 0x722   :  { %12838 = vmatpush1.bf16.msra.mxu1 %v17919_v8  ;;  %v9624_v8 = vmax.f32 %v9622_v55, %v9623_v37  ;;  %v18042_v55 = vld [vmem:[%s22860_s5 + $0x820] ss:$16 sps:$4 sm:$0xff]   ;;  %v18047_v37 = vld [vmem:[%s22860_s5 + $0x844] ss:$16 sps:$4 sm:$0xff]  }
 0x723   :  { %12839 = vmatprep.subr.bf16.mxu1 %v17924_v41  ;;  %v9636_v41 = vmax.f32 %v9634_v0, %v9635_v14  ;;  %v18045_v0 = vld [vmem:[%s22860_s5 + $0x840] ss:$16 sps:$4 sm:$0xff]   ;;  %v18050_v14 = vld [vmem:[%s22860_s5 + $0x864] ss:$16 sps:$4 sm:$0xff]  }
 0x726   :  { %12840 = vmatpush1.bf16.msra.mxu1 %v17922_v46  ;;  %v17988_v46 = vld [vmem:[%s22860_s5 + $0x5e0] ss:$16 sps:$4 sm:$0xff]  }
 0x727   :  { %12841 = vmatprep.subr.bf16.mxu1 %v17927_v3  ;;  %v9625_v3 = vadd.f32 %v21202_v28, %v9624_v8  ;;  %v18051_v8 = vld [vmem:[%s22860_s5 + $0x880] ss:$16 sps:$4 sm:$0xff]  }
 0x72a   :  { %12842 = vmatpush1.bf16.msra.mxu1 %v17925_v7  ;;  %v17993_v7 = vld [vmem:[%s22860_s5 + $0x604] ss:$16 sps:$4 sm:$0xff]  }
 0x72b   :  { %12843 = vmatprep.subr.bf16.mxu1 %v17930_v21  ;;  %v9637_v21 = vadd.f32 %v21202_v28, %v9636_v41  ;;  %v18056_v41 = vld [vmem:[%s22860_s5 + $0x8a4] ss:$16 sps:$4 sm:$0xff]  }
 0x72e   :  { %12844 = vmatpush1.bf16.msra.mxu1 %v17928_v38  ;;  %v17991_v38 = vld [vmem:[%s22860_s5 + $0x600] ss:$16 sps:$4 sm:$0xff]  }
 0x72f   :  { %12845 = vmatprep.subr.bf16.mxu1 %v17933_v62  ;;  %v21421_v62 = vpack.c.bf16 %v9625_v3, %v9625_v3  ;;  %v18059_v3 = vld [vmem:[%s22860_s5 + $0x8c4] ss:$16 sps:$4 sm:$0xff]  }
 0x732   :  { %12846 = vmatpush1.bf16.msra.mxu1 %v17931_v63  ;;  %v17996_v63 = vld [vmem:[%s22860_s5 + $0x624] ss:$16 sps:$4 sm:$0xff]  }
 0x733   :  { %12847 = vmatprep.subr.bf16.mxu1 %v17936_v9  ;;  %v21426_v9 = vpack.c.bf16 %v9637_v21, %v9637_v21  ;;  %v18062_v21 = vld [vmem:[%s22860_s5 + $0x8e4] ss:$16 sps:$4 sm:$0xff]  }
 0x736   :  { %12848 = vmatpush1.bf16.msra.mxu1 %v17934_v11  ;;  %v17994_v11 = vld [vmem:[%s22860_s5 + $0x620] ss:$16 sps:$4 sm:$0xff]  }
 0x737   :  { %12849 = vmatprep.subr.bf16.mxu1 %v17939_v43  ;;  %v17999_v43 = vld [vmem:[%s22860_s5 + $0x644] ss:$16 sps:$4 sm:$0xff]  }
 0x73a   :  { %12850 = vmatpush1.bf16.msra.mxu1 %v17937_v22  ;;  %v18003_v22 = vld [vmem:[%s22860_s5 + $0x680] ss:$16 sps:$4 sm:$0xff]  }
 0x73b   :  { %12851 = vmatprep.subr.bf16.mxu1 %v17942_v5  ;;  %v18008_v5 = vld [vmem:[%s22860_s5 + $0x6a4] ss:$16 sps:$4 sm:$0xff]  }
 0x73e   :  { %12852 = vmatpush1.bf16.msra.mxu1 %v17940_v1  ;;  %v18009_v1 = vld [vmem:[%s22860_s5 + $0x6c0] ss:$16 sps:$4 sm:$0xff]  }
 0x73f   :  { %12862 = vmatprep.subr.bf16.mxu1 %v17945_v47  ;;  %v18012_v47 = vld [vmem:[%s22860_s5 + $0x6e0] ss:$16 sps:$4 sm:$0xff]  }
 0x741   :  { %12854 = vmatmul.mubr.bf16.vlgmr.msra.gmra.mrb[108].mxu1 %v21317_v23 }
 0x742   :  { %12863 = vmatpush1.bf16.msra.mxu1 %v17943_v56  ;;  %12894 = vmatprep.mubr.bf16.mxu1 %v21322_v4  ;;  %v18015_v56 = vld [vmem:[%s22860_s5 + $0x700] ss:$16 sps:$4 sm:$0xff]  }
 0x743   :  { %12864 = vmatprep.subr.bf16.mxu1 %v17948_v16  ;;  %v18020_v16 = vld [vmem:[%s22860_s5 + $0x724] ss:$16 sps:$4 sm:$0xff]  }
 0x746   :  { %12865 = vmatpush1.bf16.msra.mxu1 %v17946_v27  ;;  %v18018_v27 = vld [vmem:[%s22860_s5 + $0x720] ss:$16 sps:$4 sm:$0xff]  }
 0x747   :  { %12866 = vmatprep.subr.bf16.mxu1 %v17951_v51  ;;  %v18023_v51 = vld [vmem:[%s22860_s5 + $0x744] ss:$16 sps:$4 sm:$0xff]  }
 0x74a   :  { %12867 = vmatpush1.bf16.msra.mxu1 %v17949_v45  ;;  %v18021_v45 = vld [vmem:[%s22860_s5 + $0x740] ss:$16 sps:$4 sm:$0xff]  }
 0x74b   :  { %12868 = vmatprep.subr.bf16.mxu1 %v17954_v39  ;;  %v18026_v39 = vld [vmem:[%s22860_s5 + $0x764] ss:$16 sps:$4 sm:$0xff]  }
 0x74e   :  { %12869 = vmatpush1.bf16.msra.mxu1 %v17952_v61  ;;  %v18024_v61 = vld [vmem:[%s22860_s5 + $0x760] ss:$16 sps:$4 sm:$0xff]  }
 0x74f   :  { %12870 = vmatprep.subr.bf16.mxu1 %v17957_v54  ;;  %v18029_v54 = vld [vmem:[%s22860_s5 + $0x784] ss:$16 sps:$4 sm:$0xff]  }
 0x752   :  { %12871 = vmatpush1.bf16.msra.mxu1 %v17955_v57  ;;  %v18027_v57 = vld [vmem:[%s22860_s5 + $0x780] ss:$16 sps:$4 sm:$0xff]  }
 0x753   :  { %12872 = vmatprep.subr.bf16.mxu1 %v17960_v44  ;;  %v18032_v44 = vld [vmem:[%s22860_s5 + $0x7a4] ss:$16 sps:$4 sm:$0xff]  }
 0x756   :  { %12873 = vmatpush1.bf16.msra.mxu1 %v17958_v12  ;;  %v18030_v12 = vld [vmem:[%s22860_s5 + $0x7a0] ss:$16 sps:$4 sm:$0xff]  }
 0x757   :  { %12874 = vmatprep.subr.bf16.mxu1 %v17963_v26  ;;  %v18035_v26 = vld [vmem:[%s22860_s5 + $0x7c4] ss:$16 sps:$4 sm:$0xff]  }
 0x75a   :  { %12875 = vmatpush1.bf16.msra.mxu1 %v17961_v53  ;;  %v9630_v53 = vld [vmem:[#allocation4 + $0x20] sm:$0x3] }
 0x75b   :  { %12876 = vmatprep.subr.bf16.mxu1 %v17966_v34  ;;  %v9631_v34 = vld [vmem:[#allocation4 + $0x22] sm:$0x3] }
 0x75e   :  { %12877 = vmatpush1.bf16.msra.mxu1 %v17964_v48  ;;  %v9642_v48 = vld [vmem:[#allocation4 + $0x34] sm:$0x3] }
 0x75f   :  { %12878 = vmatprep.subr.bf16.mxu1 %v17969_v31  ;;  %v9643_v31 = vld [vmem:[#allocation4 + $0x36] sm:$0x3] }
 0x762   :  { %12879 = vmatpush1.bf16.msra.mxu1 %v17967_v42  ;;  %v18033_v42 = vld [vmem:[%s22860_s5 + $0x7c0] ss:$16 sps:$4 sm:$0xff]  }
 0x763   :  { %12880 = vmatprep.subr.bf16.mxu1 %v17972_v36  ;;  %v18038_v36 = vld [vmem:[%s22860_s5 + $0x7e4] ss:$16 sps:$4 sm:$0xff]  }
 0x766   :  { %12881 = vmatpush1.bf16.msra.mxu1 %v17970_v49  ;;  %v9632_v49 = vmax.f32 %v9630_v53, %v9631_v34  ;;  %v18092_v53 = vld [vmem:[%s22860_s5 + $0xa24] ss:$16 sps:$4 sm:$0xff]  }
 0x767   :  { %12882 = vmatprep.subr.bf16.mxu1 %v17975_v2  ;;  %v9644_v2 = vmax.f32 %v9642_v48, %v9643_v31  ;;  %v18090_v48 = vld [vmem:[%s22860_s5 + $0xa20] ss:$16 sps:$4 sm:$0xff]   ;;  %v18095_v31 = vld [vmem:[%s22860_s5 + $0xa44] ss:$16 sps:$4 sm:$0xff]  }
 0x76a   :  { %12883 = vmatpush1.bf16.msra.mxu1 %v17973_v59  ;;  %v18036_v59 = vld [vmem:[%s22860_s5 + $0x7e0] ss:$16 sps:$4 sm:$0xff]  }
 0x76b   :  { %12884 = vmatprep.subr.bf16.mxu1 %v17978_v58  ;;  %v9633_v58 = vadd.f32 %v21202_v28, %v9632_v49  ;;  %v18096_v49 = vld [vmem:[%s22860_s5 + $0xa60] ss:$16 sps:$4 sm:$0xff]  }
 0x76e   :  { %12885 = vmatpush1.bf16.msra.mxu1 %v17976_v50  ;;  %v18041_v50 = vld [vmem:[%s22860_s5 + $0x804] ss:$16 sps:$4 sm:$0xff]  }
 0x76f   :  { %12886 = vmatprep.subr.bf16.mxu1 %v17981_v13  ;;  %v9645_v13 = vadd.f32 %v21202_v28, %v9644_v2  ;;  %v18101_v2 = vld [vmem:[%s22860_s5 + $0xa84] ss:$16 sps:$4 sm:$0xff]  }
 0x772   :  { %12887 = vmatpush1.bf16.msra.mxu1 %v17979_v24  ;;  %v18039_v24 = vld [vmem:[%s22860_s5 + $0x800] ss:$16 sps:$4 sm:$0xff]  }
 0x773   :  { %12888 = vmatprep.subr.bf16.mxu1 %v17984_v29  ;;  %v21525_v29 = vpack.c.bf16 %v9633_v58, %v9633_v58  ;;  %v18104_v58 = vld [vmem:[%s22860_s5 + $0xaa4] ss:$16 sps:$4 sm:$0xff]  }
 0x776   :  { %12889 = vmatpush1.bf16.msra.mxu1 %v17982_v18  ;;  %v18044_v18 = vld [vmem:[%s22860_s5 + $0x824] ss:$16 sps:$4 sm:$0xff]  }
 0x777   :  { %12890 = vmatprep.subr.bf16.mxu1 %v17987_v60  ;;  %v21530_v60 = vpack.c.bf16 %v9645_v13, %v9645_v13  ;;  %v18107_v13 = vld [vmem:[%s22860_s5 + $0xac4] ss:$16 sps:$4 sm:$0xff]  }
 0x77a   :  { %12891 = vmatpush1.bf16.msra.mxu1 %v17985_v15  ;;  %v18048_v15 = vld [vmem:[%s22860_s5 + $0x860] ss:$16 sps:$4 sm:$0xff]  }
 0x77b   :  { %12892 = vmatprep.subr.bf16.mxu1 %v17990_v6  ;;  %v18053_v6 = vld [vmem:[%s22860_s5 + $0x884] ss:$16 sps:$4 sm:$0xff]  }
 0x77e   :  { %12893 = vmatpush1.bf16.msra.mxu1 %v17988_v46  ;;  %v18054_v46 = vld [vmem:[%s22860_s5 + $0x8a0] ss:$16 sps:$4 sm:$0xff]  }
 0x77f   :  { %12903 = vmatprep.subr.bf16.mxu1 %v17993_v7  ;;  %v18057_v7 = vld [vmem:[%s22860_s5 + $0x8c0] ss:$16 sps:$4 sm:$0xff]  }
 0x781   :  { %12895 = vmatmul.mubr.bf16.vlgmr.msra.gmra.mrb[108].mxu1 %v21421_v62 }
 0x782   :  { %12904 = vmatpush1.bf16.msra.mxu1 %v17991_v38  ;;  %12935 = vmatprep.mubr.bf16.mxu1 %v21426_v9  ;;  %v18060_v38 = vld [vmem:[%s22860_s5 + $0x8e0] ss:$16 sps:$4 sm:$0xff]  }
 0x783   :  { %12905 = vmatprep.subr.bf16.mxu1 %v17996_v63  ;;  %v18065_v63 = vld [vmem:[%s22860_s5 + $0x904] ss:$16 sps:$4 sm:$0xff]  }
 0x786   :  { %12906 = vmatpush1.bf16.msra.mxu1 %v17994_v11  ;;  %v18063_v11 = vld [vmem:[%s22860_s5 + $0x900] ss:$16 sps:$4 sm:$0xff]  }
 0x787   :  { %12907 = vmatprep.subr.bf16.mxu1 %v17999_v43  ;;  %v18068_v43 = vld [vmem:[%s22860_s5 + $0x924] ss:$16 sps:$4 sm:$0xff]  }
 0x78a   :  { %12908 = vmatpush1.bf16.msra.mxu1 %v17997_v40  ;;  %v18066_v40 = vld [vmem:[%s22860_s5 + $0x920] ss:$16 sps:$4 sm:$0xff]  }
 0x78b   :  { %12909 = vmatprep.subr.bf16.mxu1 %v18002_v35  ;;  %v18071_v35 = vld [vmem:[%s22860_s5 + $0x944] ss:$16 sps:$4 sm:$0xff]  }
 0x78e   :  { %12910 = vmatpush1.bf16.msra.mxu1 %v18000_v19  ;;  %v18069_v19 = vld [vmem:[%s22860_s5 + $0x940] ss:$16 sps:$4 sm:$0xff]  }
 0x78f   :  { %12911 = vmatprep.subr.bf16.mxu1 %v18005_v33  ;;  %v18074_v33 = vld [vmem:[%s22860_s5 + $0x964] ss:$16 sps:$4 sm:$0xff]  }
 0x792   :  { %12912 = vmatpush1.bf16.msra.mxu1 %v18003_v22  ;;  %v18072_v22 = vld [vmem:[%s22860_s5 + $0x960] ss:$16 sps:$4 sm:$0xff]  }
 0x793   :  { %12913 = vmatprep.subr.bf16.mxu1 %v18008_v5  ;;  %v18077_v5 = vld [vmem:[%s22860_s5 + $0x984] ss:$16 sps:$4 sm:$0xff]  }
 0x796   :  { %12914 = vmatpush1.bf16.msra.mxu1 %v18006_v17  ;;  %v18075_v17 = vld [vmem:[%s22860_s5 + $0x980] ss:$16 sps:$4 sm:$0xff]  }
 0x797   :  { %12915 = vmatprep.subr.bf16.mxu1 %v18011_v30  ;;  %v18080_v30 = vld [vmem:[%s22860_s5 + $0x9a4] ss:$16 sps:$4 sm:$0xff]  }
 0x79a   :  { %12916 = vmatpush1.bf16.msra.mxu1 %v18009_v1  ;;  %v18078_v1 = vld [vmem:[%s22860_s5 + $0x9a0] ss:$16 sps:$4 sm:$0xff]  }
 0x79b   :  { %12917 = vmatprep.subr.bf16.mxu1 %v18014_v10  ;;  %v18083_v10 = vld [vmem:[%s22860_s5 + $0x9c4] ss:$16 sps:$4 sm:$0xff]  }
 0x79e   :  { %12918 = vmatpush1.bf16.msra.mxu1 %v18012_v47  ;;  %v9638_v47 = vld [vmem:[#allocation4 + $0x30] sm:$0x3] }
 0x79f   :  { %12919 = vmatprep.subr.bf16.mxu1 %v18017_v52  ;;  %v9639_v52 = vld [vmem:[#allocation4 + $0x32] sm:$0x3] }
 0x7a2   :  { %12920 = vmatpush1.bf16.msra.mxu1 %v18015_v56  ;;  %v9650_v56 = vld [vmem:[#allocation4 + $0x3c] sm:$0x3] }
 0x7a3   :  { %12921 = vmatprep.subr.bf16.mxu1 %v18020_v16  ;;  %v9651_v16 = vld [vmem:[#allocation4 + $0x3e] sm:$0x3] }
 0x7a6   :  { %12922 = vmatpush1.bf16.msra.mxu1 %v18018_v27  ;;  %v18081_v27 = vld [vmem:[%s22860_s5 + $0x9c0] ss:$16 sps:$4 sm:$0xff]  }
 0x7a7   :  { %12923 = vmatprep.subr.bf16.mxu1 %v18023_v51  ;;  %v18086_v51 = vld [vmem:[%s22860_s5 + $0x9e4] ss:$16 sps:$4 sm:$0xff]  }
 0x7aa   :  { %12924 = vmatpush1.bf16.msra.mxu1 %v18021_v45  ;;  %v9640_v45 = vmax.f32 %v9638_v47, %v9639_v52  ;;  %v18135_v47 = vld [vmem:[%s22860_s5 + $0xc00] ss:$16 sps:$4 sm:$0xff]  }
 0x7ab   :  { %12925 = vmatprep.subr.bf16.mxu1 %v18026_v39  ;;  %v9652_v39 = vmax.f32 %v9650_v56, %v9651_v16  ;;  %v18140_v56 = vld [vmem:[%s22860_s5 + $0xc24] ss:$16 sps:$4 sm:$0xff]  }
 0x7ae   :  { %12926 = vmatpush1.bf16.msra.mxu1 %v18024_v61  ;;  %v18084_v61 = vld [vmem:[%s22860_s5 + $0x9e0] ss:$16 sps:$4 sm:$0xff]  }
 0x7af   :  { %12927 = vmatprep.subr.bf16.mxu1 %v18029_v54  ;;  %v9641_v54 = vadd.f32 %v21202_v28, %v9640_v45  ;;  %v18141_v45 = vld [vmem:[%s22860_s5 + $0xc40] ss:$16 sps:$4 sm:$0xff]  }
 0x7b2   :  { %12928 = vmatpush1.bf16.msra.mxu1 %v18027_v57  ;;  %v18089_v57 = vld [vmem:[%s22860_s5 + $0xa04] ss:$16 sps:$4 sm:$0xff]  }
 0x7b3   :  { %12929 = vmatprep.subr.bf16.mxu1 %v18032_v44  ;;  %v9653_v44 = vadd.f32 %v21202_v28, %v9652_v39  ;;  %v18146_v39 = vld [vmem:[%s22860_s5 + $0xc64] ss:$16 sps:$4 sm:$0xff]  }
 0x7b5   :  { %v21634_v34 = vpack.c.bf16 %v9653_v44, %v9653_v44  ;;  %v18152_v44 = vld [vmem:[%s22860_s5 + $0xca4] ss:$16 sps:$4 sm:$0xff]  }
 0x7b6   :  { %12930 = vmatpush1.bf16.msra.mxu1 %v18030_v12  ;;  %v18087_v12 = vld [vmem:[%s22860_s5 + $0xa00] ss:$16 sps:$4 sm:$0xff]  }
 0x7b7   :  { %12931 = vmatprep.subr.bf16.mxu1 %v18035_v26  ;;  %v21629_v26 = vpack.c.bf16 %v9641_v54, %v9641_v54  ;;  %v18149_v54 = vld [vmem:[%s22860_s5 + $0xc84] ss:$16 sps:$4 sm:$0xff]  }
 0x7ba   :  { %12932 = vmatpush1.bf16.msra.mxu1 %v18033_v42  ;;  %v18093_v42 = vld [vmem:[%s22860_s5 + $0xa40] ss:$16 sps:$4 sm:$0xff]  }
 0x7bb   :  { %12933 = vmatprep.subr.bf16.mxu1 %v18038_v36  ;;  %v18098_v36 = vld [vmem:[%s22860_s5 + $0xa64] ss:$16 sps:$4 sm:$0xff]  }
 0x7be   :  { %12934 = vmatpush1.bf16.msra.mxu1 %v18036_v59  ;;  %v18099_v59 = vld [vmem:[%s22860_s5 + $0xa80] ss:$16 sps:$4 sm:$0xff]  }
 0x7bf   :  { %12944 = vmatprep.subr.bf16.mxu1 %v18041_v50  ;;  %v18102_v50 = vld [vmem:[%s22860_s5 + $0xaa0] ss:$16 sps:$4 sm:$0xff]  }
 0x7c1   :  { %12936 = vmatmul.mubr.bf16.vlgmr.msra.gmra.mrb[108].mxu1 %v21525_v29 }
 0x7c2   :  { %12945 = vmatpush1.bf16.msra.mxu1 %v18039_v24  ;;  %12976 = vmatprep.mubr.bf16.mxu1 %v21530_v60  ;;  %v18105_v24 = vld [vmem:[%s22860_s5 + $0xac0] ss:$16 sps:$4 sm:$0xff]  }
 0x7c3   :  { %12946 = vmatprep.subr.bf16.mxu1 %v18044_v18  ;;  %v18110_v18 = vld [vmem:[%s22860_s5 + $0xae4] ss:$16 sps:$4 sm:$0xff]  }
 0x7c6   :  { %12947 = vmatpush1.bf16.msra.mxu1 %v18042_v55  ;;  %v18108_v55 = vld [vmem:[%s22860_s5 + $0xae0] ss:$16 sps:$4 sm:$0xff]  }
 0x7c7   :  { %12948 = vmatprep.subr.bf16.mxu1 %v18047_v37  ;;  %v18113_v37 = vld [vmem:[%s22860_s5 + $0xb04] ss:$16 sps:$4 sm:$0xff]  }
 0x7ca   :  { %12949 = vmatpush1.bf16.msra.mxu1 %v18045_v0  ;;  %v18111_v0 = vld [vmem:[%s22860_s5 + $0xb00] ss:$16 sps:$4 sm:$0xff]  }
 0x7cb   :  { %12950 = vmatprep.subr.bf16.mxu1 %v18050_v14  ;;  %v18116_v14 = vld [vmem:[%s22860_s5 + $0xb24] ss:$16 sps:$4 sm:$0xff]  }
 0x7ce   :  { %12951 = vmatpush1.bf16.msra.mxu1 %v18048_v15  ;;  %v18114_v15 = vld [vmem:[%s22860_s5 + $0xb20] ss:$16 sps:$4 sm:$0xff]  }
 0x7cf   :  { %12952 = vmatprep.subr.bf16.mxu1 %v18053_v6  ;;  %v18119_v6 = vld [vmem:[%s22860_s5 + $0xb44] ss:$16 sps:$4 sm:$0xff]  }
 0x7d2   :  { %12953 = vmatpush1.bf16.msra.mxu1 %v18051_v8  ;;  %v18117_v8 = vld [vmem:[%s22860_s5 + $0xb40] ss:$16 sps:$4 sm:$0xff]  }
 0x7d3   :  { %12954 = vmatprep.subr.bf16.mxu1 %v18056_v41  ;;  %v18122_v41 = vld [vmem:[%s22860_s5 + $0xb64] ss:$16 sps:$4 sm:$0xff]  }
 0x7d6   :  { %12955 = vmatpush1.bf16.msra.mxu1 %v18054_v46  ;;  %v18120_v46 = vld [vmem:[%s22860_s5 + $0xb60] ss:$16 sps:$4 sm:$0xff]  }
 0x7d7   :  { %12956 = vmatprep.subr.bf16.mxu1 %v18059_v3  ;;  %v18125_v3 = vld [vmem:[%s22860_s5 + $0xb84] ss:$16 sps:$4 sm:$0xff]  }
 0x7da   :  { %12957 = vmatpush1.bf16.msra.mxu1 %v18057_v7  ;;  %v18123_v7 = vld [vmem:[%s22860_s5 + $0xb80] ss:$16 sps:$4 sm:$0xff]  }
 0x7db   :  { %12958 = vmatprep.subr.bf16.mxu1 %v18062_v21  ;;  %v18128_v21 = vld [vmem:[%s22860_s5 + $0xba4] ss:$16 sps:$4 sm:$0xff]  }
 0x7de   :  { %12959 = vmatpush1.bf16.msra.mxu1 %v18060_v38  ;;  %v18126_v38 = vld [vmem:[%s22860_s5 + $0xba0] ss:$16 sps:$4 sm:$0xff]  }
 0x7df   :  { %12960 = vmatprep.subr.bf16.mxu1 %v18065_v63  ;;  %v18131_v63 = vld [vmem:[%s22860_s5 + $0xbc4] ss:$16 sps:$4 sm:$0xff]  }
 0x7e2   :  { %12961 = vmatpush1.bf16.msra.mxu1 %v18063_v11  ;;  %v9646_v11 = vld [vmem:[#allocation4 + $0x38] sm:$0x3] }
 0x7e3   :  { %12962 = vmatprep.subr.bf16.mxu1 %v18068_v43  ;;  %v9647_v43 = vld [vmem:[#allocation4 + $0x3a] sm:$0x3] }
 0x7e6   :  { %12963 = vmatpush1.bf16.msra.mxu1 %v18066_v40  ;;  %v9658_v40 = vld [vmem:[#allocation4 + $0x4c] sm:$0x3] }
 0x7e7   :  { %12964 = vmatprep.subr.bf16.mxu1 %v18071_v35  ;;  %v9659_v35 = vld [vmem:[#allocation4 + $0x4e] sm:$0x3] }
 0x7ea   :  { %12965 = vmatpush1.bf16.msra.mxu1 %v18069_v19  ;;  %v18129_v19 = vld [vmem:[%s22860_s5 + $0xbc0] ss:$16 sps:$4 sm:$0xff]  }
 0x7eb   :  { %12966 = vmatprep.subr.bf16.mxu1 %v18074_v33  ;;  %v18134_v33 = vld [vmem:[%s22860_s5 + $0xbe4] ss:$16 sps:$4 sm:$0xff]  }
 0x7ee   :  { %12967 = vmatpush1.bf16.msra.mxu1 %v18072_v22  ;;  %v9648_v22 = vmax.f32 %v9646_v11, %v9647_v43  ;;  %v18185_v11 = vld [vmem:[%s22860_s5 + $0xe04] ss:$16 sps:$4 sm:$0xff]  }
 0x7ef   :  { %12968 = vmatprep.subr.bf16.mxu1 %v18077_v5  ;;  %v9660_v5 = vmax.f32 %v9658_v40, %v9659_v35  ;;  %v18183_v40 = vld [vmem:[%s22860_s5 + $0xe00] ss:$16 sps:$4 sm:$0xff]  }
 0x7f2   :  { %12969 = vmatpush1.bf16.msra.mxu1 %v18075_v17  ;;  %v18132_v17 = vld [vmem:[%s22860_s5 + $0xbe0] ss:$16 sps:$4 sm:$0xff]  }
 0x7f3   :  { %12970 = vmatprep.subr.bf16.mxu1 %v18080_v30  ;;  %v9649_v30 = vadd.f32 %v21202_v28, %v9648_v22  ;;  %v18191_v22 = vld [vmem:[%s22860_s5 + $0xe44] ss:$16 sps:$4 sm:$0xff]  }
 0x7f5   :  { %v21733_v52 = vpack.c.bf16 %v9649_v30, %v9649_v30  ;;  %v18192_v30 = vld [vmem:[%s22860_s5 + $0xe60] ss:$16 sps:$4 sm:$0xff]  }
 0x7f6   :  { %12971 = vmatpush1.bf16.msra.mxu1 %v18078_v1  ;;  %v18137_v1 = vld [vmem:[%s22860_s5 + $0xc04] ss:$16 sps:$4 sm:$0xff]  }
 0x7f7   :  { %12972 = vmatprep.subr.bf16.mxu1 %v18083_v10  ;;  %v9661_v10 = vadd.f32 %v21202_v28, %v9660_v5  ;;  %v18189_v5 = vld [vmem:[%s22860_s5 + $0xe40] ss:$16 sps:$4 sm:$0xff]  }
 0x7f9   :  { %v21738_v16 = vpack.c.bf16 %v9661_v10, %v9661_v10  ;;  %v18195_v10 = vld [vmem:[%s22860_s5 + $0xe80] ss:$16 sps:$4 sm:$0xff]  }
 0x7fa   :  { %12973 = vmatpush1.bf16.msra.mxu1 %v18081_v27  ;;  %v18138_v27 = vld [vmem:[%s22860_s5 + $0xc20] ss:$16 sps:$4 sm:$0xff]  }
 0x7fb   :  { %12974 = vmatprep.subr.bf16.mxu1 %v18086_v51  ;;  %v18143_v51 = vld [vmem:[%s22860_s5 + $0xc44] ss:$16 sps:$4 sm:$0xff]  }
 0x7fe   :  { %12975 = vmatpush1.bf16.msra.mxu1 %v18084_v61  ;;  %v18144_v61 = vld [vmem:[%s22860_s5 + $0xc60] ss:$16 sps:$4 sm:$0xff]  }
 0x7ff   :  { %12985 = vmatprep.subr.bf16.mxu1 %v18089_v57  ;;  %v18147_v57 = vld [vmem:[%s22860_s5 + $0xc80] ss:$16 sps:$4 sm:$0xff]  }
 0x801   :  { %12977 = vmatmul.mubr.bf16.vlgmr.msra.gmra.mrb[108].mxu1 %v21629_v26 }
 0x802   :  { %12986 = vmatpush1.bf16.msra.mxu1 %v18087_v12  ;;  %13017 = vmatprep.mubr.bf16.mxu1 %v21634_v34  ;;  %v18150_v12 = vld [vmem:[%s22860_s5 + $0xca0] ss:$16 sps:$4 sm:$0xff]  }
 0x803   :  { %12987 = vmatprep.subr.bf16.mxu1 %v18092_v53  ;;  %v18155_v53 = vld [vmem:[%s22860_s5 + $0xcc4] ss:$16 sps:$4 sm:$0xff]  }
 0x806   :  { %12988 = vmatpush1.bf16.msra.mxu1 %v18090_v48  ;;  %v18153_v48 = vld [vmem:[%s22860_s5 + $0xcc0] ss:$16 sps:$4 sm:$0xff]  }
 0x807   :  { %12989 = vmatprep.subr.bf16.mxu1 %v18095_v31  ;;  %v18158_v31 = vld [vmem:[%s22860_s5 + $0xce4] ss:$16 sps:$4 sm:$0xff]  }
 0x80a   :  { %12990 = vmatpush1.bf16.msra.mxu1 %v18093_v42  ;;  %v18156_v42 = vld [vmem:[%s22860_s5 + $0xce0] ss:$16 sps:$4 sm:$0xff]  }
 0x80b   :  { %12991 = vmatprep.subr.bf16.mxu1 %v18098_v36  ;;  %v18161_v36 = vld [vmem:[%s22860_s5 + $0xd04] ss:$16 sps:$4 sm:$0xff]  }
 0x80e   :  { %12992 = vmatpush1.bf16.msra.mxu1 %v18096_v49  ;;  %v18159_v49 = vld [vmem:[%s22860_s5 + $0xd00] ss:$16 sps:$4 sm:$0xff]  }
 0x80f   :  { %12993 = vmatprep.subr.bf16.mxu1 %v18101_v2  ;;  %v18164_v2 = vld [vmem:[%s22860_s5 + $0xd24] ss:$16 sps:$4 sm:$0xff]  }
 0x812   :  { %12994 = vmatpush1.bf16.msra.mxu1 %v18099_v59  ;;  %v18162_v59 = vld [vmem:[%s22860_s5 + $0xd20] ss:$16 sps:$4 sm:$0xff]  }
 0x813   :  { %12995 = vmatprep.subr.bf16.mxu1 %v18104_v58  ;;  %v18167_v58 = vld [vmem:[%s22860_s5 + $0xd44] ss:$16 sps:$4 sm:$0xff]  }
 0x816   :  { %12996 = vmatpush1.bf16.msra.mxu1 %v18102_v50  ;;  %v18165_v50 = vld [vmem:[%s22860_s5 + $0xd40] ss:$16 sps:$4 sm:$0xff]  }
 0x817   :  { %12997 = vmatprep.subr.bf16.mxu1 %v18107_v13  ;;  %v18170_v13 = vld [vmem:[%s22860_s5 + $0xd64] ss:$16 sps:$4 sm:$0xff]  }
 0x81a   :  { %12998 = vmatpush1.bf16.msra.mxu1 %v18105_v24  ;;  %v18168_v24 = vld [vmem:[%s22860_s5 + $0xd60] ss:$16 sps:$4 sm:$0xff]  }
 0x81b   :  { %12999 = vmatprep.subr.bf16.mxu1 %v18110_v18  ;;  %v18173_v18 = vld [vmem:[%s22860_s5 + $0xd84] ss:$16 sps:$4 sm:$0xff]  }
 0x81e   :  { %13000 = vmatpush1.bf16.msra.mxu1 %v18108_v55  ;;  %v18171_v55 = vld [vmem:[%s22860_s5 + $0xd80] ss:$16 sps:$4 sm:$0xff]  }
 0x81f   :  { %13001 = vmatprep.subr.bf16.mxu1 %v18113_v37  ;;  %v18176_v37 = vld [vmem:[%s22860_s5 + $0xda4] ss:$16 sps:$4 sm:$0xff]  }
 0x822   :  { %13002 = vmatpush1.bf16.msra.mxu1 %v18111_v0  ;;  %v18174_v0 = vld [vmem:[%s22860_s5 + $0xda0] ss:$16 sps:$4 sm:$0xff]  }
 0x823   :  { %13003 = vmatprep.subr.bf16.mxu1 %v18116_v14  ;;  %v18179_v14 = vld [vmem:[%s22860_s5 + $0xdc4] ss:$16 sps:$4 sm:$0xff]  }
 0x826   :  { %13004 = vmatpush1.bf16.msra.mxu1 %v18114_v15  ;;  %v9654_v15 = vld [vmem:[#allocation4 + $0x48] sm:$0x3] }
 0x827   :  { %13005 = vmatprep.subr.bf16.mxu1 %v18119_v6  ;;  %v9655_v6 = vld [vmem:[#allocation4 + $0x4a] sm:$0x3] }
 0x82a   :  { %13006 = vmatpush1.bf16.msra.mxu1 %v18117_v8  ;;  %v9666_v8 = vld [vmem:[#allocation4 + $0x54] sm:$0x3] }
 0x82b   :  { %13007 = vmatprep.subr.bf16.mxu1 %v18122_v41  ;;  %v9667_v41 = vld [vmem:[#allocation4 + $0x56] sm:$0x3] }
 0x82e   :  { %13008 = vmatpush1.bf16.msra.mxu1 %v18120_v46  ;;  %v18177_v46 = vld [vmem:[%s22860_s5 + $0xdc0] ss:$16 sps:$4 sm:$0xff]  }
 0x82f   :  { %13009 = vmatprep.subr.bf16.mxu1 %v18125_v3  ;;  %v18182_v3 = vld [vmem:[%s22860_s5 + $0xde4] ss:$16 sps:$4 sm:$0xff]  }
 0x832   :  { %13010 = vmatpush1.bf16.msra.mxu1 %v18123_v7  ;;  %v9656_v7 = vmax.f32 %v9654_v15, %v9655_v6  ;;  %v18231_v15 = vld [vmem:[%s22860_s5 + $0x8] ss:$16 sps:$4 sm:$0xff]  }
 0x833   :  { %13011 = vmatprep.subr.bf16.mxu1 %v18128_v21  ;;  %v9668_v21 = vmax.f32 %v9666_v8, %v9667_v41  ;;  %v18236_v8 = vld [vmem:[%s22860_s5 + $0x2c] ss:$16 sps:$4 sm:$0xff]   ;;  %v18234_v41 = vld [vmem:[%s22860_s5 + $0x28] ss:$16 sps:$4 sm:$0xff]  }
 0x835   :  { %v9669_v43 = vadd.f32 %v21202_v28, %v9668_v21  ;;  %v18245_v21 = vld [vmem:[%s22860_s5 + $0x8c] ss:$16 sps:$4 sm:$0xff]  }
 0x836   :  { %13012 = vmatpush1.bf16.msra.mxu1 %v18126_v38  ;;  %v18180_v38 = vld [vmem:[%s22860_s5 + $0xde0] ss:$16 sps:$4 sm:$0xff]  }
 0x837   :  { %13013 = vmatprep.subr.bf16.mxu1 %v18131_v63  ;;  %v9657_v63 = vadd.f32 %v21202_v28, %v9656_v7  ;;  %v18186_v28 = vld [vmem:[%s22860_s5 + $0xe20] ss:$16 sps:$4 sm:$0xff]   ;;  %v18242_v7 = vld [vmem:[%s22860_s5 + $0x6c] ss:$16 sps:$4 sm:$0xff]  }
 0x839   :  { %v21837_v35 = vpack.c.bf16 %v9657_v63, %v9657_v63  ;;  %v18248_v63 = vld [vmem:[%s22860_s5 + $0xac] ss:$16 sps:$4 sm:$0xff]  }
 0x83a   :  { %13014 = vmatpush1.bf16.msra.mxu1 %v18129_v19  ;;  %v18188_v19 = vld [vmem:[%s22860_s5 + $0xe24] ss:$16 sps:$4 sm:$0xff]  }
 0x83b   :  { %13015 = vmatprep.subr.bf16.mxu1 %v18134_v33  ;;  %v21842_v33 = vpack.c.bf16 %v9669_v43, %v9669_v43  ;;  %v18251_v43 = vld [vmem:[%s22860_s5 + $0xcc] ss:$16 sps:$4 sm:$0xff]  }
 0x83e   :  { %13016 = vmatpush1.bf16.msra.mxu1 %v18132_v17  ;;  %v18194_v17 = vld [vmem:[%s22860_s5 + $0xe64] ss:$16 sps:$4 sm:$0xff]  }
 0x83f   :  { %13026 = vmatprep.subr.bf16.mxu1 %v18137_v1  ;;  %v18197_v1 = vld [vmem:[%s22860_s5 + $0xe84] ss:$16 sps:$4 sm:$0xff]  }
 0x841   :  { %13018 = vmatmul.mubr.bf16.vlgmr.msra.gmra.mrb[108].mxu1 %v21733_v52 }
 0x842   :  { %13027 = vmatpush1.bf16.msra.mxu1 %v18135_v47  ;;  %13058 = vmatprep.mubr.bf16.mxu1 %v21738_v16  ;;  %v18200_v47 = vld [vmem:[%s22860_s5 + $0xea4] ss:$16 sps:$4 sm:$0xff]  }
 0x843   :  { %13028 = vmatprep.subr.bf16.mxu1 %v18140_v56  ;;  %v18198_v56 = vld [vmem:[%s22860_s5 + $0xea0] ss:$16 sps:$4 sm:$0xff]  }
 0x846   :  { %13029 = vmatpush1.bf16.msra.mxu1 %v18138_v27  ;;  %v18203_v27 = vld [vmem:[%s22860_s5 + $0xec4] ss:$16 sps:$4 sm:$0xff]  }
 0x847   :  { %13030 = vmatprep.subr.bf16.mxu1 %v18143_v51  ;;  %v18201_v51 = vld [vmem:[%s22860_s5 + $0xec0] ss:$16 sps:$4 sm:$0xff]  }
 0x84a   :  { %13031 = vmatpush1.bf16.msra.mxu1 %v18141_v45  ;;  %v18206_v45 = vld [vmem:[%s22860_s5 + $0xee4] ss:$16 sps:$4 sm:$0xff]  }
 0x84b   :  { %13032 = vmatprep.subr.bf16.mxu1 %v18146_v39  ;;  %v18204_v39 = vld [vmem:[%s22860_s5 + $0xee0] ss:$16 sps:$4 sm:$0xff]  }
 0x84e   :  { %13033 = vmatpush1.bf16.msra.mxu1 %v18144_v61  ;;  %v18209_v61 = vld [vmem:[%s22860_s5 + $0xf04] ss:$16 sps:$4 sm:$0xff]  }
 0x84f   :  { %13034 = vmatprep.subr.bf16.mxu1 %v18149_v54  ;;  %v18207_v54 = vld [vmem:[%s22860_s5 + $0xf00] ss:$16 sps:$4 sm:$0xff]  }
 0x852   :  { %13035 = vmatpush1.bf16.msra.mxu1 %v18147_v57  ;;  %v18212_v57 = vld [vmem:[%s22860_s5 + $0xf24] ss:$16 sps:$4 sm:$0xff]  }
 0x853   :  { %13036 = vmatprep.subr.bf16.mxu1 %v18152_v44  ;;  %v18210_v44 = vld [vmem:[%s22860_s5 + $0xf20] ss:$16 sps:$4 sm:$0xff]  }
 0x856   :  { %13037 = vmatpush1.bf16.msra.mxu1 %v18150_v12  ;;  %v18215_v12 = vld [vmem:[%s22860_s5 + $0xf44] ss:$16 sps:$4 sm:$0xff]  }
 0x857   :  { %13038 = vmatprep.subr.bf16.mxu1 %v18155_v53  ;;  %v18213_v53 = vld [vmem:[%s22860_s5 + $0xf40] ss:$16 sps:$4 sm:$0xff]  }
 0x85a   :  { %13039 = vmatpush1.bf16.msra.mxu1 %v18153_v48  ;;  %v18218_v48 = vld [vmem:[%s22860_s5 + $0xf64] ss:$16 sps:$4 sm:$0xff]  }
 0x85b   :  { %13040 = vmatprep.subr.bf16.mxu1 %v18158_v31  ;;  %v18216_v31 = vld [vmem:[%s22860_s5 + $0xf60] ss:$16 sps:$4 sm:$0xff]  }
 0x85e   :  { %13041 = vmatpush1.bf16.msra.mxu1 %v18156_v42  ;;  %v18221_v42 = vld [vmem:[%s22860_s5 + $0xf84] ss:$16 sps:$4 sm:$0xff]  }
 0x85f   :  { %13042 = vmatprep.subr.bf16.mxu1 %v18161_v36  ;;  %v18219_v36 = vld [vmem:[%s22860_s5 + $0xf80] ss:$16 sps:$4 sm:$0xff]  }
 0x862   :  { %13043 = vmatpush1.bf16.msra.mxu1 %v18159_v49  ;;  %v18224_v49 = vld [vmem:[%s22860_s5 + $0xfa4] ss:$16 sps:$4 sm:$0xff]  }
 0x863   :  { %13044 = vmatprep.subr.bf16.mxu1 %v18164_v2  ;;  %v18222_v2 = vld [vmem:[%s22860_s5 + $0xfa0] ss:$16 sps:$4 sm:$0xff]  }
 0x866   :  { %13045 = vmatpush1.bf16.msra.mxu1 %v18162_v59  ;;  %v18227_v59 = vld [vmem:[%s22860_s5 + $0xfc4] ss:$16 sps:$4 sm:$0xff]  }
 0x867   :  { %13046 = vmatprep.subr.bf16.mxu1 %v18167_v58  ;;  %v9662_v58 = vld [vmem:[#allocation4 + $0x50] sm:$0x3] }
 0x86a   :  { %13047 = vmatpush1.bf16.msra.mxu1 %v18165_v50  ;;  %v9663_v50 = vld [vmem:[#allocation4 + $0x52] sm:$0x3] }
 0x86b   :  { %13048 = vmatprep.subr.bf16.mxu1 %v18170_v13  ;;  %v18225_v13 = vld [vmem:[%s22860_s5 + $0xfc0] ss:$16 sps:$4 sm:$0xff]  }
 0x86e   :  { %13049 = vmatpush1.bf16.msra.mxu1 %v18168_v24  ;;  %v18230_v24 = vld [vmem:[%s22860_s5 + $0xfe4] ss:$16 sps:$4 sm:$0xff]  }
 0x86f   :  { %13050 = vmatprep.subr.bf16.mxu1 %v18173_v18  ;;  %v9664_v18 = vmax.f32 %v9662_v58, %v9663_v50  ;;  %v18294_v58 = vld [vmem:[%s22860_s5 + $0x2a8] ss:$16 sps:$4 sm:$0xff]   ;;  %v18299_v50 = vld [vmem:[%s22860_s5 + $0x2cc] ss:$16 sps:$4 sm:$0xff]  }
 0x872   :  { %13051 = vmatpush1.bf16.msra.mxu1 %v18171_v55  ;;  %v18228_v55 = vld [vmem:[%s22860_s5 + $0xfe0] ss:$16 sps:$4 sm:$0xff]  }
 0x873   :  { %13052 = vmatprep.subr.bf16.mxu1 %v18176_v37  ;;  %v18760_v37 = vld [vmem:[%s22859_s4] ss:$0 sm:$0xff] }
 0x876   :  { %13053 = vmatpush1.bf16.msra.mxu1 %v18174_v0  ;;  %v9665_v0 = vadd.f32 %v18760_v37, %v9664_v18  ;;  %v18300_v18 = vld [vmem:[%s22860_s5 + $0x2e8] ss:$16 sps:$4 sm:$0xff]  }
 0x877   :  { %13054 = vmatprep.subr.bf16.mxu1 %v18179_v14  ;;  %v18233_v14 = vld [vmem:[%s22860_s5 + $0xc] ss:$16 sps:$4 sm:$0xff]   ;;  %v18303_v37 = vld [vmem:[%s22860_s5 + $0x308] ss:$16 sps:$4 sm:$0xff]  }
 0x878   :  { %v21942_v6 = vpack.c.bf16 %v9665_v0, %v9665_v0  ;;  %v18308_v0 = vld [vmem:[%s22860_s5 + $0x32c] ss:$16 sps:$4 sm:$0xff]  }
 0x87a   :  { %13055 = vmatpush1.bf16.msra.mxu1 %v18177_v46  ;;  %v18239_v46 = vld [vmem:[%s22860_s5 + $0x4c] ss:$16 sps:$4 sm:$0xff]  }
 0x87b   :  { %13056 = vmatprep.subr.bf16.mxu1 %v18182_v3  ;;  %v18237_v3 = vld [vmem:[%s22860_s5 + $0x48] ss:$16 sps:$4 sm:$0xff]  }
 0x87e   :  { %13057 = vmatpush1.bf16.msra.mxu1 %v18180_v38  ;;  %v18243_v38 = vld [vmem:[%s22860_s5 + $0x88] ss:$16 sps:$4 sm:$0xff]  }
 0x87f   :  { %13067 = vmatprep.subr.bf16.mxu1 %v18185_v11  ;;  %v18246_v11 = vld [vmem:[%s22860_s5 + $0xa8] ss:$16 sps:$4 sm:$0xff]  }
 0x881   :  { %13059 = vmatmul.mubr.bf16.vlgmr.msra.gmra.mrb[108].mxu1 %v21837_v35 }
 0x882   :  { %13068 = vmatpush1.bf16.msra.mxu1 %v18183_v40  ;;  %13099 = vmatprep.mubr.bf16.mxu1 %v21842_v33  ;;  %v18249_v40 = vld [vmem:[%s22860_s5 + $0xc8] ss:$16 sps:$4 sm:$0xff]  }
 0x883   :  { %13069 = vmatprep.subr.bf16.mxu1 %v18188_v19  ;;  %v18254_v19 = vld [vmem:[%s22860_s5 + $0xec] ss:$16 sps:$4 sm:$0xff]  }
 0x886   :  { %13070 = vmatpush1.bf16.msra.mxu1 %v18186_v28  ;;  %v18252_v28 = vld [vmem:[%s22860_s5 + $0xe8] ss:$16 sps:$4 sm:$0xff]  }
 0x887   :  { %13071 = vmatprep.subr.bf16.mxu1 %v18191_v22  ;;  %v18257_v22 = vld [vmem:[%s22860_s5 + $0x10c] ss:$16 sps:$4 sm:$0xff]  }
 0x88a   :  { %13072 = vmatpush1.bf16.msra.mxu1 %v18189_v5  ;;  %v18255_v5 = vld [vmem:[%s22860_s5 + $0x108] ss:$16 sps:$4 sm:$0xff]  }
 0x88b   :  { %13073 = vmatprep.subr.bf16.mxu1 %v18194_v17  ;;  %v18260_v17 = vld [vmem:[%s22860_s5 + $0x12c] ss:$16 sps:$4 sm:$0xff]  }
 0x88e   :  { %13074 = vmatpush1.bf16.msra.mxu1 %v18192_v30  ;;  %v18258_v30 = vld [vmem:[%s22860_s5 + $0x128] ss:$16 sps:$4 sm:$0xff]  }
 0x88f   :  { %13075 = vmatprep.subr.bf16.mxu1 %v18197_v1  ;;  %v18263_v1 = vld [vmem:[%s22860_s5 + $0x14c] ss:$16 sps:$4 sm:$0xff]  }
 0x892   :  { %13076 = vmatpush1.bf16.msra.mxu1 %v18195_v10  ;;  %v18261_v10 = vld [vmem:[%s22860_s5 + $0x148] ss:$16 sps:$4 sm:$0xff]  }
 0x893   :  { %13077 = vmatprep.subr.bf16.mxu1 %v18200_v47  ;;  %v18266_v47 = vld [vmem:[%s22860_s5 + $0x16c] ss:$16 sps:$4 sm:$0xff]  }
 0x896   :  { %13078 = vmatpush1.bf16.msra.mxu1 %v18198_v56  ;;  %v18264_v56 = vld [vmem:[%s22860_s5 + $0x168] ss:$16 sps:$4 sm:$0xff]  }
 0x897   :  { %13079 = vmatprep.subr.bf16.mxu1 %v18203_v27  ;;  %v18269_v27 = vld [vmem:[%s22860_s5 + $0x18c] ss:$16 sps:$4 sm:$0xff]  }
 0x89a   :  { %13080 = vmatpush1.bf16.msra.mxu1 %v18201_v51  ;;  %v18267_v51 = vld [vmem:[%s22860_s5 + $0x188] ss:$16 sps:$4 sm:$0xff]  }
 0x89b   :  { %13081 = vmatprep.subr.bf16.mxu1 %v18206_v45  ;;  %v18272_v45 = vld [vmem:[%s22860_s5 + $0x1ac] ss:$16 sps:$4 sm:$0xff]  }
 0x89e   :  { %13082 = vmatpush1.bf16.msra.mxu1 %v18204_v39  ;;  %v18270_v39 = vld [vmem:[%s22860_s5 + $0x1a8] ss:$16 sps:$4 sm:$0xff]  }
 0x89f   :  { %13083 = vmatprep.subr.bf16.mxu1 %v18209_v61  ;;  %v18275_v61 = vld [vmem:[%s22860_s5 + $0x1cc] ss:$16 sps:$4 sm:$0xff]  }
 0x8a2   :  { %13084 = vmatpush1.bf16.msra.mxu1 %v18207_v54  ;;  %v18273_v54 = vld [vmem:[%s22860_s5 + $0x1c8] ss:$16 sps:$4 sm:$0xff]  }
 0x8a3   :  { %13085 = vmatprep.subr.bf16.mxu1 %v18212_v57  ;;  %v18278_v57 = vld [vmem:[%s22860_s5 + $0x1ec] ss:$16 sps:$4 sm:$0xff]  }
 0x8a6   :  { %13086 = vmatpush1.bf16.msra.mxu1 %v18210_v44  ;;  %v18276_v44 = vld [vmem:[%s22860_s5 + $0x1e8] ss:$16 sps:$4 sm:$0xff]  }
 0x8a7   :  { %13087 = vmatprep.subr.bf16.mxu1 %v18215_v12  ;;  %v18281_v12 = vld [vmem:[%s22860_s5 + $0x20c] ss:$16 sps:$4 sm:$0xff]  }
 0x8aa   :  { %13088 = vmatpush1.bf16.msra.mxu1 %v18213_v53  ;;  %v18279_v53 = vld [vmem:[%s22860_s5 + $0x208] ss:$16 sps:$4 sm:$0xff]  }
 0x8ab   :  { %13089 = vmatprep.subr.bf16.mxu1 %v18218_v48  ;;  %v18284_v48 = vld [vmem:[%s22860_s5 + $0x22c] ss:$16 sps:$4 sm:$0xff]  }
 0x8ae   :  { %13090 = vmatpush1.bf16.msra.mxu1 %v18216_v31  ;;  %v18282_v31 = vld [vmem:[%s22860_s5 + $0x228] ss:$16 sps:$4 sm:$0xff]  }
 0x8af   :  { %13091 = vmatprep.subr.bf16.mxu1 %v18221_v42  ;;  %v18287_v42 = vld [vmem:[%s22860_s5 + $0x24c] ss:$16 sps:$4 sm:$0xff]  }
 0x8b2   :  { %13092 = vmatpush1.bf16.msra.mxu1 %v18219_v36  ;;  %v18285_v36 = vld [vmem:[%s22860_s5 + $0x248] ss:$16 sps:$4 sm:$0xff]  }
 0x8b3   :  { %13093 = vmatprep.subr.bf16.mxu1 %v18224_v49  ;;  %v18293_v49 = vld [vmem:[%s22860_s5 + $0x28c] ss:$16 sps:$4 sm:$0xff]  }
 0x8b6   :  { %13094 = vmatpush1.bf16.msra.mxu1 %v18222_v2  ;;  %v18291_v2 = vld [vmem:[%s22860_s5 + $0x288] ss:$16 sps:$4 sm:$0xff]  }
 0x8b7   :  { %13095 = vmatprep.subr.bf16.mxu1 %v18227_v59  ;;  %v18296_v59 = vld [vmem:[%s22860_s5 + $0x2ac] ss:$16 sps:$4 sm:$0xff]  }
 0x8ba   :  { %13096 = vmatpush1.bf16.msra.mxu1 %v18225_v13  ;;  %v18297_v13 = vld [vmem:[%s22860_s5 + $0x2c8] ss:$16 sps:$4 sm:$0xff]  }
 0x8bb   :  { %13097 = vmatprep.subr.bf16.mxu1 %v18230_v24  ;;  %v18302_v24 = vld [vmem:[%s22860_s5 + $0x2ec] ss:$16 sps:$4 sm:$0xff]  }
 0x8be   :  { %13098 = vmatpush1.bf16.msra.mxu1 %v18228_v55  ;;  %v18305_v55 = vld [vmem:[%s22860_s5 + $0x30c] ss:$16 sps:$4 sm:$0xff]  }
 0x8bf   :  { %13108 = vmatprep.subr.bf16.mxu1 %v18233_v14  ;;  %v18306_v14 = vld [vmem:[%s22860_s5 + $0x328] ss:$16 sps:$4 sm:$0xff]  }
 0x8c1   :  { %13100 = vmatmul.mubr.bf16.vlgmr.msra.gmra.mrb[108].mxu1 %v21942_v6 }
 0x8c2   :  { %13109 = vmatpush1.bf16.msra.mxu1 %v18231_v15  ;;  %13140 = vmatprep.mubr.bf16.mxu1 %v21206_v25  ;;  %v18240_v25 = vld [vmem:[%s22860_s5 + $0x68] ss:$16 sps:$4 sm:$0xff]   ;;  %v18311_v15 = vld [vmem:[%s22860_s5 + $0x34c] ss:$16 sps:$4 sm:$0xff]  }
 0x8c3   :  { %13110 = vmatprep.subr.bf16.mxu1 %v18236_v8  ;;  %v18309_v8 = vld [vmem:[%s22860_s5 + $0x348] ss:$16 sps:$4 sm:$0xff]  }
 0x8c6   :  { %13111 = vmatpush1.bf16.msra.mxu1 %v18234_v41  ;;  %v18314_v41 = vld [vmem:[%s22860_s5 + $0x36c] ss:$16 sps:$4 sm:$0xff]  }
 0x8c7   :  { %13112 = vmatprep.subr.bf16.mxu1 %v18239_v46  ;;  %v18312_v46 = vld [vmem:[%s22860_s5 + $0x368] ss:$16 sps:$4 sm:$0xff]  }
 0x8ca   :  { %13113 = vmatpush1.bf16.msra.mxu1 %v18237_v3  ;;  %v18317_v3 = vld [vmem:[%s22860_s5 + $0x38c] ss:$16 sps:$4 sm:$0xff]  }
 0x8cb   :  { %13114 = vmatprep.subr.bf16.mxu1 %v18242_v7  ;;  %v18315_v7 = vld [vmem:[%s22860_s5 + $0x388] ss:$16 sps:$4 sm:$0xff]  }
 0x8ce   :  { %13115 = vmatpush1.bf16.msra.mxu1 %v18240_v25  ;;  %v18320_v25 = vld [vmem:[%s22860_s5 + $0x3ac] ss:$16 sps:$4 sm:$0xff]  }
 0x8cf   :  { %13116 = vmatprep.subr.bf16.mxu1 %v18245_v21  ;;  %v18318_v21 = vld [vmem:[%s22860_s5 + $0x3a8] ss:$16 sps:$4 sm:$0xff]  }
 0x8d2   :  { %13117 = vmatpush1.bf16.msra.mxu1 %v18243_v38  ;;  %v18323_v38 = vld [vmem:[%s22860_s5 + $0x3cc] ss:$16 sps:$4 sm:$0xff]  }
 0x8d3   :  { %13118 = vmatprep.subr.bf16.mxu1 %v18248_v63  ;;  %v18321_v63 = vld [vmem:[%s22860_s5 + $0x3c8] ss:$16 sps:$4 sm:$0xff]  }
 0x8d6   :  { %13119 = vmatpush1.bf16.msra.mxu1 %v18246_v11  ;;  %v18326_v11 = vld [vmem:[%s22860_s5 + $0x3ec] ss:$16 sps:$4 sm:$0xff]  }
 0x8d7   :  { %13120 = vmatprep.subr.bf16.mxu1 %v18251_v43  ;;  %v18324_v43 = vld [vmem:[%s22860_s5 + $0x3e8] ss:$16 sps:$4 sm:$0xff]  }
 0x8da   :  { %13121 = vmatpush1.bf16.msra.mxu1 %v18249_v40  ;;  %v18329_v40 = vld [vmem:[%s22860_s5 + $0x40c] ss:$16 sps:$4 sm:$0xff]  }
 0x8db   :  { %13122 = vmatprep.subr.bf16.mxu1 %v18254_v19  ;;  %v18327_v19 = vld [vmem:[%s22860_s5 + $0x408] ss:$16 sps:$4 sm:$0xff]  }
 0x8de   :  { %13123 = vmatpush1.bf16.msra.mxu1 %v18252_v28  ;;  %v18332_v28 = vld [vmem:[%s22860_s5 + $0x42c] ss:$16 sps:$4 sm:$0xff]  }
 0x8df   :  { %13124 = vmatprep.subr.bf16.mxu1 %v18257_v22  ;;  %v18330_v22 = vld [vmem:[%s22860_s5 + $0x428] ss:$16 sps:$4 sm:$0xff]  }
 0x8e2   :  { %13125 = vmatpush1.bf16.msra.mxu1 %v18255_v5  ;;  %v18335_v5 = vld [vmem:[%s22860_s5 + $0x44c] ss:$16 sps:$4 sm:$0xff]  }
 0x8e3   :  { %13126 = vmatprep.subr.bf16.mxu1 %v18260_v17  ;;  %v18333_v17 = vld [vmem:[%s22860_s5 + $0x448] ss:$16 sps:$4 sm:$0xff]  }
 0x8e6   :  { %13127 = vmatpush1.bf16.msra.mxu1 %v18258_v30  ;;  %v18341_v30 = vld [vmem:[%s22860_s5 + $0x48c] ss:$16 sps:$4 sm:$0xff]  }
 0x8e7   :  { %13128 = vmatprep.subr.bf16.mxu1 %v18263_v1  ;;  %v18339_v1 = vld [vmem:[%s22860_s5 + $0x488] ss:$16 sps:$4 sm:$0xff]  }
 0x8ea   :  { %13129 = vmatpush1.bf16.msra.mxu1 %v18261_v10  ;;  %v18344_v10 = vld [vmem:[%s22860_s5 + $0x4ac] ss:$16 sps:$4 sm:$0xff]  }
 0x8eb   :  { %13130 = vmatprep.subr.bf16.mxu1 %v18266_v47  ;;  %v18342_v47 = vld [vmem:[%s22860_s5 + $0x4a8] ss:$16 sps:$4 sm:$0xff]  }
 0x8ee   :  { %13131 = vmatpush1.bf16.msra.mxu1 %v18264_v56  ;;  %v18347_v56 = vld [vmem:[%s22860_s5 + $0x4cc] ss:$16 sps:$4 sm:$0xff]  }
 0x8ef   :  { %13132 = vmatprep.subr.bf16.mxu1 %v18269_v27  ;;  %v18345_v27 = vld [vmem:[%s22860_s5 + $0x4c8] ss:$16 sps:$4 sm:$0xff]  }
 0x8f2   :  { %13133 = vmatpush1.bf16.msra.mxu1 %v18267_v51  ;;  %v18350_v51 = vld [vmem:[%s22860_s5 + $0x4ec] ss:$16 sps:$4 sm:$0xff]  }
 0x8f3   :  { %13134 = vmatprep.subr.bf16.mxu1 %v18272_v45  ;;  %v18348_v45 = vld [vmem:[%s22860_s5 + $0x4e8] ss:$16 sps:$4 sm:$0xff]  }
 0x8f6   :  { %13135 = vmatpush1.bf16.msra.mxu1 %v18270_v39  ;;  %v18353_v39 = vld [vmem:[%s22860_s5 + $0x50c] ss:$16 sps:$4 sm:$0xff]  }
 0x8f7   :  { %13136 = vmatprep.subr.bf16.mxu1 %v18275_v61  ;;  %v18351_v61 = vld [vmem:[%s22860_s5 + $0x508] ss:$16 sps:$4 sm:$0xff]  }
 0x8fa   :  { %13137 = vmatpush1.bf16.msra.mxu1 %v18273_v54  ;;  %v18356_v54 = vld [vmem:[%s22860_s5 + $0x52c] ss:$16 sps:$4 sm:$0xff]  }
 0x8fb   :  { %13138 = vmatprep.subr.bf16.mxu1 %v18278_v57  ;;  %v18354_v57 = vld [vmem:[%s22860_s5 + $0x528] ss:$16 sps:$4 sm:$0xff]  }
 0x8fe   :  { %13139 = vmatpush1.bf16.msra.mxu1 %v18276_v44  ;;  %v18359_v44 = vld [vmem:[%s22860_s5 + $0x54c] ss:$16 sps:$4 sm:$0xff]  }
 0x8ff   :  { %13149 = vmatprep.subr.bf16.mxu1 %v18281_v12  ;;  %v18357_v12 = vld [vmem:[%s22860_s5 + $0x548] ss:$16 sps:$4 sm:$0xff]  }
 0x901   :  { %13141 = vmatmul.mubr.bf16.vlgmr.msra.gmra.mrb[112].mxu1 %v21211_v32  ;;  %v18290_v32 = vld [vmem:[%s22860_s5 + $0x26c] ss:$16 sps:$4 sm:$0xff]  }
 0x902   :  { %13150 = vmatpush1.bf16.msra.mxu1 %v18279_v53  ;;  %13181 = vmatprep.mubr.bf16.mxu1 %v21225_v20  ;;  %v18288_v20 = vld [vmem:[%s22860_s5 + $0x268] ss:$16 sps:$4 sm:$0xff]   ;;  %v18362_v53 = vld [vmem:[%s22860_s5 + $0x56c] ss:$16 sps:$4 sm:$0xff]  }
 0x903   :  { %13151 = vmatprep.subr.bf16.mxu1 %v18284_v48  ;;  %v18360_v48 = vld [vmem:[%s22860_s5 + $0x568] ss:$16 sps:$4 sm:$0xff]  }
 0x906   :  { %13152 = vmatpush1.bf16.msra.mxu1 %v18282_v31  ;;  %v18365_v31 = vld [vmem:[%s22860_s5 + $0x58c] ss:$16 sps:$4 sm:$0xff]  }
 0x907   :  { %13153 = vmatprep.subr.bf16.mxu1 %v18287_v42  ;;  %v18363_v42 = vld [vmem:[%s22860_s5 + $0x588] ss:$16 sps:$4 sm:$0xff]  }
 0x90a   :  { %13154 = vmatpush1.bf16.msra.mxu1 %v18285_v36  ;;  %v18368_v36 = vld [vmem:[%s22860_s5 + $0x5ac] ss:$16 sps:$4 sm:$0xff]  }
 0x90b   :  { %13155 = vmatprep.subr.bf16.mxu1 %v18290_v32  ;;  %v18366_v32 = vld [vmem:[%s22860_s5 + $0x5a8] ss:$16 sps:$4 sm:$0xff]  }
 0x90e   :  { %13156 = vmatpush1.bf16.msra.mxu1 %v18288_v20  ;;  %v18371_v20 = vld [vmem:[%s22860_s5 + $0x5cc] ss:$16 sps:$4 sm:$0xff]  }
 0x90f   :  { %13157 = vmatprep.subr.bf16.mxu1 %v18293_v49  ;;  %v18369_v49 = vld [vmem:[%s22860_s5 + $0x5c8] ss:$16 sps:$4 sm:$0xff]  }
 0x912   :  { %13158 = vmatpush1.bf16.msra.mxu1 %v18291_v2  ;;  %v18374_v2 = vld [vmem:[%s22860_s5 + $0x5ec] ss:$16 sps:$4 sm:$0xff]  }
 0x913   :  { %13159 = vmatprep.subr.bf16.mxu1 %v18296_v59  ;;  %v18372_v59 = vld [vmem:[%s22860_s5 + $0x5e8] ss:$16 sps:$4 sm:$0xff]  }
 0x916   :  { %13160 = vmatpush1.bf16.msra.mxu1 %v18294_v58  ;;  %v18377_v58 = vld [vmem:[%s22860_s5 + $0x60c] ss:$16 sps:$4 sm:$0xff]  }
 0x917   :  { %13161 = vmatprep.subr.bf16.mxu1 %v18299_v50  ;;  %v18375_v50 = vld [vmem:[%s22860_s5 + $0x608] ss:$16 sps:$4 sm:$0xff]  }
 0x91a   :  { %13162 = vmatpush1.bf16.msra.mxu1 %v18297_v13  ;;  %v18380_v13 = vld [vmem:[%s22860_s5 + $0x62c] ss:$16 sps:$4 sm:$0xff]  }
 0x91b   :  { %13163 = vmatprep.subr.bf16.mxu1 %v18302_v24  ;;  %v18378_v24 = vld [vmem:[%s22860_s5 + $0x628] ss:$16 sps:$4 sm:$0xff]  }
 0x91e   :  { %13164 = vmatpush1.bf16.msra.mxu1 %v18300_v18  ;;  %v18383_v18 = vld [vmem:[%s22860_s5 + $0x64c] ss:$16 sps:$4 sm:$0xff]  }
 0x91f   :  { %13165 = vmatprep.subr.bf16.mxu1 %v18305_v55  ;;  %v18381_v55 = vld [vmem:[%s22860_s5 + $0x648] ss:$16 sps:$4 sm:$0xff]  }
 0x922   :  { %13166 = vmatpush1.bf16.msra.mxu1 %v18303_v37  ;;  %v18389_v37 = vld [vmem:[%s22860_s5 + $0x68c] ss:$16 sps:$4 sm:$0xff]  }
 0x923   :  { %13167 = vmatprep.subr.bf16.mxu1 %v18308_v0  ;;  %v18387_v0 = vld [vmem:[%s22860_s5 + $0x688] ss:$16 sps:$4 sm:$0xff]  }
 0x926   :  { %13168 = vmatpush1.bf16.msra.mxu1 %v18306_v14  ;;  %v18392_v14 = vld [vmem:[%s22860_s5 + $0x6ac] ss:$16 sps:$4 sm:$0xff]  }
 0x927   :  { %13169 = vmatprep.subr.bf16.mxu1 %v18311_v15  ;;  %v18390_v15 = vld [vmem:[%s22860_s5 + $0x6a8] ss:$16 sps:$4 sm:$0xff]  }
 0x92a   :  { %13170 = vmatpush1.bf16.msra.mxu1 %v18309_v8  ;;  %v18395_v8 = vld [vmem:[%s22860_s5 + $0x6cc] ss:$16 sps:$4 sm:$0xff]  }
 0x92b   :  { %13171 = vmatprep.subr.bf16.mxu1 %v18314_v41 }
 0x92e   :  { %13172 = vmatpush1.bf16.msra.mxu1 %v18312_v46 }
 0x92f   :  { %13173 = vmatprep.subr.bf16.mxu1 %v18317_v3 }
 0x932   :  { %13174 = vmatpush1.bf16.msra.mxu1 %v18315_v7  ;;  %v18393_v7 = vld [vmem:[%s22860_s5 + $0x6c8] ss:$16 sps:$4 sm:$0xff]  }
 0x933   :  { %13175 = vmatprep.subr.bf16.mxu1 %v18320_v25 }
 0x936   :  { %13176 = vmatpush1.bf16.msra.mxu1 %v18318_v21  ;;  %v18398_v21 = vld [vmem:[%s22860_s5 + $0x6ec] ss:$16 sps:$4 sm:$0xff]  }
 0x937   :  { %13177 = vmatprep.subr.bf16.mxu1 %v18323_v38  ;;  %v18396_v38 = vld [vmem:[%s22860_s5 + $0x6e8] ss:$16 sps:$4 sm:$0xff]  }
 0x93a   :  { %13178 = vmatpush1.bf16.msra.mxu1 %v18321_v63  ;;  %v18401_v63 = vld [vmem:[%s22860_s5 + $0x70c] ss:$16 sps:$4 sm:$0xff]  }
 0x93b   :  { %13179 = vmatprep.subr.bf16.mxu1 %v18326_v11  ;;  %v18399_v11 = vld [vmem:[%s22860_s5 + $0x708] ss:$16 sps:$4 sm:$0xff]  }
 0x93e   :  { %13180 = vmatpush1.bf16.msra.mxu1 %v18324_v43  ;;  %v18404_v43 = vld [vmem:[%s22860_s5 + $0x72c] ss:$16 sps:$4 sm:$0xff]  }
 0x93f   :  { %13190 = vmatprep.subr.bf16.mxu1 %v18329_v40  ;;  %v18402_v40 = vld [vmem:[%s22860_s5 + $0x728] ss:$16 sps:$4 sm:$0xff]  }
 0x941   :  { %13182 = vmatmul.mubr.bf16.vlgmr.msra.gmra.mrb[112].mxu1 %v21317_v23  ;;  %v18338_v23 = vld [vmem:[%s22860_s5 + $0x46c] ss:$16 sps:$4 sm:$0xff]  }
 0x942   :  { %13191 = vmatpush1.bf16.msra.mxu1 %v18327_v19  ;;  %13222 = vmatprep.mubr.bf16.mxu1 %v21322_v4  ;;  %v18336_v4 = vld [vmem:[%s22860_s5 + $0x468] ss:$16 sps:$4 sm:$0xff]   ;;  %v18407_v19 = vld [vmem:[%s22860_s5 + $0x74c] ss:$16 sps:$4 sm:$0xff]  }
 0x943   :  { %13192 = vmatprep.subr.bf16.mxu1 %v18332_v28  ;;  %v18405_v28 = vld [vmem:[%s22860_s5 + $0x748] ss:$16 sps:$4 sm:$0xff]  }
 0x946   :  { %13193 = vmatpush1.bf16.msra.mxu1 %v18330_v22  ;;  %v18410_v22 = vld [vmem:[%s22860_s5 + $0x76c] ss:$16 sps:$4 sm:$0xff]  }
 0x947   :  { %13194 = vmatprep.subr.bf16.mxu1 %v18335_v5  ;;  %v18408_v5 = vld [vmem:[%s22860_s5 + $0x768] ss:$16 sps:$4 sm:$0xff]  }
 0x94a   :  { %13195 = vmatpush1.bf16.msra.mxu1 %v18333_v17  ;;  %v18413_v17 = vld [vmem:[%s22860_s5 + $0x78c] ss:$16 sps:$4 sm:$0xff]  }
 0x94b   :  { %13196 = vmatprep.subr.bf16.mxu1 %v18338_v23  ;;  %v18411_v23 = vld [vmem:[%s22860_s5 + $0x788] ss:$16 sps:$4 sm:$0xff]  }
 0x94e   :  { %13197 = vmatpush1.bf16.msra.mxu1 %v18336_v4  ;;  %v18416_v4 = vld [vmem:[%s22860_s5 + $0x7ac] ss:$16 sps:$4 sm:$0xff]  }
 0x94f   :  { %13198 = vmatprep.subr.bf16.mxu1 %v18341_v30  ;;  %v18414_v30 = vld [vmem:[%s22860_s5 + $0x7a8] ss:$16 sps:$4 sm:$0xff]  }
 0x952   :  { %13199 = vmatpush1.bf16.msra.mxu1 %v18339_v1  ;;  %v18419_v1 = vld [vmem:[%s22860_s5 + $0x7cc] ss:$16 sps:$4 sm:$0xff]  }
 0x953   :  { %13200 = vmatprep.subr.bf16.mxu1 %v18344_v10  ;;  %v18417_v10 = vld [vmem:[%s22860_s5 + $0x7c8] ss:$16 sps:$4 sm:$0xff]  }
 0x956   :  { %13201 = vmatpush1.bf16.msra.mxu1 %v18342_v47  ;;  %v18422_v47 = vld [vmem:[%s22860_s5 + $0x7ec] ss:$16 sps:$4 sm:$0xff]  }
 0x957   :  { %13202 = vmatprep.subr.bf16.mxu1 %v18347_v56  ;;  %v18420_v56 = vld [vmem:[%s22860_s5 + $0x7e8] ss:$16 sps:$4 sm:$0xff]  }
 0x95a   :  { %13203 = vmatpush1.bf16.msra.mxu1 %v18345_v27  ;;  %v18425_v27 = vld [vmem:[%s22860_s5 + $0x80c] ss:$16 sps:$4 sm:$0xff]  }
 0x95b   :  { %13204 = vmatprep.subr.bf16.mxu1 %v18350_v51  ;;  %v18423_v51 = vld [vmem:[%s22860_s5 + $0x808] ss:$16 sps:$4 sm:$0xff]  }
 0x95e   :  { %13205 = vmatpush1.bf16.msra.mxu1 %v18348_v45  ;;  %v18428_v45 = vld [vmem:[%s22860_s5 + $0x82c] ss:$16 sps:$4 sm:$0xff]  }
 0x95f   :  { %13206 = vmatprep.subr.bf16.mxu1 %v18353_v39  ;;  %v18426_v39 = vld [vmem:[%s22860_s5 + $0x828] ss:$16 sps:$4 sm:$0xff]  }
 0x962   :  { %13207 = vmatpush1.bf16.msra.mxu1 %v18351_v61  ;;  %v18431_v61 = vld [vmem:[%s22860_s5 + $0x84c] ss:$16 sps:$4 sm:$0xff]  }
 0x963   :  { %13208 = vmatprep.subr.bf16.mxu1 %v18356_v54  ;;  %v18429_v54 = vld [vmem:[%s22860_s5 + $0x848] ss:$16 sps:$4 sm:$0xff]  }
 0x966   :  { %13209 = vmatpush1.bf16.msra.mxu1 %v18354_v57  ;;  %v18437_v57 = vld [vmem:[%s22860_s5 + $0x88c] ss:$16 sps:$4 sm:$0xff]  }
 0x967   :  { %13210 = vmatprep.subr.bf16.mxu1 %v18359_v44  ;;  %v18435_v44 = vld [vmem:[%s22860_s5 + $0x888] ss:$16 sps:$4 sm:$0xff]  }
 0x96a   :  { %13211 = vmatpush1.bf16.msra.mxu1 %v18357_v12  ;;  %v18440_v12 = vld [vmem:[%s22860_s5 + $0x8ac] ss:$16 sps:$4 sm:$0xff]  }
 0x96b   :  { %13212 = vmatprep.subr.bf16.mxu1 %v18362_v53  ;;  %v18438_v53 = vld [vmem:[%s22860_s5 + $0x8a8] ss:$16 sps:$4 sm:$0xff]  }
 0x96e   :  { %13213 = vmatpush1.bf16.msra.mxu1 %v18360_v48  ;;  %v18443_v48 = vld [vmem:[%s22860_s5 + $0x8cc] ss:$16 sps:$4 sm:$0xff]  }
 0x96f   :  { %13214 = vmatprep.subr.bf16.mxu1 %v18365_v31  ;;  %v18441_v31 = vld [vmem:[%s22860_s5 + $0x8c8] ss:$16 sps:$4 sm:$0xff]  }
 0x972   :  { %13215 = vmatpush1.bf16.msra.mxu1 %v18363_v42  ;;  %v18446_v42 = vld [vmem:[%s22860_s5 + $0x8ec] ss:$16 sps:$4 sm:$0xff]  }
 0x973   :  { %13216 = vmatprep.subr.bf16.mxu1 %v18368_v36  ;;  %v18444_v36 = vld [vmem:[%s22860_s5 + $0x8e8] ss:$16 sps:$4 sm:$0xff]  }
 0x976   :  { %13217 = vmatpush1.bf16.msra.mxu1 %v18366_v32  ;;  %v18449_v32 = vld [vmem:[%s22860_s5 + $0x90c] ss:$16 sps:$4 sm:$0xff]  }
 0x977   :  { %13218 = vmatprep.subr.bf16.mxu1 %v18371_v20  ;;  %v18447_v20 = vld [vmem:[%s22860_s5 + $0x908] ss:$16 sps:$4 sm:$0xff]  }
 0x97a   :  { %13219 = vmatpush1.bf16.msra.mxu1 %v18369_v49  ;;  %v18452_v49 = vld [vmem:[%s22860_s5 + $0x92c] ss:$16 sps:$4 sm:$0xff]  }
 0x97b   :  { %13220 = vmatprep.subr.bf16.mxu1 %v18374_v2  ;;  %v18450_v2 = vld [vmem:[%s22860_s5 + $0x928] ss:$16 sps:$4 sm:$0xff]  }
 0x97e   :  { %13221 = vmatpush1.bf16.msra.mxu1 %v18372_v59  ;;  %v18455_v59 = vld [vmem:[%s22860_s5 + $0x94c] ss:$16 sps:$4 sm:$0xff]  }
 0x97f   :  { %13231 = vmatprep.subr.bf16.mxu1 %v18377_v58  ;;  %v18453_v58 = vld [vmem:[%s22860_s5 + $0x948] ss:$16 sps:$4 sm:$0xff]  }
 0x981   :  { %13223 = vmatmul.mubr.bf16.vlgmr.msra.gmra.mrb[112].mxu1 %v21421_v62  ;;  %v18386_v62 = vld [vmem:[%s22860_s5 + $0x66c] ss:$16 sps:$4 sm:$0xff]  }
 0x982   :  { %13232 = vmatpush1.bf16.msra.mxu1 %v18375_v50  ;;  %13263 = vmatprep.mubr.bf16.mxu1 %v21426_v9  ;;  %v18384_v9 = vld [vmem:[%s22860_s5 + $0x668] ss:$16 sps:$4 sm:$0xff]   ;;  %v18458_v50 = vld [vmem:[%s22860_s5 + $0x96c] ss:$16 sps:$4 sm:$0xff]  }
 0x983   :  { %13233 = vmatprep.subr.bf16.mxu1 %v18380_v13  ;;  %v18456_v13 = vld [vmem:[%s22860_s5 + $0x968] ss:$16 sps:$4 sm:$0xff]  }
 0x986   :  { %13234 = vmatpush1.bf16.msra.mxu1 %v18378_v24  ;;  %v18461_v24 = vld [vmem:[%s22860_s5 + $0x98c] ss:$16 sps:$4 sm:$0xff]  }
 0x987   :  { %13235 = vmatprep.subr.bf16.mxu1 %v18383_v18  ;;  %v18459_v18 = vld [vmem:[%s22860_s5 + $0x988] ss:$16 sps:$4 sm:$0xff]  }
 0x98a   :  { %13236 = vmatpush1.bf16.msra.mxu1 %v18381_v55  ;;  %v18464_v55 = vld [vmem:[%s22860_s5 + $0x9ac] ss:$16 sps:$4 sm:$0xff]  }
 0x98b   :  { %13237 = vmatprep.subr.bf16.mxu1 %v18386_v62  ;;  %v18462_v62 = vld [vmem:[%s22860_s5 + $0x9a8] ss:$16 sps:$4 sm:$0xff]  }
 0x98e   :  { %13238 = vmatpush1.bf16.msra.mxu1 %v18384_v9  ;;  %v18467_v9 = vld [vmem:[%s22860_s5 + $0x9cc] ss:$16 sps:$4 sm:$0xff]  }
 0x98f   :  { %13239 = vmatprep.subr.bf16.mxu1 %v18389_v37  ;;  %v18465_v37 = vld [vmem:[%s22860_s5 + $0x9c8] ss:$16 sps:$4 sm:$0xff]  }
 0x992   :  { %13240 = vmatpush1.bf16.msra.mxu1 %v18387_v0  ;;  %v18470_v0 = vld [vmem:[%s22860_s5 + $0x9ec] ss:$16 sps:$4 sm:$0xff]  }
 0x993   :  { %13241 = vmatprep.subr.bf16.mxu1 %v18392_v14  ;;  %v18468_v14 = vld [vmem:[%s22860_s5 + $0x9e8] ss:$16 sps:$4 sm:$0xff]  }
 0x994   :  { %v22273_v41 = vpop.f32.mrb[108].mxu1 }
 0x995   :  { %v22275_v46 = vpop.f32.mrb[109].mxu1 }
 0x996   :  { %v13105_v3 = vpop.f32.mrb[110].mxu1  ;;  %13242 = vmatpush1.bf16.msra.mxu1 %v18390_v15  ;;  %v18473_v15 = vld [vmem:[%s22860_s5 + $0xa0c] ss:$16 sps:$4 sm:$0xff]  }
 0x997   :  { %v13106_v25 = vpop.f32.mrb[111].mxu1  ;;  %13243 = vmatprep.subr.bf16.mxu1 %v18395_v8  ;;  %v18471_v8 = vld [vmem:[%s22860_s5 + $0xa08] ss:$16 sps:$4 sm:$0xff]   ;;  %v18476_v3 = vld [vmem:[%s22860_s5 + $0xa2c] ss:$16 sps:$4 sm:$0xff]  }
 0x998   :  { %v18479_v25 = vld [vmem:[%s22860_s5 + $0xa4c] ss:$16 sps:$4 sm:$0xff]  }
 0x99a   :  { %13244 = vmatpush1.bf16.msra.mxu1 %v18393_v7  ;;  %v18474_v7 = vld [vmem:[%s22860_s5 + $0xa28] ss:$16 sps:$4 sm:$0xff]  }
 0x99b   :  { %13245 = vmatprep.subr.bf16.mxu1 %v18398_v21  ;;  %v18477_v21 = vld [vmem:[%s22860_s5 + $0xa48] ss:$16 sps:$4 sm:$0xff]  }
 0x99e   :  { %13246 = vmatpush1.bf16.msra.mxu1 %v18396_v38  ;;  %v18485_v38 = vld [vmem:[%s22860_s5 + $0xa8c] ss:$16 sps:$4 sm:$0xff]  }
 0x99f   :  { %13247 = vmatprep.subr.bf16.mxu1 %v18401_v63  ;;  %v18483_v63 = vld [vmem:[%s22860_s5 + $0xa88] ss:$16 sps:$4 sm:$0xff]  }
 0x9a2   :  { %13248 = vmatpush1.bf16.msra.mxu1 %v18399_v11  ;;  %v18488_v11 = vld [vmem:[%s22860_s5 + $0xaac] ss:$16 sps:$4 sm:$0xff]  }
 0x9a3   :  { %13249 = vmatprep.subr.bf16.mxu1 %v18404_v43  ;;  %v18486_v43 = vld [vmem:[%s22860_s5 + $0xaa8] ss:$16 sps:$4 sm:$0xff]  }
 0x9a6   :  { %13250 = vmatpush1.bf16.msra.mxu1 %v18402_v40  ;;  %v18491_v40 = vld [vmem:[%s22860_s5 + $0xacc] ss:$16 sps:$4 sm:$0xff]  }
 0x9a7   :  { %13251 = vmatprep.subr.bf16.mxu1 %v18407_v19  ;;  %v18489_v19 = vld [vmem:[%s22860_s5 + $0xac8] ss:$16 sps:$4 sm:$0xff]  }
 0x9aa   :  { %13252 = vmatpush1.bf16.msra.mxu1 %v18405_v28  ;;  %v18494_v28 = vld [vmem:[%s22860_s5 + $0xaec] ss:$16 sps:$4 sm:$0xff]  }
 0x9ab   :  { %13253 = vmatprep.subr.bf16.mxu1 %v18410_v22  ;;  %v18492_v22 = vld [vmem:[%s22860_s5 + $0xae8] ss:$16 sps:$4 sm:$0xff]  }
 0x9ae   :  { %13254 = vmatpush1.bf16.msra.mxu1 %v18408_v5  ;;  %v18497_v5 = vld [vmem:[%s22860_s5 + $0xb0c] ss:$16 sps:$4 sm:$0xff]  }
 0x9af   :  { %13255 = vmatprep.subr.bf16.mxu1 %v18413_v17  ;;  %v18495_v17 = vld [vmem:[%s22860_s5 + $0xb08] ss:$16 sps:$4 sm:$0xff]  }
 0x9b2   :  { %13256 = vmatpush1.bf16.msra.mxu1 %v18411_v23  ;;  %v18500_v23 = vld [vmem:[%s22860_s5 + $0xb2c] ss:$16 sps:$4 sm:$0xff]  }
 0x9b3   :  { %13257 = vmatprep.subr.bf16.mxu1 %v18416_v4  ;;  %v18498_v4 = vld [vmem:[%s22860_s5 + $0xb28] ss:$16 sps:$4 sm:$0xff]  }
 0x9b6   :  { %13258 = vmatpush1.bf16.msra.mxu1 %v18414_v30  ;;  %v18503_v30 = vld [vmem:[%s22860_s5 + $0xb4c] ss:$16 sps:$4 sm:$0xff]  }
 0x9b7   :  { %13259 = vmatprep.subr.bf16.mxu1 %v18419_v1  ;;  %v18501_v1 = vld [vmem:[%s22860_s5 + $0xb48] ss:$16 sps:$4 sm:$0xff]  }
 0x9ba   :  { %13260 = vmatpush1.bf16.msra.mxu1 %v18417_v10  ;;  %v18506_v10 = vld [vmem:[%s22860_s5 + $0xb6c] ss:$16 sps:$4 sm:$0xff]  }
 0x9bb   :  { %13261 = vmatprep.subr.bf16.mxu1 %v18422_v47  ;;  %v18504_v47 = vld [vmem:[%s22860_s5 + $0xb68] ss:$16 sps:$4 sm:$0xff]  }
 0x9be   :  { %13262 = vmatpush1.bf16.msra.mxu1 %v18420_v56  ;;  %v18509_v56 = vld [vmem:[%s22860_s5 + $0xb8c] ss:$16 sps:$4 sm:$0xff]  }
 0x9bf   :  { %13272 = vmatprep.subr.bf16.mxu1 %v18425_v27  ;;  %v18507_v27 = vld [vmem:[%s22860_s5 + $0xb88] ss:$16 sps:$4 sm:$0xff]  }
 0x9c1   :  { %13264 = vmatmul.mubr.bf16.vlgmr.msra.gmra.mrb[112].mxu1 %v21525_v29  ;;  %v18434_v29 = vld [vmem:[%s22860_s5 + $0x86c] ss:$16 sps:$4 sm:$0xff]  }
 0x9c2   :  { %13273 = vmatpush1.bf16.msra.mxu1 %v18423_v51  ;;  %13304 = vmatprep.mubr.bf16.mxu1 %v21530_v60  ;;  %v18432_v60 = vld [vmem:[%s22860_s5 + $0x868] ss:$16 sps:$4 sm:$0xff]   ;;  %v18512_v51 = vld [vmem:[%s22860_s5 + $0xbac] ss:$16 sps:$4 sm:$0xff]  }
 0x9c3   :  { %13274 = vmatprep.subr.bf16.mxu1 %v18428_v45  ;;  %v18510_v45 = vld [vmem:[%s22860_s5 + $0xba8] ss:$16 sps:$4 sm:$0xff]  }
 0x9c6   :  { %13275 = vmatpush1.bf16.msra.mxu1 %v18426_v39  ;;  %v18515_v39 = vld [vmem:[%s22860_s5 + $0xbcc] ss:$16 sps:$4 sm:$0xff]  }
 0x9c7   :  { %13276 = vmatprep.subr.bf16.mxu1 %v18431_v61  ;;  %v18513_v61 = vld [vmem:[%s22860_s5 + $0xbc8] ss:$16 sps:$4 sm:$0xff]  }
 0x9ca   :  { %13277 = vmatpush1.bf16.msra.mxu1 %v18429_v54  ;;  %v18518_v54 = vld [vmem:[%s22860_s5 + $0xbec] ss:$16 sps:$4 sm:$0xff]  }
 0x9cb   :  { %13278 = vmatprep.subr.bf16.mxu1 %v18434_v29  ;;  %v18516_v29 = vld [vmem:[%s22860_s5 + $0xbe8] ss:$16 sps:$4 sm:$0xff]  }
 0x9ce   :  { %13279 = vmatpush1.bf16.msra.mxu1 %v18432_v60  ;;  %v18521_v60 = vld [vmem:[%s22860_s5 + $0xc0c] ss:$16 sps:$4 sm:$0xff]  }
 0x9cf   :  { %13280 = vmatprep.subr.bf16.mxu1 %v18437_v57  ;;  %v18519_v57 = vld [vmem:[%s22860_s5 + $0xc08] ss:$16 sps:$4 sm:$0xff]  }
 0x9d2   :  { %13281 = vmatpush1.bf16.msra.mxu1 %v18435_v44  ;;  %v18524_v44 = vld [vmem:[%s22860_s5 + $0xc2c] ss:$16 sps:$4 sm:$0xff]  }
 0x9d3   :  { %13282 = vmatprep.subr.bf16.mxu1 %v18440_v12  ;;  %v18522_v12 = vld [vmem:[%s22860_s5 + $0xc28] ss:$16 sps:$4 sm:$0xff]  }
 0x9d6   :  { %13283 = vmatpush1.bf16.msra.mxu1 %v18438_v53  ;;  %v18527_v53 = vld [vmem:[%s22860_s5 + $0xc4c] ss:$16 sps:$4 sm:$0xff]  }
 0x9d7   :  { %13284 = vmatprep.subr.bf16.mxu1 %v18443_v48  ;;  %v18525_v48 = vld [vmem:[%s22860_s5 + $0xc48] ss:$16 sps:$4 sm:$0xff]  }
 0x9da   :  { %13285 = vmatpush1.bf16.msra.mxu1 %v18441_v31  ;;  %v18533_v31 = vld [vmem:[%s22860_s5 + $0xc8c] ss:$16 sps:$4 sm:$0xff]  }
 0x9db   :  { %13286 = vmatprep.subr.bf16.mxu1 %v18446_v42  ;;  %v18531_v42 = vld [vmem:[%s22860_s5 + $0xc88] ss:$16 sps:$4 sm:$0xff]  }
 0x9de   :  { %13287 = vmatpush1.bf16.msra.mxu1 %v18444_v36  ;;  %v18536_v36 = vld [vmem:[%s22860_s5 + $0xcac] ss:$16 sps:$4 sm:$0xff]  }
 0x9df   :  { %13288 = vmatprep.subr.bf16.mxu1 %v18449_v32  ;;  %v18534_v32 = vld [vmem:[%s22860_s5 + $0xca8] ss:$16 sps:$4 sm:$0xff]  }
 0x9e2   :  { %13289 = vmatpush1.bf16.msra.mxu1 %v18447_v20  ;;  %v18539_v20 = vld [vmem:[%s22860_s5 + $0xccc] ss:$16 sps:$4 sm:$0xff]  }
 0x9e3   :  { %13290 = vmatprep.subr.bf16.mxu1 %v18452_v49  ;;  %v18537_v49 = vld [vmem:[%s22860_s5 + $0xcc8] ss:$16 sps:$4 sm:$0xff]  }
 0x9e6   :  { %13291 = vmatpush1.bf16.msra.mxu1 %v18450_v2  ;;  %v18542_v2 = vld [vmem:[%s22860_s5 + $0xcec] ss:$16 sps:$4 sm:$0xff]  }
 0x9e7   :  { %13292 = vmatprep.subr.bf16.mxu1 %v18455_v59  ;;  %v18540_v59 = vld [vmem:[%s22860_s5 + $0xce8] ss:$16 sps:$4 sm:$0xff]  }
 0x9ea   :  { %13293 = vmatpush1.bf16.msra.mxu1 %v18453_v58  ;;  %v18545_v58 = vld [vmem:[%s22860_s5 + $0xd0c] ss:$16 sps:$4 sm:$0xff]  }
 0x9eb   :  { %13294 = vmatprep.subr.bf16.mxu1 %v18458_v50  ;;  %v18543_v50 = vld [vmem:[%s22860_s5 + $0xd08] ss:$16 sps:$4 sm:$0xff]  }
 0x9ee   :  { %13295 = vmatpush1.bf16.msra.mxu1 %v18456_v13  ;;  %v18548_v13 = vld [vmem:[%s22860_s5 + $0xd2c] ss:$16 sps:$4 sm:$0xff]  }
 0x9ef   :  { %13296 = vmatprep.subr.bf16.mxu1 %v18461_v24  ;;  %v18546_v24 = vld [vmem:[%s22860_s5 + $0xd28] ss:$16 sps:$4 sm:$0xff]  }
 0x9f2   :  { %13297 = vmatpush1.bf16.msra.mxu1 %v18459_v18  ;;  %v18551_v18 = vld [vmem:[%s22860_s5 + $0xd4c] ss:$16 sps:$4 sm:$0xff]  }
 0x9f3   :  { %13298 = vmatprep.subr.bf16.mxu1 %v18464_v55  ;;  %v18549_v55 = vld [vmem:[%s22860_s5 + $0xd48] ss:$16 sps:$4 sm:$0xff]  }
 0x9f6   :  { %13299 = vmatpush1.bf16.msra.mxu1 %v18462_v62  ;;  %v18554_v62 = vld [vmem:[%s22860_s5 + $0xd6c] ss:$16 sps:$4 sm:$0xff]  }
 0x9f7   :  { %13300 = vmatprep.subr.bf16.mxu1 %v18467_v9  ;;  %v18552_v9 = vld [vmem:[%s22860_s5 + $0xd68] ss:$16 sps:$4 sm:$0xff]  }
 0x9fa   :  { %13301 = vmatpush1.bf16.msra.mxu1 %v18465_v37  ;;  %v18557_v37 = vld [vmem:[%s22860_s5 + $0xd8c] ss:$16 sps:$4 sm:$0xff]  }
 0x9fb   :  { %13302 = vmatprep.subr.bf16.mxu1 %v18470_v0  ;;  %v18555_v0 = vld [vmem:[%s22860_s5 + $0xd88] ss:$16 sps:$4 sm:$0xff]  }
 0x9fe   :  { %13303 = vmatpush1.bf16.msra.mxu1 %v18468_v14  ;;  %v18560_v14 = vld [vmem:[%s22860_s5 + $0xdac] ss:$16 sps:$4 sm:$0xff]  }
 0x9ff   :  { %13313 = vmatprep.subr.bf16.mxu1 %v18473_v15  ;;  %v18558_v15 = vld [vmem:[%s22860_s5 + $0xda8] ss:$16 sps:$4 sm:$0xff]  }
 0xa01   :  { %13305 = vmatmul.mubr.bf16.vlgmr.msra.gmra.mrb[112].mxu1 %v21629_v26  ;;  %v18482_v26 = vld [vmem:[%s22860_s5 + $0xa6c] ss:$16 sps:$4 sm:$0xff]  }
 0xa02   :  { %13314 = vmatpush1.bf16.msra.mxu1 %v18471_v8  ;;  %13345 = vmatprep.mubr.bf16.mxu1 %v21634_v34  ;;  %v18480_v34 = vld [vmem:[%s22860_s5 + $0xa68] ss:$16 sps:$4 sm:$0xff]   ;;  %v18563_v8 = vld [vmem:[%s22860_s5 + $0xdcc] ss:$16 sps:$4 sm:$0xff]  }
 0xa03   :  { %13315 = vmatprep.subr.bf16.mxu1 %v18476_v3  ;;  %v18561_v3 = vld [vmem:[%s22860_s5 + $0xdc8] ss:$16 sps:$4 sm:$0xff]  }
 0xa06   :  { %13316 = vmatpush1.bf16.msra.mxu1 %v18474_v7  ;;  %v18566_v7 = vld [vmem:[%s22860_s5 + $0xdec] ss:$16 sps:$4 sm:$0xff]  }
 0xa07   :  { %13317 = vmatprep.subr.bf16.mxu1 %v18479_v25  ;;  %v18564_v25 = vld [vmem:[%s22860_s5 + $0xde8] ss:$16 sps:$4 sm:$0xff]  }
 0xa0a   :  { %13318 = vmatpush1.bf16.msra.mxu1 %v18477_v21  ;;  %v18569_v21 = vld [vmem:[%s22860_s5 + $0xe0c] ss:$16 sps:$4 sm:$0xff]  }
 0xa0b   :  { %13319 = vmatprep.subr.bf16.mxu1 %v18482_v26  ;;  %v18567_v26 = vld [vmem:[%s22860_s5 + $0xe08] ss:$16 sps:$4 sm:$0xff]  }
 0xa0e   :  { %13320 = vmatpush1.bf16.msra.mxu1 %v18480_v34  ;;  %v18572_v34 = vld [vmem:[%s22860_s5 + $0xe2c] ss:$16 sps:$4 sm:$0xff]  }
 0xa0f   :  { %13321 = vmatprep.subr.bf16.mxu1 %v18485_v38  ;;  %v18570_v38 = vld [vmem:[%s22860_s5 + $0xe28] ss:$16 sps:$4 sm:$0xff]  }
 0xa12   :  { %13322 = vmatpush1.bf16.msra.mxu1 %v18483_v63  ;;  %v18575_v63 = vld [vmem:[%s22860_s5 + $0xe4c] ss:$16 sps:$4 sm:$0xff]  }
 0xa13   :  { %13323 = vmatprep.subr.bf16.mxu1 %v18488_v11  ;;  %v18573_v11 = vld [vmem:[%s22860_s5 + $0xe48] ss:$16 sps:$4 sm:$0xff]  }
 0xa16   :  { %13324 = vmatpush1.bf16.msra.mxu1 %v18486_v43  ;;  %v18581_v43 = vld [vmem:[%s22860_s5 + $0xe8c] ss:$16 sps:$4 sm:$0xff]  }
 0xa17   :  { %13325 = vmatprep.subr.bf16.mxu1 %v18491_v40  ;;  %v18579_v40 = vld [vmem:[%s22860_s5 + $0xe88] ss:$16 sps:$4 sm:$0xff]  }
 0xa1a   :  { %13326 = vmatpush1.bf16.msra.mxu1 %v18489_v19  ;;  %v18584_v19 = vld [vmem:[%s22860_s5 + $0xeac] ss:$16 sps:$4 sm:$0xff]  }
 0xa1b   :  { %13327 = vmatprep.subr.bf16.mxu1 %v18494_v28  ;;  %v18582_v28 = vld [vmem:[%s22860_s5 + $0xea8] ss:$16 sps:$4 sm:$0xff]  }
 0xa1e   :  { %13328 = vmatpush1.bf16.msra.mxu1 %v18492_v22  ;;  %v18587_v22 = vld [vmem:[%s22860_s5 + $0xecc] ss:$16 sps:$4 sm:$0xff]  }
 0xa1f   :  { %13329 = vmatprep.subr.bf16.mxu1 %v18497_v5  ;;  %v18585_v5 = vld [vmem:[%s22860_s5 + $0xec8] ss:$16 sps:$4 sm:$0xff]  }
 0xa22   :  { %13330 = vmatpush1.bf16.msra.mxu1 %v18495_v17  ;;  %v18590_v17 = vld [vmem:[%s22860_s5 + $0xeec] ss:$16 sps:$4 sm:$0xff]  }
 0xa23   :  { %13331 = vmatprep.subr.bf16.mxu1 %v18500_v23  ;;  %v18588_v23 = vld [vmem:[%s22860_s5 + $0xee8] ss:$16 sps:$4 sm:$0xff]  }
 0xa26   :  { %13332 = vmatpush1.bf16.msra.mxu1 %v18498_v4  ;;  %v18593_v4 = vld [vmem:[%s22860_s5 + $0xf0c] ss:$16 sps:$4 sm:$0xff]  }
 0xa27   :  { %13333 = vmatprep.subr.bf16.mxu1 %v18503_v30  ;;  %v18591_v30 = vld [vmem:[%s22860_s5 + $0xf08] ss:$16 sps:$4 sm:$0xff]  }
 0xa2a   :  { %13334 = vmatpush1.bf16.msra.mxu1 %v18501_v1  ;;  %v18596_v1 = vld [vmem:[%s22860_s5 + $0xf2c] ss:$16 sps:$4 sm:$0xff]  }
 0xa2b   :  { %13335 = vmatprep.subr.bf16.mxu1 %v18506_v10  ;;  %v18594_v10 = vld [vmem:[%s22860_s5 + $0xf28] ss:$16 sps:$4 sm:$0xff]  }
 0xa2e   :  { %13336 = vmatpush1.bf16.msra.mxu1 %v18504_v47  ;;  %v18599_v47 = vld [vmem:[%s22860_s5 + $0xf4c] ss:$16 sps:$4 sm:$0xff]  }
 0xa2f   :  { %13337 = vmatprep.subr.bf16.mxu1 %v18509_v56  ;;  %v18597_v56 = vld [vmem:[%s22860_s5 + $0xf48] ss:$16 sps:$4 sm:$0xff]  }
 0xa32   :  { %13338 = vmatpush1.bf16.msra.mxu1 %v18507_v27  ;;  %v18602_v27 = vld [vmem:[%s22860_s5 + $0xf6c] ss:$16 sps:$4 sm:$0xff]  }
 0xa33   :  { %13339 = vmatprep.subr.bf16.mxu1 %v18512_v51  ;;  %v10200_v51 = vlaneseq }
 0xa36   :  { %13340 = vmatpush1.bf16.msra.mxu1 %v18510_v45  ;;  %v18600_v45 = vld [vmem:[%s22860_s5 + $0xf68] ss:$16 sps:$4 sm:$0xff]  }
 0xa37   :  { %13341 = vmatprep.subr.bf16.mxu1 %v18515_v39  ;;  %v18605_v39 = vld [vmem:[%s22860_s5 + $0xf8c] ss:$16 sps:$4 sm:$0xff]  }
 0xa3a   :  { %13342 = vmatpush1.bf16.msra.mxu1 %v18513_v61  ;;  %v22705_v61 = vshrl.u32 %v10200_v51, 7 }
 0xa3b   :  { %13343 = vmatprep.subr.bf16.mxu1 %v18518_v54  ;;  %v18603_v54 = vld [vmem:[%s22860_s5 + $0xf88] ss:$16 sps:$4 sm:$0xff]  }
 0xa3e   :  { %13344 = vmatpush1.bf16.msra.mxu1 %v18516_v29  ;;  %v18608_v29 = vld [vmem:[%s22860_s5 + $0xfac] ss:$16 sps:$4 sm:$0xff]  }
 0xa3f   :  { %13354 = vmatprep.subr.bf16.mxu1 %v18521_v60  ;;  %v10206_v60 = vsub.s32 1, %v22705_v61 }
 0xa41   :  { %13346 = vmatmul.mubr.bf16.vlgmr.msra.gmra.mrb[112].mxu1 %v21733_v52  ;;  %v18530_v52 = vld [vmem:[%s22860_s5 + $0xc6c] ss:$16 sps:$4 sm:$0xff]  }
 0xa42   :  { %13355 = vmatpush1.bf16.msra.mxu1 %v18519_v57  ;;  %13386 = vmatprep.mubr.bf16.mxu1 %v21738_v16  ;;  %v18528_v16 = vld [vmem:[%s22860_s5 + $0xc68] ss:$16 sps:$4 sm:$0xff]   ;;  %v22717_v57 = vld [vmem:[%s22861_s6] sm:$0xf] }
 0xa43   :  { %13356 = vmatprep.subr.bf16.mxu1 %v18524_v44  ;;  %v18606_v44 = vld [vmem:[%s22860_s5 + $0xfa8] ss:$16 sps:$4 sm:$0xff]  }
 0xa46   :  { %13357 = vmatpush1.bf16.msra.mxu1 %v18522_v12  ;;  %v18611_v12 = vld [vmem:[%s22860_s5 + $0xfcc] ss:$16 sps:$4 sm:$0xff]  }
 0xa47   :  { %13358 = vmatprep.subr.bf16.mxu1 %v18527_v53  ;;  %v10207_v53 = vrot.slane %v22717_v57, %v10206_v60 }
 0xa4a   :  { %13359 = vmatpush1.bf16.msra.mxu1 %v18525_v48  ;;  %v18609_v48 = vld [vmem:[%s22860_s5 + $0xfc8] ss:$16 sps:$4 sm:$0xff]  }
 0xa4b   :  { %13360 = vmatprep.subr.bf16.mxu1 %v18530_v52  ;;  %v18614_v52 = vld [vmem:[%s22860_s5 + $0xfec] ss:$16 sps:$4 sm:$0xff]  }
 0xa4e   :  { %13361 = vmatpush1.bf16.msra.mxu1 %v18528_v16  ;;  %v16906_v16 = vadd.f32 %v22275_v46, %v10207_v53  ;;  %v18617_v46 = vld [vmem:[%s22862_s7 + $0x48] sm:$0xff]  }
 0xa4f   :  { %13362 = vmatprep.subr.bf16.mxu1 %v18533_v31  ;;  %v18612_v31 = vld [vmem:[%s22860_s5 + $0xfe8] ss:$16 sps:$4 sm:$0xff]  }
 0xa52   :  { %13363 = vmatpush1.bf16.msra.mxu1 %v18531_v42  ;;  %v18615_v42 = vld [vmem:[%s22862_s7 + $0x40] sm:$0xff]  }
 0xa53   :  { %13364 = vmatprep.subr.bf16.mxu1 %v18536_v36  ;;  %v13437_v36 = vmax.f32 %v16906_v16, 0.0 }
 0xa56   :  { %13365 = vmatpush1.bf16.msra.mxu1 %v18534_v32  ;;  %v18616_v32 = vld [vmem:[%s22862_s7] sm:$0xff]  }
 0xa57   :  { %13366 = vmatprep.subr.bf16.mxu1 %v18539_v20  ;;  %v13441_v20 = vpack.c.bf16 %v13437_v36, %v13437_v36 }
 0xa5a   :  { %13367 = vmatpush1.bf16.msra.mxu1 %v18537_v49  ;;  %v18618_v49 = vld [vmem:[%s22862_s7 + $0x8] sm:$0xff]  }
 0xa5b   :  { %13368 = vmatprep.subr.bf16.mxu1 %v18542_v2  ;;  %v18619_v2 = vld [vmem:[%s22862_s7 + $0x50] sm:$0xff]  }
 0xa5e   :  { %13369 = vmatpush1.bf16.msra.mxu1 %v18540_v59  ;;  %v18620_v59 = vld [vmem:[%s22862_s7 + $0x10] sm:$0xff]  }
 0xa5f   :  { %13370 = vmatprep.subr.bf16.mxu1 %v18545_v58  ;;  %v18622_v58 = vld [vmem:[%s22862_s7 + $0x18] sm:$0xff]  }
 0xa62   :  { %13371 = vmatpush1.bf16.msra.mxu1 %v18543_v50  ;;  %v18623_v50 = vld [vmem:[%s22862_s7 + $0x60] sm:$0xff]  }
 0xa63   :  { %13372 = vmatprep.subr.bf16.mxu1 %v18548_v13  ;;  %v18624_v13 = vld [vmem:[%s22862_s7 + $0x20] sm:$0xff]  }
 0xa66   :  { %13373 = vmatpush1.bf16.msra.mxu1 %v18546_v24  ;;  %v10202_v24 = vsub.s32 0, %v22705_v61 }
 0xa67   :  { %13374 = vmatprep.subr.bf16.mxu1 %v18551_v18  ;;  %v18625_v18 = vld [vmem:[%s22862_s7 + $0x68] sm:$0xff]  }
 0xa6a   :  { %13375 = vmatpush1.bf16.msra.mxu1 %v18549_v55  ;;  %v18626_v55 = vld [vmem:[%s22862_s7 + $0x28] sm:$0xff]  }
 0xa6b   :  { %13376 = vmatprep.subr.bf16.mxu1 %v18554_v62  ;;  %v10203_v62 = vrot.slane %v22717_v57, %v10202_v24 }
 0xa6e   :  { %13377 = vmatpush1.bf16.msra.mxu1 %v18552_v9  ;;  %v18627_v9 = vld [vmem:[%s22862_s7 + $0x70] sm:$0xff]  }
 0xa6f   :  { %13378 = vmatprep.subr.bf16.mxu1 %v18557_v37  ;;  %v18628_v37 = vld [vmem:[%s22862_s7 + $0x30] sm:$0xff]  }
 0xa72   :  { %13379 = vmatpush1.bf16.msra.mxu1 %v18555_v0  ;;  %v16905_v0 = vadd.f32 %v22273_v41, %v10203_v62  ;;  %v18632_v41 = vld [vmem:[%s22862_s7 + $0x80] sm:$0xff]  }
 0xa73   :  { %13380 = vmatprep.subr.bf16.mxu1 %v18560_v14  ;;  %v18629_v14 = vld [vmem:[%s22862_s7 + $0x78] sm:$0xff]  }
 0xa76   :  { %13381 = vmatpush1.bf16.msra.mxu1 %v18558_v15  ;;  %v18630_v15 = vld [vmem:[%s22862_s7 + $0x38] sm:$0xff]  }
 0xa77   :  { %13382 = vmatprep.subr.bf16.mxu1 %v18563_v8  ;;  %v13436_v8 = vmax.f32 %v16905_v0, 0.0 }
 0xa7a   :  { %13383 = vmatpush1.bf16.msra.mxu1 %v18561_v3  ;;  %v18631_v3 = vld [vmem:[%s22862_s7 + $0xc0] sm:$0xff]  }
 0xa7b   :  { %13384 = vmatprep.subr.bf16.mxu1 %v18566_v7  ;;  %v13440_v7 = vpack.c.bf16 %v13436_v8, %v13436_v8 }
 0xa7e   :  { %13385 = vmatpush1.bf16.msra.mxu1 %v18564_v25  ;;  %v18633_v25 = vld [vmem:[%s22862_s7 + $0xc8] sm:$0xff]  }
 0xa7f   :  { %13395 = vmatprep.subr.bf16.mxu1 %v18569_v21  ;;  %v18634_v21 = vld [vmem:[%s22862_s7 + $0x88] sm:$0xff]  }
 0xa81   :  { %13387 = vmatmul.mubr.bf16.vlgmr.msra.gmra.mrb[112].mxu1 %v21837_v35  ;;  %v18578_v35 = vld [vmem:[%s22860_s5 + $0xe6c] ss:$16 sps:$4 sm:$0xff]  }
 0xa82   :  { %13396 = vmatpush1.bf16.msra.mxu1 %v18567_v26  ;;  %13427 = vmatprep.mubr.bf16.mxu1 %v21842_v33  ;;  %v18576_v33 = vld [vmem:[%s22860_s5 + $0xe68] ss:$16 sps:$4 sm:$0xff]   ;;  %v18635_v26 = vld [vmem:[%s22862_s7 + $0xd0] sm:$0xff]  }
 0xa83   :  { %13397 = vmatprep.subr.bf16.mxu1 %v18572_v34  ;;  %v18636_v34 = vld [vmem:[%s22862_s7 + $0x90] sm:$0xff]  }
 0xa86   :  { %13398 = vmatpush1.bf16.msra.mxu1 %v18570_v38  ;;  %v18637_v38 = vld [vmem:[%s22862_s7 + $0xd8] sm:$0xff]  }
 0xa87   :  { %13399 = vmatprep.subr.bf16.mxu1 %v18575_v63  ;;  %v18638_v63 = vld [vmem:[%s22862_s7 + $0x98] sm:$0xff]  }
 0xa8a   :  { %13400 = vmatpush1.bf16.msra.mxu1 %v18573_v11  ;;  %v18639_v11 = vld [vmem:[%s22862_s7 + $0xe0] sm:$0xff]  }
 0xa8b   :  { %13401 = vmatprep.subr.bf16.mxu1 %v18578_v35  ;;  %v18640_v35 = vld [vmem:[%s22862_s7 + $0xa0] sm:$0xff]  }
 0xa8e   :  { %13402 = vmatpush1.bf16.msra.mxu1 %v18576_v33  ;;  %v18641_v33 = vld [vmem:[%s22862_s7 + $0xe8] sm:$0xff]  }
 0xa8f   :  { %13403 = vmatprep.subr.bf16.mxu1 %v18581_v43  ;;  %v18642_v43 = vld [vmem:[%s22862_s7 + $0xa8] sm:$0xff]  }
 0xa92   :  { %13404 = vmatpush1.bf16.msra.mxu1 %v18579_v40  ;;  %v18643_v40 = vld [vmem:[%s22862_s7 + $0xf0] sm:$0xff]  }
 0xa93   :  { %13405 = vmatprep.subr.bf16.mxu1 %v18584_v19  ;;  %v18644_v19 = vld [vmem:[%s22862_s7 + $0xb0] sm:$0xff]  }
 0xa96   :  { %13406 = vmatpush1.bf16.msra.mxu1 %v18582_v28  ;;  %v18645_v28 = vld [vmem:[%s22862_s7 + $0xf8] sm:$0xff]  }
 0xa97   :  { %13407 = vmatprep.subr.bf16.mxu1 %v18587_v22  ;;  %v18646_v22 = vld [vmem:[%s22862_s7 + $0xb8] sm:$0xff]  }
 0xa9a   :  { %13408 = vmatpush1.bf16.msra.mxu1 %v18585_v5  ;;  %v10210_v5 = vsub.s32 2, %v22705_v61 }
 0xa9b   :  { %13409 = vmatprep.subr.bf16.mxu1 %v18590_v17  ;;  %v10214_v17 = vsub.s32 3, %v22705_v61 }
 0xa9e   :  { %13410 = vmatpush1.bf16.msra.mxu1 %v18588_v23  ;;  %v10211_v23 = vrot.slane %v22717_v57, %v10210_v5 }
 0xa9f   :  { %13411 = vmatprep.subr.bf16.mxu1 %v18593_v4  ;;  %v10215_v4 = vrot.slane %v22717_v57, %v10214_v17  ;;  %v15016_v57 = vld [vmem:[%s22863_s8] ss:$0 sm:$0xff]  ;;  %s18786_s8 = smov [#allocation5]  }
 0xaa0   :  { %s13806_s15 = sshll.u32 %s18786_s8, 4  ;;  %s13807_s15 = int_to_ptr.vmem [resolvable:$true] %s13806_s15 }
 0xaa1   :  { %s18761_s16 = scalar_lea.vmem %s13807_s15, 32  ;;  %p18766_p1 = scmp.lt.s32.totalorder %s13807_s15, %s13807_s15 }
 0xaa2   :  { %13412 = vmatpush1.bf16.msra.mxu1 %v18591_v30  ;;  %p18762_p0 = scmp.ne.s32.totalorder %s13807_s15, %s18761_s16  ;;  %p18767_p2 = scmp.lt.s32.totalorder %s18761_s16, %s18761_s16 }
 0xaa3   :  { %13413 = vmatprep.subr.bf16.mxu1 %v18596_v1 }
 0xaa4   :  { %p18768_p3 = por %p18767_p2, %p18766_p1 }
 0xaa6   :  { %13414 = vmatpush1.bf16.msra.mxu1 %v18594_v10  ;;  %p18769_p4 = pnand %p18768_p3, %p18762_p0 }
 0xaa7   :  { %13415 = vmatprep.subr.bf16.mxu1 %v18599_v47 }
 0xaaa   :  { %13416 = vmatpush1.bf16.msra.mxu1 %v18597_v56 }
 0xaab   :  { %13417 = vmatprep.subr.bf16.mxu1 %v18602_v27 }
 0xaae   :  { %13418 = vmatpush1.bf16.msra.mxu1 %v18600_v45 }
 0xaaf   :  { %13419 = vmatprep.subr.bf16.mxu1 %v18605_v39 }
 0xab2   :  { %13420 = vmatpush1.bf16.msra.mxu1 %v18603_v54 }
 0xab3   :  { %13421 = vmatprep.subr.bf16.mxu1 %v18608_v29 }
 0xab6   :  { %13422 = vmatpush1.bf16.msra.mxu1 %v18606_v44 }
 0xab7   :  { %13423 = vmatprep.subr.bf16.mxu1 %v18611_v12 }
 0xaba   :  { %13424 = vmatpush1.bf16.msra.mxu1 %v18609_v48 }
 0xabb   :  { %13425 = vmatprep.subr.bf16.mxu1 %v18614_v52 }
 0xabe   :  { %13426 = vmatpush1.bf16.msra.mxu1 %v18612_v31 }
 0xabf   :  { %15653 = vmatprep.subr.bf16.mxu1 %v18615_v42 }
 0xac1   :  { %13428 = vmatmul.mubr.bf16.vlgmr.msra.gmra.mrb[112].mxu1 %v21942_v6  ;;  %v18621_v6 = vld [vmem:[%s22862_s7 + $0x58] sm:$0xff]  }
 0xac2   :  { %15654 = vmatpush3.bf16.msra.mxu1 %v18616_v32  ;;  %13739 = vmatprep.mubr.bf16.mxu1 %v13441_v20 }
 0xac3   :  { %15655 = vmatprep.subr.bf16.mxu1 %v18617_v46 }
 0xac6   :  { %15656 = vmatpush3.bf16.msra.mxu1 %v18618_v49 }
 0xac7   :  { %15657 = vmatprep.subr.bf16.mxu1 %v18619_v2 }
 0xaca   :  { %15658 = vmatpush3.bf16.msra.mxu1 %v18620_v59 }
 0xacb   :  { %15659 = vmatprep.subr.bf16.mxu1 %v18621_v6 }
 0xace   :  { %15660 = vmatpush3.bf16.msra.mxu1 %v18622_v58 }
 0xacf   :  { %15661 = vmatprep.subr.bf16.mxu1 %v18623_v50 }
 0xad2   :  { %15662 = vmatpush3.bf16.msra.mxu1 %v18624_v13 }
 0xad3   :  { %15663 = vmatprep.subr.bf16.mxu1 %v18625_v18 }
 0xad6   :  { %15664 = vmatpush3.bf16.msra.mxu1 %v18626_v55 }
 0xad7   :  { %15665 = vmatprep.subr.bf16.mxu1 %v18627_v9 }
 0xada   :  { %15666 = vmatpush3.bf16.msra.mxu1 %v18628_v37 }
 0xadb   :  { %15667 = vmatprep.subr.bf16.mxu1 %v18629_v14 }
 0xade   :  { %15668 = vmatpush3.bf16.msra.mxu1 %v18630_v15 }
 0xadf   :  { %15675 = vmatprep.subr.bf16.mxu1 %v18631_v3 }
 0xae1   :  { %13740 = vmatmul.mubr.bf16.vlgmr.msra.gmra.mrb[116].mxu1 %v13440_v7 }
 0xae2   :  { %15676 = vmatpush3.bf16.msra.mxu1 %v18632_v41 }
 0xae3   :  { %15677 = vmatprep.subr.bf16.mxu1 %v18633_v25 }
 0xae6   :  { %15678 = vmatpush3.bf16.msra.mxu1 %v18634_v21 }
 0xae7   :  { %15679 = vmatprep.subr.bf16.mxu1 %v18635_v26 }
 0xaea   :  { %15680 = vmatpush3.bf16.msra.mxu1 %v18636_v34 }
 0xaeb   :  { %15681 = vmatprep.subr.bf16.mxu1 %v18637_v38 }
 0xaee   :  { %15682 = vmatpush3.bf16.msra.mxu1 %v18638_v63 }
 0xaef   :  { %15683 = vmatprep.subr.bf16.mxu1 %v18639_v11 }
 0xaf2   :  { %15684 = vmatpush3.bf16.msra.mxu1 %v18640_v35 }
 0xaf3   :  { %15685 = vmatprep.subr.bf16.mxu1 %v18641_v33 }
 0xaf6   :  { %15686 = vmatpush3.bf16.msra.mxu1 %v18642_v43 }
 0xaf7   :  { %15687 = vmatprep.subr.bf16.mxu1 %v18643_v40 }
 0xafa   :  { %15688 = vmatpush3.bf16.msra.mxu1 %v18644_v19 }
 0xafb   :  { %15689 = vmatprep.subr.bf16.mxu1 %v18645_v28 }
 0xafe   :  { %15690 = vmatpush3.bf16.msra.mxu1 %v18646_v22 }
 0xb94   :  { %v13429_v30 = vpop.f32.mrb[112].mxu1 }
 0xb95   :  { %v16907_v1 = vadd.f32 %v13429_v30, %v10211_v23  ;;  %v13431_v10 = vpop.f32.mrb[113].mxu1 }
 0xb96   :  { %v16908_v47 = vadd.f32 %v13431_v10, %v10215_v4  ;;  %v13433_v56 = vpop.f32.mrb[114].mxu1 }
 0xb97   :  { %v13438_v27 = vmax.f32 %v16907_v1, 0.0  ;;  %v13434_v51 = vpop.f32.mrb[115].mxu1 }
 0xb98   :  { %v13439_v45 = vmax.f32 %v16908_v47, 0.0 }
 0xb99   :  { %v13442_v54 = vpack.c.bf16 %v13438_v27, %v13438_v27 }
 0xb9a   :  { %v13443_v39 = vpack.c.bf16 %v13439_v45, %v13439_v45 }
 0xb9c   :  { %13779 = vmatprep.mubr.bf16.mxu1 %v13443_v39 }
 0xb9d   :  { %13780 = vmatmul.mubr.bf16.vlgmr.msra.gmra.mrb[120].mxu1 %v13442_v54 }
 0xbb4   :  { %v15669_v29 = vpop.f32.mrb[116].mxu1 }
 0xbb5   :  { %v15670_v60 = vpop.f32.mrb[117].mxu1 }
 0xbb6   :  { %v15671_v44 = vadd.f32 %v15670_v60, %v15669_v29  ;;  %v15672_v61 = vpop.f32.mrb[118].mxu1 }
 0xbb7   :  { %v15673_v12 = vpop.f32.mrb[119].mxu1 }
 0xbb8   :  { %v13742_v52 = vadd.f32 %v15671_v44, %v15016_v57 }
 0xc70   :  { %v15691_v53 = vpop.f32.mrb[120].mxu1 }
 0xc71   :  { %v15692_v48 = vpop.f32.mrb[121].mxu1 }
 0xc72   :  { %v15693_v16 = vadd.f32 %v15692_v48, %v15691_v53  ;;  %v15694_v31 = vpop.f32.mrb[122].mxu1 }
 0xc73   :  { %v15695_v42 = vpop.f32.mrb[123].mxu1 }
 0xc74   :  { %v13782_v36 = vadd.f32 %v15693_v16, %v13742_v52 }
 0xc76   :  { %v13788_v32 = vsel %vm13787_vm0, %v13782_v36, -inf }
 0xc77   :  { %13789 = vmax.xlane.f32.xlu0 %v13788_v32 }
 0xd04   :  { %v13790_v46 = vpop.xlane.xlu0 %13789 }
 0xd05   :  { %v13791_v20 = vsub.f32 %v13782_v36, %v13790_v46 }
 0xd07   :  { %v13792_v49 = vmul.f32 1.442695, %v13791_v20 }
 0xd09   :  { %18647 = vpow2.f32 %v13792_v49 }
 0xd13   :  { %v18648_v2 = vpop.eup %18647 }
 0xd14   :  { %v13794_v59 = vsel %vm13787_vm0, %v18648_v2, 0.0 }
 0xd15   :  { %13795 = vadd.xlane.f32.xlu0 %v13794_v59 }
 0xda2   :  { %v13796_v6 = vpop.xlane.xlu0 %13795 }
 0xda3   :  { %18649 = vrcp.f32 %v13796_v6 }
 0xdad   :  { %v18650_v58 = vpop.eup %18649 }
 0xdae   :  { %v13798_v50 = vmul.f32 %v18650_v58, %v18648_v2 }
 0xdb0   :  { %13799 = vst [vmem:[#allocation5] sm:$0x3] %v13798_v50 }
 0xdb1   :  { %18772 = shalt.err (!%p18769_p4)
}
 0xdb2   :  { %s18773_s19 = scalar_lea.hbm %s22864_s9, 32 }
 0xdb3   :  { %p18774_p5 = scmp.ne.s32.totalorder %s22864_s9, %s18773_s19  ;;  %p18777_p6 = scmp.lt.u32.totalorder %s18773_s19, %s22864_s9 }
 0xdb5   :  { %p18779_p7 = pnand %p18777_p6, %p18774_p5 }
 0xdb7   :  { %18782 = shalt.err (!%p18779_p7)
}
 0xdb8   :  { %13809 = dma.vmem_to_hbm [thread:$0]  %s13807_s15, 32, %s22864_s9, [#allocation6]  }
 0xdb9   :  { %18783 = dma.done.wait [#allocation6], 32  }
 0xdba   :  { %18784 = vsyncadd [#allocation6], 4294967264 }
 0xdbb   :  { %13813 = vsyncpa [#allocation6], 1 }

</bundles_post_ra>
